<compile_context>
chip_gen: v5e
topology: v5e:2x2
jax: 0.10.0
libtpu: 0.0.40
codegen_flags: <defaults>
</compile_context>

<pallas_src>
import numpy as np
import jax
import jax.numpy as jnp
from jax.experimental import pallas as pl
from jax.experimental.pallas import tpu as pltpu

# ----------------------- static module configuration -----------------------
GRID_SIZE = (8, 16)                # patch grid -> N = 128 tokens (lane-dense on TPU)
N = int(np.prod(GRID_SIZE))
DILATION = 1
NUM_CONNECT = 2 * len(GRID_SIZE)   # default "2 * dimension" connectivity
ITERATION = 5                      # Newton-Schulz iterations
F32_TAIL_ITERS = 1                 # last iteration(s) in full f32 (tolerance guard)
ALPHA = 0.002
LOSS_RATE = 1.0                    # nn.Parameter(torch.ones([1]) * loss_rate)


def build_laplacian(grid_size, dilation=1):
    """Replicates Fuse.getAdj / getIdMat / getLap for num_connect == 2*dim.

    Host-side structural glue (the PyTorch module builds this with scipy coo_matrix)."""
    dims = len(grid_size)
    n = int(np.prod(grid_size))
    strides = [int(np.prod(grid_size[i + 1:])) for i in range(dims)]

    def dim_idx(idx):
        left, out = idx, []
        for s in strides:
            q = left // s
            out.append(q)
            left -= q * s
        return out

    def patch_idx(idxes):
        return int(sum(idxes[i] * strides[i] for i in range(dims)))

    adj = np.zeros((n, n), dtype=np.float64)
    for r in range(n):
        idxes = dim_idx(r)
        for axis in range(dims):
            for delta in (-dilation, dilation):
                cand = list(idxes)
                cand[axis] += delta
                if 0 <= cand[axis] < grid_size[axis]:
                    adj[r, patch_idx(cand)] = 1.0
    indeg = np.diag(adj.sum(axis=0))           # in-degree (column sums) on the diagonal
    return (indeg - adj).astype(np.float32)    # Laplacian = D - A


# ------------------------------- Pallas kernel ------------------------------
def fuse_kernel(lr_ref, sim_ref, lap_ref, o_ref):
    lr = lr_ref[0]                   # scalar loss_rate from SMEM
    sim = sim_ref[...]               # (TB, N, N) similarity block, f32
    lap = lap_ref[...]               # (N, N) graph Laplacian (shared across batch)

    # X = Laplacian * (lr * sim - 1), Laplacian broadcast over the batch block.
    x = lap[None, :, :] * (lr * sim - 1.0)

    # X^T is loop-invariant: materialize it ONCE per grid step (guarantees no
    # per-iteration XLU transposes inside the unrolled loop), and cast the bf16
    # copy ONCE so the convert is not re-emitted every iteration.
    xt = jnp.swapaxes(x, -1, -2)
    xt_bf = xt.astype(jnp.bfloat16)

    # Newton-Schulz in transposed form with 2I eliminated:
    #   W_0 = alpha*X,   W_{k+1} = 2*W_k - (W_k @ X^T) @ W_k,   out = W_final
    # (W_k = inv_k^T; identical to inv @ (2I - X @ inv) of the reference, so the
    #  epilogue is a plain store — no materialized transposes of the result.)
    w = jnp.float32(ALPHA) * x       # f32 carry throughout

    # Fast iterations: bf16 MXU operands, f32 accumulation.
    for _ in range(ITERATION - F32_TAIL_ITERS):      # static trip count -> unrolled
        w_bf = w.astype(jnp.bfloat16)
        p = jnp.einsum('bik,bkj->bij', w_bf, xt_bf,
                       preferred_element_type=jnp.float32)
        w = 2.0 * w - jnp.einsum('bij,bjk->bik', p.astype(jnp.bfloat16), w_bf,
                                 preferred_element_type=jnp.float32)

    # Tail iteration(s) in full f32: the final correction term is the largest
    # fraction of the output, so keeping it f32 protects the tolerance.
    for _ in range(F32_TAIL_ITERS):
        p = jnp.einsum('bik,bkj->bij', w, xt, preferred_element_type=jnp.float32)
        w = 2.0 * w - jnp.einsum('bij,bjk->bik', p, w,
                                 preferred_element_type=jnp.float32)

    o_ref[...] = w.astype(o_ref.dtype)


# --------------------------- generation-aware sizing -------------------------
def _tpu_config():
    """Per-generation sizing: (vmem_limit_bytes or None, in-kernel VMEM budget, TCs/chip)."""
    try:
        kind = jax.devices()[0].device_kind.lower()
    except Exception:
        kind = ""
    if "7x" in kind or "v7" in kind:
        # v7x: only 64 MiB physical VMEM per TensorCore, 2 TCs/chip -> cap well below 64 MiB.
        return 48 << 20, 26 << 20, 2
    if "v6" in kind or "v5" in kind:
        # v5e/v5p/v6e: 128 MiB physical VMEM, 1 TC. The 16/32 MiB scoped limit is only a
        # default — raise it explicitly instead of designing TB around it.
        return 64 << 20, 40 << 20, 1
    if "v4" in kind:
        return 64 << 20, 32 << 20, 2
    if "v2" in kind or "v3" in kind:
        return None, 8 << 20, 1
    # Unknown device (e.g. interpret mode): conservative sizing, assume 2 cores.
    return None, 12 << 20, 2


def _pick_batch_block(B, budget_bytes, num_cores):
    """Pick (TB, grid_steps) so pipelined buffers + in-kernel temps fit the VMEM budget."""
    bytes_per_mat = N * N * 4                       # 64 KiB per (128,128) f32
    # Peak per batch element: 2x double-buffered sim in + 2x out (auto pipelining)
    # + in-kernel temps (x, xt, w, p in f32; xt/w/p bf16 copies) ~= 9.5 mats.
    # Use 12 mats (~768 KiB) to leave headroom for Mosaic scratch / layout copies.
    per_elem = 12 * bytes_per_mat
    tb = max(1, min(B, budget_bytes // per_elem))
    steps = -(-B // tb)
    if num_cores > 1 and B >= num_cores:
        # Round the step count UP to a multiple of the TC count (v7x: 2) so no core
        # idles for a whole grid step; shrink TB accordingly.
        steps = max(num_cores, -(-steps // num_cores) * num_cores)
        tb = min(tb, -(-B // steps))
    return tb, steps


# --------------------------------- wrapper -----------------------------------
def fuse_forward(sim, lap, loss_rate, tb=None):
    B, n, _ = sim.shape
    assert n == N and sim.shape[-1] == sim.shape[-2]
    vmem_limit, budget, num_cores = _tpu_config()
    if tb is None:
        tb, steps = _pick_batch_block(B, budget, num_cores)
    else:
        steps = -(-B // tb)

    # Pad the batch so the (TB, N, N) BlockSpec never reads/writes out of range.
    b_pad = tb * steps
    sim_p = sim if b_pad == B else jnp.pad(sim, ((0, b_pad - B), (0, 0), (0, 0)))

    cost = pl.CostEstimate(
        flops=b_pad * ITERATION * 2 * 2 * (N ** 3),          # 2 matmuls / iter / elem
        transcendentals=0,
        bytes_accessed=2 * b_pad * N * N * 4 + N * N * 4 + 4,
    )

    compiler_kwargs = dict(dimension_semantics=("parallel",))
    if vmem_limit is not None:
        compiler_kwargs["vmem_limit_bytes"] = vmem_limit

    out = pl.pallas_call(
        fuse_kernel,
        out_shape=jax.ShapeDtypeStruct((b_pad, n, n), sim.dtype),
        grid_spec=pltpu.PrefetchScalarGridSpec(
            num_scalar_prefetch=0,
            grid=(steps,),
            in_specs=[
                pl.BlockSpec(memory_space=pltpu.MemorySpace.SMEM),   # loss_rate (1,)
                pl.BlockSpec((tb, n, n), lambda b: (b, 0, 0)),       # sim batch block
                pl.BlockSpec((n, n), lambda b: (0, 0)),              # Laplacian (resident)
            ],
            out_specs=pl.BlockSpec((tb, n, n), lambda b: (b, 0, 0)),
        ),
        compiler_params=pltpu.CompilerParams(**compiler_kwargs),
        cost_estimate=cost,
    )(loss_rate, sim_p, lap)

    return out[:B]


# ------------------------------- pure-JAX ref --------------------------------
def fuse_ref(sim, lap, loss_rate):
    x = lap[None, :, :] * (loss_rate[0] * sim - 1.0)
    eye = jnp.eye(N, dtype=x.dtype)
    inv = ALPHA * jnp.swapaxes(x, -1, -2)
    for _ in range(ITERATION):
        inv = inv @ (2.0 * eye - x @ inv)
    return jnp.swapaxes(inv, -1, -2)


if __name__ == "__main__":
    key = jax.random.PRNGKey(0)
    B = 8
    sim = jax.random.uniform(key, (B, N, N), dtype=jnp.float32)   # (B, N, N) similarities

    lap = jnp.asarray(build_laplacian(GRID_SIZE, DILATION))       # deterministic structural param
    loss_rate = jnp.ones((1,), dtype=jnp.float32) * LOSS_RATE     # deterministic learnable param

    out = fuse_forward(sim, lap, loss_rate)
    out = jax.block_until_ready(out)

    ref = fuse_ref(sim, lap, loss_rate)
    # bf16 MXU operands (f32 accumulation) are used for the first 4 Newton-Schulz iterations,
    # the final iteration stays full f32; expected max error is well inside rtol=1e-3, with a
    # small atol headroom (1e-4 -> 2e-4) for the largest-magnitude diagonal entries.
    np.testing.assert_allclose(np.asarray(out), np.asarray(ref), rtol=1e-3, atol=2e-4)

    print("KERNEL_OK")
</pallas_src>

<mosaic_0001>
module attributes {stable_mosaic.version = 11 : i64} {
  func.func @fuse_kernel(%arg0: i32, %arg1: memref<1xf32, #tpu.memory_space<smem>>, %arg2: memref<4x128x128xf32, #tpu.memory_space<vmem>>, %arg3: memref<128x128xf32, #tpu.memory_space<vmem>>, %arg4: memref<4x128x128xf32, #tpu.memory_space<vmem>>) attributes {dimension_semantics = [#tpu.dimension_semantics<parallel>], iteration_bounds = array<i64: 2>, scalar_prefetch = 0 : i64, scratch_operands = 0 : i64, tpu.core_type = #tpu.core_type<tc>, window_params = [{transform_indices = @transform_0, window_bounds = array<i64: 1>}, {transform_indices = @transform_1, window_bounds = array<i64: 4, 128, 128>}, {pipeline_mode = #tpu.pipeline_mode<synchronous>, transform_indices = @transform_2, window_bounds = array<i64: 128, 128>}, {transform_indices = @transform_3, window_bounds = array<i64: 4, 128, 128>}]} {
    %c0 = arith.constant 0 : index
    %0 = memref.load %arg1[%c0] : memref<1xf32, #tpu.memory_space<smem>>
    %c0_0 = arith.constant 0 : index
    %c0_1 = arith.constant 0 : index
    %c0_2 = arith.constant 0 : index
    %1 = vector.load %arg2[%c0_0, %c0_1, %c0_2] : memref<4x128x128xf32, #tpu.memory_space<vmem>>, vector<4x128x128xf32>
    %c0_3 = arith.constant 0 : index
    %c0_4 = arith.constant 0 : index
    %2 = vector.load %arg3[%c0_3, %c0_4] : memref<128x128xf32, #tpu.memory_space<vmem>>, vector<128x128xf32>
    %3 = vector.shape_cast %2 : vector<128x128xf32> to vector<1x128x128xf32>
    %4 = vector.broadcast %0 : f32 to vector<4x128x128xf32>
    %5 = arith.mulf %4, %1 : vector<4x128x128xf32>
    %cst = arith.constant 1.000000e+00 : f32
    %6 = vector.broadcast %cst : f32 to vector<4x128x128xf32>
    %7 = arith.subf %5, %6 : vector<4x128x128xf32>
    %8 = vector.broadcast %3 : vector<1x128x128xf32> to vector<4x128x128xf32>
    %9 = arith.mulf %8, %7 : vector<4x128x128xf32>
    %10 = tpu.transpose %9, [0, 2, 1] : vector<4x128x128xf32> -> vector<4x128x128xf32>
    %11 = arith.truncf %10 : vector<4x128x128xf32> to vector<4x128x128xbf16>
    %cst_5 = arith.constant 2.000000e-03 : f32
    %12 = vector.broadcast %cst_5 : f32 to vector<4x128x128xf32>
    %13 = arith.mulf %12, %9 : vector<4x128x128xf32>
    %14 = arith.truncf %13 : vector<4x128x128xf32> to vector<4x128x128xbf16>
    "tpu.trace_start"() <{level = 10 : i32, message = "bik,bkj->bij"}> : () -> ()
    %cst_6 = arith.constant dense<0.000000e+00> : vector<4x128x128xf32>
    %15 = tpu.matmul %14, %11, %cst_6 {dimension_numbers = #tpu.dot_dimension_numbers<[2], [1], [1], [2], [0, 0, 0, 1, 1, 2], [0], [0]>} : vector<4x128x128xbf16>, vector<4x128x128xbf16>, vector<4x128x128xf32> -> vector<4x128x128xf32>
    "tpu.trace_stop"() : () -> ()
    %cst_7 = arith.constant 2.000000e+00 : f32
    %16 = vector.broadcast %cst_7 : f32 to vector<4x128x128xf32>
    %17 = arith.mulf %16, %13 : vector<4x128x128xf32>
    %18 = arith.truncf %15 : vector<4x128x128xf32> to vector<4x128x128xbf16>
    "tpu.trace_start"() <{level = 10 : i32, message = "bij,bjk->bik"}> : () -> ()
    %cst_8 = arith.constant dense<0.000000e+00> : vector<4x128x128xf32>
    %19 = tpu.matmul %18, %14, %cst_8 {dimension_numbers = #tpu.dot_dimension_numbers<[2], [1], [1], [2], [0, 0, 0, 1, 1, 2], [0], [0]>} : vector<4x128x128xbf16>, vector<4x128x128xbf16>, vector<4x128x128xf32> -> vector<4x128x128xf32>
    "tpu.trace_stop"() : () -> ()
    %20 = arith.subf %17, %19 : vector<4x128x128xf32>
    %21 = arith.truncf %20 : vector<4x128x128xf32> to vector<4x128x128xbf16>
    "tpu.trace_start"() <{level = 10 : i32, message = "bik,bkj->bij"}> : () -> ()
    %cst_9 = arith.constant dense<0.000000e+00> : vector<4x128x128xf32>
    %22 = tpu.matmul %21, %11, %cst_9 {dimension_numbers = #tpu.dot_dimension_numbers<[2], [1], [1], [2], [0, 0, 0, 1, 1, 2], [0], [0]>} : vector<4x128x128xbf16>, vector<4x128x128xbf16>, vector<4x128x128xf32> -> vector<4x128x128xf32>
    "tpu.trace_stop"() : () -> ()
    %cst_10 = arith.constant 2.000000e+00 : f32
    %23 = vector.broadcast %cst_10 : f32 to vector<4x128x128xf32>
    %24 = arith.mulf %23, %20 : vector<4x128x128xf32>
    %25 = arith.truncf %22 : vector<4x128x128xf32> to vector<4x128x128xbf16>
    "tpu.trace_start"() <{level = 10 : i32, message = "bij,bjk->bik"}> : () -> ()
    %cst_11 = arith.constant dense<0.000000e+00> : vector<4x128x128xf32>
    %26 = tpu.matmul %25, %21, %cst_11 {dimension_numbers = #tpu.dot_dimension_numbers<[2], [1], [1], [2], [0, 0, 0, 1, 1, 2], [0], [0]>} : vector<4x128x128xbf16>, vector<4x128x128xbf16>, vector<4x128x128xf32> -> vector<4x128x128xf32>
    "tpu.trace_stop"() : () -> ()
    %27 = arith.subf %24, %26 : vector<4x128x128xf32>
    %28 = arith.truncf %27 : vector<4x128x128xf32> to vector<4x128x128xbf16>
    "tpu.trace_start"() <{level = 10 : i32, message = "bik,bkj->bij"}> : () -> ()
    %cst_12 = arith.constant dense<0.000000e+00> : vector<4x128x128xf32>
    %29 = tpu.matmul %28, %11, %cst_12 {dimension_numbers = #tpu.dot_dimension_numbers<[2], [1], [1], [2], [0, 0, 0, 1, 1, 2], [0], [0]>} : vector<4x128x128xbf16>, vector<4x128x128xbf16>, vector<4x128x128xf32> -> vector<4x128x128xf32>
    "tpu.trace_stop"() : () -> ()
    %cst_13 = arith.constant 2.000000e+00 : f32
    %30 = vector.broadcast %cst_13 : f32 to vector<4x128x128xf32>
    %31 = arith.mulf %30, %27 : vector<4x128x128xf32>
    %32 = arith.truncf %29 : vector<4x128x128xf32> to vector<4x128x128xbf16>
    "tpu.trace_start"() <{level = 10 : i32, message = "bij,bjk->bik"}> : () -> ()
    %cst_14 = arith.constant dense<0.000000e+00> : vector<4x128x128xf32>
    %33 = tpu.matmul %32, %28, %cst_14 {dimension_numbers = #tpu.dot_dimension_numbers<[2], [1], [1], [2], [0, 0, 0, 1, 1, 2], [0], [0]>} : vector<4x128x128xbf16>, vector<4x128x128xbf16>, vector<4x128x128xf32> -> vector<4x128x128xf32>
    "tpu.trace_stop"() : () -> ()
    %34 = arith.subf %31, %33 : vector<4x128x128xf32>
    %35 = arith.truncf %34 : vector<4x128x128xf32> to vector<4x128x128xbf16>
    "tpu.trace_start"() <{level = 10 : i32, message = "bik,bkj->bij"}> : () -> ()
    %cst_15 = arith.constant dense<0.000000e+00> : vector<4x128x128xf32>
    %36 = tpu.matmul %35, %11, %cst_15 {dimension_numbers = #tpu.dot_dimension_numbers<[2], [1], [1], [2], [0, 0, 0, 1, 1, 2], [0], [0]>} : vector<4x128x128xbf16>, vector<4x128x128xbf16>, vector<4x128x128xf32> -> vector<4x128x128xf32>
    "tpu.trace_stop"() : () -> ()
    %cst_16 = arith.constant 2.000000e+00 : f32
    %37 = vector.broadcast %cst_16 : f32 to vector<4x128x128xf32>
    %38 = arith.mulf %37, %34 : vector<4x128x128xf32>
    %39 = arith.truncf %36 : vector<4x128x128xf32> to vector<4x128x128xbf16>
    "tpu.trace_start"() <{level = 10 : i32, message = "bij,bjk->bik"}> : () -> ()
    %cst_17 = arith.constant dense<0.000000e+00> : vector<4x128x128xf32>
    %40 = tpu.matmul %39, %35, %cst_17 {dimension_numbers = #tpu.dot_dimension_numbers<[2], [1], [1], [2], [0, 0, 0, 1, 1, 2], [0], [0]>} : vector<4x128x128xbf16>, vector<4x128x128xbf16>, vector<4x128x128xf32> -> vector<4x128x128xf32>
    "tpu.trace_stop"() : () -> ()
    %41 = arith.subf %38, %40 : vector<4x128x128xf32>
    "tpu.trace_start"() <{level = 10 : i32, message = "bik,bkj->bij"}> : () -> ()
    %cst_18 = arith.constant dense<0.000000e+00> : vector<4x128x128xf32>
    %42 = tpu.matmul %41, %10, %cst_18 {dimension_numbers = #tpu.dot_dimension_numbers<[2], [1], [1], [2], [0, 0, 0, 1, 1, 2], [0], [0]>} : vector<4x128x128xf32>, vector<4x128x128xf32>, vector<4x128x128xf32> -> vector<4x128x128xf32>
    "tpu.trace_stop"() : () -> ()
    %cst_19 = arith.constant 2.000000e+00 : f32
    %43 = vector.broadcast %cst_19 : f32 to vector<4x128x128xf32>
    %44 = arith.mulf %43, %41 : vector<4x128x128xf32>
    "tpu.trace_start"() <{level = 10 : i32, message = "bij,bjk->bik"}> : () -> ()
    %cst_20 = arith.constant dense<0.000000e+00> : vector<4x128x128xf32>
    %45 = tpu.matmul %42, %41, %cst_20 {dimension_numbers = #tpu.dot_dimension_numbers<[2], [1], [1], [2], [0, 0, 0, 1, 1, 2], [0], [0]>} : vector<4x128x128xf32>, vector<4x128x128xf32>, vector<4x128x128xf32> -> vector<4x128x128xf32>
    "tpu.trace_stop"() : () -> ()
    %46 = arith.subf %44, %45 : vector<4x128x128xf32>
    %c0_21 = arith.constant 0 : index
    %c0_22 = arith.constant 0 : index
    %c0_23 = arith.constant 0 : index
    %47 = vector.load %arg4[%c0_21, %c0_22, %c0_23] : memref<4x128x128xf32, #tpu.memory_space<vmem>>, vector<4x128x128xf32>
    tpu.vector_store %arg4[%c0_21, %c0_22, %c0_23], %46 {strides = array<i32>} : memref<4x128x128xf32, #tpu.memory_space<vmem>>, vector<4x128x128xf32>,
    return
  }
  func.func @transform_0(%arg0: i32) -> i32 {
    %c0_i32 = arith.constant 0 : i32
    %c0_i32_0 = arith.constant 0 : i32
    return %c0_i32 : i32
  }
  func.func @transform_1(%arg0: i32) -> (i32, i32, i32) {
    %c0_i32 = arith.constant 0 : i32
    %c0_i32_0 = arith.constant 0 : i32
    %c0_i32_1 = arith.constant 0 : i32
    return %arg0, %c0_i32, %c0_i32_0 : i32, i32, i32
  }
  func.func @transform_2(%arg0: i32) -> (i32, i32) {
    %c0_i32 = arith.constant 0 : i32
    %c0_i32_0 = arith.constant 0 : i32
    %c0_i32_1 = arith.constant 0 : i32
    return %c0_i32, %c0_i32_0 : i32, i32
  }
  func.func @transform_3(%arg0: i32) -> (i32, i32, i32) {
    %c0_i32 = arith.constant 0 : i32
    %c0_i32_0 = arith.constant 0 : i32
    %c0_i32_1 = arith.constant 0 : i32
    return %arg0, %c0_i32, %c0_i32_0 : i32, i32, i32
  }
}

</mosaic_0001>

<bundles_post_ra>
// kernel: tpu_custom_call.1
= control target key start
LH: loop header
LB: loop body
LE: loop exit
PB: predicated region body
PF: predicated region fallthrough
CT: control target
= control target key end

     0   :  { %s9650_s0 = inlined_call_operand.<no memory space> [shape: f32[1], index: 0, kind: input, shape index: {}]   ;;  %s9651_s1 = inlined_call_operand.hbm [shape: f32[8,128,128], index: 1, kind: input, shape index: {}]   ;;  %s9652_s2 = inlined_call_operand.hbm [shape: f32[128,128], index: 2, kind: input, shape index: {}]   ;;  %s9653_s3 = inlined_call_operand.hbm [shape: f32[8,128,128], index: 3, kind: output, shape index: {}]  }
   0x1   :  { %8 = sst [smem:[#allocation2]] %s9650_s0 }
   0x2   :  { %9 = vsyncpa [#allocation4], 0 }
   0x3   :  { %11 = vsyncpa [#allocation4 + $0x1], 0 }
   0x4   :  { %12 = vsyncpa [#allocation7], 0 }
   0x5   :  { %13 = vsyncpa [#allocation5], 0 }
   0x6   :  { %15 = vsyncpa [#allocation5 + $0x1], 0  ;;  %s6405_s14 = smov 0   ;;  %s6407_s15 = smov 0  }
   0x7   :  { %s6409_s16 = smov 0   ;;  %s6411_s17 = smov 0  }
   0x8 LB: > { %s6426_s0 = sadd.s32 4294967295, %s6375_s17   ;;  %s5874_s18 = sadd.s32 4294967294, %s6375_s17   ;;  %s6375_s17 = sphi %s6411_s17, %s10868_s17   ;;  %s6371_s16 = sphi %s6409_s16, %s10867_s16   ;;  %s6367_s15 = sphi %s6407_s15, %s10866_s15   ;;  %s6363_s14 = sphi %s6405_s14, %s10865_s14  }
   0x9   : > { %p62_p0 = scmp.ne.s32.totalorder %s6367_s15, %s6363_s14  ;;  %p63_p1 = scmp.eq.s32.totalorder %s6426_s0, 0 }
   0xa   : > { %p107_p2 = scmp.eq.s32.totalorder %s6426_s0, 1  ;;  %p113_p3 = scmp.eq.s32.totalorder %s5874_s18, 1 }
   0xb   : > { %p6435_p4 = por %p63_p1, %p62_p0  ;;  %p5875_p5 = scmp.ge.s32.totalorder %s6375_s17, 1 }
   0xc   : > { %p6440_p6 = por %p113_p3, %p62_p0  ;;  %p120_p7 = scmp.lt.s32.totalorder %s6375_s17, 3 }
   0xd   : > { %s134_s23 = sshll.u32 %s9652_s2, 4  ;;  %s6377_s25 = smov [#allocation6]   ;;  %s135_s23 = int_to_ptr.hbm [resolvable:$true] %s134_s23 }
   0xe   : > { %p6448_p8 = pnand %p5875_p5, %p120_p7  ;;  %s136_s26 = sshll.u32 %s6377_s25, 4  ;;  %s137_s26 = int_to_ptr.vmem [resolvable:$true] %s136_s26 }
   0xf   : > { %s6458_s27 = sadd.s32 1, %s6375_s17   ;;  %s6378_s28 = smov 128  }
  0x10   : > { %p5968_p9 = pneg %p6448_p8  ;;  %s6379_s29 = smov 8  }
  0x11   : > { %s46_s30 = ssub.s32 %s6375_s17, %s6458_s27  ;;  %s49_s4 = sadd.s32 1, %s6371_s16 }
  0x12   : > { %p5969_p10 = pnand %p5968_p9, %p63_p1  ;;  %p47_p12 = scmp.eq.s32.totalorder %s46_s30, 0 }
  0x13   : > { %p56_p13 = scmp.ne.s32.totalorder %s6371_s16, %s6367_s15  ;;  %p57_p0 = scmp.eq.s32.totalorder %s6375_s17, 0 }
  0x14   : > { %5971 = dma.hbm_to_vmem [thread:$0]  (!%p5969_p10), %s135_s23, 2048, %s137_s26, [#allocation7], %s6378_s28, %s6378_s28, %s6379_s29  }
  0x15   : > { %s6470_s5 = scalar_select %p47_p12, %s6371_s16, %s49_s4  }
  0x16   : > { %p6474_p3 = por %p107_p2, %p56_p13  ;;  %p5981_p5 = scmp.lt.s32.totalorder %s6375_s17, 2 }
  0x17   : > { %s150_s7 = sand.u32 1, %s6371_s16   ;;  %s5957_s8 = sshll.u32 %s6375_s17, 9 }
  0x18   : > { %p58_p7 = por %p57_p0, %p56_p13  ;;  %s5878_s9 = sshll.u32 %s150_s7, 9 }
  0x19   : > { %s160_s12 = scalar_lea.hbm %s9651_s1, %s5957_s8  ;;  %s154_s18 = scalar_lea.vmem [#allocation3], %s5878_s9 }
  0x1a   : > { %s161_s13 = sshll.u32 %s160_s12, 4  ;;  %s163_s21 = sshll.u32 %s154_s18, 4  ;;  %s162_s13 = int_to_ptr.hbm [resolvable:$true] %s161_s13  ;;  %s164_s21 = int_to_ptr.vmem [resolvable:$true] %s163_s21 }
  0x1b   : > { %p6484_p9 = pnand %p5981_p5, %p58_p7  ;;  %s151_s23 = scalar_lea.sflag [#allocation4], %s150_s7 }
  0x1c   : > { %s6275_s25 = sshra.s32 %s162_s13, 4  ;;  %s6282_s8 = scalar_lea.hbm %s9651_s1, 1024  ;;  %s6276_s25 = int_to_ptr.hbm [resolvable:$true] %s6275_s25 }
  0x1d   : > { %s6277_s26 = scalar_lea.hbm %s6276_s25, 512  ;;  %p6279_p10 = pneg %p6484_p9 }
  0x1e   : > { %p6278_p2 = scmp.ne.s32.totalorder %s6276_s25, %s6277_s26  ;;  %p6283_p0 = scmp.lt.s32.totalorder %s6276_s25, %s9651_s1 }
  0x1f   : > { %p6284_p5 = scmp.lt.s32.totalorder %s6282_s8, %s6277_s26 }
  0x20   : > { %p6280_p12 = pnand %p6279_p10, %p6278_p2 }
  0x21   : > { %p6285_p7 = por %p6284_p5, %p6283_p0 }
  0x22   : > { %p6281_p13 = pneg %p6280_p12 }
  0x24   : > { %p6286_p11 = pnand %p6285_p7, %p6281_p13 }
  0x26   : > { %6289 = shalt.err (!%p6286_p11)
}
  0x27   : > { %5975 = dma.hbm_to_vmem [thread:$0]  (!%p6484_p9), %s162_s13, 8192, %s164_s21, %s151_s23, %s6378_s28, %s6378_s28, %s6379_s29  }
  0x28   : > { %175 = sbr.rel (%p6448_p8) target bundleno = 1998 (0x7ce), region = 32 }
  0x2d   : > { %s6504_s7 = sand.u32 1, %s6367_s15  }
  0x2e   : > { %s5883_s11 = sshll.u32 %s6504_s7, 9  ;;  %s178_s12 = scalar_lea.sflag [#allocation4], %s6504_s7 }
  0x2f   : > { %s6510_s18 = scalar_lea.vmem [#allocation3], %s5883_s11 }
  0x30   : > { %6350 = dma.done.wait (%p6435_p4), %s178_s12, 8192  }
  0x31   : > { %6352 = vsyncadd (%p6435_p4), %s178_s12, 4294959104 }
  0x32   : > { %6354 = dma.done.wait (%p63_p1), [#allocation7], 2048  }
  0x33   : > { %6356 = vsyncadd (%p63_p1), [#allocation7], 4294965248  ;;  %s212_s24 = sld [smem:[#allocation2]]  ;;  %v245_v0 = vld [vmem:[%s6510_s18 + $0x100] sm:$0xff]  ;;  %v246_v7 = vld [vmem:[%s6510_s18 + $0x108] sm:$0xff]  ;;  %s9488_s19 = scalar_lea.vmem [#allocation8], %s5883_s11 }
  0x34   : > { %v261_v1 = vld [vmem:[%s6510_s18 + $0x180] sm:$0xff]  ;;  %v262_v11 = vld [vmem:[%s6510_s18 + $0x188] sm:$0xff]  ;;  %v247_v31 = vld [vmem:[%s6510_s18 + $0x110] sm:$0xff]  ;;  %s5959_s28 = sshll.u32 %s6426_s0, 9  ;;  %s5788_s22 = sshll.u32 %s9488_s19, 4  ;;  %s5789_s22 = int_to_ptr.vmem [resolvable:$true] %s5788_s22 }
  0x35   : > { %v213_v5 = vld [vmem:[%s6510_s18] sm:$0xff]  ;;  %v214_v13 = vld [vmem:[%s6510_s18 + $0x8] sm:$0xff]  ;;  %v263_v33 = vld [vmem:[%s6510_s18 + $0x190] sm:$0xff]  ;;  %s5787_s21 = scalar_lea.hbm %s9653_s3, %s5959_s28  ;;  %s5775_s0 = scalar_lea.sflag [#allocation5], %s6504_s7 }
  0x36   : > { %v229_v6 = vld [vmem:[%s6510_s18 + $0x80] sm:$0xff]  ;;  %v230_v17 = vld [vmem:[%s6510_s18 + $0x88] sm:$0xff]  ;;  %v215_v34 = vld [vmem:[%s6510_s18 + $0x10] sm:$0xff]  ;;  %s5790_s23 = sshll.u32 %s5787_s21, 4  ;;  %s6325_s8 = scalar_lea.hbm %s9653_s3, 1024  ;;  %s5791_s23 = int_to_ptr.hbm [resolvable:$true] %s5790_s23 }
  0x37   : > { %v277_v8 = vld [vmem:[#allocation6] sm:$0xff]  ;;  %v278_v29 = vld [vmem:[#allocation6 + $0x8] sm:$0xff]  ;;  %v231_v35 = vld [vmem:[%s6510_s18 + $0x90] sm:$0xff]  ;;  %s6319_s25 = sshra.s32 %s5791_s23, 4  ;;  %s6320_s25 = int_to_ptr.hbm [resolvable:$true] %s6319_s25 }
  0x38   : > { %v279_v49 = vld [vmem:[#allocation6 + $0x10] sm:$0xff]  ;;  %v248_v52 = vld [vmem:[%s6510_s18 + $0x118] sm:$0xff]  ;;  %s6321_s26 = scalar_lea.hbm %s6320_s25, 512  ;;  %p6326_p11 = scmp.lt.s32.totalorder %s6320_s25, %s9653_s3 }
  0x39   : > { %v6522_v2 = vstv %s212_s24  ;;  %v264_v53 = vld [vmem:[%s6510_s18 + $0x198] sm:$0xff]  ;;  %p6322_p1 = scmp.ne.s32.totalorder %s6320_s25, %s6321_s26  ;;  %p6327_p9 = scmp.lt.s32.totalorder %s6325_s8, %s6321_s26 }
  0x3a   : > { %v326_v3 = vmul.f32 %v6522_v2, %v245_v0  ;;  %v342_v4 = vmul.f32 %v6522_v2, %v261_v1  ;;  %v294_v9 = vmul.f32 %v6522_v2, %v213_v5  ;;  %v310_v10 = vmul.f32 %v6522_v2, %v229_v6  ;;  %v216_v54 = vld [vmem:[%s6510_s18 + $0x18] sm:$0xff] }
  0x3b   : > { %v327_v12 = vmul.f32 %v6522_v2, %v246_v7  ;;  %v343_v16 = vmul.f32 %v6522_v2, %v262_v11  ;;  %v295_v18 = vmul.f32 %v6522_v2, %v214_v13  ;;  %v311_v22 = vmul.f32 %v6522_v2, %v230_v17  ;;  %v232_v55 = vld [vmem:[%s6510_s18 + $0x98] sm:$0xff]  ;;  %v233_v11 = vld [vmem:[%s6510_s18 + $0xa0] sm:$0xff]  ;;  %p6323_p4 = pnand %p6322_p1, %p6474_p3  ;;  %p6328_p2 = por %p6327_p9, %p6326_p11 }
  0x3c   : > { %v5918_v14 = vadd.f32 -1.0, %v326_v3  ;;  %v5934_v15 = vadd.f32 -1.0, %v342_v4  ;;  %v5886_v19 = vadd.f32 -1.0, %v294_v9  ;;  %v5902_v20 = vadd.f32 -1.0, %v310_v10  ;;  %v280_v5 = vld [vmem:[#allocation6 + $0x18] sm:$0xff]  ;;  %v265_v9 = vld [vmem:[%s6510_s18 + $0x1a0] sm:$0xff] }
  0x3d   : > { %v5919_v21 = vadd.f32 -1.0, %v327_v12  ;;  %v5935_v25 = vadd.f32 -1.0, %v343_v16  ;;  %v5887_v26 = vadd.f32 -1.0, %v295_v18  ;;  %v5903_v30 = vadd.f32 -1.0, %v311_v22  ;;  %v217_v10 = vld [vmem:[%s6510_s18 + $0x20] sm:$0xff]  ;;  %p6324_p8 = pneg %p6323_p4 }
  0x3e   : > { %v6538_v23 = vmul.f32 %v5918_v14, %v277_v8  ;;  %v6540_v24 = vmul.f32 %v5934_v15, %v277_v8  ;;  %v6542_v27 = vmul.f32 %v5886_v19, %v277_v8  ;;  %v6544_v28 = vmul.f32 %v5902_v20, %v277_v8  ;;  %v249_v8 = vld [vmem:[%s6510_s18 + $0x120] sm:$0xff] }
  0x3f   : > { %v6554_v37 = vmul.f32 %v5919_v21, %v278_v29  ;;  %v6556_v38 = vmul.f32 %v5935_v25, %v278_v29  ;;  %v6558_v39 = vmul.f32 %v5887_v26, %v278_v29  ;;  %v6560_v40 = vmul.f32 %v5903_v30, %v278_v29  ;;  %v281_v26 = vld [vmem:[#allocation6 + $0x20] sm:$0xff]  ;;  %p6329_p10 = pnand %p6328_p2, %p6324_p8 }
  0x40   : > { %v6021_v32 = vpack.i.bf16 %v6540_v24, %v6538_v23  ;;  %v6133_v36 = vpack.i.bf16 %v6544_v28, %v6542_v27  ;;  %v328_v41 = vmul.f32 %v6522_v2, %v247_v31  ;;  %v344_v42 = vmul.f32 %v6522_v2, %v263_v33  ;;  %v250_v31 = vld [vmem:[%s6510_s18 + $0x128] sm:$0xff] }
  0x41   : > { %v296_v43 = vmul.f32 %v6522_v2, %v215_v34  ;;  %v312_v44 = vmul.f32 %v6522_v2, %v231_v35  ;;  %v6023_v45 = vpack.i.bf16 %v6556_v38, %v6554_v37  ;;  %v6135_v48 = vpack.i.bf16 %v6560_v40, %v6558_v39  ;;  %v218_v33 = vld [vmem:[%s6510_s18 + $0x28] sm:$0xff] }
  0x42   : > { %6022 = vxpose.xlu0.b32.start [1/16] %v6021_v32, 128  ;;  %6134 = vxpose.xlu1.b32.start [1/16] %v6133_v36, 128  ;;  %v5920_v46 = vadd.f32 -1.0, %v328_v41  ;;  %v5936_v47 = vadd.f32 -1.0, %v344_v42  ;;  %v329_v58 = vmul.f32 %v6522_v2, %v248_v52  ;;  %v345_v59 = vmul.f32 %v6522_v2, %v264_v53  ;;  %v266_v32 = vld [vmem:[%s6510_s18 + $0x1a8] sm:$0xff] }
  0x43   : > { %v5888_v50 = vadd.f32 -1.0, %v296_v43  ;;  %v5904_v51 = vadd.f32 -1.0, %v312_v44  ;;  %v297_v62 = vmul.f32 %v6522_v2, %v216_v54  ;;  %v313_v63 = vmul.f32 %v6522_v2, %v232_v55  ;;  %v234_v34 = vld [vmem:[%s6510_s18 + $0xa8] sm:$0xff]  ;;  %v251_v54 = vld [vmem:[%s6510_s18 + $0x130] sm:$0xff] }
  0x44   : > { %v6574_v56 = vmul.f32 %v5920_v46, %v279_v49  ;;  %v6576_v57 = vmul.f32 %v5936_v47, %v279_v49  ;;  %v5921_v1 = vadd.f32 -1.0, %v329_v58  ;;  %v5937_v3 = vadd.f32 -1.0, %v345_v59  ;;  %v267_v55 = vld [vmem:[%s6510_s18 + $0x1b0] sm:$0xff] }
  0x45   : > { %v6580_v60 = vmul.f32 %v5888_v50, %v279_v49  ;;  %v6582_v61 = vmul.f32 %v5904_v51, %v279_v49  ;;  %v5889_v6 = vadd.f32 -1.0, %v297_v62  ;;  %v5905_v7 = vadd.f32 -1.0, %v313_v63  ;;  %v282_v51 = vld [vmem:[#allocation6 + $0x28] sm:$0xff]  ;;  %v219_v58 = vld [vmem:[%s6510_s18 + $0x30] sm:$0xff] }
  0x46   : > { %v6025_v0 = vpack.i.bf16 %v6576_v57, %v6574_v56  ;;  %v6594_v12 = vmul.f32 %v5921_v1, %v280_v5  ;;  %v6596_v13 = vmul.f32 %v5937_v3, %v280_v5  ;;  %v330_v14 = vmul.f32 %v6522_v2, %v249_v8  ;;  %v235_v59 = vld [vmem:[%s6510_s18 + $0xb0] sm:$0xff] }
  0x47   : > { %v6137_v4 = vpack.i.bf16 %v6582_v61, %v6580_v60  ;;  %v346_v15 = vmul.f32 %v6522_v2, %v265_v9  ;;  %v6600_v16 = vmul.f32 %v5889_v6, %v280_v5  ;;  %v6602_v17 = vmul.f32 %v5905_v7, %v280_v5 }
  0x48   : > { %v298_v18 = vmul.f32 %v6522_v2, %v217_v10  ;;  %v314_v19 = vmul.f32 %v6522_v2, %v233_v11  ;;  %v6027_v20 = vpack.i.bf16 %v6596_v13, %v6594_v12  ;;  %v5922_v21 = vadd.f32 -1.0, %v330_v14  ;;  %v283_v11 = vld [vmem:[#allocation6 + $0x30] sm:$0xff] }
  0x49   : > { %v5938_v22 = vadd.f32 -1.0, %v346_v15  ;;  %v6139_v25 = vpack.i.bf16 %v6602_v17, %v6600_v16  ;;  %v331_v41 = vmul.f32 %v6522_v2, %v250_v31  ;;  %v347_v42 = vmul.f32 %v6522_v2, %v266_v32 }
  0x4a   : > { %6024 = vxpose.xlu0.b32.cont [2/16] %v6023_v45, 128  ;;  %6136 = vxpose.xlu1.b32.cont [2/16] %v6135_v48, 128  ;;  %v5890_v29 = vadd.f32 -1.0, %v298_v18  ;;  %v5906_v30 = vadd.f32 -1.0, %v314_v19  ;;  %v6614_v35 = vmul.f32 %v5922_v21, %v281_v26  ;;  %v299_v45 = vmul.f32 %v6522_v2, %v218_v33  ;;  %v252_v18 = vld [vmem:[%s6510_s18 + $0x138] sm:$0xff] }
  0x4b   : > { %v6616_v36 = vmul.f32 %v5938_v22, %v281_v26  ;;  %v315_v46 = vmul.f32 %v6522_v2, %v234_v34  ;;  %v5923_v48 = vadd.f32 -1.0, %v331_v41  ;;  %v5939_v49 = vadd.f32 -1.0, %v347_v42  ;;  %v268_v19 = vld [vmem:[%s6510_s18 + $0x1b8] sm:$0xff] }
  0x4c   : > { %v6620_v43 = vmul.f32 %v5890_v29, %v281_v26  ;;  %v6622_v44 = vmul.f32 %v5906_v30, %v281_v26  ;;  %v5891_v52 = vadd.f32 -1.0, %v299_v45  ;;  %v348_v1 = vmul.f32 %v6522_v2, %v267_v55  ;;  %v236_v21 = vld [vmem:[%s6510_s18 + $0xb8] sm:$0xff] }
  0x4d   : > { %v6029_v47 = vpack.i.bf16 %v6616_v36, %v6614_v35  ;;  %v5907_v53 = vadd.f32 -1.0, %v315_v46  ;;  %v6634_v62 = vmul.f32 %v5923_v48, %v282_v51  ;;  %v6636_v63 = vmul.f32 %v5939_v49, %v282_v51  ;;  %v284_v46 = vld [vmem:[#allocation6 + $0x38] sm:$0xff]  ;;  %v253_v49 = vld [vmem:[%s6510_s18 + $0x140] sm:$0xff] }
  0x4e   : > { %v6141_v50 = vpack.i.bf16 %v6622_v44, %v6620_v43  ;;  %v6640_v3 = vmul.f32 %v5891_v52, %v282_v51  ;;  %v300_v5 = vmul.f32 %v6522_v2, %v219_v58  ;;  %v316_v6 = vmul.f32 %v6522_v2, %v235_v59  ;;  %v237_v52 = vld [vmem:[%s6510_s18 + $0xc0] sm:$0xff] }
  0x4f   : > { %v6031_v7 = vpack.i.bf16 %v6636_v63, %v6634_v62  ;;  %v5940_v9 = vadd.f32 -1.0, %v348_v1  ;;  %v333_v26 = vmul.f32 %v6522_v2, %v252_v18  ;;  %v349_v29 = vmul.f32 %v6522_v2, %v268_v19  ;;  %v270_v18 = vld [vmem:[%s6510_s18 + $0x1c8] sm:$0xff] }
  0x50   : > { %10042 = vst [vmem:[#allocation12_spill] sm:$0xff] %v6640_v3  ;;  %v5892_v14 = vadd.f32 -1.0, %v300_v5  ;;  %v5908_v15 = vadd.f32 -1.0, %v316_v6  ;;  %v317_v33 = vmul.f32 %v6522_v2, %v236_v21  ;;  %v334_v55 = vmul.f32 %v6522_v2, %v253_v49  ;;  %v222_v19 = vld [vmem:[%s6510_s18 + $0x48] sm:$0xff] }
  0x51   : > { %v5925_v41 = vadd.f32 -1.0, %v333_v26  ;;  %v5941_v42 = vadd.f32 -1.0, %v349_v29  ;;  %v318_v5 = vmul.f32 %v6522_v2, %v237_v52  ;;  %v286_v49 = vld [vmem:[#allocation6 + $0x48] sm:$0xff]  ;;  %v255_v52 = vld [vmem:[%s6510_s18 + $0x150] sm:$0xff] }
  0x52   : > { %6026 = vxpose.xlu0.b32.cont [3/16] %v6025_v0, 128  ;;  %6138 = vxpose.xlu1.b32.cont [3/16] %v6137_v4, 128  ;;  %v332_v0 = vmul.f32 %v6522_v2, %v251_v54  ;;  %v6642_v4 = vmul.f32 %v5907_v53, %v282_v51  ;;  %v6660_v30 = vmul.f32 %v5892_v14, %v283_v11  ;;  %v5909_v48 = vadd.f32 -1.0, %v317_v33  ;;  %v221_v51 = vld [vmem:[%s6510_s18 + $0x40] sm:$0xff] }
  0x53   : > { %v6662_v31 = vmul.f32 %v5908_v15, %v283_v11  ;;  %v6674_v53 = vmul.f32 %v5925_v41, %v284_v46  ;;  %v6676_v54 = vmul.f32 %v5941_v42, %v284_v46  ;;  %v302_v1 = vmul.f32 %v6522_v2, %v221_v51  ;;  %v254_v15 = vld [vmem:[%s6510_s18 + $0x148] sm:$0xff] }
  0x54   : > { %10043 = vst [vmem:[#allocation13_spill] sm:$0xff] %v6642_v4  ;;  %v5924_v8 = vadd.f32 -1.0, %v332_v0  ;;  %v6143_v10 = vpack.i.bf16 %v6642_v4, %v6640_v3  ;;  %v6682_v0 = vmul.f32 %v5909_v48, %v284_v46  ;;  %v5910_v14 = vadd.f32 -1.0, %v318_v5  ;;  %v289_v4 = vld [vmem:[#allocation6 + $0x60] sm:$0xff] }
  0x55   : > { %v6145_v45 = vpack.i.bf16 %v6662_v31, %v6660_v30  ;;  %v6035_v6 = vpack.i.bf16 %v6676_v54, %v6674_v53  ;;  %v335_v29 = vmul.f32 %v6522_v2, %v254_v15  ;;  %v303_v41 = vmul.f32 %v6522_v2, %v222_v19 }
  0x56   : > { %v6654_v22 = vmul.f32 %v5924_v8, %v283_v11 }
  0x5a   : > { %6028 = vxpose.xlu0.b32.cont [4/16] %v6027_v20, 128  ;;  %6140 = vxpose.xlu1.b32.cont [4/16] %v6139_v25, 128  ;;  %v220_v20 = vld [vmem:[%s6510_s18 + $0x38] sm:$0xff]  ;;  %v6656_v25 = vmul.f32 %v5940_v9, %v283_v11  ;;  %v5894_v11 = vadd.f32 -1.0, %v302_v1  ;;  %v239_v1 = vld [vmem:[%s6510_s18 + $0xd0] sm:$0xff] }
  0x5b   : > { %v301_v32 = vmul.f32 %v6522_v2, %v220_v20  ;;  %v238_v20 = vld [vmem:[%s6510_s18 + $0xc8] sm:$0xff] }
  0x5c   : > { %v6033_v34 = vpack.i.bf16 %v6656_v25, %v6654_v22  ;;  %v319_v42 = vmul.f32 %v6522_v2, %v238_v20 }
  0x5e   : > { %v5911_v51 = vadd.f32 -1.0, %v319_v42  ;;  %v256_v42 = vld [vmem:[%s6510_s18 + $0x158] sm:$0xff] }
  0x62   : > { %6030 = vxpose.xlu0.b32.cont [5/16] %v6029_v47, 128  ;;  %6142 = vxpose.xlu1.b32.cont [5/16] %v6141_v50, 128  ;;  %v5893_v47 = vadd.f32 -1.0, %v301_v32  ;;  %v269_v50 = vld [vmem:[%s6510_s18 + $0x1c0] sm:$0xff]  ;;  %v351_v32 = vmul.f32 %v6522_v2, %v270_v18 }
  0x63   : > { %v350_v58 = vmul.f32 %v6522_v2, %v269_v50  ;;  %v5895_v50 = vadd.f32 -1.0, %v303_v41 }
  0x64   : > { %v6680_v59 = vmul.f32 %v5893_v47, %v284_v46  ;;  %v5927_v46 = vadd.f32 -1.0, %v335_v29  ;;  %v5943_v47 = vadd.f32 -1.0, %v351_v32  ;;  %v287_v29 = vld [vmem:[#allocation6 + $0x50] sm:$0xff] }
  0x65   : > { %v5942_v8 = vadd.f32 -1.0, %v350_v58  ;;  %v223_v58 = vld [vmem:[%s6510_s18 + $0x50] sm:$0xff] }
  0x66   : > { %v6147_v9 = vpack.i.bf16 %v6682_v0, %v6680_v59  ;;  %v6714_v5 = vmul.f32 %v5927_v46, %v286_v49  ;;  %v224_v46 = vld [vmem:[%s6510_s18 + $0x58] sm:$0xff] }
  0x6a   : > { %6032 = vxpose.xlu0.b32.cont [6/16] %v6031_v7, 128  ;;  %6144 = vxpose.xlu1.b32.cont [6/16] %v6143_v10, 128  ;;  %v5926_v7 = vadd.f32 -1.0, %v334_v55  ;;  %v285_v10 = vld [vmem:[#allocation6 + $0x40] sm:$0xff]  ;;  %v271_v55 = vld [vmem:[%s6510_s18 + $0x1d0] sm:$0xff] }
  0x6b   : > { %v6696_v26 = vmul.f32 %v5942_v8, %v285_v10  ;;  %v6700_v33 = vmul.f32 %v5894_v11, %v285_v10  ;;  %v352_v8 = vmul.f32 %v6522_v2, %v271_v55  ;;  %v304_v11 = vmul.f32 %v6522_v2, %v223_v58 }
  0x6c   : > { %v6694_v21 = vmul.f32 %v5926_v7, %v285_v10  ;;  %v336_v7 = vmul.f32 %v6522_v2, %v255_v52  ;;  %v305_v58 = vmul.f32 %v6522_v2, %v224_v46 }
  0x6d   : > { %v5944_v19 = vadd.f32 -1.0, %v352_v8  ;;  %v5896_v32 = vadd.f32 -1.0, %v304_v11 }
  0x6e   : > { %v5928_v18 = vadd.f32 -1.0, %v336_v7 }
  0x6f   : > { %v6740_v52 = vmul.f32 %v5896_v32, %v287_v29  ;;  %v273_v32 = vld [vmem:[%s6510_s18 + $0x1e0] sm:$0xff] }
  0x72   : > { %6034 = vxpose.xlu0.b32.cont [7/16] %v6033_v34, 128  ;;  %6146 = vxpose.xlu1.b32.cont [7/16] %v6145_v45, 128  ;;  %v6702_v34 = vmul.f32 %v5910_v14, %v285_v10  ;;  %v6037_v45 = vpack.i.bf16 %v6696_v26, %v6694_v21  ;;  %v6722_v10 = vmul.f32 %v5911_v51, %v286_v49 }
  0x73   : > { %v320_v14 = vmul.f32 %v6522_v2, %v239_v1 }
  0x74   : > { %v6149_v48 = vpack.i.bf16 %v6702_v34, %v6700_v33  ;;  %10044 = vst [vmem:[#allocation14_spill] sm:$0xff] %v6722_v10 }
  0x75   : > { %v5912_v41 = vadd.f32 -1.0, %v320_v14 }
  0x77   : > { %v6742_v55 = vmul.f32 %v5912_v41, %v287_v29 }
  0x79   : > { %v6153_v14 = vpack.i.bf16 %v6742_v55, %v6740_v52 }
  0x7a   : > { %6036 = vxpose.xlu0.b32.cont [8/16] %v6035_v6, 128  ;;  %6148 = vxpose.xlu1.b32.cont [8/16] %v6147_v9, 128  ;;  %v6716_v6 = vmul.f32 %v5943_v47, %v286_v49  ;;  %v6720_v9 = vmul.f32 %v5895_v50, %v286_v49  ;;  %v240_v47 = vld [vmem:[%s6510_s18 + $0xd8] sm:$0xff]  ;;  %v6736_v49 = vmul.f32 %v5944_v19, %v287_v29 }
  0x7b   : > { %v337_v50 = vmul.f32 %v6522_v2, %v256_v42  ;;  %v321_v1 = vmul.f32 %v6522_v2, %v240_v47  ;;  %v225_v42 = vld [vmem:[%s6510_s18 + $0x60] sm:$0xff]  ;;  %v354_v47 = vmul.f32 %v6522_v2, %v273_v32 }
  0x7c   : > { %v6039_v15 = vpack.i.bf16 %v6716_v6, %v6714_v5  ;;  %v6151_v20 = vpack.i.bf16 %v6722_v10, %v6720_v9  ;;  %v226_v10 = vld [vmem:[%s6510_s18 + $0x68] sm:$0xff] }
  0x7d   : > { %v5929_v8 = vadd.f32 -1.0, %v337_v50  ;;  %v5913_v19 = vadd.f32 -1.0, %v321_v1 }
  0x82   : > { %6038 = vxpose.xlu0.b32.cont [9/16] %v6037_v45, 128  ;;  %6150 = vxpose.xlu1.b32.cont [9/16] %v6149_v48, 128  ;;  %v272_v45 = vld [vmem:[%s6510_s18 + $0x1d8] sm:$0xff]  ;;  %v6734_v48 = vmul.f32 %v5928_v18, %v287_v29  ;;  %v5897_v18 = vadd.f32 -1.0, %v305_v58  ;;  %v241_v29 = vld [vmem:[%s6510_s18 + $0xe0] sm:$0xff]  ;;  %v306_v58 = vmul.f32 %v6522_v2, %v225_v42 }
  0x83   : > { %v353_v51 = vmul.f32 %v6522_v2, %v272_v45  ;;  %v322_v1 = vmul.f32 %v6522_v2, %v241_v29 }
  0x84   : > { %v6041_v7 = vpack.i.bf16 %v6736_v49, %v6734_v48  ;;  %v5898_v32 = vadd.f32 -1.0, %v306_v58 }
  0x85   : > { %v5945_v11 = vadd.f32 -1.0, %v353_v51  ;;  %v5914_v3 = vadd.f32 -1.0, %v322_v1  ;;  %v307_v1 = vmul.f32 %v6522_v2, %v226_v10 }
  0x87   : > { %v6782_v58 = vmul.f32 %v5914_v3, %v289_v4  ;;  %v243_v3 = vld [vmem:[%s6510_s18 + $0xf0] sm:$0xff] }
  0x89   : > { %10052 = vst [vmem:[#allocation22_spill] sm:$0xff] %v6782_v58 }
  0x8a   : > { %6040 = vxpose.xlu0.b32.cont [10/16] %v6039_v15, 128  ;;  %6152 = vxpose.xlu1.b32.cont [10/16] %v6151_v20, 128  ;;  %v288_v15 = vld [vmem:[#allocation6 + $0x58] sm:$0xff]  ;;  %v257_v20 = vld [vmem:[%s6510_s18 + $0x160] sm:$0xff] }
  0x8b   : > { %v6754_v41 = vmul.f32 %v5929_v8, %v288_v15  ;;  %v6756_v45 = vmul.f32 %v5945_v11, %v288_v15  ;;  %v338_v46 = vmul.f32 %v6522_v2, %v257_v20  ;;  %v6760_v50 = vmul.f32 %v5897_v18, %v288_v15  ;;  %v274_v18 = vld [vmem:[%s6510_s18 + $0x1e8] sm:$0xff] }
  0x8c   : > { %v6762_v51 = vmul.f32 %v5913_v19, %v288_v15  ;;  %v5946_v11 = vadd.f32 -1.0, %v354_v47  ;;  %v242_v15 = vld [vmem:[%s6510_s18 + $0xe8] sm:$0xff]  ;;  %v6780_v47 = vmul.f32 %v5898_v32, %v289_v4  ;;  %v275_v32 = vld [vmem:[%s6510_s18 + $0x1f0] sm:$0xff] }
  0x8d   : > { %10045 = vst [vmem:[#allocation15_spill] sm:$0xff] %v6754_v41  ;;  %v5930_v8 = vadd.f32 -1.0, %v338_v46  ;;  %v355_v46 = vmul.f32 %v6522_v2, %v274_v18  ;;  %v5899_v18 = vadd.f32 -1.0, %v307_v1 }
  0x8e   : > { %10046 = vst [vmem:[#allocation16_spill] sm:$0xff] %v6756_v45  ;;  %v6155_v20 = vpack.i.bf16 %v6762_v51, %v6760_v50  ;;  %v6776_v42 = vmul.f32 %v5946_v11, %v289_v4 }
  0x8f   : > { %10047 = vst [vmem:[#allocation17_spill] sm:$0xff] %v6760_v50  ;;  %v6774_v19 = vmul.f32 %v5930_v8, %v289_v4  ;;  %v290_v50 = vld [vmem:[#allocation6 + $0x68] sm:$0xff] }
  0x90   : > { %10048 = vst [vmem:[#allocation18_spill] sm:$0xff] %v6762_v51  ;;  %v5947_v51 = vadd.f32 -1.0, %v355_v46  ;;  %v6800_v46 = vmul.f32 %v5899_v18, %v290_v50  ;;  %v276_v18 = vld [vmem:[%s6510_s18 + $0x1f8] sm:$0xff] }
  0x91   : > { %10049 = vst [vmem:[#allocation19_spill] sm:$0xff] %v6774_v19  ;;  %v6045_v8 = vpack.i.bf16 %v6776_v42, %v6774_v19 }
  0x92   : > { %6042 = vxpose.xlu0.b32.cont [11/16] %v6041_v7, 128  ;;  %6154 = vxpose.xlu1.b32.cont [11/16] %v6153_v14, 128  ;;  %v6043_v7 = vpack.i.bf16 %v6756_v45, %v6754_v41  ;;  %v258_v14 = vld [vmem:[%s6510_s18 + $0x168] sm:$0xff]  ;;  %10050 = vst [vmem:[#allocation20_spill] sm:$0xff] %v6776_v42  ;;  %v227_v41 = vld [vmem:[%s6510_s18 + $0x70] sm:$0xff]  ;;  %v6796_v10 = vmul.f32 %v5947_v51, %v290_v50  ;;  %v228_v42 = vld [vmem:[%s6510_s18 + $0x78] sm:$0xff] }
  0x93   : > { %v339_v29 = vmul.f32 %v6522_v2, %v258_v14  ;;  %10051 = vst [vmem:[#allocation21_spill] sm:$0xff] %v6780_v47  ;;  %v6157_v14 = vpack.i.bf16 %v6782_v58, %v6780_v47  ;;  %v291_v58 = vld [vmem:[#allocation6 + $0x70] sm:$0xff] }
  0x94   : > { %10054 = vst [vmem:[#allocation24_spill] sm:$0xff] %v6800_v46 }
  0x95   : > { %v5931_v11 = vadd.f32 -1.0, %v339_v29  ;;  %v356_v29 = vmul.f32 %v6522_v2, %v275_v32 }
  0x97   : > { %v6794_v4 = vmul.f32 %v5931_v11, %v290_v50  ;;  %v5948_v47 = vadd.f32 -1.0, %v356_v29 }
  0x99   : > { %10053 = vst [vmem:[#allocation23_spill] sm:$0xff] %v6794_v4  ;;  %v6047_v51 = vpack.i.bf16 %v6796_v10, %v6794_v4 }
  0x9a   : > { %6044 = vxpose.xlu0.b32.cont [12/16] %v6043_v7, 128  ;;  %6156 = vxpose.xlu1.b32.cont [12/16] %v6155_v20, 128  ;;  %v323_v7 = vmul.f32 %v6522_v2, %v242_v15  ;;  %v259_v20 = vld [vmem:[%s6510_s18 + $0x170] sm:$0xff] }
  0x9b   : > { %v340_v15 = vmul.f32 %v6522_v2, %v259_v20 }
  0x9c   : > { %v5915_v45 = vadd.f32 -1.0, %v323_v7  ;;  %v308_v7 = vmul.f32 %v6522_v2, %v227_v41  ;;  %v6816_v41 = vmul.f32 %v5948_v47, %v291_v58 }
  0x9d   : > { %v5932_v11 = vadd.f32 -1.0, %v340_v15  ;;  %v357_v15 = vmul.f32 %v6522_v2, %v276_v18 }
  0x9e   : > { %v6802_v1 = vmul.f32 %v5915_v45, %v290_v50  ;;  %v5900_v32 = vadd.f32 -1.0, %v308_v7  ;;  %v244_v45 = vld [vmem:[%s6510_s18 + $0xf8] sm:$0xff]  ;;  %v309_v7 = vmul.f32 %v6522_v2, %v228_v42 }
  0x9f   : > { %v6814_v50 = vmul.f32 %v5932_v11, %v291_v58 }
  0xa0   : > { %10055 = vst [vmem:[#allocation25_spill] sm:$0xff] %v6802_v1  ;;  %v6159_v20 = vpack.i.bf16 %v6802_v1, %v6800_v46  ;;  %v6820_v29 = vmul.f32 %v5900_v32, %v291_v58  ;;  %v5949_v46 = vadd.f32 -1.0, %v357_v15  ;;  %v5901_v1 = vadd.f32 -1.0, %v309_v7 }
  0xa2   : > { %6046 = vxpose.xlu0.b32.cont [13/16] %v6045_v8, 128  ;;  %6158 = vxpose.xlu1.b32.cont [13/16] %v6157_v14, 128  ;;  %v324_v8 = vmul.f32 %v6522_v2, %v243_v3  ;;  %v260_v14 = vld [vmem:[%s6510_s18 + $0x178] sm:$0xff] }
  0xa3   : > { %v341_v3 = vmul.f32 %v6522_v2, %v260_v14  ;;  %v292_v14 = vld [vmem:[#allocation6 + $0x78] sm:$0xff] }
  0xa4   : > { %v5916_v19 = vadd.f32 -1.0, %v324_v8  ;;  %v325_v8 = vmul.f32 %v6522_v2, %v244_v45  ;;  %v6834_v42 = vmul.f32 %v5901_v1, %v292_v14 }
  0xa5   : > { %v5933_v11 = vadd.f32 -1.0, %v341_v3 }
  0xa6   : > { %v6822_v4 = vmul.f32 %v5916_v19, %v291_v58  ;;  %v5917_v18 = vadd.f32 -1.0, %v325_v8  ;;  %v6832_v19 = vmul.f32 %v5949_v46, %v292_v14 }
  0xa8   : > { %v6161_v47 = vpack.i.bf16 %v6822_v4, %v6820_v29  ;;  %v6836_v2 = vmul.f32 %v5917_v18, %v292_v14 }
  0xaa   : > { %6048 = vxpose.xlu0.b32.cont [14/16] %v6047_v51, 128  ;;  %6160 = vxpose.xlu1.b32.cont [14/16] %v6159_v20, 128  ;;  %v6049_v51 = vpack.i.bf16 %v6816_v41, %v6814_v50  ;;  %v6830_v20 = vmul.f32 %v5933_v11, %v292_v14  ;;  %v6163_v32 = vpack.i.bf16 %v6836_v2, %v6834_v42 }
  0xac   : > { %v6051_v58 = vpack.i.bf16 %v6832_v19, %v6830_v20 }
  0xb2   : > { %6050 = vxpose.xlu0.b32.cont [15/16] %v6049_v51, 128  ;;  %6162 = vxpose.xlu1.b32.cont [15/16] %v6161_v47, 128 }
  0xba   : > { %6052 = vxpose.xlu0.b32.end [16/16] %v6051_v58, 128  ;;  %6164 = vxpose.xlu1.b32.end [16/16] %v6163_v32, 128 }
  0xe6   : > { %v6842_v45 = vpop.trf.xlu0  ;;  %v6844_v3 = vpop.trf.xlu1 }
  0xee   : > { %v6846_v15 = vpop.trf.xlu0  ;;  %v6848_v46 = vpop.trf.xlu1 }
  0xf6   : > { %v6850_v1 = vpop.trf.xlu0  ;;  %v6852_v7 = vpop.trf.xlu1 }
  0xf7   : > { %10056 = vst [vmem:[#allocation26_spill] sm:$0xff] %v6850_v1  ;;  %v6871_v1 = vmul.f32 0.002, %v6540_v24  ;;  %v6892_v24 = vmul.f32 0.002, %v6558_v39 }
  0xf8   : > { %10057 = vst [vmem:[#allocation27_spill] sm:$0xff] %v6852_v7  ;;  %v6874_v7 = vmul.f32 0.002, %v6538_v23  ;;  %v6895_v23 = vmul.f32 0.002, %v6576_v57 }
  0xf9   : > { %10063 = vst [vmem:[#allocation33_spill] sm:$0xff] %v6871_v1  ;;  %v6913_v39 = vmul.f32 0.002, %v6602_v17  ;;  %v6916_v57 = vmul.f32 0.002, %v6600_v16 }
  0xfa   : > { %10064 = vst [vmem:[#allocation34_spill] sm:$0xff] %v6874_v7  ;;  %v6933_v17 = vmul.f32 0.002, %v6636_v63  ;;  %v6936_v16 = vmul.f32 0.002, %v6634_v62 }
  0xfb   : > { %10070 = vst [vmem:[#allocation40_spill] sm:$0xff] %v6892_v24  ;;  %v6953_v63 = vmul.f32 0.002, %v6676_v54  ;;  %v6956_v62 = vmul.f32 0.002, %v6674_v53 }
  0xfc   : > { %10071 = vst [vmem:[#allocation41_spill] sm:$0xff] %v6895_v23  ;;  %v6974_v54 = vmul.f32 0.002, %v6700_v33  ;;  %v6977_v53 = vmul.f32 0.002, %v6716_v6  ;;  %v10104_v6 = vld [vmem:[#allocation15_spill] sm:$0xff] }
  0xfd   : > { %10077 = vst [vmem:[#allocation47_spill] sm:$0xff] %v6913_v39  ;;  %v6995_v33 = vmul.f32 0.002, %v6740_v52  ;;  %v10114_v52 = vld [vmem:[#allocation19_spill] sm:$0xff]  ;;  %v10118_v39 = vld [vmem:[#allocation21_spill] sm:$0xff] }
  0xfe   : > { %v6854_v8 = vpop.trf.xlu0  ;;  %v6856_v51 = vpop.trf.xlu1  ;;  %10078 = vst [vmem:[#allocation48_spill] sm:$0xff] %v6916_v57  ;;  %v7050_v57 = vmul.f32 0.002, %v6820_v29  ;;  %v7071_v29 = vunpack.i.l.bf16 %v6848_v46 }
  0xff   : > { %10058 = vst [vmem:[#allocation28_spill] sm:$0xff] %v6856_v51  ;;  %v6877_v51 = vmul.f32 0.002, %v6544_v28  ;;  %v6898_v28 = vmul.f32 0.002, %v6574_v56 }
 0x100   : > { %v6919_v56 = vmul.f32 0.002, %v6614_v35  ;;  %10083 = vst [vmem:[#allocation53_spill] sm:$0xff] %v6933_v17  ;;  %v6941_v35 = vmul.f32 0.002, %v6656_v25 }
 0x101   : > { %10065 = vst [vmem:[#allocation35_spill] sm:$0xff] %v6877_v51  ;;  %v6959_v17 = vmul.f32 0.002, %v6682_v0  ;;  %v6962_v25 = vmul.f32 0.002, %v6680_v59 }
 0x102   : > { %10072 = vst [vmem:[#allocation42_spill] sm:$0xff] %v6898_v28  ;;  %v6980_v0 = vmul.f32 0.002, %v6714_v5  ;;  %v6983_v59 = vmul.f32 0.002, %v6720_v9 }
 0x103   : > { %10079 = vst [vmem:[#allocation49_spill] sm:$0xff] %v6919_v56  ;;  %v10108_v56 = vld [vmem:[#allocation17_spill] sm:$0xff] }
 0x104   : > { %10084 = vst [vmem:[#allocation54_spill] sm:$0xff] %v6936_v16  ;;  %v10106_v16 = vld [vmem:[#allocation16_spill] sm:$0xff] }
 0x105   : > { %10085 = vst [vmem:[#allocation55_spill] sm:$0xff] %v6941_v35  ;;  %v7003_v9 = vmul.f32 0.002, %v10106_v16  ;;  %v7023_v16 = vmul.f32 0.002, %v10118_v39 }
 0x106   : > { %v6858_v11 = vpop.trf.xlu0  ;;  %v6860_v47 = vpop.trf.xlu1  ;;  %10089 = vst [vmem:[#allocation59_spill] sm:$0xff] %v6953_v63  ;;  %v7044_v39 = vmul.f32 0.002, %v6822_v4  ;;  %v7065_v4 = vmul.f32 0.002, %v6836_v2 }
 0x107   : > { %10059 = vst [vmem:[#allocation29_spill] sm:$0xff] %v6858_v11  ;;  %v6880_v11 = vmul.f32 0.002, %v6542_v27  ;;  %v6901_v27 = vmul.f32 0.002, %v6582_v61 }
 0x108   : > { %v6922_v61 = vmul.f32 0.002, %v6616_v36  ;;  %v6944_v36 = vmul.f32 0.002, %v6654_v22  ;;  %10090 = vst [vmem:[#allocation60_spill] sm:$0xff] %v6956_v62  ;;  %v10137_v62 = vld [vmem:[#allocation26_spill] sm:$0xff] }
 0x109   : > { %10066 = vst [vmem:[#allocation36_spill] sm:$0xff] %v6880_v11  ;;  %v6965_v22 = vmul.f32 0.002, %v6696_v26  ;;  %v6986_v26 = vmul.f32 0.002, %v6736_v49 }
 0x10a   : > { %10073 = vst [vmem:[#allocation43_spill] sm:$0xff] %v6901_v27  ;;  %v7006_v49 = vmul.f32 0.002, %v10108_v56  ;;  %v7026_v56 = vmul.f32 0.002, %v6796_v10  ;;  %v7029_v27 = vunpack.i.h.bf16 %v6842_v45  ;;  %v7047_v10 = vunpack.i.l.bf16 %v6842_v45 }
 0x10b   : > { %10080 = vst [vmem:[#allocation50_spill] sm:$0xff] %v6922_v61  ;;  %v6998_v61 = vmul.f32 0.002, %v10104_v6  ;;  %v10116_v6 = vld [vmem:[#allocation22_spill] sm:$0xff]  ;;  %v7068_v45 = vunpack.i.h.bf16 %v6848_v46  ;;  %v7087_v46 = vunpack.i.h.bf16 %v10137_v62 }
 0x10c   : > { %10086 = vst [vmem:[#allocation56_spill] sm:$0xff] %v6944_v36  ;;  %v7020_v28 = vmul.f32 0.002, %v10116_v6  ;;  %v7041_v6 = vmul.f32 0.002, %v6814_v50  ;;  %v662_v63 = vpack.c.bf16 %v7029_v27, %v7029_v27  ;;  %v646_v35 = vpack.c.bf16 %v7047_v10, %v7047_v10 }
 0x10d   : > { %10091 = vst [vmem:[#allocation61_spill] sm:$0xff] %v6959_v17  ;;  %v7062_v50 = vmul.f32 0.002, %v6830_v20  ;;  %v7100_v17 = vunpack.i.h.bf16 %v6854_v8 }
 0x10e   : > { %v6862_v14 = vpop.trf.xlu0  ;;  %v6864_v18 = vpop.trf.xlu1  ;;  %10092 = vst [vmem:[#allocation62_spill] sm:$0xff] %v6962_v25 }
 0x10f   : > { %10060 = vst [vmem:[#allocation30_spill] sm:$0xff] %v6862_v14  ;;  %v6883_v14 = vmul.f32 0.002, %v6554_v37  ;;  %v6904_v37 = vmul.f32 0.002, %v6580_v60 }
 0x110   : > { %10061 = vst [vmem:[#allocation31_spill] sm:$0xff] %v6864_v18  ;;  %v6886_v18 = vmul.f32 0.002, %v6556_v38  ;;  %v6907_v38 = vmul.f32 0.002, %v6596_v13 }
 0x111   : > { %10067 = vst [vmem:[#allocation37_spill] sm:$0xff] %v6883_v14  ;;  %v6925_v60 = vmul.f32 0.002, %v6622_v44  ;;  %v6928_v13 = vmul.f32 0.002, %v6620_v43 }
 0x112   : > { %10068 = vst [vmem:[#allocation38_spill] sm:$0xff] %v6886_v18  ;;  %v6947_v44 = vmul.f32 0.002, %v6662_v31  ;;  %v6950_v43 = vmul.f32 0.002, %v6660_v30 }
 0x113   : > { %10074 = vst [vmem:[#allocation44_spill] sm:$0xff] %v6904_v37  ;;  %v6968_v31 = vmul.f32 0.002, %v6694_v21  ;;  %v6971_v30 = vmul.f32 0.002, %v6702_v34 }
 0x114   : > { %10075 = vst [vmem:[#allocation45_spill] sm:$0xff] %v6907_v38  ;;  %v6989_v21 = vmul.f32 0.002, %v6734_v48  ;;  %v6992_v34 = vmul.f32 0.002, %v6742_v55  ;;  %v10110_v48 = vld [vmem:[#allocation18_spill] sm:$0xff] }
 0x115   : > { %10081 = vst [vmem:[#allocation51_spill] sm:$0xff] %v6925_v60  ;;  %v10112_v55 = vld [vmem:[#allocation20_spill] sm:$0xff]  ;;  %v7053_v37 = vmul.f32 0.002, %v6832_v19  ;;  %v7074_v19 = vmul.f32 0.002, %v6834_v42 }
 0x116   : > { %v6866_v58 = vpop.trf.xlu0  ;;  %v6868_v32 = vpop.trf.xlu1  ;;  %10082 = vst [vmem:[#allocation52_spill] sm:$0xff] %v6928_v13  ;;  %v7011_v13 = vmul.f32 0.002, %v10110_v48  ;;  %v7014_v23 = vmul.f32 0.002, %v10112_v55  ;;  %v7032_v48 = vunpack.i.h.bf16 %v6846_v15  ;;  %v7035_v55 = vunpack.i.l.bf16 %v6846_v15 }
 0x117   : > { %10062 = vst [vmem:[#allocation32_spill] sm:$0xff] %v6868_v32  ;;  %v6889_v32 = vmul.f32 0.002, %v6560_v40  ;;  %v6910_v40 = vmul.f32 0.002, %v6594_v12  ;;  %v7056_v15 = vunpack.i.h.bf16 %v6844_v3 }
 0x118   : > { %10087 = vst [vmem:[#allocation57_spill] sm:$0xff] %v6947_v44  ;;  %v647_v20 = vpack.c.bf16 %v7035_v55, %v7035_v55 }
 0x119   : > { %10069 = vst [vmem:[#allocation39_spill] sm:$0xff] %v6889_v32  ;;  %v630_v42 = vpack.c.bf16 %v7056_v15, %v7056_v15 }
 0x11a   : > { %10076 = vst [vmem:[#allocation46_spill] sm:$0xff] %v6910_v40  ;;  %v7017_v40 = vmul.f32 0.002, %v10114_v52  ;;  %v7038_v52 = vmul.f32 0.002, %v6816_v41  ;;  %v7059_v41 = vunpack.i.l.bf16 %v6844_v3  ;;  %v663_v3 = vpack.c.bf16 %v7032_v48, %v7032_v48 }
 0x11b   : > { %10088 = vst [vmem:[#allocation58_spill] sm:$0xff] %v6950_v43  ;;  %v1161_v25 = vunpack.c.l.b16 %v647_v20  ;;  %v7106_v43 = vunpack.i.l.bf16 %v10137_v62 }
 0x11c   : > { %10093 = vst [vmem:[#allocation63_spill] sm:$0xff] %v6965_v22  ;;  %v1306_v44 = vunpack.c.l.b16 %v663_v3  ;;  %v1160_v22 = vunpack.c.l.b16 %v646_v35 }
 0x11d   : > { %10094 = vst [vmem:[#allocation64_spill] sm:$0xff] %v6968_v31 }
 0x11e   : > { %v6930_v12 = vpop.trf.xlu0  ;;  %v6938_v38 = vpop.trf.xlu1  ;;  %10095 = vst [vmem:[#allocation65_spill] sm:$0xff] %v6971_v30 }
 0x11f   : > { %10096 = vst [vmem:[#allocation66_spill] sm:$0xff] %v6974_v54  ;;  %v10150_v54 = vld [vmem:[#allocation29_spill] sm:$0xff] }
 0x120   : > { %10097 = vst [vmem:[#allocation67_spill] sm:$0xff] %v6977_v53 }
 0x121   : > { %10098 = vst [vmem:[#allocation68_spill] sm:$0xff] %v6980_v0  ;;  %v1015_v0 = vunpack.c.l.b16 %v630_v42 }
 0x122   : > { %10099 = vst [vmem:[#allocation69_spill] sm:$0xff] %v6983_v59 }
 0x123   : > { %10100 = vst [vmem:[#allocation70_spill] sm:$0xff] %v6986_v26 }
 0x124   : > { %10101 = vst [vmem:[#allocation71_spill] sm:$0xff] %v6989_v21 }
 0x125   : > { %10102 = vst [vmem:[#allocation72_spill] sm:$0xff] %v6992_v34 }
 0x126   : > { %10103 = vst [vmem:[#allocation73_spill] sm:$0xff] %v6995_v33  ;;  %v7000_v5 = vpop.trf.xlu0  ;;  %v7008_v60 = vpop.trf.xlu1 }
 0x127   : > { %10105 = vst [vmem:[#allocation15_spill] sm:$0xff] %v6998_v61 }
 0x128   : > { %10107 = vst [vmem:[#allocation16_spill] sm:$0xff] %v7003_v9  ;;  %v7145_v9 = vunpack.i.h.bf16 %v10150_v54 }
 0x129   : > { %10109 = vst [vmem:[#allocation17_spill] sm:$0xff] %v7006_v49 }
 0x12a   : > { %10111 = vst [vmem:[#allocation18_spill] sm:$0xff] %v7011_v13  ;;  %v666_v61 = vpack.c.bf16 %v7145_v9, %v7145_v9 }
 0x12b   : > { %10113 = vst [vmem:[#allocation20_spill] sm:$0xff] %v7014_v23 }
 0x12c   : > { %10115 = vst [vmem:[#allocation19_spill] sm:$0xff] %v7017_v40 }
 0x12d   : > { %10117 = vst [vmem:[#allocation22_spill] sm:$0xff] %v7020_v28 }
 0x12e   : > { %10119 = vst [vmem:[#allocation21_spill] sm:$0xff] %v7023_v16  ;;  %v7082_v2 = vpop.trf.xlu0  ;;  %v7089_v36 = vpop.trf.xlu1 }
 0x12f   : > { %10120 = vst [vmem:[#allocation74_spill] sm:$0xff] %v7026_v56 }
 0x130   : > { %10121 = vst [vmem:[#allocation75_spill] sm:$0xff] %v7029_v27  ;;  %v614_v27 = vpack.c.bf16 %v7059_v41, %v7059_v41 }
 0x131   : > { %10122 = vst [vmem:[#allocation76_spill] sm:$0xff] %v7032_v48  ;;  %v631_v48 = vpack.c.bf16 %v7068_v45, %v7068_v45 }
 0x132   : > { %10123 = vst [vmem:[#allocation77_spill] sm:$0xff] %v7035_v55  ;;  %v615_v55 = vpack.c.bf16 %v7071_v29, %v7071_v29  ;;  %v870_v31 = vunpack.c.l.b16 %v614_v27 }
 0x133   : > { %10124 = vst [vmem:[#allocation78_spill] sm:$0xff] %v7038_v52  ;;  %v1016_v62 = vunpack.c.l.b16 %v631_v48 }
 0x134   : > { %10125 = vst [vmem:[#allocation79_spill] sm:$0xff] %v7041_v6  ;;  %v871_v20 = vunpack.c.l.b16 %v615_v55 }
 0x135   : > { %10126 = vst [vmem:[#allocation80_spill] sm:$0xff] %v7044_v39 }
 0x136   : > { %10127 = vst [vmem:[#allocation81_spill] sm:$0xff] %v7047_v10  ;;  %v7103_v10 = vunpack.i.l.bf16 %v6854_v8  ;;  %v10145_v8 = vld [vmem:[#allocation28_spill] sm:$0xff]  ;;  %v7130_v42 = vpop.trf.xlu0 }
 0x137   : > { %10128 = vst [vmem:[#allocation82_spill] sm:$0xff] %v7050_v57  ;;  %v7117_v30 = vunpack.i.h.bf16 %v10145_v8  ;;  %v7120_v3 = vunpack.i.l.bf16 %v10145_v8 }
 0x138   : > { %10129 = vst [vmem:[#allocation83_spill] sm:$0xff] %v7053_v37  ;;  %v649_v35 = vpack.c.bf16 %v7103_v10, %v7103_v10 }
 0x139   : > { %10130 = vst [vmem:[#allocation84_spill] sm:$0xff] %v7056_v15  ;;  %v10142_v15 = vld [vmem:[#allocation27_spill] sm:$0xff] }
 0x13a   : > { %10131 = vst [vmem:[#allocation85_spill] sm:$0xff] %v7059_v41  ;;  %v7109_v53 = vunpack.i.h.bf16 %v10142_v15  ;;  %v1305_v41 = vunpack.c.l.b16 %v662_v63  ;;  %v665_v63 = vpack.c.bf16 %v7100_v17, %v7100_v17 }
 0x13b   : > { %10132 = vst [vmem:[#allocation86_spill] sm:$0xff] %v7062_v50 }
 0x13c   : > { %10133 = vst [vmem:[#allocation87_spill] sm:$0xff] %v7065_v4  ;;  %v632_v27 = vpack.c.bf16 %v7109_v53, %v7109_v53  ;;  %v7134_v8 = vpack.c.b16 %v1306_v44, %v1305_v41  ;;  %v1308_v59 = vunpack.c.l.b16 %v665_v63  ;;  %v7148_v44 = vunpack.i.l.bf16 %v10150_v54  ;;  %v10154_v41 = vld [vmem:[#allocation30_spill] sm:$0xff] }
 0x13d   : > { %10134 = vst [vmem:[#allocation88_spill] sm:$0xff] %v7068_v45  ;;  %v664_v45 = vpack.c.bf16 %v7087_v46, %v7087_v46  ;;  %v7160_v63 = vunpack.i.l.bf16 %v6860_v47 }
 0x13e   : > { %10135 = vst [vmem:[#allocation89_spill] sm:$0xff] %v7071_v29  ;;  %v7114_v29 = vunpack.i.l.bf16 %v10142_v15  ;;  %v648_v15 = vpack.c.bf16 %v7106_v43, %v7106_v43 }
 0x13f   : > { %10136 = vst [vmem:[#allocation90_spill] sm:$0xff] %v7074_v19  ;;  %v1307_v48 = vunpack.c.l.b16 %v664_v45  ;;  %v7154_v45 = vunpack.i.h.bf16 %v10154_v41 }
 0x140   : > { %10138 = vst [vmem:[#allocation26_spill] sm:$0xff] %v7087_v46  ;;  %v7132_v46 = vpack.c.b16 %v1161_v25, %v1160_v22  ;;  %v616_v55 = vpack.c.bf16 %v7114_v29, %v7114_v29  ;;  %v1162_v25 = vunpack.c.l.b16 %v648_v15  ;;  %v7151_v22 = vunpack.i.h.bf16 %v6860_v47 }
 0x141   : > { %10139 = vst [vmem:[#allocation91_spill] sm:$0xff] %v7100_v17  ;;  %v7138_v17 = vpop.trf.xlu1  ;;  %v7175_v47 = vpack.c.b16 %v1308_v59, %v1307_v48  ;;  %v7191_v59 = vunpack.i.h.bf16 %v6866_v58 }
 0x142   : > { %10140 = vst [vmem:[#allocation92_spill] sm:$0xff] %v7103_v10  ;;  %v633_v10 = vpack.c.bf16 %v7117_v30, %v7117_v30  ;;  %v872_v54 = vunpack.c.l.b16 %v616_v55  ;;  %v7198_v55 = vunpack.i.l.bf16 %v6866_v58 }
 0x143   : > { %10141 = vst [vmem:[#allocation93_spill] sm:$0xff] %v7106_v43  ;;  %v617_v43 = vpack.c.bf16 %v7120_v3, %v7120_v3  ;;  %v668_v58 = vpack.c.bf16 %v7191_v59, %v7191_v59 }
 0x144   : > { %10143 = vst [vmem:[#allocation27_spill] sm:$0xff] %v7109_v53  ;;  %v1163_v53 = vunpack.c.l.b16 %v649_v35  ;;  %v7162_v35 = vpack.c.b16 %v871_v20, %v870_v31  ;;  %v634_v31 = vpack.c.bf16 %v7151_v22, %v7151_v22 }
 0x145   : > { %10144 = vst [vmem:[#allocation94_spill] sm:$0xff] %v7114_v29  ;;  %v7157_v29 = vunpack.i.l.bf16 %v10154_v41  ;;  %v873_v15 = vunpack.c.l.b16 %v617_v43  ;;  %v650_v41 = vpack.c.bf16 %v7148_v44, %v7148_v44 }
 0x146   : > { %10146 = vst [vmem:[#allocation28_spill] sm:$0xff] %v7117_v30  ;;  %v1017_v30 = vunpack.c.l.b16 %v632_v27  ;;  %v7173_v27 = vpack.c.b16 %v1163_v53, %v1162_v25  ;;  %v618_v53 = vpack.c.bf16 %v7160_v63, %v7160_v63  ;;  %v1309_v25 = vunpack.c.l.b16 %v666_v61 }
 0x147   : > { %10147 = vst [vmem:[#allocation95_spill] sm:$0xff] %v7120_v3  ;;  %v7164_v3 = vpack.c.b16 %v1016_v62, %v1015_v0  ;;  %v667_v0 = vpack.c.bf16 %v7154_v45, %v7154_v45  ;;  %v651_v43 = vpack.c.bf16 %v7157_v29, %v7157_v29  ;;  %v7186_v62 = vpop.trf.xlu0 }
 0x148   : > { %10148 = vst [vmem:[#allocation96_spill] sm:$0xff] %v7132_v46  ;;  %v10160_v46 = vld [vmem:[#allocation31_spill] sm:$0xff] }
 0x149   : > { %10149 = vst [vmem:[#allocation97_spill] sm:$0xff] %v7134_v8  ;;  %v1018_v8 = vunpack.c.l.b16 %v633_v10  ;;  %v7167_v26 = vunpack.i.h.bf16 %v10160_v46  ;;  %v7184_v10 = vunpack.i.l.bf16 %v10160_v46  ;;  %v7193_v20 = vpop.trf.xlu1  ;;  %v7201_v46 = vunpack.i.h.bf16 %v6930_v12 }
 0x14a   : > { %10151 = vst [vmem:[#allocation29_spill] sm:$0xff] %v7145_v9  ;;  %v1164_v9 = vunpack.c.l.b16 %v650_v41  ;;  %v7216_v41 = vpack.c.b16 %v873_v15, %v872_v54 }
 0x14b   : > { %10152 = vst [vmem:[#allocation98_spill] sm:$0xff] %v7148_v44  ;;  %v635_v48 = vpack.c.bf16 %v7167_v26, %v7167_v26  ;;  %v7204_v44 = vunpack.i.l.bf16 %v6930_v12  ;;  %v1019_v12 = vunpack.c.l.b16 %v634_v31 }
 0x14c   : > { %10153 = vst [vmem:[#allocation99_spill] sm:$0xff] %v7151_v22  ;;  %v619_v22 = vpack.c.bf16 %v7184_v10, %v7184_v10 }
 0x14d   : > { %10155 = vst [vmem:[#allocation30_spill] sm:$0xff] %v7154_v45  ;;  %v1310_v45 = vunpack.c.l.b16 %v667_v0  ;;  %v1020_v0 = vunpack.c.l.b16 %v635_v48 }
 0x14e   : > { %10156 = vst [vmem:[#allocation100_spill] sm:$0xff] %v7157_v29  ;;  %v1165_v29 = vunpack.c.l.b16 %v651_v43  ;;  %v652_v43 = vpack.c.bf16 %v7198_v55, %v7198_v55 }
 0x14f   : > { %10157 = vst [vmem:[#allocation101_spill] sm:$0xff] %v7160_v63  ;;  %v10169_v63 = vld [vmem:[#allocation32_spill] sm:$0xff]  ;;  %v7234_v54 = vpop.trf.xlu0  ;;  %v7238_v31 = vpack.c.b16 %v1310_v45, %v1309_v25  ;;  %v7253_v45 = vunpack.i.l.bf16 %v7000_v5  ;;  %v7256_v25 = vunpack.i.h.bf16 %v7008_v60 }
 0x150   : > { %10158 = vst [vmem:[#allocation102_spill] sm:$0xff] %v7162_v35  ;;  %v7214_v61 = vunpack.i.l.bf16 %v10169_v63  ;;  %v874_v35 = vunpack.c.l.b16 %v618_v53  ;;  %v7236_v15 = vpack.c.b16 %v1165_v29, %v1164_v9  ;;  %v1311_v53 = vunpack.c.l.b16 %v668_v58 }
 0x151   : > { %10159 = vst [vmem:[#allocation103_spill] sm:$0xff] %v7164_v3  ;;  %v7209_v3 = vunpack.i.h.bf16 %v10169_v63  ;;  %v7230_v63 = vunpack.i.l.bf16 %v6938_v38  ;;  %v7250_v29 = vunpack.i.h.bf16 %v7000_v5  ;;  %v7259_v58 = vunpack.i.l.bf16 %v7008_v60 }
 0x152   : > { %10161 = vst [vmem:[#allocation31_spill] sm:$0xff] %v7167_v26  ;;  %v7218_v26 = vpack.c.b16 %v1018_v8, %v1017_v30  ;;  %v875_v30 = vunpack.c.l.b16 %v619_v22  ;;  %v620_v48 = vpack.c.bf16 %v7214_v61, %v7214_v61 }
 0x153   : > { %10162 = vst [vmem:[#allocation104_spill] sm:$0xff] %v7173_v27  ;;  %v636_v8 = vpack.c.bf16 %v7209_v3, %v7209_v3  ;;  %v621_v9 = vpack.c.bf16 %v7230_v63, %v7230_v63 }
 0x154   : > { %10163 = vst [vmem:[#allocation105_spill] sm:$0xff] %v7175_v47  ;;  %v653_v47 = vpack.c.bf16 %v7204_v44, %v7204_v44 }
 0x155   : > { %10164 = vst [vmem:[#allocation106_spill] sm:$0xff] %v7184_v10  ;;  %v669_v10 = vpack.c.bf16 %v7201_v46, %v7201_v46 }
 0x156   : > { %10165 = vst [vmem:[#allocation107_spill] sm:$0xff] %v7191_v59  ;;  %v7227_v59 = vunpack.i.h.bf16 %v6938_v38  ;;  %v1167_v22 = vunpack.c.l.b16 %v653_v47  ;;  %v7262_v47 = vunpack.i.h.bf16 %v7082_v2 }
 0x157   : > { %10166 = vst [vmem:[#allocation108_spill] sm:$0xff] %v7198_v55  ;;  %v6225_v55 = vpop.trf.xlu1  ;;  %v1312_v38 = vunpack.c.l.b16 %v669_v10  ;;  %v7265_v10 = vunpack.i.h.bf16 %v7089_v36 }
 0x158   : > { %10167 = vst [vmem:[#allocation109_spill] sm:$0xff] %v7201_v46  ;;  %v1166_v46 = vunpack.c.l.b16 %v652_v43  ;;  %v7267_v43 = vpack.c.b16 %v875_v30, %v874_v35  ;;  %v670_v35 = vpack.c.bf16 %v7250_v29, %v7250_v29  ;;  %v622_v30 = vpack.c.bf16 %v7259_v58, %v7259_v58 }
 0x159   : > { %10168 = vst [vmem:[#allocation110_spill] sm:$0xff] %v7204_v44  ;;  %v7243_v44 = vunpack.i.l.bf16 %v7082_v2  ;;  %v7278_v2 = vpack.c.b16 %v1312_v38, %v1311_v53  ;;  %v7295_v38 = vunpack.i.h.bf16 %v7130_v42 }
 0x15a   : > { %10170 = vst [vmem:[#allocation32_spill] sm:$0xff] %v7209_v3  ;;  %v637_v3 = vpack.c.bf16 %v7227_v59, %v7227_v59  ;;  %v7276_v27 = vpack.c.b16 %v1167_v22, %v1166_v46  ;;  %v639_v46 = vpack.c.bf16 %v7265_v10, %v7265_v10  ;;  %v7298_v22 = vunpack.i.l.bf16 %v7130_v42 }
 0x15b   : > { %10171 = vst [vmem:[#allocation111_spill] sm:$0xff] %v7214_v61  ;;  %v7269_v61 = vpack.c.b16 %v1020_v0, %v1019_v12  ;;  %v655_v5 = vpack.c.bf16 %v7243_v44, %v7243_v44  ;;  %v654_v12 = vpack.c.bf16 %v7253_v45, %v7253_v45  ;;  %v638_v0 = vpack.c.bf16 %v7256_v25, %v7256_v25 }
 0x15c   : > { %10172 = vst [vmem:[#allocation112_spill] sm:$0xff] %v7216_v41  ;;  %v1022_v60 = vunpack.c.l.b16 %v637_v3  ;;  %v877_v41 = vunpack.c.l.b16 %v621_v9  ;;  %v671_v3 = vpack.c.bf16 %v7262_v47, %v7262_v47  ;;  %v7301_v9 = vunpack.i.h.bf16 %v7138_v17 }
 0x15d   : > { %10173 = vst [vmem:[#allocation113_spill] sm:$0xff] %v7218_v26  ;;  %v7274_v26 = vunpack.i.l.bf16 %v7089_v36  ;;  %v6118_v36 = vpop.trf.xlu0  ;;  %v1169_v53 = vunpack.c.l.b16 %v655_v5  ;;  %v7318_v42 = vunpack.c.l.b16 %v639_v46  ;;  %v7352_v46 = vunpack.i.l.bf16 %v7234_v54 }
 0x15e   : > { %10174 = vst [vmem:[#allocation114_spill] sm:$0xff] %v7227_v59  ;;  %v1021_v59 = vunpack.c.l.b16 %v636_v8 }
 0x15f   : > { %10175 = vst [vmem:[#allocation115_spill] sm:$0xff] %v7230_v63  ;;  %v876_v63 = vunpack.c.l.b16 %v620_v48  ;;  %v6230_v8 = vpop.trf.xlu1  ;;  %v623_v48 = vpack.c.bf16 %v7274_v26, %v7274_v26 }
 0x160   : > { %10176 = vst [vmem:[#allocation116_spill] sm:$0xff] %v7236_v15  ;;  %v7310_v5 = vpack.c.b16 %v1022_v60, %v1021_v59  ;;  %v672_v59 = vpack.c.bf16 %v7295_v38, %v7295_v38  ;;  %v7386_v15 = vunpack.i.h.bf16 %v6118_v36 }
 0x161   : > { %10177 = vst [vmem:[#allocation117_spill] sm:$0xff] %v7238_v31 }
 0x162   : > { %10178 = vst [vmem:[#allocation118_spill] sm:$0xff] %v7243_v44  ;;  %v7308_v44 = vpack.c.b16 %v877_v41, %v876_v63  ;;  %v656_v41 = vpack.c.bf16 %v7298_v22, %v7298_v22  ;;  %v7358_v60 = vunpack.c.l.b16 %v672_v59 }
 0x163   : > { %10179 = vst [vmem:[#allocation119_spill] sm:$0xff] %v7250_v29  ;;  %v7304_v29 = vunpack.i.l.bf16 %v7138_v17  ;;  %v7324_v17 = vunpack.i.l.bf16 %v6225_v55 }
 0x164   : > { %10180 = vst [vmem:[#allocation120_spill] sm:$0xff] %v7253_v45  ;;  %v7306_v45 = vunpack.c.l.b16 %v670_v35  ;;  %v7360_v63 = vunpack.c.l.b16 %v656_v41 }
 0x165   : > { %10181 = vst [vmem:[#allocation121_spill] sm:$0xff] %v7256_v25  ;;  %v7312_v25 = vunpack.c.l.b16 %v638_v0  ;;  %v7346_v0 = vunpack.i.l.bf16 %v7193_v20 }
 0x166   : > { %10182 = vst [vmem:[#allocation122_spill] sm:$0xff] %v7259_v58  ;;  %v7314_v58 = vunpack.c.l.b16 %v622_v30  ;;  %v6123_v30 = vpop.trf.xlu0 }
 0x167   : > { %10183 = vst [vmem:[#allocation123_spill] sm:$0xff] %v7262_v47  ;;  %v1168_v47 = vunpack.c.l.b16 %v654_v12  ;;  %v7337_v12 = vunpack.i.h.bf16 %v7186_v62 }
 0x168   : > { %10184 = vst [vmem:[#allocation124_spill] sm:$0xff] %v7265_v10  ;;  %v7316_v10 = vunpack.c.l.b16 %v671_v3  ;;  %v7349_v3 = vunpack.i.h.bf16 %v7234_v54 }
 0x169   : > { %10185 = vst [vmem:[#allocation125_spill] sm:$0xff] %v7267_v43  ;;  %v7326_v35 = vpack.c.b16 %v1169_v53, %v1168_v47  ;;  %v7343_v47 = vunpack.i.h.bf16 %v7193_v20  ;;  %v6235_v53 = vpop.trf.xlu1  ;;  %v7362_v20 = vunpack.i.h.bf16 %v6230_v8  ;;  %v7368_v43 = vunpack.i.l.bf16 %v6123_v30 }
 0x16a   : > { %10186 = vst [vmem:[#allocation126_spill] sm:$0xff] %v7269_v61  ;;  %v7322_v61 = vunpack.i.h.bf16 %v6225_v55  ;;  %v7340_v55 = vunpack.i.l.bf16 %v7186_v62  ;;  %v626_v62 = vpack.c.bf16 %v7324_v17, %v7324_v17  ;;  %v7370_v54 = vunpack.i.h.bf16 %v6235_v53 }
 0x16b   : > { %10187 = vst [vmem:[#allocation127_spill] sm:$0xff] %v7274_v26  ;;  %v7320_v26 = vunpack.c.l.b16 %v623_v48  ;;  %v7372_v21 = vunpack.i.l.bf16 %v6235_v53  ;;  %v641_v41 = vpack.c.bf16 %v7343_v47, %v7343_v47 }
 0x16c   : > { %10188 = vst [vmem:[#allocation128_spill] sm:$0xff] %v7276_v27  ;;  %v642_v48 = vpack.c.bf16 %v7322_v61, %v7322_v61  ;;  %v657_v59 = vpack.c.bf16 %v7340_v55, %v7340_v55  ;;  %v882_v31 = vunpack.c.l.b16 %v626_v62 }
 0x16d   : > { %10189 = vst [vmem:[#allocation129_spill] sm:$0xff] %v7278_v2  ;;  %v628_v62 = vpack.c.bf16 %v7372_v21, %v7372_v21 }
 0x16e   : > { %10190 = vst [vmem:[#allocation130_spill] sm:$0xff] %v7295_v38  ;;  %v7364_v38 = vunpack.i.l.bf16 %v6230_v8  ;;  %v625_v8 = vpack.c.bf16 %v7346_v0, %v7346_v0  ;;  %v1027_v53 = vunpack.c.l.b16 %v642_v48  ;;  %v644_v48 = vpack.c.bf16 %v7370_v54, %v7370_v54 }
 0x16f   : > { %10191 = vst [vmem:[#allocation131_spill] sm:$0xff] %v7298_v22  ;;  %v7366_v22 = vunpack.i.h.bf16 %v6123_v30  ;;  %v674_v30 = vpack.c.bf16 %v7349_v3, %v7349_v3 }
 0x170   : > { %10192 = vst [vmem:[#allocation132_spill] sm:$0xff] %v7301_v9  ;;  %v1029_v49 = vunpack.c.l.b16 %v644_v48 }
 0x171   : > { %10193 = vst [vmem:[#allocation133_spill] sm:$0xff] %v7304_v29 }
 0x172   : > { %10194 = vst [vmem:[#allocation134_spill] sm:$0xff] %v7308_v44 }
 0x173   : > { %10195 = vst [vmem:[#allocation135_spill] sm:$0xff] %v7310_v5 }
 0x174   : > { %10196 = vst [vmem:[#allocation136_spill] sm:$0xff] %v7322_v61  ;;  %v673_v61 = vpack.c.bf16 %v7337_v12, %v7337_v12 }
 0x175   : > { %10197 = vst [vmem:[#allocation137_spill] sm:$0xff] %v7324_v17  ;;  %v658_v17 = vpack.c.bf16 %v7352_v46, %v7352_v46 }
 0x176   : > { %10198 = vst [vmem:[#allocation138_spill] sm:$0xff] %v7326_v35 }
 0x177   : > { %10199 = vst [vmem:[#allocation139_spill] sm:$0xff] %v7337_v12  ;;  %v7388_v12 = vunpack.i.l.bf16 %v6118_v36  ;;  %v6128_v36 = vpop.trf.xlu0 }
 0x178   : > { %10200 = vst [vmem:[#allocation140_spill] sm:$0xff] %v7340_v55  ;;  %v643_v55 = vpack.c.bf16 %v7362_v20, %v7362_v20  ;;  %v7404_v13 = vunpack.i.l.bf16 %v6128_v36 }
 0x179   : > { %10201 = vst [vmem:[#allocation141_spill] sm:$0xff] %v7343_v47  ;;  %v627_v47 = vpack.c.bf16 %v7364_v38, %v7364_v38 }
 0x17a   : > { %10202 = vst [vmem:[#allocation142_spill] sm:$0xff] %v7346_v0  ;;  %v676_v0 = vpack.c.bf16 %v7366_v22, %v7366_v22  ;;  %v1028_v27 = vunpack.c.l.b16 %v643_v55  ;;  %v881_v55 = vunpack.c.l.b16 %v625_v8  ;;  %v7475_v8 = vpack.c.b16 %v7316_v10, %v7306_v45  ;;  %v10228_v10 = vld [vmem:[#allocation24_spill] sm:$0xff] }
 0x17b   : > { %10203 = vst [vmem:[#allocation143_spill] sm:$0xff] %v7349_v3  ;;  %v660_v3 = vpack.c.bf16 %v7368_v43, %v7368_v43  ;;  %v7491_v45 = vpack.c.b16 %v7318_v42, %v7312_v25  ;;  %v743_v25 = vpack.c.bf16 %v6892_v24, %v6892_v24  ;;  %v758_v42 = vpack.c.bf16 %v6877_v51, %v6877_v51  ;;  %v10272_v24 = vld [vmem:[#allocation67_spill] sm:$0xff]  ;;  %v10273_v51 = vld [vmem:[#allocation58_spill] sm:$0xff] }
 0x17c   : > { %10204 = vst [vmem:[#allocation144_spill] sm:$0xff] %v7352_v46  ;;  %v7402_v46 = vunpack.i.h.bf16 %v6128_v36  ;;  %v884_v36 = vunpack.c.l.b16 %v628_v62  ;;  %v1319_v5 = vunpack.c.l.b16 %v676_v0  ;;  %v1317_v62 = vunpack.c.l.b16 %v674_v30 }
 0x17d   : > { %10205 = vst [vmem:[#allocation145_spill] sm:$0xff] %v7362_v20  ;;  %v6240_v20 = vpop.trf.xlu1  ;;  %v1174_v44 = vunpack.c.l.b16 %v660_v3  ;;  %v756_v0 = vpack.c.bf16 %v7050_v57, %v7050_v57  ;;  %v1172_v3 = vunpack.c.l.b16 %v658_v17 }
 0x17e   : > { %10206 = vst [vmem:[#allocation146_spill] sm:$0xff] %v7364_v38  ;;  %v7406_v34 = vunpack.i.h.bf16 %v6240_v20  ;;  %v7408_v38 = vunpack.i.l.bf16 %v6240_v20 }
 0x17f   : > { %10207 = vst [vmem:[#allocation147_spill] sm:$0xff] %v7366_v22  ;;  %v675_v22 = vpack.c.bf16 %v7386_v15, %v7386_v15 }
 0x180   : > { %10208 = vst [vmem:[#allocation148_spill] sm:$0xff] %v7368_v43  ;;  %v659_v43 = vpack.c.bf16 %v7388_v12, %v7388_v12  ;;  %v645_v33 = vpack.c.bf16 %v7406_v34, %v7406_v34  ;;  %v629_v20 = vpack.c.bf16 %v7408_v38, %v7408_v38 }
 0x181   : > { %10209 = vst [vmem:[#allocation149_spill] sm:$0xff] %v7370_v54  ;;  %v677_v54 = vpack.c.bf16 %v7402_v46, %v7402_v46 }
 0x182   : > { %10210 = vst [vmem:[#allocation150_spill] sm:$0xff] %v7372_v21  ;;  %v661_v21 = vpack.c.bf16 %v7404_v13, %v7404_v13  ;;  %v1030_v56 = vunpack.c.l.b16 %v645_v33  ;;  %v885_v23 = vunpack.c.l.b16 %v629_v20  ;;  %v1173_v40 = vunpack.c.l.b16 %v659_v43 }
 0x183   : > { %10211 = vst [vmem:[#allocation151_spill] sm:$0xff] %v7386_v15  ;;  %v1320_v15 = vunpack.c.l.b16 %v677_v54  ;;  %v772_v33 = vpack.c.bf16 %v7044_v39, %v7044_v39 }
 0x184   : > { %10212 = vst [vmem:[#allocation152_spill] sm:$0xff] %v7388_v12  ;;  %v1175_v2 = vunpack.c.l.b16 %v661_v21  ;;  %v883_v12 = vunpack.c.l.b16 %v627_v47  ;;  %v757_v21 = vpack.c.bf16 %v7074_v19, %v7074_v19  ;;  %v7446_v43 = vpack.c.b16 %v1173_v40, %v1172_v3 }
 0x185   : > { %10213 = vst [vmem:[#allocation153_spill] sm:$0xff] %v7402_v46  ;;  %v1318_v46 = vunpack.c.l.b16 %v675_v22  ;;  %v7424_v48 = vpack.c.b16 %v1320_v15, %v1319_v5  ;;  %v7444_v15 = vpack.c.b16 %v1028_v27, %v1027_v53  ;;  %v788_v22 = vpack.c.bf16 %v7041_v6, %v7041_v6 }
 0x186   : > { %10214 = vst [vmem:[#allocation154_spill] sm:$0xff] %v7404_v13  ;;  %v7422_v28 = vpack.c.b16 %v1175_v2, %v1174_v44  ;;  %v7426_v13 = vpack.c.b16 %v885_v23, %v884_v36  ;;  %v773_v23 = vpack.c.bf16 %v7065_v4, %v7065_v4  ;;  %v1316_v44 = vunpack.c.l.b16 %v673_v61  ;;  %v10241_v4 = vld [vmem:[#allocation129_spill] sm:$0xff] }
 0x187   : > { %10215 = vst [vmem:[#allocation155_spill] sm:$0xff] %v7406_v34  ;;  %v7428_v34 = vpack.c.b16 %v1030_v56, %v1029_v49  ;;  %1337 = vmatpush.bf16.msra.mxu3 %v7424_v48  ;;  %v1171_v49 = vunpack.c.l.b16 %v657_v59  ;;  %v7442_v56 = vpack.c.b16 %v883_v12, %v882_v31  ;;  %v7448_v2 = vpack.c.b16 %v1318_v46, %v1317_v62  ;;  %v10223_v59 = vld [vmem:[#allocation25_spill] sm:$0xff] }
 0x188   : > { %10216 = vst [vmem:[#allocation156_spill] sm:$0xff] %v7408_v38  ;;  %1192 = vmatpush.bf16.msra.mxu2 %v7422_v28  ;;  %902 = vmatpush.bf16.msra.mxu0 %v7426_v13  ;;  %v789_v5 = vpack.c.bf16 %v7062_v50, %v7062_v50  ;;  %v10221_v61 = vpack.c.bf16 %v7301_v9, %v7301_v9  ;;  %v1026_v27 = vunpack.c.l.b16 %v641_v41  ;;  %v836_v40 = vunpack.c.l.b16 %v756_v0  ;;  %v10238_v9 = vld [vmem:[#allocation20_spill] sm:$0xff]  ;;  %v10239_v38 = vld [vmem:[#allocation74_spill] sm:$0xff] }
 0x189   : > { %10217 = vst [vmem:[#allocation157_spill] sm:$0xff] %v7422_v28  ;;  %1047 = vmatpush.bf16.msra.mxu1 %v7428_v34  ;;  %v10222_v31 = vpack.c.bf16 %v7304_v29, %v7304_v29  ;;  %v837_v47 = vunpack.c.l.b16 %v757_v21  ;;  %v981_v46 = vunpack.c.l.b16 %v772_v33  ;;  %v982_v54 = vunpack.c.l.b16 %v773_v23 }
 0x18a   : > { %10218 = vst [vmem:[#allocation158_spill] sm:$0xff] %v7424_v48  ;;  %v1025_v17 = vunpack.c.l.b16 %v10221_v61  ;;  %v7463_v30 = vmul.f32 0.002, %v10223_v59  ;;  %v7468_v53 = vpack.c.b16 %v1171_v49, %v7360_v63  ;;  %v7471_v41 = vpack.c.b16 %v1316_v44, %v7358_v60 }
 0x18b   : > { %10219 = vst [vmem:[#allocation159_spill] sm:$0xff] %v7446_v43  ;;  %v880_v12 = vunpack.c.l.b16 %v10222_v31  ;;  %1338 = vmatpush.bf16.msra.mxu3 %v7448_v2  ;;  %v1126_v36 = vunpack.c.l.b16 %v788_v22  ;;  %v1127_v20 = vunpack.c.l.b16 %v789_v5  ;;  %v804_v62 = vpack.c.bf16 %v7038_v52, %v7038_v52 }
 0x18c   : > { %10220 = vst [vmem:[#allocation160_spill] sm:$0xff] %v7448_v2  ;;  %1193 = vmatpush.bf16.msra.mxu2 %v7446_v43  ;;  %903 = vmatpush.bf16.msra.mxu0 %v7442_v56  ;;  %v805_v0 = vpack.c.bf16 %v7053_v37, %v7053_v37  ;;  %v7483_v21 = vpack.c.b16 %v1026_v27, %v1025_v17  ;;  %v7494_v60 = vmul.f32 0.002, %v10228_v10 }
 0x18d   : > { %10224 = vst [vmem:[#allocation25_spill] sm:$0xff] %v7463_v30  ;;  %1048 = vmatpush.bf16.msra.mxu1 %v7444_v15  ;;  %v7481_v3 = vpack.c.b16 %v881_v55, %v880_v12  ;;  %v7487_v63 = vpack.c.b16 %v7320_v26, %v7314_v58  ;;  %v7498_v33 = vpack.c.b16 %v837_v47, %v836_v40  ;;  %v10232_v26 = vld [vmem:[#allocation23_spill] sm:$0xff]  ;;  %v1271_v5 = vunpack.c.l.b16 %v804_v62 }
 0x18e   : > { %10225 = vst [vmem:[#allocation161_spill] sm:$0xff] %v7468_v53  ;;  %v7500_v23 = vpack.c.b16 %v982_v54, %v981_v46  ;;  %v742_v44 = vpack.c.bf16 %v6880_v11, %v6880_v11  ;;  %v7505_v58 = vmul.f32 0.002, %v10232_v26  ;;  %v759_v49 = vpack.c.bf16 %v6889_v32, %v6889_v32  ;;  %v10235_v46 = vld [vmem:[#allocation22_spill] sm:$0xff]  ;;  %v10236_v62 = vld [vmem:[#allocation19_spill] sm:$0xff] }
 0x18f   : > { %10226 = vst [vmem:[#allocation162_spill] sm:$0xff] %v7471_v41  ;;  %1339 = vmatpush.bf16.msra.mxu3 %v7471_v41  ;;  %v7515_v22 = vpack.c.b16 %v1127_v20, %v1126_v36  ;;  %v1272_v61 = vunpack.c.l.b16 %v805_v0  ;;  %v774_v17 = vpack.c.bf16 %v6874_v7, %v6874_v7  ;;  %v775_v31 = vpack.c.bf16 %v6883_v14, %v6883_v14 }
 0x190   : > { %10227 = vst [vmem:[#allocation163_spill] sm:$0xff] %v7475_v8  ;;  %1194 = vmatpush.bf16.msra.mxu2 %v7468_v53  ;;  %904 = vmatpush.bf16.msra.mxu0 %v7481_v3  ;;  %v790_v12 = vpack.c.bf16 %v6871_v1, %v6871_v1  ;;  %v791_v27 = vpack.c.bf16 %v6886_v18, %v6886_v18  ;;  %v822_v40 = vunpack.c.l.b16 %v742_v44  ;;  %v823_v36 = vunpack.c.l.b16 %v743_v25  ;;  %v10262_v18 = vld [vmem:[#allocation66_spill] sm:$0xff]  ;;  %v10269_v1 = vld [vmem:[#allocation112_spill] sm:$0xff] }
 0x191   : > { %10229 = vst [vmem:[#allocation24_spill] sm:$0xff] %v7494_v60  ;;  %1049 = vmatpush.bf16.msra.mxu1 %v7483_v21  ;;  %v754_v55 = vpack.c.bf16 %v7023_v16, %v7023_v16  ;;  %v755_v47 = vpack.c.bf16 %v7494_v60, %v7494_v60  ;;  %v770_v54 = vpack.c.bf16 %v10235_v46, %v10235_v46  ;;  %v967_v20 = vunpack.c.l.b16 %v758_v42  ;;  %v10240_v42 = vld [vmem:[#allocation128_spill] sm:$0xff]  ;;  %v10248_v46 = vld [vmem:[#allocation14_spill] sm:$0xff] }
 0x192   : > { %10230 = vst [vmem:[#allocation164_spill] sm:$0xff] %v7498_v33  ;;  %v771_v59 = vpack.c.bf16 %v7463_v30, %v7463_v30  ;;  %v786_v0 = vpack.c.bf16 %v10236_v62, %v10236_v62  ;;  %v787_v10 = vpack.c.bf16 %v7505_v58, %v7505_v58  ;;  %v7541_v44 = vpack.c.b16 %v1272_v61, %v1271_v5  ;;  %v10242_v61 = vld [vmem:[#allocation134_spill] sm:$0xff]  ;;  %v10244_v62 = vld [vmem:[#allocation73_spill] sm:$0xff]  ;;  %v10246_v30 = vld [vmem:[#allocation72_spill] sm:$0xff] }
 0x193   : > { %10231 = vst [vmem:[#allocation165_spill] sm:$0xff] %v7500_v23  ;;  %1340 = vmatpush.bf16.msra.mxu3 %v7475_v8  ;;  %v968_v26 = vunpack.c.l.b16 %v759_v49  ;;  %v802_v29 = vpack.c.bf16 %v10238_v9, %v10238_v9  ;;  %v803_v37 = vpack.c.bf16 %v10239_v38, %v10239_v38  ;;  %v1112_v50 = vunpack.c.l.b16 %v774_v17  ;;  %v10243_v49 = vld [vmem:[#allocation135_spill] sm:$0xff] }
 0x194   : > { %10233 = vst [vmem:[#allocation23_spill] sm:$0xff] %v7505_v58  ;;  %1195 = vmatpush.bf16.msra.mxu2 %v7326_v35  ;;  %905 = vmatpush.bf16.msra.mxu0 %v7487_v63  ;;  %v1113_v52 = vunpack.c.l.b16 %v775_v31  ;;  %v1257_v6 = vunpack.c.l.b16 %v790_v12  ;;  %v1258_v25 = vunpack.c.l.b16 %v791_v27  ;;  %v834_v19 = vunpack.c.l.b16 %v754_v55  ;;  %v10245_v31 = vld [vmem:[#allocation17_spill] sm:$0xff] }
 0x195   : > { %10234 = vst [vmem:[#allocation166_spill] sm:$0xff] %v7515_v22  ;;  %1050 = vmatpush.bf16.msra.mxu1 %v7491_v45  ;;  %v835_v39 = vunpack.c.l.b16 %v755_v47  ;;  %v979_v58 = vunpack.c.l.b16 %v770_v54  ;;  %v980_v5 = vunpack.c.l.b16 %v771_v59  ;;  %v1124_v57 = vunpack.c.l.b16 %v786_v0  ;;  %v10247_v47 = vld [vmem:[#allocation18_spill] sm:$0xff] }
 0x196   : > { %10237 = vst [vmem:[#allocation167_spill] sm:$0xff] %v7541_v44  ;;  %v1125_v9 = vunpack.c.l.b16 %v787_v10  ;;  %v752_v17 = vpack.c.bf16 %v10244_v62, %v10244_v62  ;;  %v753_v12 = vpack.c.bf16 %v10245_v31, %v10245_v31  ;;  %v1269_v27 = vunpack.c.l.b16 %v802_v29  ;;  %v10250_v31 = vld [vmem:[#allocation116_spill] sm:$0xff] }
 0x197   : > { %1341 = vmatpush.bf16.msra.mxu3 %v10241_v4  ;;  %v1270_v38 = vunpack.c.l.b16 %v803_v37  ;;  %v768_v55 = vpack.c.bf16 %v10246_v30, %v10246_v30  ;;  %v769_v54 = vpack.c.bf16 %v10247_v47, %v10247_v47  ;;  %v7559_v59 = vpack.c.b16 %v823_v36, %v822_v40  ;;  %v10251_v37 = vld [vmem:[#allocation117_spill] sm:$0xff]  ;;  %v10254_v47 = vld [vmem:[#allocation71_spill] sm:$0xff]  ;;  %v10261_v62 = vld [vmem:[#allocation16_spill] sm:$0xff] }
 0x198   : > { %1196 = vmatpush.bf16.msra.mxu2 %v10240_v42  ;;  %906 = vmatpush.bf16.msra.mxu0 %v10242_v61  ;;  %v7561_v60 = vpack.c.b16 %v968_v26, %v967_v20  ;;  %v7563_v0 = vpack.c.b16 %v1113_v52, %v1112_v50  ;;  %v7565_v10 = vpack.c.b16 %v1258_v25, %v1257_v6  ;;  %v7568_v16 = vmul.f32 0.002, %v10248_v46  ;;  %v10255_v36 = vld [vmem:[#allocation125_spill] sm:$0xff]  ;;  %v10256_v52 = vld [vmem:[#allocation126_spill] sm:$0xff]  ;;  %v10258_v20 = vld [vmem:[#allocation15_spill] sm:$0xff] }
 0x199   : > { %1051 = vmatpush.bf16.msra.mxu1 %v10243_v49  ;;  %v7572_v29 = vpack.c.b16 %v835_v39, %v834_v19  ;;  %v7574_v30 = vpack.c.b16 %v980_v5, %v979_v58  ;;  %v784_v40 = vpack.c.bf16 %v10254_v47, %v10254_v47  ;;  %v7580_v6 = vpack.c.b16 %v1125_v9, %v1124_v57  ;;  %v10260_v58 = vld [vmem:[#allocation70_spill] sm:$0xff]  ;;  %v10263_v57 = vld [vmem:[#allocation69_spill] sm:$0xff]  ;;  %v10282_v49 = vld [vmem:[#allocation103_spill] sm:$0xff] }
 0x19a   : > { %10249 = vst [vmem:[#allocation14_spill] sm:$0xff] %v7568_v16  ;;  %v832_v50 = vunpack.c.l.b16 %v752_v17  ;;  %v833_v46 = vunpack.c.l.b16 %v753_v12  ;;  %v785_v26 = vpack.c.bf16 %v10258_v20, %v10258_v20  ;;  %v7584_v25 = vpack.c.b16 %v1270_v38, %v1269_v27  ;;  %v10264_v17 = vld [vmem:[#allocation65_spill] sm:$0xff]  ;;  %v10265_v20 = vld [vmem:[#allocation104_spill] sm:$0xff] }
 0x19b   : > { %1342 = vmatpush.bf16.msra.mxu3 %v10251_v37  ;;  %10252 = vst [vmem:[#allocation168_spill] sm:$0xff] %v7572_v29  ;;  %v977_v39 = vunpack.c.l.b16 %v768_v55  ;;  %v978_v19 = vunpack.c.l.b16 %v769_v54  ;;  %v800_v5 = vpack.c.bf16 %v10260_v58, %v10260_v58  ;;  %v801_v47 = vpack.c.bf16 %v10261_v62, %v10261_v62  ;;  %v10266_v38 = vld [vmem:[#allocation105_spill] sm:$0xff]  ;;  %v10267_v54 = vld [vmem:[#allocation64_spill] sm:$0xff] }
 0x19c   : > { %1197 = vmatpush.bf16.msra.mxu2 %v10250_v31  ;;  %10253 = vst [vmem:[#allocation169_spill] sm:$0xff] %v7574_v30  ;;  %907 = vmatpush.bf16.msra.mxu0 %v10255_v36  ;;  %v750_v14 = vpack.c.bf16 %v10262_v18, %v10262_v18  ;;  %v751_v9 = vpack.c.bf16 %v10263_v57, %v10263_v57  ;;  %v1122_v27 = vunpack.c.l.b16 %v784_v40  ;;  %v10268_v58 = vld [vmem:[#allocation68_spill] sm:$0xff]  ;;  %v10270_v57 = vld [vmem:[#allocation113_spill] sm:$0xff]  ;;  %v1123_v7 = vunpack.c.l.b16 %v785_v26 }
 0x19d   : > { %1052 = vmatpush.bf16.msra.mxu1 %v10256_v52  ;;  %10257 = vst [vmem:[#allocation170_spill] sm:$0xff] %v7580_v6  ;;  %v766_v12 = vpack.c.bf16 %v10264_v17, %v10264_v17  ;;  %v767_v55 = vpack.c.bf16 %v7568_v16, %v7568_v16  ;;  %v782_v62 = vpack.c.bf16 %v10267_v54, %v10267_v54  ;;  %v10271_v17 = vld [vmem:[#allocation63_spill] sm:$0xff]  ;;  %v1267_v11 = vunpack.c.l.b16 %v800_v5  ;;  %v10277_v31 = vld [vmem:[#allocation56_spill] sm:$0xff]  ;;  %v10280_v5 = vld [vmem:[#allocation97_spill] sm:$0xff] }
 0x19e   : > { %10259 = vst [vmem:[#allocation171_spill] sm:$0xff] %v7584_v25  ;;  %v783_v18 = vpack.c.bf16 %v10268_v58, %v10268_v58  ;;  %v798_v32 = vpack.c.bf16 %v10271_v17, %v10271_v17  ;;  %v799_v40 = vpack.c.bf16 %v10272_v24, %v10272_v24  ;;  %v748_v16 = vpack.c.bf16 %v10273_v51, %v10273_v51  ;;  %v10278_v52 = vld [vmem:[#allocation60_spill] sm:$0xff] }
 0x19f   : > { %1343 = vmatpush.bf16.msra.mxu3 %v10266_v38  ;;  %v10274_v38 = vld [vmem:[#allocation62_spill] sm:$0xff]  ;;  %v1268_v26 = vunpack.c.l.b16 %v801_v47  ;;  %v830_v37 = vunpack.c.l.b16 %v750_v14  ;;  %v780_v17 = vpack.c.bf16 %v10277_v31, %v10277_v31  ;;  %v781_v24 = vpack.c.bf16 %v10278_v52, %v10278_v52  ;;  %v10279_v36 = vld [vmem:[#allocation96_spill] sm:$0xff] }
 0x1a0   : > { %1198 = vmatpush.bf16.msra.mxu2 %v10265_v20  ;;  %908 = vmatpush.bf16.msra.mxu0 %v10269_v1  ;;  %v749_v54 = vpack.c.bf16 %v10274_v38, %v10274_v38  ;;  %v10275_v20 = vld [vmem:[#allocation57_spill] sm:$0xff]  ;;  %v831_v51 = vunpack.c.l.b16 %v751_v9  ;;  %v975_v38 = vunpack.c.l.b16 %v766_v12  ;;  %v976_v4 = vunpack.c.l.b16 %v767_v55  ;;  %v10284_v12 = vld [vmem:[#allocation59_spill] sm:$0xff]  ;;  %v10285_v55 = vld [vmem:[#allocation12_spill] sm:$0xff] }
 0x1a1   : > { %1053 = vmatpush.bf16.msra.mxu1 %v10270_v57  ;;  %v764_v58 = vpack.c.bf16 %v10275_v20, %v10275_v20  ;;  %v10276_v1 = vld [vmem:[#allocation61_spill] sm:$0xff]  ;;  %v1120_v42 = vunpack.c.l.b16 %v782_v62  ;;  %v10281_v20 = vld [vmem:[#allocation102_spill] sm:$0xff]  ;;  %v1121_v47 = vunpack.c.l.b16 %v783_v18  ;;  %v1265_v14 = vunpack.c.l.b16 %v798_v32 }
 0x1a2   : > { %v765_v57 = vpack.c.bf16 %v10276_v1, %v10276_v1  ;;  %v1266_v1 = vunpack.c.l.b16 %v799_v40  ;;  %v828_v61 = vunpack.c.l.b16 %v748_v16  ;;  %v829_v52 = vunpack.c.l.b16 %v749_v54 }
 0x1a3   : > { %1344 = vmatpush.bf16.msra.mxu3 %v10280_v5  ;;  %v973_v31 = vunpack.c.l.b16 %v764_v58  ;;  %v10283_v5 = vld [vmem:[#allocation55_spill] sm:$0xff]  ;;  %v7632_v62 = vpack.c.b16 %v833_v46, %v832_v50  ;;  %v1118_v18 = vunpack.c.l.b16 %v780_v17  ;;  %v1119_v32 = vunpack.c.l.b16 %v781_v24  ;;  %v10287_v50 = vld [vmem:[#allocation13_spill] sm:$0xff] }
 0x1a4   : > { %1199 = vmatpush.bf16.msra.mxu2 %v10279_v36  ;;  %909 = vmatpush.bf16.msra.mxu0 %v10281_v20  ;;  %v974_v36 = vunpack.c.l.b16 %v765_v57  ;;  %v796_v9 = vpack.c.bf16 %v10283_v5, %v10283_v5  ;;  %v797_v16 = vpack.c.bf16 %v10284_v12, %v10284_v12  ;;  %v7637_v40 = vmul.f32 0.002, %v10285_v55 }
 0x1a5   : > { %1054 = vmatpush.bf16.msra.mxu1 %v10282_v49  ;;  %v7641_v58 = vpack.c.b16 %v978_v19, %v977_v39  ;;  %v7643_v57 = vpack.c.b16 %v1123_v7, %v1122_v27  ;;  %v7645_v54 = vpack.c.b16 %v1268_v26, %v1267_v11  ;;  %v7648_v46 = vmul.f32 0.002, %v10287_v50  ;;  %v10297_v50 = vld [vmem:[#allocation52_spill] sm:$0xff] }
 0x1a6   : > { %10286 = vst [vmem:[#allocation12_spill] sm:$0xff] %v7637_v40  ;;  %1345 = vmatmul.bf16.vlgmr.msra.gmra.mxu3 %v7565_v10  ;;  %v7652_v24 = vpack.c.b16 %v831_v51, %v830_v37  ;;  %v7654_v17 = vpack.c.b16 %v976_v4, %v975_v38  ;;  %v7656_v55 = vpack.c.b16 %v1121_v47, %v1120_v42  ;;  %v1263_v19 = vunpack.c.l.b16 %v796_v9  ;;  %v10289_v42 = vld [vmem:[#allocation44_spill] sm:$0xff]  ;;  %v10294_v47 = vld [vmem:[#allocation46_spill] sm:$0xff]  ;;  %v10295_v9 = vld [vmem:[#allocation41_spill] sm:$0xff] }
 0x1a7   : > { %1853 = vmatpush.bf16.msrb.mxu3 %v7541_v44  ;;  %910 = vmatmul.bf16.vlgmr.msra.gmra.mxu0 %v7559_v59  ;;  %10288 = vst [vmem:[#allocation13_spill] sm:$0xff] %v7648_v46  ;;  %v7660_v7 = vpack.c.b16 %v1266_v1, %v1265_v14  ;;  %v7662_v11 = vpack.c.b16 %v829_v52, %v828_v61  ;;  %v1264_v4 = vunpack.c.l.b16 %v797_v16  ;;  %v10290_v38 = vld [vmem:[#allocation48_spill] sm:$0xff]  ;;  %v10291_v1 = vld [vmem:[#allocation43_spill] sm:$0xff]  ;;  %v10302_v44 = vld [vmem:[#allocation53_spill] sm:$0xff] }
 0x1a8   : > { %1562 = vmatpush.bf16.msrb.mxu0 %v7498_v33  ;;  %1756 = vmatpush.bf16.msrb.mxu2 %v7515_v22  ;;  %v7664_v39 = vpack.c.b16 %v974_v36, %v973_v31  ;;  %v7668_v51 = vpack.c.b16 %v1119_v32, %v1118_v18  ;;  %v744_v37 = vpack.c.bf16 %v10289_v42, %v10289_v42  ;;  %v10292_v52 = vld [vmem:[#allocation47_spill] sm:$0xff]  ;;  %v10293_v36 = vld [vmem:[#allocation42_spill] sm:$0xff]  ;;  %v10296_v32 = vld [vmem:[#allocation45_spill] sm:$0xff] }
 0x1a9   : > { %1659 = vmatpush.bf16.msrb.mxu1 %v7500_v23  ;;  %1200 = vmatmul.bf16.vlgmr.msra.gmra.mxu2 %v7563_v0  ;;  %v745_v27 = vpack.c.bf16 %v10290_v38, %v10290_v38  ;;  %v760_v61 = vpack.c.bf16 %v10291_v1, %v10291_v1  ;;  %v761_v31 = vpack.c.bf16 %v10292_v52, %v10292_v52  ;;  %v10301_v1 = vld [vmem:[#allocation50_spill] sm:$0xff] }
 0x1aa   : > { %1055 = vmatmul.bf16.vlgmr.msra.gmra.mxu1 %v7561_v60  ;;  %v776_v26 = vpack.c.bf16 %v10293_v36, %v10293_v36  ;;  %v777_v14 = vpack.c.bf16 %v10294_v47, %v10294_v47  ;;  %v792_v18 = vpack.c.bf16 %v10295_v9, %v10295_v9  ;;  %v793_v16 = vpack.c.bf16 %v10296_v32, %v10296_v32  ;;  %v10298_v36 = vld [vmem:[#allocation51_spill] sm:$0xff]  ;;  %v10299_v9 = vld [vmem:[#allocation49_spill] sm:$0xff] }
 0x1ab   : > { %1854 = vmatpush.bf16.msrb.mxu3 %v7584_v25  ;;  %v746_v12 = vpack.c.bf16 %v10297_v50, %v10297_v50  ;;  %v747_v5 = vpack.c.bf16 %v7637_v40, %v7637_v40  ;;  %v762_v52 = vpack.c.bf16 %v10298_v36, %v10298_v36  ;;  %v763_v47 = vpack.c.bf16 %v7648_v46, %v7648_v46  ;;  %v10300_v50 = vld [vmem:[#allocation54_spill] sm:$0xff] }
 0x1ac   : > { %1563 = vmatpush.bf16.msrb.mxu0 %v7572_v29  ;;  %1757 = vmatpush.bf16.msrb.mxu2 %v7580_v6  ;;  %v778_v38 = vpack.c.bf16 %v10299_v9, %v10299_v9  ;;  %v824_v32 = vunpack.c.l.b16 %v744_v37  ;;  %v779_v40 = vpack.c.bf16 %v10300_v50, %v10300_v50  ;;  %v794_v42 = vpack.c.bf16 %v10301_v1, %v10301_v1 }
 0x1ad   : > { %1660 = vmatpush.bf16.msrb.mxu1 %v7574_v30  ;;  %v795_v36 = vpack.c.bf16 %v10302_v44, %v10302_v44  ;;  %v7706_v22 = vpack.c.b16 %v1264_v4, %v1263_v19  ;;  %v825_v46 = vunpack.c.l.b16 %v745_v27  ;;  %v969_v23 = vunpack.c.l.b16 %v760_v61 }
 0x1ae   : > { %v970_v33 = vunpack.c.l.b16 %v761_v31  ;;  %v1114_v9 = vunpack.c.l.b16 %v776_v26  ;;  %v1115_v25 = vunpack.c.l.b16 %v777_v14  ;;  %v1259_v6 = vunpack.c.l.b16 %v792_v18 }
 0x1af   : > { %1855 = vmatpush.bf16.msrb.mxu3 %v7645_v54  ;;  %v1260_v30 = vunpack.c.l.b16 %v793_v16  ;;  %v826_v37 = vunpack.c.l.b16 %v746_v12  ;;  %v827_v50 = vunpack.c.l.b16 %v747_v5  ;;  %v971_v29 = vunpack.c.l.b16 %v762_v52 }
 0x1b0   : > { %1564 = vmatpush.bf16.msrb.mxu0 %v7632_v62  ;;  %1758 = vmatpush.bf16.msrb.mxu2 %v7643_v57  ;;  %v972_v1 = vunpack.c.l.b16 %v763_v47  ;;  %v1116_v19 = vunpack.c.l.b16 %v778_v38  ;;  %v1117_v4 = vunpack.c.l.b16 %v779_v40  ;;  %v1261_v27 = vunpack.c.l.b16 %v794_v42  ;;  %v10313_v40 = vld [vmem:[#allocation104_spill] sm:$0xff] }
 0x1b1   : > { %1661 = vmatpush.bf16.msrb.mxu1 %v7641_v58  ;;  %v1262_v61 = vunpack.c.l.b16 %v795_v36  ;;  %v839_v31 = vpack.c.b16 %v825_v46, %v824_v32  ;;  %v984_v26 = vpack.c.b16 %v970_v33, %v969_v23  ;;  %v1129_v14 = vpack.c.b16 %v1115_v25, %v1114_v9  ;;  %v10305_v33 = vld [vmem:[#allocation128_spill] sm:$0xff]  ;;  %v10306_v23 = vld [vmem:[#allocation129_spill] sm:$0xff] }
 0x1b2   : > { %v1274_v18 = vpack.c.b16 %v1260_v30, %v1259_v6  ;;  %v840_v12 = vpack.c.b16 %v827_v50, %v826_v37  ;;  %v985_v5 = vpack.c.b16 %v972_v1, %v971_v29  ;;  %v1130_v52 = vpack.c.b16 %v1117_v4, %v1116_v19  ;;  %v10303_v30 = vld [vmem:[#allocation134_spill] sm:$0xff]  ;;  %v10310_v29 = vld [vmem:[#allocation117_spill] sm:$0xff]  ;;  %v10311_v6 = vld [vmem:[#allocation112_spill] sm:$0xff] }
 0x1b3   : > { %1856 = vmatpush.bf16.msrb.mxu3 %v7660_v7  ;;  %v1275_v47 = vpack.c.b16 %v1262_v61, %v1261_v27  ;;  %v10312_v25 = vld [vmem:[#allocation113_spill] sm:$0xff]  ;;  %v10315_v42 = vld [vmem:[#allocation96_spill] sm:$0xff] }
 0x1b4   : > { %1565 = vmatpush.bf16.msrb.mxu0 %v7652_v24  ;;  %1759 = vmatpush.bf16.msrb.mxu2 %v7656_v55  ;;  %v10314_v46 = vld [vmem:[#allocation105_spill] sm:$0xff] }
 0x1b5   : > { %1662 = vmatpush.bf16.msrb.mxu1 %v7654_v17 }
 0x1b6   : > { %1350 = vmatmul.bf16.gmra.mxu3 %v1274_v18 }
 0x1b7   : > { %1857 = vmatpush.bf16.msrb.mxu3 %v7706_v22  ;;  %915 = vmatmul.bf16.gmra.mxu0 %v839_v31 }
 0x1b8   : > { %1566 = vmatpush.bf16.msrb.mxu0 %v7662_v11  ;;  %1760 = vmatpush.bf16.msrb.mxu2 %v7668_v51 }
 0x1b9   : > { %1663 = vmatpush.bf16.msrb.mxu1 %v7664_v39  ;;  %1205 = vmatmul.bf16.gmra.mxu2 %v1129_v14 }
 0x1ba   : > { %1060 = vmatmul.bf16.gmra.mxu1 %v984_v26 }
 0x1bb   : > { %1858 = vmatpush.bf16.msrb.mxu3 %v1275_v47 }
 0x1bc   : > { %1567 = vmatpush.bf16.msrb.mxu0 %v840_v12  ;;  %1761 = vmatpush.bf16.msrb.mxu2 %v1130_v52 }
 0x1bd   : > { %1664 = vmatpush.bf16.msrb.mxu1 %v985_v5 }
 0x1bf   : > { %1859 = vmatpush.bf16.msrb.mxu3 %v1274_v18 }
 0x1c0   : > { %1568 = vmatpush.bf16.msrb.mxu0 %v839_v31  ;;  %1762 = vmatpush.bf16.msrb.mxu2 %v1129_v14 }
 0x1c1   : > { %1665 = vmatpush.bf16.msrb.mxu1 %v984_v26 }
 0x1c3   : > { %1860 = vmatpush.bf16.msrb.mxu3 %v7565_v10  ;;  %v10309_v10 = vld [vmem:[#allocation116_spill] sm:$0xff] }
 0x1c4   : > { %1569 = vmatpush.bf16.msrb.mxu0 %v7559_v59  ;;  %1763 = vmatpush.bf16.msrb.mxu2 %v7563_v0  ;;  %v10307_v59 = vld [vmem:[#allocation125_spill] sm:$0xff]  ;;  %v10308_v0 = vld [vmem:[#allocation126_spill] sm:$0xff] }
 0x1c5   : > { %1666 = vmatpush.bf16.msrb.mxu1 %v7561_v60  ;;  %v10304_v60 = vld [vmem:[#allocation135_spill] sm:$0xff] }
 0x1c6   : > { %1355 = vmatmul.bf16.gmra.mxu3 %v1275_v47 }
 0x1c7   : > { %2369 = vmatpush.bf16.msra.mxu3 %v7424_v48  ;;  %920 = vmatmul.bf16.gmra.mxu0 %v840_v12 }
 0x1c8   : > { %2078 = vmatpush.bf16.msra.mxu0 %v7426_v13  ;;  %2272 = vmatpush.bf16.msra.mxu2 %v7422_v28 }
 0x1c9   : > { %2175 = vmatpush.bf16.msra.mxu1 %v7428_v34  ;;  %1210 = vmatmul.bf16.gmra.mxu2 %v1130_v52 }
 0x1ca   : > { %1065 = vmatmul.bf16.gmra.mxu1 %v985_v5 }
 0x1cb   : > { %2370 = vmatpush.bf16.msra.mxu3 %v7448_v2 }
 0x1cc   : > { %2079 = vmatpush.bf16.msra.mxu0 %v7442_v56  ;;  %2273 = vmatpush.bf16.msra.mxu2 %v7446_v43 }
 0x1cd   : > { %2176 = vmatpush.bf16.msra.mxu1 %v7444_v15 }
 0x1cf   : > { %2371 = vmatpush.bf16.msra.mxu3 %v7471_v41 }
 0x1d0   : > { %2080 = vmatpush.bf16.msra.mxu0 %v7481_v3  ;;  %2274 = vmatpush.bf16.msra.mxu2 %v7468_v53 }
 0x1d1   : > { %2177 = vmatpush.bf16.msra.mxu1 %v7483_v21 }
 0x1d3   : > { %2372 = vmatpush.bf16.msra.mxu3 %v7475_v8  ;;  %v10423_v8 = vld [vmem:[#allocation25_spill] sm:$0xff] }
 0x1d4   : > { %2081 = vmatpush.bf16.msra.mxu0 %v7487_v63  ;;  %2275 = vmatpush.bf16.msra.mxu2 %v7326_v35  ;;  %v1415_v35 = vmul.f32 2.0, %v10423_v8 }
 0x1d5   : > { %2178 = vmatpush.bf16.msra.mxu1 %v7491_v45 }
 0x1d6   : > { %1360 = vmatmul.bf16.gmra.mxu3 %v7706_v22  ;;  %v10317_v22 = vld [vmem:[#allocation168_spill] sm:$0xff] }
 0x1d7   : > { %2373 = vmatpush.bf16.msra.mxu3 %v10306_v23  ;;  %925 = vmatmul.bf16.gmra.mxu0 %v7662_v11  ;;  %v10316_v11 = vld [vmem:[#allocation97_spill] sm:$0xff]  ;;  %v10407_v23 = vld [vmem:[#allocation18_spill] sm:$0xff] }
 0x1d8   : > { %2082 = vmatpush.bf16.msra.mxu0 %v10303_v30  ;;  %2276 = vmatpush.bf16.msra.mxu2 %v10305_v33  ;;  %v1413_v33 = vmul.f32 2.0, %v10407_v23 }
 0x1d9   : > { %2179 = vmatpush.bf16.msra.mxu1 %v10304_v60  ;;  %1215 = vmatmul.bf16.gmra.mxu2 %v7668_v51  ;;  %v10319_v51 = vld [vmem:[#allocation170_spill] sm:$0xff] }
 0x1da   : > { %1070 = vmatmul.bf16.gmra.mxu1 %v7664_v39  ;;  %v10318_v39 = vld [vmem:[#allocation169_spill] sm:$0xff] }
 0x1db   : > { %2374 = vmatpush.bf16.msra.mxu3 %v10310_v29  ;;  %v10403_v29 = vld [vmem:[#allocation67_spill] sm:$0xff] }
 0x1dc   : > { %2083 = vmatpush.bf16.msra.mxu0 %v10307_v59  ;;  %2277 = vmatpush.bf16.msra.mxu2 %v10309_v10 }
 0x1dd   : > { %2180 = vmatpush.bf16.msra.mxu1 %v10308_v0 }
 0x1df   : > { %2375 = vmatpush.bf16.msra.mxu3 %v10314_v46  ;;  %v10391_v46 = vld [vmem:[#allocation14_spill] sm:$0xff] }
 0x1e0   : > { %2084 = vmatpush.bf16.msra.mxu0 %v10311_v6  ;;  %2278 = vmatpush.bf16.msra.mxu2 %v10313_v40  ;;  %v1411_v40 = vmul.f32 2.0, %v10391_v46 }
 0x1e1   : > { %2181 = vmatpush.bf16.msra.mxu1 %v10312_v25  ;;  %v10435_v25 = vld [vmem:[#allocation74_spill] sm:$0xff] }
 0x1e2   : > { %v1447_v6 = vmul.f32 2.0, %v10435_v25 }
 0x1e3   : > { %2376 = vmatpush.bf16.msra.mxu3 %v10316_v11  ;;  %v10387_v11 = vld [vmem:[#allocation59_spill] sm:$0xff] }
 0x1e4   : > { %2085 = vmatpush.bf16.msra.mxu0 %v10281_v20  ;;  %2279 = vmatpush.bf16.msra.mxu2 %v10315_v42 }
 0x1e5   : > { %2182 = vmatpush.bf16.msra.mxu1 %v10282_v49  ;;  %v10419_v49 = vld [vmem:[#allocation16_spill] sm:$0xff] }
 0x1e6   : > { %1365 = vmatmul.bf16.gmra.mxu3 %v7660_v7  ;;  %v10323_v7 = vld [vmem:[#allocation166_spill] sm:$0xff] }
 0x1e7   : > { %930 = vmatmul.bf16.gmra.mxu0 %v7652_v24  ;;  %v10320_v24 = vld [vmem:[#allocation171_spill] sm:$0xff] }
 0x1e9   : > { %1220 = vmatmul.bf16.gmra.mxu2 %v7656_v55  ;;  %v10322_v55 = vld [vmem:[#allocation165_spill] sm:$0xff] }
 0x1ea   : > { %1075 = vmatmul.bf16.gmra.mxu1 %v7654_v17  ;;  %v10321_v17 = vld [vmem:[#allocation164_spill] sm:$0xff] }
 0x1f6   : > { %1370 = vmatmul.bf16.gmra.mxu3 %v7645_v54 }
 0x1f7   : > { %935 = vmatmul.bf16.gmra.mxu0 %v7632_v62  ;;  %v10324_v62 = vld [vmem:[#allocation167_spill] sm:$0xff] }
 0x1f9   : > { %1225 = vmatmul.bf16.gmra.mxu2 %v7643_v57 }
 0x1fa   : > { %1080 = vmatmul.bf16.gmra.mxu1 %v7641_v58 }
 0x206   : > { %1375 = vmatmul.bf16.gmra.mxu3 %v10320_v24 }
 0x207   : > { %940 = vmatmul.bf16.gmra.mxu0 %v10317_v22 }
 0x209   : > { %1230 = vmatmul.bf16.gmra.mxu2 %v10319_v51 }
 0x20a   : > { %1085 = vmatmul.bf16.gmra.mxu1 %v10318_v39 }
 0x216   : > { %1380 = vmatmul.bf16.gmra.mxu3 %v10324_v62 }
 0x217   : > { %945 = vmatmul.bf16.gmra.mxu0 %v10321_v17 }
 0x219   : > { %1235 = vmatmul.bf16.gmra.mxu2 %v10323_v7 }
 0x21a   : > { %1090 = vmatmul.bf16.gmra.mxu1 %v10322_v55 }
 0x224   : > { %v911_v58 = vpop.f32.mrf.mxu0 }
 0x225   : > { %v1450_v38 = vpack.c.bf16 %v911_v58, %v911_v58 }
 0x227   : > { %v1056_v57 = vpop.f32.mrf.mxu1  ;;  %v1530_v16 = vunpack.c.l.b16 %v1450_v38 }
 0x228   : > { %v1466_v54 = vpack.c.bf16 %v1056_v57, %v1056_v57 }
 0x229   : > { %v1346_v36 = vpop.f32.mrf.mxu3 }
 0x22a   : > { %v1627_v50 = vunpack.c.l.b16 %v1466_v54  ;;  %v1498_v14 = vpack.c.bf16 %v1346_v36, %v1346_v36 }
 0x22c   : > { %v1201_v1 = vpop.f32.mrf.mxu2  ;;  %v913_v9 = vpop.f32.mrf.mxu0  ;;  %v1821_v51 = vunpack.c.l.b16 %v1498_v14 }
 0x22d   : > { %v1451_v37 = vpack.c.bf16 %v913_v9, %v913_v9  ;;  %v1482_v26 = vpack.c.bf16 %v1201_v1, %v1201_v1 }
 0x22f   : > { %v1058_v32 = vpop.f32.mrf.mxu1  ;;  %v1531_v4 = vunpack.c.l.b16 %v1451_v37  ;;  %v1724_v39 = vunpack.c.l.b16 %v1482_v26 }
 0x230   : > { %v1467_v19 = vpack.c.bf16 %v1058_v32, %v1058_v32 }
 0x231   : > { %v1546_v61 = vpack.c.b16 %v1531_v4, %v1530_v16  ;;  %v1348_v12 = vpop.f32.mrf.mxu3 }
 0x232   : > { %v1628_v27 = vunpack.c.l.b16 %v1467_v19  ;;  %v1499_v52 = vpack.c.bf16 %v1348_v12, %v1348_v12 }
 0x233   : > { %1570 = vmatmul.bf16.vlgmr.msrb.gmra.mxu0 %v1546_v61 }
 0x234   : > { %v1643_v31 = vpack.c.b16 %v1628_v27, %v1627_v50  ;;  %v1203_v18 = vpop.f32.mrf.mxu2  ;;  %v916_v47 = vpop.f32.mrf.mxu0  ;;  %v1822_v17 = vunpack.c.l.b16 %v1499_v52 }
 0x235   : > { %v1483_v5 = vpack.c.bf16 %v1203_v18, %v1203_v18  ;;  %v1452_v62 = vpack.c.bf16 %v916_v47, %v916_v47 }
 0x236   : > { %1667 = vmatmul.bf16.vlgmr.msrb.gmra.mxu1 %v1643_v31  ;;  %v1837_v7 = vpack.c.b16 %v1822_v17, %v1821_v51 }
 0x237   : > { %v1061_v22 = vpop.f32.mrf.mxu1  ;;  %v1725_v24 = vunpack.c.l.b16 %v1483_v5  ;;  %v1532_v36 = vunpack.c.l.b16 %v1452_v62 }
 0x238   : > { %v1468_v58 = vpack.c.bf16 %v1061_v22, %v1061_v22  ;;  %1861 = vmatmul.bf16.vlgmr.msrb.gmra.mxu3 %v1837_v7 }
 0x239   : > { %v1740_v55 = vpack.c.b16 %v1725_v24, %v1724_v39  ;;  %v1351_v38 = vpop.f32.mrf.mxu3 }
 0x23a   : > { %v1629_v9 = vunpack.c.l.b16 %v1468_v58  ;;  %v1500_v61 = vpack.c.bf16 %v1351_v38, %v1351_v38 }
 0x23b   : > { %1764 = vmatmul.bf16.vlgmr.msrb.gmra.mxu2 %v1740_v55 }
 0x23c   : > { %v1206_v57 = vpop.f32.mrf.mxu2  ;;  %v918_v54 = vpop.f32.mrf.mxu0  ;;  %v1823_v5 = vunpack.c.l.b16 %v1500_v61 }
 0x23d   : > { %v1453_v32 = vpack.c.bf16 %v918_v54, %v918_v54  ;;  %v1484_v27 = vpack.c.bf16 %v1206_v57, %v1206_v57 }
 0x23f   : > { %v1063_v1 = vpop.f32.mrf.mxu1  ;;  %v1533_v50 = vunpack.c.l.b16 %v1453_v32  ;;  %v1726_v12 = vunpack.c.l.b16 %v1484_v27 }
 0x240   : > { %v1469_v16 = vpack.c.bf16 %v1063_v1, %v1063_v1 }
 0x241   : > { %v1547_v19 = vpack.c.b16 %v1533_v50, %v1532_v36  ;;  %v1353_v26 = vpop.f32.mrf.mxu3 }
 0x242   : > { %v1630_v37 = vunpack.c.l.b16 %v1469_v16  ;;  %v1501_v18 = vpack.c.bf16 %v1353_v26, %v1353_v26 }
 0x243   : > { %1575 = vmatmul.bf16.gmra.mxu0 %v1547_v19 }
 0x244   : > { %v1644_v4 = vpack.c.b16 %v1630_v37, %v1629_v9  ;;  %v1208_v31 = vpop.f32.mrf.mxu2  ;;  %v1824_v47 = vunpack.c.l.b16 %v1501_v18  ;;  %v921_v22 = vpop.f32.mrf.mxu0 }
 0x245   : > { %v1485_v14 = vpack.c.bf16 %v1208_v31, %v1208_v31  ;;  %v1454_v17 = vpack.c.bf16 %v921_v22, %v921_v22 }
 0x246   : > { %1672 = vmatmul.bf16.gmra.mxu1 %v1644_v4  ;;  %v1838_v24 = vpack.c.b16 %v1824_v47, %v1823_v5 }
 0x247   : > { %v1727_v52 = vunpack.c.l.b16 %v1485_v14  ;;  %v1066_v39 = vpop.f32.mrf.mxu1  ;;  %v1534_v38 = vunpack.c.l.b16 %v1454_v17 }
 0x248   : > { %1866 = vmatmul.bf16.gmra.mxu3 %v1838_v24  ;;  %v1470_v55 = vpack.c.bf16 %v1066_v39, %v1066_v39 }
 0x249   : > { %v1741_v51 = vpack.c.b16 %v1727_v52, %v1726_v12  ;;  %v1356_v62 = vpop.f32.mrf.mxu3 }
 0x24a   : > { %v1631_v54 = vunpack.c.l.b16 %v1470_v55  ;;  %v1502_v19 = vpack.c.bf16 %v1356_v62, %v1356_v62 }
 0x24b   : > { %1769 = vmatmul.bf16.gmra.mxu2 %v1741_v51 }
 0x24c   : > { %v1211_v7 = vpop.f32.mrf.mxu2  ;;  %v923_v58 = vpop.f32.mrf.mxu0  ;;  %v1825_v12 = vunpack.c.l.b16 %v1502_v19 }
 0x24d   : > { %v1455_v1 = vpack.c.bf16 %v923_v58, %v923_v58  ;;  %v1486_v37 = vpack.c.bf16 %v1211_v7, %v1211_v7 }
 0x24f   : > { %v1068_v57 = vpop.f32.mrf.mxu1  ;;  %v1535_v9 = vunpack.c.l.b16 %v1455_v1  ;;  %v1728_v18 = vunpack.c.l.b16 %v1486_v37 }
 0x250   : > { %v1471_v36 = vpack.c.bf16 %v1068_v57, %v1068_v57 }
 0x251   : > { %v1548_v16 = vpack.c.b16 %v1535_v9, %v1534_v38  ;;  %v1358_v27 = vpop.f32.mrf.mxu3 }
 0x252   : > { %v1632_v32 = vunpack.c.l.b16 %v1471_v36  ;;  %v1503_v31 = vpack.c.bf16 %v1358_v27, %v1358_v27 }
 0x253   : > { %1580 = vmatmul.bf16.gmra.mxu0 %v1548_v16 }
 0x254   : > { %v1645_v50 = vpack.c.b16 %v1632_v32, %v1631_v54  ;;  %v1213_v4 = vpop.f32.mrf.mxu2  ;;  %v926_v26 = vpop.f32.mrf.mxu0  ;;  %v1826_v52 = vunpack.c.l.b16 %v1503_v31 }
 0x255   : > { %v1487_v61 = vpack.c.bf16 %v1213_v4, %v1213_v4  ;;  %v1456_v39 = vpack.c.bf16 %v926_v26, %v926_v26 }
 0x256   : > { %1677 = vmatmul.bf16.gmra.mxu1 %v1645_v50  ;;  %v1839_v22 = vpack.c.b16 %v1826_v52, %v1825_v12 }
 0x257   : > { %v1071_v14 = vpop.f32.mrf.mxu1  ;;  %v1729_v5 = vunpack.c.l.b16 %v1487_v61  ;;  %v1536_v62 = vunpack.c.l.b16 %v1456_v39 }
 0x258   : > { %v1472_v51 = vpack.c.bf16 %v1071_v14, %v1071_v14  ;;  %1871 = vmatmul.bf16.gmra.mxu3 %v1839_v22 }
 0x259   : > { %v1742_v47 = vpack.c.b16 %v1729_v5, %v1728_v18  ;;  %v1361_v17 = vpop.f32.mrf.mxu3 }
 0x25a   : > { %v1633_v58 = vunpack.c.l.b16 %v1472_v51  ;;  %v1504_v16 = vpack.c.bf16 %v1361_v17, %v1361_v17 }
 0x25b   : > { %1774 = vmatmul.bf16.gmra.mxu2 %v1742_v47 }
 0x25c   : > { %v1216_v24 = vpop.f32.mrf.mxu2  ;;  %v928_v55 = vpop.f32.mrf.mxu0  ;;  %v1827_v26 = vunpack.c.l.b16 %v1504_v16 }
 0x25d   : > { %v1457_v57 = vpack.c.bf16 %v928_v55, %v928_v55  ;;  %v1488_v32 = vpack.c.bf16 %v1216_v24, %v1216_v24 }
 0x25f   : > { %v1073_v7 = vpop.f32.mrf.mxu1  ;;  %v1537_v54 = vunpack.c.l.b16 %v1457_v57  ;;  %v1730_v31 = vunpack.c.l.b16 %v1488_v32 }
 0x260   : > { %v1473_v38 = vpack.c.bf16 %v1073_v7, %v1073_v7 }
 0x261   : > { %v1549_v36 = vpack.c.b16 %v1537_v54, %v1536_v62  ;;  %v1363_v37 = vpop.f32.mrf.mxu3 }
 0x262   : > { %v1634_v1 = vunpack.c.l.b16 %v1473_v38  ;;  %v1505_v4 = vpack.c.bf16 %v1363_v37, %v1363_v37 }
 0x263   : > { %1585 = vmatmul.bf16.gmra.mxu0 %v1549_v36 }
 0x264   : > { %v1646_v9 = vpack.c.b16 %v1634_v1, %v1633_v58  ;;  %v1218_v50 = vpop.f32.mrf.mxu2  ;;  %v931_v27 = vpop.f32.mrf.mxu0  ;;  %v1828_v18 = vunpack.c.l.b16 %v1505_v4 }
 0x265   : > { %v1489_v19 = vpack.c.bf16 %v1218_v50, %v1218_v50  ;;  %v1458_v52 = vpack.c.bf16 %v931_v27, %v931_v27 }
 0x266   : > { %1682 = vmatmul.bf16.gmra.mxu1 %v1646_v9  ;;  %v1840_v5 = vpack.c.b16 %v1828_v18, %v1827_v26 }
 0x267   : > { %v1076_v61 = vpop.f32.mrf.mxu1  ;;  %v1731_v14 = vunpack.c.l.b16 %v1489_v19  ;;  %v1538_v17 = vunpack.c.l.b16 %v1458_v52 }
 0x268   : > { %v1474_v47 = vpack.c.bf16 %v1076_v61, %v1076_v61  ;;  %1876 = vmatmul.bf16.gmra.mxu3 %v1840_v5 }
 0x269   : > { %v1743_v12 = vpack.c.b16 %v1731_v14, %v1730_v31  ;;  %v1366_v39 = vpop.f32.mrf.mxu3 }
 0x26a   : > { %v1635_v55 = vunpack.c.l.b16 %v1474_v47  ;;  %v1506_v36 = vpack.c.bf16 %v1366_v39, %v1366_v39 }
 0x26b   : > { %1779 = vmatmul.bf16.gmra.mxu2 %v1743_v12 }
 0x26c   : > { %v1221_v22 = vpop.f32.mrf.mxu2  ;;  %v933_v51 = vpop.f32.mrf.mxu0  ;;  %v1829_v27 = vunpack.c.l.b16 %v1506_v36 }
 0x26d   : > { %v1459_v7 = vpack.c.bf16 %v933_v51, %v933_v51  ;;  %v1490_v1 = vpack.c.bf16 %v1221_v22, %v1221_v22 }
 0x26f   : > { %v1078_v24 = vpop.f32.mrf.mxu1  ;;  %v1539_v58 = vunpack.c.l.b16 %v1459_v7  ;;  %v1732_v4 = vunpack.c.l.b16 %v1490_v1 }
 0x270   : > { %v1475_v62 = vpack.c.bf16 %v1078_v24, %v1078_v24 }
 0x271   : > { %v1550_v38 = vpack.c.b16 %v1539_v58, %v1538_v17  ;;  %v1368_v32 = vpop.f32.mrf.mxu3 }
 0x272   : > { %v1636_v57 = vunpack.c.l.b16 %v1475_v62  ;;  %v1507_v50 = vpack.c.bf16 %v1368_v32, %v1368_v32 }
 0x273   : > { %1590 = vmatmul.bf16.gmra.mxu0 %v1550_v38 }
 0x274   : > { %v1647_v54 = vpack.c.b16 %v1636_v57, %v1635_v55  ;;  %v1223_v9 = vpop.f32.mrf.mxu2  ;;  %v936_v37 = vpop.f32.mrf.mxu0  ;;  %v1830_v31 = vunpack.c.l.b16 %v1507_v50 }
 0x275   : > { %v1491_v16 = vpack.c.bf16 %v1223_v9, %v1223_v9  ;;  %v1460_v18 = vpack.c.bf16 %v936_v37, %v936_v37 }
 0x276   : > { %1687 = vmatmul.bf16.gmra.mxu1 %v1647_v54  ;;  %v1841_v14 = vpack.c.b16 %v1830_v31, %v1829_v27 }
 0x277   : > { %v1081_v19 = vpop.f32.mrf.mxu1  ;;  %v1733_v61 = vunpack.c.l.b16 %v1491_v16  ;;  %v1540_v39 = vunpack.c.l.b16 %v1460_v18 }
 0x278   : > { %v1476_v12 = vpack.c.bf16 %v1081_v19, %v1081_v19  ;;  %1881 = vmatmul.bf16.gmra.mxu3 %v1841_v14 }
 0x279   : > { %v1744_v26 = vpack.c.b16 %v1733_v61, %v1732_v4  ;;  %v1371_v52 = vpop.f32.mrf.mxu3 }
 0x27a   : > { %v1637_v51 = vunpack.c.l.b16 %v1476_v12  ;;  %v1508_v38 = vpack.c.bf16 %v1371_v52, %v1371_v52 }
 0x27b   : > { %1784 = vmatmul.bf16.gmra.mxu2 %v1744_v26 }
 0x27c   : > { %v1226_v5 = vpop.f32.mrf.mxu2  ;;  %v938_v47 = vpop.f32.mrf.mxu0  ;;  %v1831_v37 = vunpack.c.l.b16 %v1508_v38 }
 0x27d   : > { %v1461_v24 = vpack.c.bf16 %v938_v47, %v938_v47  ;;  %v1492_v57 = vpack.c.bf16 %v1226_v5, %v1226_v5 }
 0x27f   : > { %v1083_v22 = vpop.f32.mrf.mxu1  ;;  %v1541_v55 = vunpack.c.l.b16 %v1461_v24  ;;  %v1734_v50 = vunpack.c.l.b16 %v1492_v57 }
 0x280   : > { %v1477_v17 = vpack.c.bf16 %v1083_v22, %v1083_v22 }
 0x281   : > { %v1551_v62 = vpack.c.b16 %v1541_v55, %v1540_v39  ;;  %v1373_v1 = vpop.f32.mrf.mxu3 }
 0x282   : > { %v1638_v7 = vunpack.c.l.b16 %v1477_v17  ;;  %v1509_v9 = vpack.c.bf16 %v1373_v1, %v1373_v1 }
 0x283   : > { %1595 = vmatmul.bf16.gmra.mxu0 %v1551_v62 }
 0x284   : > { %v1648_v58 = vpack.c.b16 %v1638_v7, %v1637_v51  ;;  %v1228_v54 = vpop.f32.mrf.mxu2  ;;  %v941_v32 = vpop.f32.mrf.mxu0  ;;  %v1832_v4 = vunpack.c.l.b16 %v1509_v9 }
 0x285   : > { %v1493_v36 = vpack.c.bf16 %v1228_v54, %v1228_v54  ;;  %v1462_v31 = vpack.c.bf16 %v941_v32, %v941_v32 }
 0x286   : > { %1692 = vmatmul.bf16.gmra.mxu1 %v1648_v58  ;;  %v1842_v61 = vpack.c.b16 %v1832_v4, %v1831_v37 }
 0x287   : > { %v1086_v16 = vpop.f32.mrf.mxu1  ;;  %v1735_v19 = vunpack.c.l.b16 %v1493_v36  ;;  %v1542_v52 = vunpack.c.l.b16 %v1462_v31 }
 0x288   : > { %v1478_v26 = vpack.c.bf16 %v1086_v16, %v1086_v16  ;;  %1886 = vmatmul.bf16.gmra.mxu3 %v1842_v61 }
 0x289   : > { %v1745_v27 = vpack.c.b16 %v1735_v19, %v1734_v50  ;;  %v1376_v18 = vpop.f32.mrf.mxu3 }
 0x28a   : > { %v1639_v47 = vunpack.c.l.b16 %v1478_v26  ;;  %v1510_v62 = vpack.c.bf16 %v1376_v18, %v1376_v18 }
 0x28b   : > { %1789 = vmatmul.bf16.gmra.mxu2 %v1745_v27 }
 0x28c   : > { %v1231_v14 = vpop.f32.mrf.mxu2  ;;  %v943_v12 = vpop.f32.mrf.mxu0  ;;  %v1833_v32 = vunpack.c.l.b16 %v1510_v62 }
 0x28d   : > { %v1463_v22 = vpack.c.bf16 %v943_v12, %v943_v12  ;;  %v1494_v7 = vpack.c.bf16 %v1231_v14, %v1231_v14 }
 0x28f   : > { %v1088_v5 = vpop.f32.mrf.mxu1  ;;  %v1543_v51 = vunpack.c.l.b16 %v1463_v22  ;;  %v1736_v9 = vunpack.c.l.b16 %v1494_v7 }
 0x290   : > { %v1479_v39 = vpack.c.bf16 %v1088_v5, %v1088_v5 }
 0x291   : > { %v1552_v17 = vpack.c.b16 %v1543_v51, %v1542_v52  ;;  %v1378_v57 = vpop.f32.mrf.mxu3 }
 0x292   : > { %v1640_v24 = vunpack.c.l.b16 %v1479_v39  ;;  %v1511_v54 = vpack.c.bf16 %v1378_v57, %v1378_v57 }
 0x293   : > { %1600 = vmatmul.bf16.gmra.mxu0 %v1552_v17 }
 0x294   : > { %v1649_v55 = vpack.c.b16 %v1640_v24, %v1639_v47  ;;  %v1233_v58 = vpop.f32.mrf.mxu2  ;;  %v946_v1 = vpop.f32.mrf.mxu0  ;;  %v1834_v50 = vunpack.c.l.b16 %v1511_v54 }
 0x295   : > { %v1495_v38 = vpack.c.bf16 %v1233_v58, %v1233_v58  ;;  %v1464_v4 = vpack.c.bf16 %v946_v1, %v946_v1 }
 0x296   : > { %1697 = vmatmul.bf16.gmra.mxu1 %v1649_v55  ;;  %v1843_v19 = vpack.c.b16 %v1834_v50, %v1833_v32  ;;  %v10325_v32 = vld [vmem:[#allocation36_spill] sm:$0xff]  ;;  %v10326_v50 = vld [vmem:[#allocation35_spill] sm:$0xff] }
 0x297   : > { %v1091_v36 = vpop.f32.mrf.mxu1  ;;  %v1737_v16 = vunpack.c.l.b16 %v1495_v38  ;;  %v1544_v18 = vunpack.c.l.b16 %v1464_v4 }
 0x298   : > { %v1480_v27 = vpack.c.bf16 %v1091_v36, %v1091_v36  ;;  %1891 = vmatmul.bf16.gmra.mxu3 %v1843_v19 }
 0x299   : > { %v1746_v37 = vpack.c.b16 %v1737_v16, %v1736_v9  ;;  %v1381_v31 = vpop.f32.mrf.mxu3  ;;  %v1386_v16 = vmul.f32 2.0, %v10325_v32 }
 0x29a   : > { %v1641_v12 = vunpack.c.l.b16 %v1480_v27  ;;  %v1512_v17 = vpack.c.bf16 %v1381_v31, %v1381_v31  ;;  %v10329_v31 = vld [vmem:[#allocation40_spill] sm:$0xff] }
 0x29b   : > { %1794 = vmatmul.bf16.gmra.mxu2 %v1746_v37  ;;  %v1402_v37 = vmul.f32 2.0, %v10326_v50 }
 0x29c   : > { %v1236_v61 = vpop.f32.mrf.mxu2  ;;  %v948_v26 = vpop.f32.mrf.mxu0  ;;  %v1835_v38 = vunpack.c.l.b16 %v1512_v17 }
 0x29d   : > { %v1465_v5 = vpack.c.bf16 %v948_v26, %v948_v26  ;;  %v1496_v24 = vpack.c.bf16 %v1236_v61, %v1236_v61  ;;  %v1387_v26 = vmul.f32 2.0, %v10329_v31 }
 0x29f   : > { %v1093_v14 = vpop.f32.mrf.mxu1  ;;  %v1545_v47 = vunpack.c.l.b16 %v1465_v5  ;;  %v1738_v57 = vunpack.c.l.b16 %v1496_v24 }
 0x2a0   : > { %v1481_v52 = vpack.c.bf16 %v1093_v14, %v1093_v14  ;;  %v10330_v14 = vld [vmem:[#allocation39_spill] sm:$0xff] }
 0x2a1   : > { %v1553_v39 = vpack.c.b16 %v1545_v47, %v1544_v18  ;;  %v1383_v7 = vpop.f32.mrf.mxu3  ;;  %v1403_v18 = vmul.f32 2.0, %v10330_v14 }
 0x2a2   : > { %v1642_v22 = vunpack.c.l.b16 %v1481_v52  ;;  %v1513_v58 = vpack.c.bf16 %v1383_v7, %v1383_v7 }
 0x2a3   : > { %1605 = vmatmul.bf16.gmra.mxu0 %v1553_v39 }
 0x2a4   : > { %v1650_v51 = vpack.c.b16 %v1642_v22, %v1641_v12  ;;  %v1238_v55 = vpop.f32.mrf.mxu2  ;;  %v1836_v1 = vunpack.c.l.b16 %v1513_v58 }
 0x2a5   : > { %v1497_v62 = vpack.c.bf16 %v1238_v55, %v1238_v55 }
 0x2a6   : > { %1702 = vmatmul.bf16.gmra.mxu1 %v1650_v51  ;;  %v1844_v9 = vpack.c.b16 %v1836_v1, %v1835_v38  ;;  %v10333_v38 = vld [vmem:[#allocation34_spill] sm:$0xff]  ;;  %v10334_v1 = vld [vmem:[#allocation33_spill] sm:$0xff] }
 0x2a7   : > { %v1739_v54 = vunpack.c.l.b16 %v1497_v62 }
 0x2a8   : > { %1896 = vmatmul.bf16.gmra.mxu3 %v1844_v9 }
 0x2a9   : > { %v1747_v36 = vpack.c.b16 %v1739_v54, %v1738_v57  ;;  %v1418_v54 = vmul.f32 2.0, %v10333_v38 }
 0x2ab   : > { %1799 = vmatmul.bf16.gmra.mxu2 %v1747_v36  ;;  %v1434_v36 = vmul.f32 2.0, %v10334_v1 }
 0x2b0   : > { %v1571_v19 = vpop.f32.mrf.mxu0 }
 0x2b1   : > { %v7774_v27 = vsub.f32 %v1386_v16, %v1571_v19  ;;  %v10335_v16 = vld [vmem:[#allocation44_spill] sm:$0xff] }
 0x2b2   : > { %v1388_v50 = vmul.f32 2.0, %v10335_v16 }
 0x2b3   : > { %v1668_v4 = vpop.f32.mrf.mxu1  ;;  %10327 = vst [vmem:[#allocation53_spill] sm:$0xff] %v7774_v27  ;;  %v1966_v12 = vpack.c.bf16 %v7774_v27, %v7774_v27 }
 0x2b4   : > { %v7776_v61 = vsub.f32 %v1402_v37, %v1668_v4  ;;  %v10336_v37 = vld [vmem:[#allocation43_spill] sm:$0xff] }
 0x2b5   : > { %v2046_v51 = vunpack.c.l.b16 %v1966_v12  ;;  %v1404_v19 = vmul.f32 2.0, %v10336_v37 }
 0x2b6   : > { %10328 = vst [vmem:[#allocation134_spill] sm:$0xff] %v7776_v61  ;;  %v1982_v5 = vpack.c.bf16 %v7776_v61, %v7776_v61  ;;  %v10375_v61 = vld [vmem:[#allocation61_spill] sm:$0xff] }
 0x2b7   : > { %v1409_v27 = vmul.f32 2.0, %v10375_v61 }
 0x2b8   : > { %v1573_v52 = vpop.f32.mrf.mxu0  ;;  %v2143_v24 = vunpack.c.l.b16 %v1982_v5  ;;  %v10340_v5 = vld [vmem:[#allocation38_spill] sm:$0xff] }
 0x2b9   : > { %v7784_v22 = vsub.f32 %v1387_v26, %v1573_v52  ;;  %v1435_v52 = vmul.f32 2.0, %v10340_v5 }
 0x2bb   : > { %v1670_v47 = vpop.f32.mrf.mxu1  ;;  %10331 = vst [vmem:[#allocation135_spill] sm:$0xff] %v7784_v22  ;;  %v1967_v17 = vpack.c.bf16 %v7784_v22, %v7784_v22  ;;  %v1862_v57 = vpop.f32.mrf.mxu3 }
 0x2bc   : > { %v7786_v39 = vsub.f32 %v1403_v18, %v1670_v47  ;;  %v7804_v14 = vsub.f32 %v1434_v36, %v1862_v57  ;;  %v10339_v18 = vld [vmem:[#allocation37_spill] sm:$0xff] }
 0x2bd   : > { %v2047_v7 = vunpack.c.l.b16 %v1967_v17  ;;  %v1419_v12 = vmul.f32 2.0, %v10339_v18 }
 0x2be   : > { %10332 = vst [vmem:[#allocation168_spill] sm:$0xff] %v7786_v39  ;;  %v1983_v55 = vpack.c.bf16 %v7786_v39, %v7786_v39  ;;  %v1765_v58 = vpop.f32.mrf.mxu2  ;;  %v2014_v57 = vpack.c.bf16 %v7804_v14, %v7804_v14 }
 0x2bf   : > { %v7794_v9 = vpack.c.b16 %v2047_v7, %v2046_v51  ;;  %v7802_v26 = vsub.f32 %v1418_v54, %v1765_v58  ;;  %10338 = vst [vmem:[#allocation170_spill] sm:$0xff] %v7804_v14 }
 0x2c0   : > { %v2144_v62 = vunpack.c.l.b16 %v1983_v55  ;;  %v1576_v4 = vpop.f32.mrf.mxu0  ;;  %v10343_v55 = vld [vmem:[#allocation48_spill] sm:$0xff]  ;;  %v2337_v5 = vunpack.c.l.b16 %v2014_v57 }
 0x2c1   : > { %2086 = vmatmul.bf16.vlgmr.msra.gmra.mxu0 %v7794_v9  ;;  %10337 = vst [vmem:[#allocation169_spill] sm:$0xff] %v7802_v26  ;;  %v7808_v47 = vsub.f32 %v1388_v50, %v1576_v4  ;;  %v1389_v7 = vmul.f32 2.0, %v10343_v55  ;;  %v1998_v58 = vpack.c.bf16 %v7802_v26, %v7802_v26 }
 0x2c2   : > { %v7796_v32 = vpack.c.b16 %v2144_v62, %v2143_v24  ;;  %v10344_v62 = vld [vmem:[#allocation47_spill] sm:$0xff] }
 0x2c3   : > { %v1673_v31 = vpop.f32.mrf.mxu1  ;;  %10341 = vst [vmem:[#allocation171_spill] sm:$0xff] %v7808_v47  ;;  %v1864_v17 = vpop.f32.mrf.mxu3  ;;  %v1405_v38 = vmul.f32 2.0, %v10344_v62  ;;  %v1968_v36 = vpack.c.bf16 %v7808_v47, %v7808_v47 }
 0x2c4   : > { %2183 = vmatmul.bf16.vlgmr.msra.gmra.mxu1 %v7796_v32  ;;  %v7810_v51 = vsub.f32 %v1404_v19, %v1673_v31  ;;  %v7820_v1 = vsub.f32 %v1435_v52, %v1864_v17 }
 0x2c5   : > { %v2048_v17 = vunpack.c.l.b16 %v1968_v36 }
 0x2c6   : > { %10342 = vst [vmem:[#allocation164_spill] sm:$0xff] %v7810_v51  ;;  %v1767_v24 = vpop.f32.mrf.mxu2  ;;  %v1984_v16 = vpack.c.bf16 %v7810_v51, %v7810_v51  ;;  %v2015_v37 = vpack.c.bf16 %v7820_v1, %v7820_v1  ;;  %v10362_v51 = vld [vmem:[#allocation13_spill] sm:$0xff] }
 0x2c7   : > { %v7818_v54 = vsub.f32 %v1419_v12, %v1767_v24  ;;  %10346 = vst [vmem:[#allocation166_spill] sm:$0xff] %v7820_v1  ;;  %v2240_v12 = vunpack.c.l.b16 %v1998_v58  ;;  %v10349_v58 = vld [vmem:[#allocation42_spill] sm:$0xff] }
 0x2c8   : > { %v1578_v19 = vpop.f32.mrf.mxu0  ;;  %v2338_v24 = vunpack.c.l.b16 %v2015_v37  ;;  %v2145_v55 = vunpack.c.l.b16 %v1984_v16  ;;  %v1420_v57 = vmul.f32 2.0, %v10349_v58 }
 0x2c9   : > { %10345 = vst [vmem:[#allocation165_spill] sm:$0xff] %v7818_v54  ;;  %v1999_v50 = vpack.c.bf16 %v7818_v54, %v7818_v54  ;;  %v7830_v31 = vsub.f32 %v1389_v7, %v1578_v19 }
 0x2ca   : > { %v7840_v1 = vpack.c.b16 %v2338_v24, %v2337_v5  ;;  %v10352_v5 = vld [vmem:[#allocation51_spill] sm:$0xff] }
 0x2cb   : > { %v1675_v4 = vpop.f32.mrf.mxu1  ;;  %10347 = vst [vmem:[#allocation167_spill] sm:$0xff] %v7830_v31  ;;  %v2241_v52 = vunpack.c.l.b16 %v1999_v50  ;;  %v1969_v62 = vpack.c.bf16 %v7830_v31, %v7830_v31  ;;  %v10350_v50 = vld [vmem:[#allocation41_spill] sm:$0xff]  ;;  %v1406_v24 = vmul.f32 2.0, %v10352_v5 }
 0x2cc   : > { %v7832_v18 = vsub.f32 %v1405_v38, %v1675_v4  ;;  %v1867_v4 = vpop.f32.mrf.mxu3  ;;  %v1436_v37 = vmul.f32 2.0, %v10350_v50  ;;  %2377 = vmatmul.bf16.vlgmr.msra.gmra.mxu3 %v7840_v1 }
 0x2cd   : > { %v7838_v14 = vpack.c.b16 %v2241_v52, %v2240_v12  ;;  %v2049_v7 = vunpack.c.l.b16 %v1969_v62  ;;  %v10351_v12 = vld [vmem:[#allocation52_spill] sm:$0xff] }
 0x2ce   : > { %10348 = vst [vmem:[#allocation36_spill] sm:$0xff] %v7832_v18  ;;  %v1985_v54 = vpack.c.bf16 %v7832_v18, %v7832_v18  ;;  %v1770_v38 = vpop.f32.mrf.mxu2  ;;  %v1390_v52 = vmul.f32 2.0, %v10351_v12  ;;  %v7856_v62 = vsub.f32 %v1436_v37, %v1867_v4  ;;  %v10355_v18 = vld [vmem:[#allocation46_spill] sm:$0xff]  ;;  %v10361_v37 = vld [vmem:[#allocation12_spill] sm:$0xff] }
 0x2cf   : > { %2280 = vmatmul.bf16.vlgmr.msra.gmra.mxu2 %v7838_v14  ;;  %v7846_v36 = vpack.c.b16 %v2049_v7, %v2048_v17  ;;  %v1421_v31 = vmul.f32 2.0, %v10355_v18  ;;  %v10356_v17 = vld [vmem:[#allocation45_spill] sm:$0xff]  ;;  %v1391_v18 = vmul.f32 2.0, %v10361_v37 }
 0x2d0   : > { %v2146_v19 = vunpack.c.l.b16 %v1985_v54  ;;  %v7854_v54 = vsub.f32 %v1420_v57, %v1770_v38  ;;  %10354 = vst [vmem:[#allocation40_spill] sm:$0xff] %v7856_v62  ;;  %v1581_v58 = vpop.f32.mrf.mxu0  ;;  %v1437_v7 = vmul.f32 2.0, %v10356_v17  ;;  %v2016_v38 = vpack.c.bf16 %v7856_v62, %v7856_v62 }
 0x2d1   : > { %2091 = vmatmul.bf16.gmra.mxu0 %v7846_v36  ;;  %v1407_v17 = vmul.f32 2.0, %v10362_v51 }
 0x2d2   : > { %v7848_v16 = vpack.c.b16 %v2146_v19, %v2145_v55  ;;  %10353 = vst [vmem:[#allocation35_spill] sm:$0xff] %v7854_v54  ;;  %v7860_v55 = vsub.f32 %v1390_v52, %v1581_v58  ;;  %v2000_v26 = vpack.c.bf16 %v7854_v54, %v7854_v54 }
 0x2d3   : > { %v1678_v50 = vpop.f32.mrf.mxu1 }
 0x2d4   : > { %2188 = vmatmul.bf16.gmra.mxu1 %v7848_v16  ;;  %10357 = vst [vmem:[#allocation39_spill] sm:$0xff] %v7860_v55  ;;  %v7862_v19 = vsub.f32 %v1406_v24, %v1678_v50  ;;  %v1869_v5 = vpop.f32.mrf.mxu3  ;;  %v1970_v58 = vpack.c.bf16 %v7860_v55, %v7860_v55 }
 0x2d5   : > { %v7870_v57 = vsub.f32 %v1437_v7, %v1869_v5 }
 0x2d6   : > { %10358 = vst [vmem:[#allocation34_spill] sm:$0xff] %v7862_v19  ;;  %v1772_v12 = vpop.f32.mrf.mxu2  ;;  %v1986_v50 = vpack.c.bf16 %v7862_v19, %v7862_v19 }
 0x2d7   : > { %v7868_v4 = vsub.f32 %v1421_v31, %v1772_v12  ;;  %10360 = vst [vmem:[#allocation44_spill] sm:$0xff] %v7870_v57  ;;  %v2017_v24 = vpack.c.bf16 %v7870_v57, %v7870_v57  ;;  %v2242_v31 = vunpack.c.l.b16 %v2000_v26  ;;  %v2339_v12 = vunpack.c.l.b16 %v2016_v38 }
 0x2d8   : > { %v1583_v62 = vpop.f32.mrf.mxu0  ;;  %v2050_v57 = vunpack.c.l.b16 %v1970_v58  ;;  %v2147_v39 = vunpack.c.l.b16 %v1986_v50  ;;  %v10367_v58 = vld [vmem:[#allocation58_spill] sm:$0xff] }
 0x2d9   : > { %10359 = vst [vmem:[#allocation33_spill] sm:$0xff] %v7868_v4  ;;  %v2001_v52 = vpack.c.bf16 %v7868_v4, %v7868_v4  ;;  %v2340_v5 = vunpack.c.l.b16 %v2017_v24  ;;  %v7882_v54 = vsub.f32 %v1391_v18, %v1583_v62  ;;  %v1392_v50 = vmul.f32 2.0, %v10367_v58 }
 0x2da   : > { %v1439_v58 = vmul.f32 2.0, %v10302_v44 }
 0x2db   : > { %v2243_v7 = vunpack.c.l.b16 %v2001_v52  ;;  %v1680_v37 = vpop.f32.mrf.mxu1  ;;  %10363 = vst [vmem:[#allocation43_spill] sm:$0xff] %v7882_v54  ;;  %v7888_v47 = vpack.c.b16 %v2340_v5, %v2339_v12  ;;  %v1971_v55 = vpack.c.bf16 %v7882_v54, %v7882_v54  ;;  %v10365_v52 = vld [vmem:[#allocation49_spill] sm:$0xff] }
 0x2dc   : > { %v7884_v51 = vsub.f32 %v1407_v17, %v1680_v37  ;;  %v1872_v17 = vpop.f32.mrf.mxu3  ;;  %v1422_v24 = vmul.f32 2.0, %v10365_v52  ;;  %v10371_v52 = vld [vmem:[#allocation54_spill] sm:$0xff] }
 0x2dd   : > { %v7886_v4 = vpack.c.b16 %v2243_v7, %v2242_v31  ;;  %2382 = vmatmul.bf16.gmra.mxu3 %v7888_v47  ;;  %v2051_v62 = vunpack.c.l.b16 %v1971_v55  ;;  %v10366_v31 = vld [vmem:[#allocation50_spill] sm:$0xff]  ;;  %v10368_v7 = vld [vmem:[#allocation57_spill] sm:$0xff] }
 0x2de   : > { %10364 = vst [vmem:[#allocation37_spill] sm:$0xff] %v7884_v51  ;;  %v1987_v26 = vpack.c.bf16 %v7884_v51, %v7884_v51  ;;  %v1775_v18 = vpop.f32.mrf.mxu2  ;;  %v1438_v12 = vmul.f32 2.0, %v10366_v31  ;;  %v1408_v5 = vmul.f32 2.0, %v10368_v7  ;;  %v1423_v31 = vmul.f32 2.0, %v10371_v52 }
 0x2df   : > { %2285 = vmatmul.bf16.gmra.mxu2 %v7886_v4  ;;  %v7900_v37 = vpack.c.b16 %v2051_v62, %v2050_v57  ;;  %v7906_v55 = vsub.f32 %v1422_v24, %v1775_v18 }
 0x2e0   : > { %v2148_v38 = vunpack.c.l.b16 %v1987_v26  ;;  %v1586_v51 = vpop.f32.mrf.mxu0  ;;  %v7908_v26 = vsub.f32 %v1438_v12, %v1872_v17 }
 0x2e1   : > { %2096 = vmatmul.bf16.gmra.mxu0 %v7900_v37  ;;  %10369 = vst [vmem:[#allocation38_spill] sm:$0xff] %v7906_v55  ;;  %v7912_v22 = vsub.f32 %v1392_v50, %v1586_v51  ;;  %v2002_v18 = vpack.c.bf16 %v7906_v55, %v7906_v55 }
 0x2e2   : > { %v7902_v54 = vpack.c.b16 %v2148_v38, %v2147_v39  ;;  %10370 = vst [vmem:[#allocation48_spill] sm:$0xff] %v7908_v26  ;;  %v10374_v38 = vld [vmem:[#allocation62_spill] sm:$0xff]  ;;  %v2018_v17 = vpack.c.bf16 %v7908_v26, %v7908_v26 }
 0x2e3   : > { %v1683_v19 = vpop.f32.mrf.mxu1  ;;  %10372 = vst [vmem:[#allocation47_spill] sm:$0xff] %v7912_v22  ;;  %v1393_v7 = vmul.f32 2.0, %v10374_v38  ;;  %v1972_v44 = vpack.c.bf16 %v7912_v22, %v7912_v22 }
 0x2e4   : > { %2193 = vmatmul.bf16.gmra.mxu1 %v7902_v54  ;;  %v7914_v57 = vsub.f32 %v1408_v5, %v1683_v19  ;;  %v1874_v62 = vpop.f32.mrf.mxu3 }
 0x2e5   : > { %v7924_v12 = vsub.f32 %v1439_v58, %v1874_v62  ;;  %v2244_v58 = vunpack.c.l.b16 %v2002_v18  ;;  %v2052_v26 = vunpack.c.l.b16 %v1972_v44  ;;  %v10380_v18 = vld [vmem:[#allocation56_spill] sm:$0xff]  ;;  %v10382_v44 = vld [vmem:[#allocation66_spill] sm:$0xff] }
 0x2e6   : > { %10373 = vst [vmem:[#allocation42_spill] sm:$0xff] %v7914_v57  ;;  %v1777_v39 = vpop.f32.mrf.mxu2  ;;  %v1988_v19 = vpack.c.bf16 %v7914_v57, %v7914_v57 }
 0x2e7   : > { %v7922_v24 = vsub.f32 %v1423_v31, %v1777_v39  ;;  %10377 = vst [vmem:[#allocation52_spill] sm:$0xff] %v7924_v12  ;;  %v2019_v61 = vpack.c.bf16 %v7924_v12, %v7924_v12  ;;  %v2341_v39 = vunpack.c.l.b16 %v2018_v17  ;;  %v1424_v17 = vmul.f32 2.0, %v10380_v18  ;;  %v10386_v18 = vld [vmem:[#allocation60_spill] sm:$0xff] }
 0x2e8   : > { %v1588_v50 = vpop.f32.mrf.mxu0  ;;  %v2149_v55 = vunpack.c.l.b16 %v1988_v19  ;;  %v1394_v19 = vmul.f32 2.0, %v10382_v44  ;;  %v1441_v44 = vmul.f32 2.0, %v10387_v11 }
 0x2e9   : > { %10376 = vst [vmem:[#allocation41_spill] sm:$0xff] %v7922_v24  ;;  %v2003_v51 = vpack.c.bf16 %v7922_v24, %v7922_v24  ;;  %v7934_v52 = vsub.f32 %v1393_v7, %v1588_v50  ;;  %v2342_v38 = vunpack.c.l.b16 %v2019_v61 }
 0x2eb   : > { %v1685_v5 = vpop.f32.mrf.mxu1  ;;  %10378 = vst [vmem:[#allocation51_spill] sm:$0xff] %v7934_v52  ;;  %v2245_v62 = vunpack.c.l.b16 %v2003_v51  ;;  %v1973_v57 = vpack.c.bf16 %v7934_v52, %v7934_v52  ;;  %v7944_v12 = vpack.c.b16 %v2342_v38, %v2341_v39  ;;  %v10381_v51 = vld [vmem:[#allocation55_spill] sm:$0xff]  ;;  %v10383_v52 = vld [vmem:[#allocation65_spill] sm:$0xff] }
 0x2ec   : > { %v7936_v31 = vsub.f32 %v1409_v27, %v1685_v5  ;;  %v1877_v5 = vpop.f32.mrf.mxu3  ;;  %v1440_v61 = vmul.f32 2.0, %v10381_v51  ;;  %v1425_v51 = vmul.f32 2.0, %v10386_v18 }
 0x2ed   : > { %v7942_v22 = vpack.c.b16 %v2245_v62, %v2244_v58  ;;  %v2053_v7 = vunpack.c.l.b16 %v1973_v57  ;;  %2387 = vmatmul.bf16.gmra.mxu3 %v7944_v12 }
 0x2ee   : > { %10379 = vst [vmem:[#allocation46_spill] sm:$0xff] %v7936_v31  ;;  %v1989_v24 = vpack.c.bf16 %v7936_v31, %v7936_v31  ;;  %v1780_v27 = vpop.f32.mrf.mxu2  ;;  %v1410_v31 = vmul.f32 2.0, %v10383_v52  ;;  %v7960_v38 = vsub.f32 %v1440_v61, %v1877_v5 }
 0x2ef   : > { %2290 = vmatmul.bf16.gmra.mxu2 %v7942_v22  ;;  %v7952_v58 = vpack.c.b16 %v2053_v7, %v2052_v26  ;;  %v7958_v62 = vsub.f32 %v1424_v17, %v1780_v27  ;;  %v10390_v7 = vld [vmem:[#allocation69_spill] sm:$0xff] }
 0x2f0   : > { %v2150_v50 = vunpack.c.l.b16 %v1989_v24  ;;  %v1591_v57 = vpop.f32.mrf.mxu0  ;;  %10385 = vst [vmem:[#allocation12_spill] sm:$0xff] %v7960_v38  ;;  %v2020_v5 = vpack.c.bf16 %v7960_v38, %v7960_v38 }
 0x2f1   : > { %2101 = vmatmul.bf16.gmra.mxu0 %v7952_v58  ;;  %10384 = vst [vmem:[#allocation45_spill] sm:$0xff] %v7958_v62  ;;  %v7964_v42 = vsub.f32 %v1394_v19, %v1591_v57  ;;  %v2004_v27 = vpack.c.bf16 %v7958_v62, %v7958_v62 }
 0x2f2   : > { %v7954_v39 = vpack.c.b16 %v2150_v50, %v2149_v55  ;;  %v1395_v50 = vmul.f32 2.0, %v10390_v7 }
 0x2f3   : > { %v1688_v24 = vpop.f32.mrf.mxu1  ;;  %10388 = vst [vmem:[#allocation13_spill] sm:$0xff] %v7964_v42  ;;  %v1974_v11 = vpack.c.bf16 %v7964_v42, %v7964_v42 }
 0x2f4   : > { %2198 = vmatmul.bf16.gmra.mxu1 %v7954_v39  ;;  %v7966_v26 = vsub.f32 %v1410_v31, %v1688_v24  ;;  %v1879_v52 = vpop.f32.mrf.mxu3 }
 0x2f5   : > { %v7976_v61 = vsub.f32 %v1441_v44, %v1879_v52  ;;  %v2246_v44 = vunpack.c.l.b16 %v2004_v27  ;;  %v2054_v38 = vunpack.c.l.b16 %v1974_v11  ;;  %v10396_v27 = vld [vmem:[#allocation64_spill] sm:$0xff]  ;;  %v10398_v11 = vld [vmem:[#allocation73_spill] sm:$0xff] }
 0x2f6   : > { %10389 = vst [vmem:[#allocation49_spill] sm:$0xff] %v7966_v26  ;;  %v1782_v55 = vpop.f32.mrf.mxu2  ;;  %v1990_v31 = vpack.c.bf16 %v7966_v26, %v7966_v26 }
 0x2f7   : > { %v7974_v17 = vsub.f32 %v1425_v51, %v1782_v55  ;;  %10393 = vst [vmem:[#allocation58_spill] sm:$0xff] %v7976_v61  ;;  %v2021_v46 = vpack.c.bf16 %v7976_v61, %v7976_v61  ;;  %v2343_v55 = vunpack.c.l.b16 %v2020_v5  ;;  %v1426_v5 = vmul.f32 2.0, %v10396_v27  ;;  %v10402_v27 = vld [vmem:[#allocation68_spill] sm:$0xff] }
 0x2f8   : > { %v1593_v57 = vpop.f32.mrf.mxu0  ;;  %v2151_v62 = vunpack.c.l.b16 %v1990_v31  ;;  %v1396_v31 = vmul.f32 2.0, %v10398_v11  ;;  %v1443_v11 = vmul.f32 2.0, %v10403_v29 }
 0x2f9   : > { %10392 = vst [vmem:[#allocation50_spill] sm:$0xff] %v7974_v17  ;;  %v2005_v19 = vpack.c.bf16 %v7974_v17, %v7974_v17  ;;  %v7986_v18 = vsub.f32 %v1395_v50, %v1593_v57  ;;  %v2344_v7 = vunpack.c.l.b16 %v2021_v46 }
 0x2fb   : > { %v1690_v24 = vpop.f32.mrf.mxu1  ;;  %10394 = vst [vmem:[#allocation57_spill] sm:$0xff] %v7986_v18  ;;  %v2247_v52 = vunpack.c.l.b16 %v2005_v19  ;;  %v1975_v26 = vpack.c.bf16 %v7986_v18, %v7986_v18  ;;  %v7996_v61 = vpack.c.b16 %v2344_v7, %v2343_v55  ;;  %v10397_v19 = vld [vmem:[#allocation63_spill] sm:$0xff]  ;;  %v10399_v18 = vld [vmem:[#allocation72_spill] sm:$0xff] }
 0x2fc   : > { %v7988_v51 = vsub.f32 %v1411_v40, %v1690_v24  ;;  %v1882_v24 = vpop.f32.mrf.mxu3  ;;  %v1442_v46 = vmul.f32 2.0, %v10397_v19  ;;  %v1427_v19 = vmul.f32 2.0, %v10402_v27 }
 0x2fd   : > { %v7994_v42 = vpack.c.b16 %v2247_v52, %v2246_v44  ;;  %v2055_v50 = vunpack.c.l.b16 %v1975_v26  ;;  %2392 = vmatmul.bf16.gmra.mxu3 %v7996_v61 }
 0x2fe   : > { %10395 = vst [vmem:[#allocation54_spill] sm:$0xff] %v7988_v51  ;;  %v1991_v17 = vpack.c.bf16 %v7988_v51, %v7988_v51  ;;  %v1785_v40 = vpop.f32.mrf.mxu2  ;;  %v1412_v51 = vmul.f32 2.0, %v10399_v18  ;;  %v8012_v7 = vsub.f32 %v1442_v46, %v1882_v24 }
 0x2ff   : > { %2295 = vmatmul.bf16.gmra.mxu2 %v7994_v42  ;;  %v8004_v44 = vpack.c.b16 %v2055_v50, %v2054_v38  ;;  %v8010_v52 = vsub.f32 %v1426_v5, %v1785_v40  ;;  %v10406_v50 = vld [vmem:[#allocation17_spill] sm:$0xff] }
 0x300   : > { %v2152_v57 = vunpack.c.l.b16 %v1991_v17  ;;  %v1596_v26 = vpop.f32.mrf.mxu0  ;;  %10401 = vst [vmem:[#allocation61_spill] sm:$0xff] %v8012_v7  ;;  %v2022_v24 = vpack.c.bf16 %v8012_v7, %v8012_v7 }
 0x301   : > { %2106 = vmatmul.bf16.gmra.mxu0 %v8004_v44  ;;  %10400 = vst [vmem:[#allocation62_spill] sm:$0xff] %v8010_v52  ;;  %v8016_v10 = vsub.f32 %v1396_v31, %v1596_v26  ;;  %v2006_v40 = vpack.c.bf16 %v8010_v52, %v8010_v52 }
 0x302   : > { %v8006_v55 = vpack.c.b16 %v2152_v57, %v2151_v62  ;;  %v1397_v57 = vmul.f32 2.0, %v10406_v50 }
 0x303   : > { %v1693_v17 = vpop.f32.mrf.mxu1  ;;  %10404 = vst [vmem:[#allocation56_spill] sm:$0xff] %v8016_v10  ;;  %v1976_v29 = vpack.c.bf16 %v8016_v10, %v8016_v10 }
 0x304   : > { %2203 = vmatmul.bf16.gmra.mxu1 %v8006_v55  ;;  %v8018_v38 = vsub.f32 %v1412_v51, %v1693_v17  ;;  %v1884_v18 = vpop.f32.mrf.mxu3 }
 0x305   : > { %v8028_v46 = vsub.f32 %v1443_v11, %v1884_v18  ;;  %v2248_v11 = vunpack.c.l.b16 %v2006_v40  ;;  %v2056_v7 = vunpack.c.l.b16 %v1976_v29  ;;  %v10412_v40 = vld [vmem:[#allocation71_spill] sm:$0xff]  ;;  %v10414_v29 = vld [vmem:[#allocation21_spill] sm:$0xff] }
 0x306   : > { %10405 = vst [vmem:[#allocation55_spill] sm:$0xff] %v8018_v38  ;;  %v1787_v62 = vpop.f32.mrf.mxu2  ;;  %v1992_v51 = vpack.c.bf16 %v8018_v38, %v8018_v38 }
 0x307   : > { %v8026_v5 = vsub.f32 %v1427_v19, %v1787_v62  ;;  %10409 = vst [vmem:[#allocation65_spill] sm:$0xff] %v8028_v46  ;;  %v2023_v23 = vpack.c.bf16 %v8028_v46, %v8028_v46  ;;  %v2345_v62 = vunpack.c.l.b16 %v2022_v24  ;;  %v1428_v24 = vmul.f32 2.0, %v10412_v40  ;;  %v10418_v40 = vld [vmem:[#allocation15_spill] sm:$0xff] }
 0x308   : > { %v1598_v26 = vpop.f32.mrf.mxu0  ;;  %v2153_v52 = vunpack.c.l.b16 %v1992_v51  ;;  %v1398_v51 = vmul.f32 2.0, %v10414_v29  ;;  %v1445_v29 = vmul.f32 2.0, %v10419_v49 }
 0x309   : > { %10408 = vst [vmem:[#allocation66_spill] sm:$0xff] %v8026_v5  ;;  %v2007_v31 = vpack.c.bf16 %v8026_v5, %v8026_v5  ;;  %v8038_v27 = vsub.f32 %v1397_v57, %v1598_v26  ;;  %v2346_v50 = vunpack.c.l.b16 %v2023_v23 }
 0x30b   : > { %v1695_v17 = vpop.f32.mrf.mxu1  ;;  %10410 = vst [vmem:[#allocation60_spill] sm:$0xff] %v8038_v27  ;;  %v2249_v18 = vunpack.c.l.b16 %v2007_v31  ;;  %v1977_v38 = vpack.c.bf16 %v8038_v27, %v8038_v27  ;;  %v8048_v46 = vpack.c.b16 %v2346_v50, %v2345_v62  ;;  %v10413_v31 = vld [vmem:[#allocation70_spill] sm:$0xff] }
 0x30c   : > { %v8040_v19 = vsub.f32 %v1413_v33, %v1695_v17  ;;  %v1887_v17 = vpop.f32.mrf.mxu3  ;;  %v1444_v23 = vmul.f32 2.0, %v10413_v31  ;;  %v10415_v27 = vld [vmem:[#allocation22_spill] sm:$0xff]  ;;  %v1429_v31 = vmul.f32 2.0, %v10418_v40 }
 0x30d   : > { %v8046_v10 = vpack.c.b16 %v2249_v18, %v2248_v11  ;;  %v2057_v57 = vunpack.c.l.b16 %v1977_v38  ;;  %2397 = vmatmul.bf16.gmra.mxu3 %v8048_v46 }
 0x30e   : > { %10411 = vst [vmem:[#allocation59_spill] sm:$0xff] %v8040_v19  ;;  %v1993_v5 = vpack.c.bf16 %v8040_v19, %v8040_v19  ;;  %v1790_v33 = vpop.f32.mrf.mxu2  ;;  %v1414_v19 = vmul.f32 2.0, %v10415_v27  ;;  %v8064_v50 = vsub.f32 %v1444_v23, %v1887_v17 }
 0x30f   : > { %2300 = vmatmul.bf16.gmra.mxu2 %v8046_v10  ;;  %v8056_v11 = vpack.c.b16 %v2057_v57, %v2056_v7  ;;  %v8062_v18 = vsub.f32 %v1428_v24, %v1790_v33  ;;  %v10422_v57 = vld [vmem:[#allocation24_spill] sm:$0xff] }
 0x310   : > { %v2154_v26 = vunpack.c.l.b16 %v1993_v5  ;;  %v1601_v38 = vpop.f32.mrf.mxu0  ;;  %10417 = vst [vmem:[#allocation14_spill] sm:$0xff] %v8064_v50  ;;  %v2024_v17 = vpack.c.bf16 %v8064_v50, %v8064_v50 }
 0x311   : > { %2111 = vmatmul.bf16.gmra.mxu0 %v8056_v11  ;;  %10416 = vst [vmem:[#allocation69_spill] sm:$0xff] %v8062_v18  ;;  %v8068_v20 = vsub.f32 %v1398_v51, %v1601_v38  ;;  %v2008_v33 = vpack.c.bf16 %v8062_v18, %v8062_v18 }
 0x312   : > { %v8058_v62 = vpack.c.b16 %v2154_v26, %v2153_v52  ;;  %v1399_v26 = vmul.f32 2.0, %v10422_v57 }
 0x313   : > { %v1698_v5 = vpop.f32.mrf.mxu1  ;;  %10420 = vst [vmem:[#allocation64_spill] sm:$0xff] %v8068_v20  ;;  %v1978_v49 = vpack.c.bf16 %v8068_v20, %v8068_v20 }
 0x314   : > { %2208 = vmatmul.bf16.gmra.mxu1 %v8058_v62  ;;  %v8070_v7 = vsub.f32 %v1414_v19, %v1698_v5  ;;  %v1889_v27 = vpop.f32.mrf.mxu3 }
 0x315   : > { %v8080_v23 = vsub.f32 %v1445_v29, %v1889_v27  ;;  %v2250_v29 = vunpack.c.l.b16 %v2008_v33  ;;  %v2058_v50 = vunpack.c.l.b16 %v1978_v49  ;;  %v10428_v33 = vld [vmem:[#allocation19_spill] sm:$0xff]  ;;  %v10430_v49 = vld [vmem:[#allocation82_spill] sm:$0xff] }
 0x316   : > { %10421 = vst [vmem:[#allocation63_spill] sm:$0xff] %v8070_v7  ;;  %v1792_v52 = vpop.f32.mrf.mxu2  ;;  %v1994_v19 = vpack.c.bf16 %v8070_v7, %v8070_v7 }
 0x317   : > { %v8078_v24 = vsub.f32 %v1429_v31, %v1792_v52  ;;  %10425 = vst [vmem:[#allocation72_spill] sm:$0xff] %v8080_v23  ;;  %v2025_v8 = vpack.c.bf16 %v8080_v23, %v8080_v23  ;;  %v2347_v52 = vunpack.c.l.b16 %v2024_v17  ;;  %v1430_v17 = vmul.f32 2.0, %v10428_v33  ;;  %v10434_v33 = vld [vmem:[#allocation23_spill] sm:$0xff] }
 0x318   : > { %v1603_v38 = vpop.f32.mrf.mxu0  ;;  %v2155_v18 = vunpack.c.l.b16 %v1994_v19  ;;  %v1400_v19 = vmul.f32 2.0, %v10430_v49 }
 0x319   : > { %10424 = vst [vmem:[#allocation73_spill] sm:$0xff] %v8078_v24  ;;  %v2009_v51 = vpack.c.bf16 %v8078_v24, %v8078_v24  ;;  %v8090_v40 = vsub.f32 %v1399_v26, %v1603_v38  ;;  %v2348_v57 = vunpack.c.l.b16 %v2025_v8 }
 0x31b   : > { %v1700_v5 = vpop.f32.mrf.mxu1  ;;  %10426 = vst [vmem:[#allocation68_spill] sm:$0xff] %v8090_v40  ;;  %v2251_v27 = vunpack.c.l.b16 %v2009_v51  ;;  %v1979_v7 = vpack.c.bf16 %v8090_v40, %v8090_v40  ;;  %v8100_v23 = vpack.c.b16 %v2348_v57, %v2347_v52  ;;  %v10429_v51 = vld [vmem:[#allocation20_spill] sm:$0xff] }
 0x31c   : > { %v8092_v31 = vsub.f32 %v1415_v35, %v1700_v5  ;;  %v1892_v5 = vpop.f32.mrf.mxu3  ;;  %v1446_v8 = vmul.f32 2.0, %v10429_v51  ;;  %v10431_v40 = vld [vmem:[#allocation80_spill] sm:$0xff]  ;;  %v1431_v51 = vmul.f32 2.0, %v10434_v33 }
 0x31d   : > { %v8098_v20 = vpack.c.b16 %v2251_v27, %v2250_v29  ;;  %v2059_v26 = vunpack.c.l.b16 %v1979_v7  ;;  %2402 = vmatmul.bf16.gmra.mxu3 %v8100_v23 }
 0x31e   : > { %10427 = vst [vmem:[#allocation67_spill] sm:$0xff] %v8092_v31  ;;  %v1995_v24 = vpack.c.bf16 %v8092_v31, %v8092_v31  ;;  %v1795_v35 = vpop.f32.mrf.mxu2  ;;  %v1416_v31 = vmul.f32 2.0, %v10431_v40 }
 0x31f   : > { %2305 = vmatmul.bf16.gmra.mxu2 %v8098_v20  ;;  %v2068_v29 = vpack.c.b16 %v2059_v26, %v2058_v50  ;;  %v8108_v7 = vsub.f32 %v1430_v17, %v1795_v35  ;;  %v10438_v50 = vld [vmem:[#allocation90_spill] sm:$0xff]  ;;  %v10439_v26 = vld [vmem:[#allocation87_spill] sm:$0xff] }
 0x320   : > { %v2156_v38 = vunpack.c.l.b16 %v1995_v24  ;;  %v1606_v52 = vpop.f32.mrf.mxu0  ;;  %v8110_v24 = vsub.f32 %v1446_v8, %v1892_v5 }
 0x321   : > { %2116 = vmatmul.bf16.gmra.mxu0 %v2068_v29  ;;  %10432 = vst [vmem:[#allocation17_spill] sm:$0xff] %v8108_v7  ;;  %v8114_v41 = vsub.f32 %v1400_v19, %v1606_v52  ;;  %v2010_v35 = vpack.c.bf16 %v8108_v7, %v8108_v7 }
 0x322   : > { %v2165_v27 = vpack.c.b16 %v2156_v38, %v2155_v18  ;;  %10433 = vst [vmem:[#allocation18_spill] sm:$0xff] %v8110_v24  ;;  %v1401_v18 = vmul.f32 2.0, %v10438_v50  ;;  %v1417_v38 = vmul.f32 2.0, %v10439_v26  ;;  %v2026_v5 = vpack.c.bf16 %v8110_v24, %v8110_v24 }
 0x323   : > { %v1703_v57 = vpop.f32.mrf.mxu1  ;;  %10436 = vst [vmem:[#allocation71_spill] sm:$0xff] %v8114_v41  ;;  %v1980_v25 = vpack.c.bf16 %v8114_v41, %v8114_v41 }
 0x324   : > { %2213 = vmatmul.bf16.gmra.mxu1 %v2165_v27  ;;  %v8116_v53 = vsub.f32 %v1416_v31, %v1703_v57  ;;  %v1894_v40 = vpop.f32.mrf.mxu3 }
 0x325   : > { %v8126_v8 = vsub.f32 %v1447_v6, %v1894_v40  ;;  %v2252_v6 = vunpack.c.l.b16 %v2010_v35  ;;  %v2060_v24 = vunpack.c.l.b16 %v1980_v25  ;;  %v10443_v35 = vld [vmem:[#allocation78_spill] sm:$0xff] }
 0x326   : > { %10437 = vst [vmem:[#allocation70_spill] sm:$0xff] %v8116_v53  ;;  %v1797_v49 = vpop.f32.mrf.mxu2  ;;  %v1996_v31 = vpack.c.bf16 %v8116_v53, %v8116_v53 }
 0x327   : > { %v8124_v17 = vsub.f32 %v1431_v51, %v1797_v49  ;;  %10441 = vst [vmem:[#allocation22_spill] sm:$0xff] %v8126_v8  ;;  %v2027_v52 = vpack.c.bf16 %v8126_v8, %v8126_v8  ;;  %v2349_v49 = vunpack.c.l.b16 %v2026_v5  ;;  %v1448_v5 = vmul.f32 2.0, %v10443_v35 }
 0x328   : > { %v1608_v57 = vpop.f32.mrf.mxu0  ;;  %v2157_v7 = vunpack.c.l.b16 %v1996_v31 }
 0x329   : > { %10440 = vst [vmem:[#allocation21_spill] sm:$0xff] %v8124_v17  ;;  %v2011_v19 = vpack.c.bf16 %v8124_v17, %v8124_v17  ;;  %v8136_v50 = vsub.f32 %v1401_v18, %v1608_v57  ;;  %v2350_v26 = vunpack.c.l.b16 %v2027_v52 }
 0x32b   : > { %v1705_v33 = vpop.f32.mrf.mxu1  ;;  %v2253_v40 = vunpack.c.l.b16 %v2011_v19  ;;  %v1981_v53 = vpack.c.bf16 %v8136_v50, %v8136_v50  ;;  %v2359_v8 = vpack.c.b16 %v2350_v26, %v2349_v49 }
 0x32c   : > { %v8138_v51 = vsub.f32 %v1417_v38, %v1705_v33  ;;  %v1897_v57 = vpop.f32.mrf.mxu3  ;;  %v10442_v38 = vld [vmem:[#allocation79_spill] sm:$0xff] }
 0x32d   : > { %v2262_v41 = vpack.c.b16 %v2253_v40, %v2252_v6  ;;  %v2061_v0 = vunpack.c.l.b16 %v1981_v53  ;;  %v1432_v33 = vmul.f32 2.0, %v10442_v38  ;;  %2407 = vmatmul.bf16.gmra.mxu3 %v2359_v8  ;;  %v8148_v52 = vsub.f32 %v1448_v5, %v1897_v57  ;;  %v10444_v6 = vld [vmem:[#allocation86_spill] sm:$0xff]  ;;  %v10445_v53 = vld [vmem:[#allocation83_spill] sm:$0xff] }
 0x32e   : > { %v1997_v17 = vpack.c.bf16 %v8138_v51, %v8138_v51  ;;  %v1800_v18 = vpop.f32.mrf.mxu2  ;;  %v1433_v49 = vmul.f32 2.0, %v10444_v6 }
 0x32f   : > { %2310 = vmatmul.bf16.gmra.mxu2 %v2262_v41  ;;  %v2069_v25 = vpack.c.b16 %v2061_v0, %v2060_v24  ;;  %v8146_v19 = vsub.f32 %v1432_v33, %v1800_v18 }
 0x330   : > { %v2158_v59 = vunpack.c.l.b16 %v1997_v17  ;;  %v1449_v17 = vmul.f32 2.0, %v10445_v53 }
 0x331   : > { %2594 = vmatpush.bf16.msrb.mxu0 %v2069_v25  ;;  %v2012_v0 = vpack.c.bf16 %v8146_v19, %v8146_v19 }
 0x332   : > { %v2166_v31 = vpack.c.b16 %v2158_v59, %v2157_v7  ;;  %2121 = vmatmul.bf16.gmra.mxu0 %v2069_v25  ;;  %v2028_v59 = vpack.c.bf16 %v8148_v52, %v8148_v52 }
 0x334   : > { %2691 = vmatpush.bf16.msrb.mxu1 %v2166_v31  ;;  %v1899_v26 = vpop.f32.mrf.mxu3 }
 0x335   : > { %2218 = vmatmul.bf16.gmra.mxu1 %v2166_v31  ;;  %2595 = vmatpush.bf16.msrb.mxu0 %v2068_v29  ;;  %v8158_v24 = vsub.f32 %v1449_v17, %v1899_v26  ;;  %v2254_v29 = vunpack.c.l.b16 %v2012_v0 }
 0x336   : > { %v1802_v40 = vpop.f32.mrf.mxu2 }
 0x337   : > { %v8156_v7 = vsub.f32 %v1433_v49, %v1802_v40  ;;  %v2029_v57 = vpack.c.bf16 %v8158_v24, %v8158_v24 }
 0x338   : > { %2692 = vmatpush.bf16.msrb.mxu1 %v2165_v27  ;;  %v2351_v27 = vunpack.c.l.b16 %v2028_v59 }
 0x339   : > { %v2013_v18 = vpack.c.bf16 %v8156_v7, %v8156_v7  ;;  %2596 = vmatpush.bf16.msrb.mxu0 %v8056_v11  ;;  %v2352_v33 = vunpack.c.l.b16 %v2029_v57 }
 0x33b   : > { %v2255_v38 = vunpack.c.l.b16 %v2013_v18  ;;  %v2360_v5 = vpack.c.b16 %v2352_v33, %v2351_v27 }
 0x33c   : > { %2693 = vmatpush.bf16.msrb.mxu1 %v8058_v62 }
 0x33d   : > { %v2263_v35 = vpack.c.b16 %v2255_v38, %v2254_v29  ;;  %2597 = vmatpush.bf16.msrb.mxu0 %v8004_v44  ;;  %2412 = vmatmul.bf16.gmra.mxu3 %v2360_v5 }
 0x33e   : > { %v2087_v25 = vpop.f32.mrf.mxu0  ;;  %2885 = vmatpush.bf16.msrb.mxu3 %v2360_v5 }
 0x33f   : > { %2315 = vmatmul.bf16.gmra.mxu2 %v2263_v35  ;;  %v2482_v11 = vpack.c.bf16 %v2087_v25, %v2087_v25 }
 0x340   : > { %2694 = vmatpush.bf16.msrb.mxu1 %v8006_v55  ;;  %2788 = vmatpush.bf16.msrb.mxu2 %v2263_v35 }
 0x341   : > { %v2184_v31 = vpop.f32.mrf.mxu1  ;;  %2598 = vmatpush.bf16.msrb.mxu0 %v7952_v58  ;;  %v2562_v53 = vunpack.c.l.b16 %v2482_v11 }
 0x342   : > { %2886 = vmatpush.bf16.msrb.mxu3 %v2359_v8  ;;  %v2498_v62 = vpack.c.bf16 %v2184_v31, %v2184_v31 }
 0x344   : > { %2695 = vmatpush.bf16.msrb.mxu1 %v7954_v39  ;;  %2789 = vmatpush.bf16.msrb.mxu2 %v2262_v41  ;;  %v2659_v58 = vunpack.c.l.b16 %v2498_v62  ;;  %v10447_v62 = vld [vmem:[#allocation126_spill] sm:$0xff] }
 0x345   : > { %2599 = vmatpush.bf16.msrb.mxu0 %v7900_v37 }
 0x346   : > { %v2089_v6 = vpop.f32.mrf.mxu0  ;;  %2887 = vmatpush.bf16.msrb.mxu3 %v8100_v23 }
 0x347   : > { %v2483_v44 = vpack.c.bf16 %v2089_v6, %v2089_v6  ;;  %v10448_v6 = vld [vmem:[#allocation161_spill] sm:$0xff] }
 0x348   : > { %2696 = vmatpush.bf16.msrb.mxu1 %v7902_v54  ;;  %2790 = vmatpush.bf16.msrb.mxu2 %v8098_v20 }
 0x349   : > { %v2186_v49 = vpop.f32.mrf.mxu1  ;;  %v2563_v17 = vunpack.c.l.b16 %v2483_v44  ;;  %2600 = vmatpush.bf16.msrb.mxu0 %v7846_v36 }
 0x34a   : > { %v2499_v55 = vpack.c.bf16 %v2186_v49, %v2186_v49  ;;  %2888 = vmatpush.bf16.msrb.mxu3 %v8048_v46  ;;  %v10449_v49 = vld [vmem:[#allocation162_spill] sm:$0xff] }
 0x34b   : > { %v2578_v41 = vpack.c.b16 %v2563_v17, %v2562_v53  ;;  %v10450_v17 = vld [vmem:[#allocation112_spill] sm:$0xff] }
 0x34c   : > { %v2660_v39 = vunpack.c.l.b16 %v2499_v55  ;;  %2697 = vmatpush.bf16.msrb.mxu1 %v7848_v16  ;;  %2791 = vmatpush.bf16.msrb.mxu2 %v8046_v10 }
 0x34d   : > { %2601 = vmatpush.bf16.msrb.mxu0 %v7794_v9 }
 0x34e   : > { %v2675_v54 = vpack.c.b16 %v2660_v39, %v2659_v58  ;;  %v2092_v37 = vpop.f32.mrf.mxu0  ;;  %2889 = vmatpush.bf16.msrb.mxu3 %v7996_v61  ;;  %v10451_v39 = vld [vmem:[#allocation113_spill] sm:$0xff] }
 0x34f   : > { %v2378_v10 = vpop.f32.mrf.mxu3  ;;  %v2484_v36 = vpack.c.bf16 %v2092_v37, %v2092_v37 }
 0x350   : > { %2698 = vmatpush.bf16.msrb.mxu1 %v7796_v32  ;;  %2792 = vmatpush.bf16.msrb.mxu2 %v7994_v42  ;;  %v2530_v61 = vpack.c.bf16 %v2378_v10, %v2378_v10 }
 0x351   : > { %v2189_v8 = vpop.f32.mrf.mxu1  ;;  %3110 = vmatpush.bf16.msra.mxu0 %v7426_v13  ;;  %v2564_v0 = vunpack.c.l.b16 %v2484_v36 }
 0x352   : > { %v2281_v20 = vpop.f32.mrf.mxu2  ;;  %2602 = vmatmul.bf16.vlgmr.msrb.gmra.mxu0 %v2578_v41  ;;  %2890 = vmatpush.bf16.msrb.mxu3 %v7944_v12  ;;  %v2500_v16 = vpack.c.bf16 %v2189_v8, %v2189_v8  ;;  %v2853_v27 = vunpack.c.l.b16 %v2530_v61 }
 0x353   : > { %2699 = vmatmul.bf16.vlgmr.msrb.gmra.mxu1 %v2675_v54  ;;  %v2514_v23 = vpack.c.bf16 %v2281_v20, %v2281_v20 }
 0x354   : > { %3207 = vmatpush.bf16.msra.mxu1 %v7428_v34  ;;  %2793 = vmatpush.bf16.msrb.mxu2 %v7942_v22  ;;  %v2661_v59 = vunpack.c.l.b16 %v2500_v16 }
 0x355   : > { %3111 = vmatpush.bf16.msra.mxu0 %v7442_v56  ;;  %v2756_v29 = vunpack.c.l.b16 %v2514_v23 }
 0x356   : > { %v2094_v9 = vpop.f32.mrf.mxu0  ;;  %2891 = vmatpush.bf16.msrb.mxu3 %v7888_v47 }
 0x357   : > { %v2485_v46 = vpack.c.bf16 %v2094_v9, %v2094_v9  ;;  %v2380_v22 = vpop.f32.mrf.mxu3  ;;  %v10452_v9 = vld [vmem:[#allocation138_spill] sm:$0xff] }
 0x358   : > { %3208 = vmatpush.bf16.msra.mxu1 %v7444_v15  ;;  %2794 = vmatpush.bf16.msrb.mxu2 %v7886_v4  ;;  %v2531_v12 = vpack.c.bf16 %v2380_v22, %v2380_v22 }
 0x359   : > { %v2191_v32 = vpop.f32.mrf.mxu1  ;;  %3112 = vmatpush.bf16.msra.mxu0 %v7481_v3  ;;  %v2565_v18 = vunpack.c.l.b16 %v2485_v46 }
 0x35a   : > { %v2501_v42 = vpack.c.bf16 %v2191_v32, %v2191_v32  ;;  %v2283_v40 = vpop.f32.mrf.mxu2  ;;  %v2854_v33 = vunpack.c.l.b16 %v2531_v12  ;;  %2892 = vmatpush.bf16.msrb.mxu3 %v7840_v1  ;;  %v10446_v1 = vld [vmem:[#allocation125_spill] sm:$0xff]  ;;  %v10453_v32 = vld [vmem:[#allocation163_spill] sm:$0xff] }
 0x35b   : > { %v2515_v26 = vpack.c.bf16 %v2283_v40, %v2283_v40  ;;  %v2579_v35 = vpack.c.b16 %v2565_v18, %v2564_v0  ;;  %v10454_v0 = vld [vmem:[#allocation102_spill] sm:$0xff]  ;;  %v10456_v18 = vld [vmem:[#allocation128_spill] sm:$0xff] }
 0x35c   : > { %3209 = vmatpush.bf16.msra.mxu1 %v7483_v21  ;;  %v2662_v57 = vunpack.c.l.b16 %v2501_v42  ;;  %2795 = vmatpush.bf16.msrb.mxu2 %v7838_v14  ;;  %v2869_v4 = vpack.c.b16 %v2854_v33, %v2853_v27 }
 0x35d   : > { %v2757_v38 = vunpack.c.l.b16 %v2515_v26  ;;  %3113 = vmatpush.bf16.msra.mxu0 %v7487_v63 }
 0x35e   : > { %3401 = vmatpush.bf16.msra.mxu3 %v7424_v48  ;;  %v2676_v5 = vpack.c.b16 %v2662_v57, %v2661_v59  ;;  %v2097_v25 = vpop.f32.mrf.mxu0  ;;  %v10455_v59 = vld [vmem:[#allocation103_spill] sm:$0xff]  ;;  %v10457_v57 = vld [vmem:[#allocation129_spill] sm:$0xff] }
 0x35f   : > { %v2772_v47 = vpack.c.b16 %v2757_v38, %v2756_v29  ;;  %2893 = vmatmul.bf16.vlgmr.msrb.gmra.mxu3 %v2869_v4  ;;  %v2486_v44 = vpack.c.bf16 %v2097_v25, %v2097_v25 }
 0x360   : > { %3210 = vmatpush.bf16.msra.mxu1 %v7491_v45  ;;  %3304 = vmatpush.bf16.msra.mxu2 %v7422_v28  ;;  %v2383_v14 = vpop.f32.mrf.mxu3 }
 0x361   : > { %3114 = vmatpush.bf16.msra.mxu0 %v10303_v30  ;;  %v2194_v31 = vpop.f32.mrf.mxu1  ;;  %2796 = vmatmul.bf16.vlgmr.msrb.gmra.mxu2 %v2772_v47  ;;  %v2532_v58 = vpack.c.bf16 %v2383_v14, %v2383_v14  ;;  %v2566_v46 = vunpack.c.l.b16 %v2486_v44  ;;  %v10461_v14 = vld [vmem:[#allocation105_spill] sm:$0xff] }
 0x362   : > { %v2286_v11 = vpop.f32.mrf.mxu2  ;;  %3402 = vmatpush.bf16.msra.mxu3 %v7448_v2  ;;  %2607 = vmatmul.bf16.gmra.mxu0 %v2579_v35  ;;  %v2502_v55 = vpack.c.bf16 %v2194_v31, %v2194_v31  ;;  %v10458_v35 = vld [vmem:[#allocation116_spill] sm:$0xff] }
 0x363   : > { %2704 = vmatmul.bf16.gmra.mxu1 %v2676_v5  ;;  %v2516_v53 = vpack.c.bf16 %v2286_v11, %v2286_v11  ;;  %v2855_v22 = vunpack.c.l.b16 %v2532_v58  ;;  %v10459_v5 = vld [vmem:[#allocation117_spill] sm:$0xff]  ;;  %v10460_v11 = vld [vmem:[#allocation104_spill] sm:$0xff] }
 0x364   : > { %3211 = vmatpush.bf16.msra.mxu1 %v10304_v60  ;;  %3305 = vmatpush.bf16.msra.mxu2 %v7446_v43  ;;  %v2663_v42 = vunpack.c.l.b16 %v2502_v55 }
 0x365   : > { %3115 = vmatpush.bf16.msra.mxu0 %v10446_v1  ;;  %v2758_v40 = vunpack.c.l.b16 %v2516_v53 }
 0x366   : > { %3403 = vmatpush.bf16.msra.mxu3 %v10449_v49  ;;  %v2099_v41 = vpop.f32.mrf.mxu0 }
 0x367   : > { %v2487_v20 = vpack.c.bf16 %v2099_v41, %v2099_v41 }
 0x368   : > { %3212 = vmatpush.bf16.msra.mxu1 %v10447_v62  ;;  %3306 = vmatpush.bf16.msra.mxu2 %v10448_v6  ;;  %v2385_v8 = vpop.f32.mrf.mxu3 }
 0x369   : > { %3116 = vmatpush.bf16.msra.mxu0 %v10450_v17  ;;  %v2196_v54 = vpop.f32.mrf.mxu1  ;;  %v2533_v16 = vpack.c.bf16 %v2385_v8, %v2385_v8  ;;  %v2567_v23 = vunpack.c.l.b16 %v2487_v20  ;;  %v10462_v20 = vld [vmem:[#allocation96_spill] sm:$0xff] }
 0x36a   : > { %v2288_v37 = vpop.f32.mrf.mxu2  ;;  %v2503_v10 = vpack.c.bf16 %v2196_v54, %v2196_v54  ;;  %3404 = vmatpush.bf16.msra.mxu3 %v10453_v32 }
 0x36b   : > { %v2517_v36 = vpack.c.bf16 %v2288_v37, %v2288_v37  ;;  %v2856_v12 = vunpack.c.l.b16 %v2533_v16  ;;  %v2580_v38 = vpack.c.b16 %v2567_v23, %v2566_v46 }
 0x36c   : > { %3213 = vmatpush.bf16.msra.mxu1 %v10451_v39  ;;  %3307 = vmatpush.bf16.msra.mxu2 %v10452_v9  ;;  %v2664_v61 = vunpack.c.l.b16 %v2503_v10  ;;  %v10463_v10 = vld [vmem:[#allocation97_spill] sm:$0xff] }
 0x36d   : > { %v2759_v26 = vunpack.c.l.b16 %v2517_v36  ;;  %3117 = vmatpush.bf16.msra.mxu0 %v10454_v0  ;;  %v2870_v27 = vpack.c.b16 %v2856_v12, %v2855_v22 }
 0x36e   : > { %3405 = vmatpush.bf16.msra.mxu3 %v10457_v57  ;;  %v2677_v33 = vpack.c.b16 %v2664_v61, %v2663_v42  ;;  %v2102_v47 = vpop.f32.mrf.mxu0 }
 0x36f   : > { %v2773_v29 = vpack.c.b16 %v2759_v26, %v2758_v40  ;;  %2898 = vmatmul.bf16.gmra.mxu3 %v2870_v27  ;;  %v2488_v44 = vpack.c.bf16 %v2102_v47, %v2102_v47 }
 0x370   : > { %3214 = vmatpush.bf16.msra.mxu1 %v10455_v59  ;;  %3308 = vmatpush.bf16.msra.mxu2 %v10456_v18  ;;  %v2388_v31 = vpop.f32.mrf.mxu3 }
 0x371   : > { %v2199_v4 = vpop.f32.mrf.mxu1  ;;  %2801 = vmatmul.bf16.gmra.mxu2 %v2773_v29  ;;  %v2534_v8 = vpack.c.bf16 %v2388_v31, %v2388_v31  ;;  %v2568_v36 = vunpack.c.l.b16 %v2488_v44 }
 0x372   : > { %3406 = vmatpush.bf16.msra.mxu3 %v10459_v5  ;;  %v2291_v25 = vpop.f32.mrf.mxu2  ;;  %2612 = vmatmul.bf16.gmra.mxu0 %v2580_v38  ;;  %v2504_v55 = vpack.c.bf16 %v2199_v4, %v2199_v4 }
 0x373   : > { %2709 = vmatmul.bf16.gmra.mxu1 %v2677_v33  ;;  %v2518_v37 = vpack.c.bf16 %v2291_v25, %v2291_v25  ;;  %v2857_v12 = vunpack.c.l.b16 %v2534_v8 }
 0x374   : > { %3309 = vmatpush.bf16.msra.mxu2 %v10458_v35  ;;  %v2665_v16 = vunpack.c.l.b16 %v2504_v55 }
 0x375   : > { %v2760_v26 = vunpack.c.l.b16 %v2518_v37 }
 0x376   : > { %3407 = vmatpush.bf16.msra.mxu3 %v10461_v14  ;;  %v2104_v53 = vpop.f32.mrf.mxu0 }
 0x377   : > { %v2489_v41 = vpack.c.bf16 %v2104_v53, %v2104_v53 }
 0x378   : > { %3310 = vmatpush.bf16.msra.mxu2 %v10460_v11  ;;  %v2390_v42 = vpop.f32.mrf.mxu3 }
 0x379   : > { %v2201_v58 = vpop.f32.mrf.mxu1  ;;  %v2569_v23 = vunpack.c.l.b16 %v2489_v41  ;;  %v2535_v22 = vpack.c.bf16 %v2390_v42, %v2390_v42 }
 0x37a   : > { %v2505_v54 = vpack.c.bf16 %v2201_v58, %v2201_v58  ;;  %3408 = vmatpush.bf16.msra.mxu3 %v10463_v10  ;;  %v2293_v46 = vpop.f32.mrf.mxu2 }
 0x37b   : > { %v2519_v40 = vpack.c.bf16 %v2293_v46, %v2293_v46  ;;  %v2858_v27 = vunpack.c.l.b16 %v2535_v22  ;;  %v2581_v38 = vpack.c.b16 %v2569_v23, %v2568_v36 }
 0x37c   : > { %3311 = vmatpush.bf16.msra.mxu2 %v10462_v20  ;;  %v2666_v61 = vunpack.c.l.b16 %v2505_v54 }
 0x37d   : > { %v2761_v29 = vunpack.c.l.b16 %v2519_v40  ;;  %v2871_v4 = vpack.c.b16 %v2858_v27, %v2857_v12 }
 0x37e   : > { %v2678_v33 = vpack.c.b16 %v2666_v61, %v2665_v16  ;;  %v2107_v25 = vpop.f32.mrf.mxu0 }
 0x37f   : > { %v2774_v47 = vpack.c.b16 %v2761_v29, %v2760_v26  ;;  %2903 = vmatmul.bf16.gmra.mxu3 %v2871_v4  ;;  %v2490_v53 = vpack.c.bf16 %v2107_v25, %v2107_v25 }
 0x380   : > { %v2393_v55 = vpop.f32.mrf.mxu3 }
 0x381   : > { %v2204_v31 = vpop.f32.mrf.mxu1  ;;  %2806 = vmatmul.bf16.gmra.mxu2 %v2774_v47  ;;  %v2536_v42 = vpack.c.bf16 %v2393_v55, %v2393_v55  ;;  %v2570_v36 = vunpack.c.l.b16 %v2490_v53 }
 0x382   : > { %v2296_v44 = vpop.f32.mrf.mxu2  ;;  %2617 = vmatmul.bf16.gmra.mxu0 %v2581_v38  ;;  %v2506_v58 = vpack.c.bf16 %v2204_v31, %v2204_v31 }
 0x383   : > { %2714 = vmatmul.bf16.gmra.mxu1 %v2678_v33  ;;  %v2520_v46 = vpack.c.bf16 %v2296_v44, %v2296_v44  ;;  %v2859_v27 = vunpack.c.l.b16 %v2536_v42 }
 0x384   : > { %v2667_v16 = vunpack.c.l.b16 %v2506_v58 }
 0x385   : > { %v2762_v29 = vunpack.c.l.b16 %v2520_v46 }
 0x386   : > { %v2109_v41 = vpop.f32.mrf.mxu0 }
 0x387   : > { %v2491_v37 = vpack.c.bf16 %v2109_v41, %v2109_v41 }
 0x388   : > { %v2395_v61 = vpop.f32.mrf.mxu3 }
 0x389   : > { %v2206_v54 = vpop.f32.mrf.mxu1  ;;  %v2571_v40 = vunpack.c.l.b16 %v2491_v37  ;;  %v2537_v12 = vpack.c.bf16 %v2395_v61, %v2395_v61 }
 0x38a   : > { %v2507_v8 = vpack.c.bf16 %v2206_v54, %v2206_v54  ;;  %v2298_v23 = vpop.f32.mrf.mxu2 }
 0x38b   : > { %v2521_v26 = vpack.c.bf16 %v2298_v23, %v2298_v23  ;;  %v2860_v33 = vunpack.c.l.b16 %v2537_v12  ;;  %v2582_v47 = vpack.c.b16 %v2571_v40, %v2570_v36 }
 0x38c   : > { %v2668_v22 = vunpack.c.l.b16 %v2507_v8 }
 0x38d   : > { %v2763_v38 = vunpack.c.l.b16 %v2521_v26  ;;  %v2872_v31 = vpack.c.b16 %v2860_v33, %v2859_v27 }
 0x38e   : > { %v2679_v4 = vpack.c.b16 %v2668_v22, %v2667_v16  ;;  %v2112_v41 = vpop.f32.mrf.mxu0 }
 0x38f   : > { %v2775_v25 = vpack.c.b16 %v2763_v38, %v2762_v29  ;;  %2908 = vmatmul.bf16.gmra.mxu3 %v2872_v31  ;;  %v2492_v53 = vpack.c.bf16 %v2112_v41, %v2112_v41 }
 0x390   : > { %v2398_v55 = vpop.f32.mrf.mxu3 }
 0x391   : > { %v2209_v54 = vpop.f32.mrf.mxu1  ;;  %2811 = vmatmul.bf16.gmra.mxu2 %v2775_v25  ;;  %v2538_v61 = vpack.c.bf16 %v2398_v55, %v2398_v55  ;;  %v2572_v36 = vunpack.c.l.b16 %v2492_v53 }
 0x392   : > { %v2301_v44 = vpop.f32.mrf.mxu2  ;;  %2622 = vmatmul.bf16.gmra.mxu0 %v2582_v47  ;;  %v2508_v58 = vpack.c.bf16 %v2209_v54, %v2209_v54 }
 0x393   : > { %2719 = vmatmul.bf16.gmra.mxu1 %v2679_v4  ;;  %v2522_v23 = vpack.c.bf16 %v2301_v44, %v2301_v44  ;;  %v2861_v33 = vunpack.c.l.b16 %v2538_v61 }
 0x394   : > { %v2669_v16 = vunpack.c.l.b16 %v2508_v58 }
 0x395   : > { %v2764_v38 = vunpack.c.l.b16 %v2522_v23 }
 0x396   : > { %v2114_v37 = vpop.f32.mrf.mxu0 }
 0x397   : > { %v2493_v46 = vpack.c.bf16 %v2114_v37, %v2114_v37 }
 0x398   : > { %v2400_v22 = vpop.f32.mrf.mxu3 }
 0x399   : > { %v2211_v8 = vpop.f32.mrf.mxu1  ;;  %v2573_v26 = vunpack.c.l.b16 %v2493_v46  ;;  %v2539_v27 = vpack.c.bf16 %v2400_v22, %v2400_v22 }
 0x39a   : > { %v2509_v42 = vpack.c.bf16 %v2211_v8, %v2211_v8  ;;  %v2303_v40 = vpop.f32.mrf.mxu2 }
 0x39b   : > { %v2523_v29 = vpack.c.bf16 %v2303_v40, %v2303_v40  ;;  %v2862_v4 = vunpack.c.l.b16 %v2539_v27  ;;  %v2583_v25 = vpack.c.b16 %v2573_v26, %v2572_v36 }
 0x39c   : > { %v2670_v12 = vunpack.c.l.b16 %v2509_v42 }
 0x39d   : > { %v2765_v47 = vunpack.c.l.b16 %v2523_v29  ;;  %v2873_v54 = vpack.c.b16 %v2862_v4, %v2861_v33 }
 0x39e   : > { %v2680_v31 = vpack.c.b16 %v2670_v12, %v2669_v16  ;;  %v2117_v37 = vpop.f32.mrf.mxu0 }
 0x39f   : > { %v2776_v41 = vpack.c.b16 %v2765_v47, %v2764_v38  ;;  %2913 = vmatmul.bf16.gmra.mxu3 %v2873_v54  ;;  %v2494_v53 = vpack.c.bf16 %v2117_v37, %v2117_v37 }
 0x3a0   : > { %v2403_v55 = vpop.f32.mrf.mxu3 }
 0x3a1   : > { %v2214_v8 = vpop.f32.mrf.mxu1  ;;  %2816 = vmatmul.bf16.gmra.mxu2 %v2776_v41  ;;  %v2540_v22 = vpack.c.bf16 %v2403_v55, %v2403_v55  ;;  %v2574_v36 = vunpack.c.l.b16 %v2494_v53 }
 0x3a2   : > { %v2306_v44 = vpop.f32.mrf.mxu2  ;;  %2627 = vmatmul.bf16.gmra.mxu0 %v2583_v25  ;;  %v2510_v58 = vpack.c.bf16 %v2214_v8, %v2214_v8 }
 0x3a3   : > { %2724 = vmatmul.bf16.gmra.mxu1 %v2680_v31  ;;  %v2524_v40 = vpack.c.bf16 %v2306_v44, %v2306_v44  ;;  %v2863_v4 = vunpack.c.l.b16 %v2540_v22 }
 0x3a4   : > { %v2671_v16 = vunpack.c.l.b16 %v2510_v58 }
 0x3a5   : > { %v2766_v47 = vunpack.c.l.b16 %v2524_v40 }
 0x3a6   : > { %v2119_v46 = vpop.f32.mrf.mxu0 }
 0x3a7   : > { %v2495_v23 = vpack.c.bf16 %v2119_v46, %v2119_v46 }
 0x3a8   : > { %v2405_v12 = vpop.f32.mrf.mxu3 }
 0x3a9   : > { %v2216_v42 = vpop.f32.mrf.mxu1  ;;  %v2575_v29 = vunpack.c.l.b16 %v2495_v23  ;;  %v2541_v33 = vpack.c.bf16 %v2405_v12, %v2405_v12 }
 0x3aa   : > { %v2511_v61 = vpack.c.bf16 %v2216_v42, %v2216_v42  ;;  %v2308_v26 = vpop.f32.mrf.mxu2 }
 0x3ab   : > { %v2525_v38 = vpack.c.bf16 %v2308_v26, %v2308_v26  ;;  %v2864_v31 = vunpack.c.l.b16 %v2541_v33  ;;  %v2584_v41 = vpack.c.b16 %v2575_v29, %v2574_v36 }
 0x3ac   : > { %v2672_v27 = vunpack.c.l.b16 %v2511_v61 }
 0x3ad   : > { %v2767_v25 = vunpack.c.l.b16 %v2525_v38  ;;  %v2874_v8 = vpack.c.b16 %v2864_v31, %v2863_v4 }
 0x3ae   : > { %v2681_v54 = vpack.c.b16 %v2672_v27, %v2671_v16 }
 0x3af   : > { %v2777_v37 = vpack.c.b16 %v2767_v25, %v2766_v47  ;;  %v2122_v46 = vpop.f32.mrf.mxu0  ;;  %2918 = vmatmul.bf16.gmra.mxu3 %v2874_v8 }
 0x3b0   : > { %v2408_v55 = vpop.f32.mrf.mxu3  ;;  %v2496_v53 = vpack.c.bf16 %v2122_v46, %v2122_v46 }
 0x3b1   : > { %2821 = vmatmul.bf16.gmra.mxu2 %v2777_v37  ;;  %v2542_v22 = vpack.c.bf16 %v2408_v55, %v2408_v55 }
 0x3b2   : > { %v2219_v42 = vpop.f32.mrf.mxu1  ;;  %v2311_v44 = vpop.f32.mrf.mxu2  ;;  %2632 = vmatmul.bf16.gmra.mxu0 %v2584_v41  ;;  %v2576_v36 = vunpack.c.l.b16 %v2496_v53 }
 0x3b3   : > { %2729 = vmatmul.bf16.gmra.mxu1 %v2681_v54  ;;  %v2512_v58 = vpack.c.bf16 %v2219_v42, %v2219_v42  ;;  %v2526_v40 = vpack.c.bf16 %v2311_v44, %v2311_v44  ;;  %v2865_v31 = vunpack.c.l.b16 %v2542_v22 }
 0x3b5   : > { %v2673_v16 = vunpack.c.l.b16 %v2512_v58  ;;  %v2768_v25 = vunpack.c.l.b16 %v2526_v40 }
 0x3b7   : > { %v2124_v23 = vpop.f32.mrf.mxu0 }
 0x3b8   : > { %v2497_v26 = vpack.c.bf16 %v2124_v23, %v2124_v23  ;;  %v2410_v27 = vpop.f32.mrf.mxu3 }
 0x3b9   : > { %v2543_v33 = vpack.c.bf16 %v2410_v27, %v2410_v27 }
 0x3ba   : > { %v2221_v61 = vpop.f32.mrf.mxu1  ;;  %v2313_v29 = vpop.f32.mrf.mxu2  ;;  %v2577_v47 = vunpack.c.l.b16 %v2497_v26 }
 0x3bb   : > { %v2513_v12 = vpack.c.bf16 %v2221_v61, %v2221_v61  ;;  %v2527_v38 = vpack.c.bf16 %v2313_v29, %v2313_v29  ;;  %v2866_v54 = vunpack.c.l.b16 %v2543_v33 }
 0x3bc   : > { %v2585_v37 = vpack.c.b16 %v2577_v47, %v2576_v36  ;;  %v10464_v47 = vld [vmem:[#allocation53_spill] sm:$0xff] }
 0x3bd   : > { %v2674_v4 = vunpack.c.l.b16 %v2513_v12  ;;  %v2769_v41 = vunpack.c.l.b16 %v2527_v38  ;;  %v2875_v42 = vpack.c.b16 %v2866_v54, %v2865_v31 }
 0x3bf   : > { %v2682_v8 = vpack.c.b16 %v2674_v4, %v2673_v16  ;;  %v2778_v46 = vpack.c.b16 %v2769_v41, %v2768_v25  ;;  %2923 = vmatmul.bf16.gmra.mxu3 %v2875_v42  ;;  %v2418_v4 = vmul.f32 2.0, %v10464_v47  ;;  %v10465_v25 = vld [vmem:[#allocation134_spill] sm:$0xff]  ;;  %v10472_v47 = vld [vmem:[#allocation171_spill] sm:$0xff] }
 0x3c0   : > { %v2413_v55 = vpop.f32.mrf.mxu3  ;;  %v2434_v31 = vmul.f32 2.0, %v10465_v25  ;;  %v10473_v25 = vld [vmem:[#allocation164_spill] sm:$0xff] }
 0x3c1   : > { %2826 = vmatmul.bf16.gmra.mxu2 %v2778_v46  ;;  %v2544_v58 = vpack.c.bf16 %v2413_v55, %v2413_v55  ;;  %v10469_v46 = vld [vmem:[#allocation168_spill] sm:$0xff] }
 0x3c2   : > { %v2316_v44 = vpop.f32.mrf.mxu2  ;;  %2637 = vmatmul.bf16.gmra.mxu0 %v2585_v37  ;;  %v10468_v37 = vld [vmem:[#allocation135_spill] sm:$0xff]  ;;  %v2435_v42 = vmul.f32 2.0, %v10469_v46 }
 0x3c3   : > { %2734 = vmatmul.bf16.gmra.mxu1 %v2682_v8  ;;  %v2528_v53 = vpack.c.bf16 %v2316_v44, %v2316_v44  ;;  %v2867_v22 = vunpack.c.l.b16 %v2544_v58  ;;  %v2419_v8 = vmul.f32 2.0, %v10468_v37 }
 0x3c5   : > { %v2770_v40 = vunpack.c.l.b16 %v2528_v53 }
 0x3c8   : > { %v2415_v61 = vpop.f32.mrf.mxu3 }
 0x3c9   : > { %v2545_v12 = vpack.c.bf16 %v2415_v61, %v2415_v61 }
 0x3ca   : > { %v2318_v23 = vpop.f32.mrf.mxu2 }
 0x3cb   : > { %v2529_v26 = vpack.c.bf16 %v2318_v23, %v2318_v23  ;;  %v2868_v27 = vunpack.c.l.b16 %v2545_v12 }
 0x3cd   : > { %v2771_v29 = vunpack.c.l.b16 %v2529_v26  ;;  %v2876_v33 = vpack.c.b16 %v2868_v27, %v2867_v22 }
 0x3cf   : > { %v2603_v36 = vpop.f32.mrf.mxu0  ;;  %v2779_v38 = vpack.c.b16 %v2771_v29, %v2770_v40  ;;  %2928 = vmatmul.bf16.gmra.mxu3 %v2876_v33 }
 0x3d0   : > { %v2700_v16 = vpop.f32.mrf.mxu1  ;;  %v8222_v41 = vsub.f32 %v2418_v4, %v2603_v36  ;;  %v2420_v4 = vmul.f32 2.0, %v10472_v47 }
 0x3d1   : > { %2831 = vmatmul.bf16.gmra.mxu2 %v2779_v38  ;;  %v8224_v54 = vsub.f32 %v2434_v31, %v2700_v16  ;;  %v2436_v31 = vmul.f32 2.0, %v10473_v25 }
 0x3d2   : > { %10466 = vst [vmem:[#allocation15_spill] sm:$0xff] %v8222_v41  ;;  %v2998_v53 = vpack.c.bf16 %v8222_v41, %v8222_v41  ;;  %v10501_v41 = vld [vmem:[#allocation44_spill] sm:$0xff] }
 0x3d3   : > { %10467 = vst [vmem:[#allocation16_spill] sm:$0xff] %v8224_v54  ;;  %v3014_v58 = vpack.c.bf16 %v8224_v54, %v8224_v54 }
 0x3d4   : > { %v3078_v40 = vunpack.c.l.b16 %v2998_v53  ;;  %v10477_v53 = vld [vmem:[#allocation170_spill] sm:$0xff] }
 0x3d5   : > { %v3175_v22 = vunpack.c.l.b16 %v3014_v58  ;;  %v2466_v58 = vmul.f32 2.0, %v10477_v53 }
 0x3d7   : > { %v2605_v44 = vpop.f32.mrf.mxu0 }
 0x3d8   : > { %v2702_v55 = vpop.f32.mrf.mxu1  ;;  %v8232_v23 = vsub.f32 %v2419_v8, %v2605_v44  ;;  %v10476_v44 = vld [vmem:[#allocation169_spill] sm:$0xff] }
 0x3d9   : > { %v8234_v61 = vsub.f32 %v2435_v42, %v2702_v55  ;;  %v2450_v55 = vmul.f32 2.0, %v10476_v44 }
 0x3da   : > { %10470 = vst [vmem:[#allocation24_spill] sm:$0xff] %v8232_v23  ;;  %v2999_v26 = vpack.c.bf16 %v8232_v23, %v8232_v23 }
 0x3db   : > { %10471 = vst [vmem:[#allocation25_spill] sm:$0xff] %v8234_v61  ;;  %v3015_v12 = vpack.c.bf16 %v8234_v61, %v8234_v61 }
 0x3dc   : > { %v3079_v29 = vunpack.c.l.b16 %v2999_v26  ;;  %v10478_v26 = vld [vmem:[#allocation167_spill] sm:$0xff] }
 0x3dd   : > { %v3176_v27 = vunpack.c.l.b16 %v3015_v12  ;;  %v2421_v12 = vmul.f32 2.0, %v10478_v26  ;;  %v10484_v26 = vld [vmem:[#allocation165_spill] sm:$0xff] }
 0x3de   : > { %v8240_v36 = vpack.c.b16 %v3079_v29, %v3078_v40  ;;  %v10479_v40 = vld [vmem:[#allocation36_spill] sm:$0xff] }
 0x3df   : > { %v8242_v16 = vpack.c.b16 %v3176_v27, %v3175_v22  ;;  %v2608_v38 = vpop.f32.mrf.mxu0  ;;  %v2437_v22 = vmul.f32 2.0, %v10479_v40  ;;  %v2451_v40 = vmul.f32 2.0, %v10484_v26 }
 0x3e0   : > { %v2705_v33 = vpop.f32.mrf.mxu1  ;;  %3118 = vmatmul.bf16.vlgmr.msra.gmra.mxu0 %v8240_v36  ;;  %v8248_v37 = vsub.f32 %v2420_v4, %v2608_v38 }
 0x3e1   : > { %3215 = vmatmul.bf16.vlgmr.msra.gmra.mxu1 %v8242_v16  ;;  %v8250_v8 = vsub.f32 %v2436_v31, %v2705_v33 }
 0x3e2   : > { %10474 = vst [vmem:[#allocation19_spill] sm:$0xff] %v8248_v37  ;;  %v2894_v42 = vpop.f32.mrf.mxu3  ;;  %v3000_v29 = vpack.c.bf16 %v8248_v37, %v8248_v37  ;;  %v10485_v37 = vld [vmem:[#allocation166_spill] sm:$0xff] }
 0x3e3   : > { %10475 = vst [vmem:[#allocation20_spill] sm:$0xff] %v8250_v8  ;;  %v3016_v27 = vpack.c.bf16 %v8250_v8, %v8250_v8  ;;  %v8262_v33 = vsub.f32 %v2466_v58, %v2894_v42  ;;  %v2467_v8 = vmul.f32 2.0, %v10485_v37 }
 0x3e4   : > { %v2797_v46 = vpop.f32.mrf.mxu2 }
 0x3e5   : > { %v8260_v38 = vsub.f32 %v2450_v55, %v2797_v46  ;;  %10481 = vst [vmem:[#allocation80_spill] sm:$0xff] %v8262_v33  ;;  %v3080_v46 = vunpack.c.l.b16 %v3000_v29  ;;  %v3177_v55 = vunpack.c.l.b16 %v3016_v27  ;;  %v3046_v58 = vpack.c.bf16 %v8262_v33, %v8262_v33 }
 0x3e7   : > { %10480 = vst [vmem:[#allocation82_spill] sm:$0xff] %v8260_v38  ;;  %v2610_v47 = vpop.f32.mrf.mxu0  ;;  %v3030_v42 = vpack.c.bf16 %v8260_v38, %v8260_v38  ;;  %v3369_v23 = vunpack.c.l.b16 %v3046_v58 }
 0x3e8   : > { %v2707_v4 = vpop.f32.mrf.mxu1  ;;  %v8264_v25 = vsub.f32 %v2421_v12, %v2610_v47 }
 0x3e9   : > { %v8266_v31 = vsub.f32 %v2437_v22, %v2707_v4 }
 0x3ea   : > { %10482 = vst [vmem:[#allocation23_spill] sm:$0xff] %v8264_v25  ;;  %v3001_v44 = vpack.c.bf16 %v8264_v25, %v8264_v25  ;;  %v2896_v22 = vpop.f32.mrf.mxu3 }
 0x3eb   : > { %10483 = vst [vmem:[#allocation74_spill] sm:$0xff] %v8266_v31  ;;  %v3017_v53 = vpack.c.bf16 %v8266_v31, %v8266_v31  ;;  %v8280_v61 = vsub.f32 %v2467_v8, %v2896_v22  ;;  %v3272_v31 = vunpack.c.l.b16 %v3030_v42  ;;  %v10488_v8 = vld [vmem:[#allocation39_spill] sm:$0xff] }
 0x3ec   : > { %v2799_v12 = vpop.f32.mrf.mxu2  ;;  %v3081_v47 = vunpack.c.l.b16 %v3001_v44 }
 0x3ed   : > { %v3178_v4 = vunpack.c.l.b16 %v3017_v53  ;;  %v8278_v25 = vsub.f32 %v2451_v40, %v2799_v12  ;;  %10487 = vst [vmem:[#allocation87_spill] sm:$0xff] %v8280_v61  ;;  %v3047_v37 = vpack.c.bf16 %v8280_v61, %v8280_v61  ;;  %v2422_v40 = vmul.f32 2.0, %v10488_v8  ;;  %v10489_v12 = vld [vmem:[#allocation34_spill] sm:$0xff]  ;;  %v10494_v61 = vld [vmem:[#allocation43_spill] sm:$0xff] }
 0x3ee   : > { %v8286_v29 = vpack.c.b16 %v3081_v47, %v3080_v46  ;;  %v2438_v22 = vmul.f32 2.0, %v10489_v12  ;;  %v2423_v12 = vmul.f32 2.0, %v10494_v61 }
 0x3ef   : > { %10486 = vst [vmem:[#allocation90_spill] sm:$0xff] %v8278_v25  ;;  %v3031_v26 = vpack.c.bf16 %v8278_v25, %v8278_v25  ;;  %v8288_v27 = vpack.c.b16 %v3178_v4, %v3177_v55  ;;  %v2613_v38 = vpop.f32.mrf.mxu0  ;;  %v3370_v53 = vunpack.c.l.b16 %v3047_v37  ;;  %v10492_v4 = vld [vmem:[#allocation35_spill] sm:$0xff]  ;;  %v10493_v37 = vld [vmem:[#allocation40_spill] sm:$0xff] }
 0x3f0   : > { %v2710_v33 = vpop.f32.mrf.mxu1  ;;  %3123 = vmatmul.bf16.gmra.mxu0 %v8286_v29  ;;  %v8298_v55 = vsub.f32 %v2422_v40, %v2613_v38  ;;  %v2468_v8 = vmul.f32 2.0, %v10493_v37 }
 0x3f1   : > { %v3273_v44 = vunpack.c.l.b16 %v3031_v26  ;;  %3220 = vmatmul.bf16.gmra.mxu1 %v8288_v27  ;;  %v8296_v46 = vpack.c.b16 %v3370_v53, %v3369_v23  ;;  %v8300_v47 = vsub.f32 %v2438_v22, %v2710_v33  ;;  %v2452_v26 = vmul.f32 2.0, %v10492_v4 }
 0x3f2   : > { %10490 = vst [vmem:[#allocation79_spill] sm:$0xff] %v8298_v55  ;;  %v2899_v58 = vpop.f32.mrf.mxu3  ;;  %v3002_v23 = vpack.c.bf16 %v8298_v55, %v8298_v55 }
 0x3f3   : > { %v8294_v25 = vpack.c.b16 %v3273_v44, %v3272_v31  ;;  %10491 = vst [vmem:[#allocation78_spill] sm:$0xff] %v8300_v47  ;;  %3409 = vmatmul.bf16.vlgmr.msra.gmra.mxu3 %v8296_v46  ;;  %v10495_v31 = vld [vmem:[#allocation37_spill] sm:$0xff]  ;;  %v3018_v38 = vpack.c.bf16 %v8300_v47, %v8300_v47  ;;  %v8314_v53 = vsub.f32 %v2468_v8, %v2899_v58  ;;  %v2469_v47 = vmul.f32 2.0, %v10501_v41 }
 0x3f4   : > { %v2802_v42 = vpop.f32.mrf.mxu2  ;;  %v2439_v44 = vmul.f32 2.0, %v10495_v31  ;;  %v10500_v31 = vld [vmem:[#allocation33_spill] sm:$0xff] }
 0x3f5   : > { %3312 = vmatmul.bf16.vlgmr.msra.gmra.mxu2 %v8294_v25  ;;  %v8312_v33 = vsub.f32 %v2452_v26, %v2802_v42  ;;  %10497 = vst [vmem:[#allocation83_spill] sm:$0xff] %v8314_v53  ;;  %v2453_v55 = vmul.f32 2.0, %v10500_v31  ;;  %v3082_v42 = vunpack.c.l.b16 %v3002_v23  ;;  %v3179_v26 = vunpack.c.l.b16 %v3018_v38 }
 0x3f6   : > { %v3048_v8 = vpack.c.bf16 %v8314_v53, %v8314_v53 }
 0x3f7   : > { %10496 = vst [vmem:[#allocation86_spill] sm:$0xff] %v8312_v33  ;;  %v2615_v40 = vpop.f32.mrf.mxu0  ;;  %v3032_v58 = vpack.c.bf16 %v8312_v33, %v8312_v33 }
 0x3f8   : > { %v2712_v22 = vpop.f32.mrf.mxu1  ;;  %v8316_v54 = vsub.f32 %v2423_v12, %v2615_v40  ;;  %v3371_v20 = vunpack.c.l.b16 %v3048_v8 }
 0x3f9   : > { %v8318_v4 = vsub.f32 %v2439_v44, %v2712_v22 }
 0x3fa   : > { %10498 = vst [vmem:[#allocation125_spill] sm:$0xff] %v8316_v54  ;;  %v3003_v61 = vpack.c.bf16 %v8316_v54, %v8316_v54  ;;  %v2901_v44 = vpop.f32.mrf.mxu3 }
 0x3fb   : > { %10499 = vst [vmem:[#allocation126_spill] sm:$0xff] %v8318_v4  ;;  %v3019_v37 = vpack.c.bf16 %v8318_v4, %v8318_v4  ;;  %v8332_v10 = vsub.f32 %v2469_v47, %v2901_v44  ;;  %v3274_v4 = vunpack.c.l.b16 %v3032_v58 }
 0x3fc   : > { %v2804_v12 = vpop.f32.mrf.mxu2  ;;  %v3083_v40 = vunpack.c.l.b16 %v3003_v61 }
 0x3fd   : > { %v3180_v22 = vunpack.c.l.b16 %v3019_v37  ;;  %v8330_v54 = vsub.f32 %v2453_v55, %v2804_v12  ;;  %10503 = vst [vmem:[#allocation134_spill] sm:$0xff] %v8332_v10  ;;  %v3049_v41 = vpack.c.bf16 %v8332_v10, %v8332_v10  ;;  %v10504_v55 = vld [vmem:[#allocation47_spill] sm:$0xff]  ;;  %v10505_v12 = vld [vmem:[#allocation42_spill] sm:$0xff] }
 0x3fe   : > { %v8338_v23 = vpack.c.b16 %v3083_v40, %v3082_v42  ;;  %v2424_v47 = vmul.f32 2.0, %v10504_v55  ;;  %v2440_v44 = vmul.f32 2.0, %v10505_v12  ;;  %v10510_v10 = vld [vmem:[#allocation38_spill] sm:$0xff] }
 0x3ff   : > { %10502 = vst [vmem:[#allocation53_spill] sm:$0xff] %v8330_v54  ;;  %v3033_v31 = vpack.c.bf16 %v8330_v54, %v8330_v54  ;;  %v8340_v38 = vpack.c.b16 %v3180_v22, %v3179_v26  ;;  %v2618_v33 = vpop.f32.mrf.mxu0  ;;  %v3372_v37 = vunpack.c.l.b16 %v3049_v41  ;;  %v10508_v22 = vld [vmem:[#allocation51_spill] sm:$0xff]  ;;  %v10509_v41 = vld [vmem:[#allocation46_spill] sm:$0xff]  ;;  %v2454_v12 = vmul.f32 2.0, %v10510_v10 }
 0x400   : > { %v2715_v53 = vpop.f32.mrf.mxu1  ;;  %3128 = vmatmul.bf16.gmra.mxu0 %v8338_v23  ;;  %v8350_v26 = vsub.f32 %v2424_v47, %v2618_v33  ;;  %v2441_v55 = vmul.f32 2.0, %v10509_v41 }
 0x401   : > { %v3275_v61 = vunpack.c.l.b16 %v3033_v31  ;;  %3225 = vmatmul.bf16.gmra.mxu1 %v8340_v38  ;;  %v8348_v42 = vpack.c.b16 %v3372_v37, %v3371_v20  ;;  %v8352_v40 = vsub.f32 %v2440_v44, %v2715_v53  ;;  %v2425_v31 = vmul.f32 2.0, %v10508_v22 }
 0x402   : > { %10506 = vst [vmem:[#allocation135_spill] sm:$0xff] %v8350_v26  ;;  %v2904_v8 = vpop.f32.mrf.mxu3  ;;  %v3004_v33 = vpack.c.bf16 %v8350_v26, %v8350_v26  ;;  %v10517_v26 = vld [vmem:[#allocation52_spill] sm:$0xff] }
 0x403   : > { %v8346_v54 = vpack.c.b16 %v3275_v61, %v3274_v4  ;;  %10507 = vst [vmem:[#allocation168_spill] sm:$0xff] %v8352_v40  ;;  %3414 = vmatmul.bf16.gmra.mxu3 %v8348_v42  ;;  %v10511_v4 = vld [vmem:[#allocation48_spill] sm:$0xff]  ;;  %v3020_v53 = vpack.c.bf16 %v8352_v40, %v8352_v40  ;;  %v2471_v5 = vmul.f32 2.0, %v10517_v26 }
 0x404   : > { %v2807_v58 = vpop.f32.mrf.mxu2  ;;  %v2470_v61 = vmul.f32 2.0, %v10511_v4  ;;  %v10516_v4 = vld [vmem:[#allocation41_spill] sm:$0xff]  ;;  %v3084_v35 = vunpack.c.l.b16 %v3004_v33 }
 0x405   : > { %3317 = vmatmul.bf16.gmra.mxu2 %v8346_v54  ;;  %v8368_v14 = vsub.f32 %v2454_v12, %v2807_v58  ;;  %v2455_v11 = vmul.f32 2.0, %v10516_v4  ;;  %v3181_v40 = vunpack.c.l.b16 %v3020_v53 }
 0x406   : > { %v8370_v22 = vsub.f32 %v2470_v61, %v2904_v8 }
 0x407   : > { %v2620_v20 = vpop.f32.mrf.mxu0  ;;  %10514 = vst [vmem:[#allocation169_spill] sm:$0xff] %v8368_v14  ;;  %v3034_v58 = vpack.c.bf16 %v8368_v14, %v8368_v14 }
 0x408   : > { %v2717_v37 = vpop.f32.mrf.mxu1  ;;  %v8364_v47 = vsub.f32 %v2425_v31, %v2620_v20  ;;  %10515 = vst [vmem:[#allocation170_spill] sm:$0xff] %v8370_v22  ;;  %v3050_v8 = vpack.c.bf16 %v8370_v22, %v8370_v22 }
 0x409   : > { %v8366_v44 = vsub.f32 %v2441_v55, %v2717_v37 }
 0x40a   : > { %10512 = vst [vmem:[#allocation171_spill] sm:$0xff] %v8364_v47  ;;  %v3005_v10 = vpack.c.bf16 %v8364_v47, %v8364_v47  ;;  %v2906_v37 = vpop.f32.mrf.mxu3 }
 0x40b   : > { %10513 = vst [vmem:[#allocation164_spill] sm:$0xff] %v8366_v44  ;;  %v3021_v41 = vpack.c.bf16 %v8366_v44, %v8366_v44  ;;  %v8384_v61 = vsub.f32 %v2471_v5, %v2906_v37 }
 0x40c   : > { %v3085_v31 = vunpack.c.l.b16 %v3005_v10  ;;  %v2809_v55 = vpop.f32.mrf.mxu2 }
 0x40d   : > { %v3182_v20 = vunpack.c.l.b16 %v3021_v41  ;;  %v8382_v12 = vsub.f32 %v2455_v11, %v2809_v55  ;;  %10519 = vst [vmem:[#allocation36_spill] sm:$0xff] %v8384_v61  ;;  %v3051_v33 = vpack.c.bf16 %v8384_v61, %v8384_v61  ;;  %v3276_v11 = vunpack.c.l.b16 %v3034_v58  ;;  %v10524_v58 = vld [vmem:[#allocation57_spill] sm:$0xff] }
 0x40e   : > { %v8386_v44 = vpack.c.b16 %v3085_v31, %v3084_v35  ;;  %v3373_v41 = vunpack.c.l.b16 %v3050_v8  ;;  %v10520_v35 = vld [vmem:[#allocation13_spill] sm:$0xff]  ;;  %v2427_v8 = vmul.f32 2.0, %v10524_v58 }
 0x40f   : > { %10518 = vst [vmem:[#allocation167_spill] sm:$0xff] %v8382_v12  ;;  %v8388_v4 = vpack.c.b16 %v3182_v20, %v3181_v40  ;;  %v3035_v26 = vpack.c.bf16 %v8382_v12, %v8382_v12  ;;  %v2623_v53 = vpop.f32.mrf.mxu0  ;;  %v3374_v55 = vunpack.c.l.b16 %v3051_v33  ;;  %v2426_v31 = vmul.f32 2.0, %v10520_v35  ;;  %v10521_v40 = vld [vmem:[#allocation49_spill] sm:$0xff] }
 0x410   : > { %v2720_v10 = vpop.f32.mrf.mxu1  ;;  %3133 = vmatmul.bf16.gmra.mxu0 %v8386_v44  ;;  %v2442_v20 = vmul.f32 2.0, %v10521_v40  ;;  %v10526_v35 = vld [vmem:[#allocation45_spill] sm:$0xff] }
 0x411   : > { %3230 = vmatmul.bf16.gmra.mxu1 %v8388_v4  ;;  %v3277_v5 = vunpack.c.l.b16 %v3035_v26  ;;  %v8400_v12 = vpack.c.b16 %v3374_v55, %v3373_v41  ;;  %v8402_v22 = vsub.f32 %v2426_v31, %v2623_v53  ;;  %v10525_v26 = vld [vmem:[#allocation54_spill] sm:$0xff]  ;;  %v2456_v40 = vmul.f32 2.0, %v10526_v35 }
 0x412   : > { %v8404_v61 = vsub.f32 %v2442_v20, %v2720_v10  ;;  %v2909_v47 = vpop.f32.mrf.mxu3  ;;  %v2443_v33 = vmul.f32 2.0, %v10525_v26 }
 0x413   : > { %v8398_v37 = vpack.c.b16 %v3277_v5, %v3276_v11  ;;  %10522 = vst [vmem:[#allocation165_spill] sm:$0xff] %v8402_v22  ;;  %3419 = vmatmul.bf16.gmra.mxu3 %v8400_v12  ;;  %v10527_v11 = vld [vmem:[#allocation12_spill] sm:$0xff]  ;;  %v3006_v53 = vpack.c.bf16 %v8402_v22, %v8402_v22  ;;  %v10533_v22 = vld [vmem:[#allocation58_spill] sm:$0xff] }
 0x414   : > { %10523 = vst [vmem:[#allocation166_spill] sm:$0xff] %v8404_v61  ;;  %v2812_v14 = vpop.f32.mrf.mxu2  ;;  %v2472_v5 = vmul.f32 2.0, %v10527_v11  ;;  %v3022_v10 = vpack.c.bf16 %v8404_v61, %v8404_v61  ;;  %v10532_v11 = vld [vmem:[#allocation50_spill] sm:$0xff]  ;;  %v2473_v32 = vmul.f32 2.0, %v10533_v22 }
 0x415   : > { %3322 = vmatmul.bf16.gmra.mxu2 %v8398_v37  ;;  %v8420_v57 = vsub.f32 %v2456_v40, %v2812_v14  ;;  %v2457_v18 = vmul.f32 2.0, %v10532_v11  ;;  %v3086_v9 = vunpack.c.l.b16 %v3006_v53 }
 0x416   : > { %v8422_v58 = vsub.f32 %v2472_v5, %v2909_v47  ;;  %v3183_v61 = vunpack.c.l.b16 %v3022_v10 }
 0x417   : > { %v2625_v41 = vpop.f32.mrf.mxu0  ;;  %10530 = vst [vmem:[#allocation35_spill] sm:$0xff] %v8420_v57  ;;  %v3036_v14 = vpack.c.bf16 %v8420_v57, %v8420_v57 }
 0x418   : > { %v2722_v55 = vpop.f32.mrf.mxu1  ;;  %v8416_v31 = vsub.f32 %v2427_v8, %v2625_v41  ;;  %10531 = vst [vmem:[#allocation40_spill] sm:$0xff] %v8422_v58  ;;  %v3052_v47 = vpack.c.bf16 %v8422_v58, %v8422_v58 }
 0x419   : > { %v8418_v20 = vsub.f32 %v2443_v33, %v2722_v55 }
 0x41a   : > { %10528 = vst [vmem:[#allocation39_spill] sm:$0xff] %v8416_v31  ;;  %v3007_v26 = vpack.c.bf16 %v8416_v31, %v8416_v31  ;;  %v2911_v55 = vpop.f32.mrf.mxu3 }
 0x41b   : > { %10529 = vst [vmem:[#allocation34_spill] sm:$0xff] %v8418_v20  ;;  %v3023_v35 = vpack.c.bf16 %v8418_v20, %v8418_v20  ;;  %v8436_v5 = vsub.f32 %v2473_v32, %v2911_v55 }
 0x41c   : > { %v3087_v8 = vunpack.c.l.b16 %v3007_v26  ;;  %v2814_v33 = vpop.f32.mrf.mxu2 }
 0x41d   : > { %v3184_v41 = vunpack.c.l.b16 %v3023_v35  ;;  %v8434_v40 = vsub.f32 %v2457_v18, %v2814_v33  ;;  %10535 = vst [vmem:[#allocation37_spill] sm:$0xff] %v8436_v5  ;;  %v3053_v53 = vpack.c.bf16 %v8436_v5, %v8436_v5  ;;  %v3278_v18 = vunpack.c.l.b16 %v3036_v14  ;;  %v10540_v14 = vld [vmem:[#allocation60_spill] sm:$0xff] }
 0x41e   : > { %v8438_v20 = vpack.c.b16 %v3087_v8, %v3086_v9  ;;  %v3375_v35 = vunpack.c.l.b16 %v3052_v47  ;;  %v10536_v9 = vld [vmem:[#allocation56_spill] sm:$0xff]  ;;  %v2429_v47 = vmul.f32 2.0, %v10540_v14 }
 0x41f   : > { %10534 = vst [vmem:[#allocation43_spill] sm:$0xff] %v8434_v40  ;;  %v8440_v11 = vpack.c.b16 %v3184_v41, %v3183_v61  ;;  %v3037_v22 = vpack.c.bf16 %v8434_v40, %v8434_v40  ;;  %v2628_v10 = vpop.f32.mrf.mxu0  ;;  %v3376_v33 = vunpack.c.l.b16 %v3053_v53  ;;  %v2428_v8 = vmul.f32 2.0, %v10536_v9  ;;  %v10537_v61 = vld [vmem:[#allocation55_spill] sm:$0xff]  ;;  %v10542_v9 = vld [vmem:[#allocation62_spill] sm:$0xff] }
 0x420   : > { %v2725_v26 = vpop.f32.mrf.mxu1  ;;  %3138 = vmatmul.bf16.gmra.mxu0 %v8438_v20  ;;  %v2444_v41 = vmul.f32 2.0, %v10537_v61  ;;  %v2458_v61 = vmul.f32 2.0, %v10542_v9 }
 0x421   : > { %3235 = vmatmul.bf16.gmra.mxu1 %v8440_v11  ;;  %v3279_v32 = vunpack.c.l.b16 %v3037_v22  ;;  %v8452_v40 = vpack.c.b16 %v3376_v33, %v3375_v35  ;;  %v8454_v58 = vsub.f32 %v2428_v8, %v2628_v10  ;;  %v10541_v22 = vld [vmem:[#allocation59_spill] sm:$0xff] }
 0x422   : > { %v8456_v5 = vsub.f32 %v2444_v41, %v2725_v26  ;;  %v2914_v31 = vpop.f32.mrf.mxu3  ;;  %v2445_v53 = vmul.f32 2.0, %v10541_v22 }
 0x423   : > { %v8450_v55 = vpack.c.b16 %v3279_v32, %v3278_v18  ;;  %10538 = vst [vmem:[#allocation33_spill] sm:$0xff] %v8454_v58  ;;  %3424 = vmatmul.bf16.gmra.mxu3 %v8452_v40  ;;  %v10543_v18 = vld [vmem:[#allocation61_spill] sm:$0xff]  ;;  %v3008_v10 = vpack.c.bf16 %v8454_v58, %v8454_v58 }
 0x424   : > { %10539 = vst [vmem:[#allocation44_spill] sm:$0xff] %v8456_v5  ;;  %v2817_v57 = vpop.f32.mrf.mxu2  ;;  %v2474_v32 = vmul.f32 2.0, %v10543_v18  ;;  %v3024_v26 = vpack.c.bf16 %v8456_v5, %v8456_v5  ;;  %v10548_v18 = vld [vmem:[#allocation66_spill] sm:$0xff]  ;;  %v10549_v58 = vld [vmem:[#allocation65_spill] sm:$0xff] }
 0x425   : > { %3327 = vmatmul.bf16.gmra.mxu2 %v8450_v55  ;;  %v8472_v49 = vsub.f32 %v2458_v61, %v2817_v57  ;;  %v2459_v6 = vmul.f32 2.0, %v10548_v18  ;;  %v2475_v59 = vmul.f32 2.0, %v10549_v58  ;;  %v3088_v0 = vunpack.c.l.b16 %v3008_v10 }
 0x426   : > { %v8474_v14 = vsub.f32 %v2474_v32, %v2914_v31  ;;  %v3185_v5 = vunpack.c.l.b16 %v3024_v26 }
 0x427   : > { %v2630_v35 = vpop.f32.mrf.mxu0  ;;  %10546 = vst [vmem:[#allocation51_spill] sm:$0xff] %v8472_v49  ;;  %v3038_v57 = vpack.c.bf16 %v8472_v49, %v8472_v49 }
 0x428   : > { %v2727_v33 = vpop.f32.mrf.mxu1  ;;  %v8468_v8 = vsub.f32 %v2429_v47, %v2630_v35  ;;  %10547 = vst [vmem:[#allocation46_spill] sm:$0xff] %v8474_v14  ;;  %v3054_v31 = vpack.c.bf16 %v8474_v14, %v8474_v14 }
 0x429   : > { %v8470_v41 = vsub.f32 %v2445_v53, %v2727_v33 }
 0x42a   : > { %10544 = vst [vmem:[#allocation47_spill] sm:$0xff] %v8468_v8  ;;  %v3009_v22 = vpack.c.bf16 %v8468_v8, %v8468_v8  ;;  %v2916_v33 = vpop.f32.mrf.mxu3 }
 0x42b   : > { %10545 = vst [vmem:[#allocation42_spill] sm:$0xff] %v8470_v41  ;;  %v3025_v9 = vpack.c.bf16 %v8470_v41, %v8470_v41  ;;  %v8488_v32 = vsub.f32 %v2475_v59, %v2916_v33 }
 0x42c   : > { %v3089_v47 = vunpack.c.l.b16 %v3009_v22  ;;  %v2819_v53 = vpop.f32.mrf.mxu2 }
 0x42d   : > { %v3186_v35 = vunpack.c.l.b16 %v3025_v9  ;;  %v8486_v61 = vsub.f32 %v2459_v6, %v2819_v53  ;;  %10551 = vst [vmem:[#allocation48_spill] sm:$0xff] %v8488_v32  ;;  %v3055_v10 = vpack.c.bf16 %v8488_v32, %v8488_v32  ;;  %v3280_v6 = vunpack.c.l.b16 %v3038_v57  ;;  %v10556_v57 = vld [vmem:[#allocation68_spill] sm:$0xff] }
 0x42e   : > { %v8490_v41 = vpack.c.b16 %v3089_v47, %v3088_v0  ;;  %v3377_v9 = vunpack.c.l.b16 %v3054_v31  ;;  %v10552_v0 = vld [vmem:[#allocation64_spill] sm:$0xff]  ;;  %v2431_v31 = vmul.f32 2.0, %v10556_v57 }
 0x42f   : > { %10550 = vst [vmem:[#allocation38_spill] sm:$0xff] %v8486_v61  ;;  %v8492_v18 = vpack.c.b16 %v3186_v35, %v3185_v5  ;;  %v3039_v58 = vpack.c.bf16 %v8486_v61, %v8486_v61  ;;  %v2633_v26 = vpop.f32.mrf.mxu0  ;;  %v3378_v53 = vunpack.c.l.b16 %v3055_v10  ;;  %v2430_v47 = vmul.f32 2.0, %v10552_v0  ;;  %v10553_v5 = vld [vmem:[#allocation63_spill] sm:$0xff]  ;;  %v10558_v0 = vld [vmem:[#allocation69_spill] sm:$0xff] }
 0x430   : > { %v2730_v22 = vpop.f32.mrf.mxu1  ;;  %3143 = vmatmul.bf16.gmra.mxu0 %v8490_v41  ;;  %v2446_v35 = vmul.f32 2.0, %v10553_v5  ;;  %v2460_v5 = vmul.f32 2.0, %v10558_v0 }
 0x431   : > { %3240 = vmatmul.bf16.gmra.mxu1 %v8492_v18  ;;  %v3281_v59 = vunpack.c.l.b16 %v3039_v58  ;;  %v8504_v61 = vpack.c.b16 %v3378_v53, %v3377_v9  ;;  %v8506_v14 = vsub.f32 %v2430_v47, %v2633_v26  ;;  %v10557_v58 = vld [vmem:[#allocation67_spill] sm:$0xff] }
 0x432   : > { %v8508_v32 = vsub.f32 %v2446_v35, %v2730_v22  ;;  %v2919_v8 = vpop.f32.mrf.mxu3  ;;  %v2447_v10 = vmul.f32 2.0, %v10557_v58 }
 0x433   : > { %v8502_v33 = vpack.c.b16 %v3281_v59, %v3280_v6  ;;  %10554 = vst [vmem:[#allocation41_spill] sm:$0xff] %v8506_v14  ;;  %3429 = vmatmul.bf16.gmra.mxu3 %v8504_v61  ;;  %v10559_v6 = vld [vmem:[#allocation14_spill] sm:$0xff]  ;;  %v3010_v26 = vpack.c.bf16 %v8506_v14, %v8506_v14  ;;  %v10565_v14 = vld [vmem:[#allocation72_spill] sm:$0xff] }
 0x434   : > { %10555 = vst [vmem:[#allocation52_spill] sm:$0xff] %v8508_v32  ;;  %v2822_v49 = vpop.f32.mrf.mxu2  ;;  %v2476_v59 = vmul.f32 2.0, %v10559_v6  ;;  %v3026_v22 = vpack.c.bf16 %v8508_v32, %v8508_v32  ;;  %v10564_v6 = vld [vmem:[#allocation73_spill] sm:$0xff]  ;;  %v2477_v39 = vmul.f32 2.0, %v10565_v14 }
 0x435   : > { %3332 = vmatmul.bf16.gmra.mxu2 %v8502_v33  ;;  %v8524_v2 = vsub.f32 %v2460_v5, %v2822_v49  ;;  %v2461_v43 = vmul.f32 2.0, %v10564_v6  ;;  %v3090_v17 = vunpack.c.l.b16 %v3010_v26 }
 0x436   : > { %v8526_v57 = vsub.f32 %v2476_v59, %v2919_v8  ;;  %v3187_v32 = vunpack.c.l.b16 %v3026_v22 }
 0x437   : > { %v2635_v9 = vpop.f32.mrf.mxu0  ;;  %10562 = vst [vmem:[#allocation57_spill] sm:$0xff] %v8524_v2  ;;  %v3040_v49 = vpack.c.bf16 %v8524_v2, %v8524_v2 }
 0x438   : > { %v2732_v53 = vpop.f32.mrf.mxu1  ;;  %v8520_v47 = vsub.f32 %v2431_v31, %v2635_v9  ;;  %10563 = vst [vmem:[#allocation54_spill] sm:$0xff] %v8526_v57  ;;  %v3056_v8 = vpack.c.bf16 %v8526_v57, %v8526_v57 }
 0x439   : > { %v8522_v35 = vsub.f32 %v2447_v10, %v2732_v53 }
 0x43a   : > { %10560 = vst [vmem:[#allocation13_spill] sm:$0xff] %v8520_v47  ;;  %v3011_v58 = vpack.c.bf16 %v8520_v47, %v8520_v47  ;;  %v2921_v53 = vpop.f32.mrf.mxu3 }
 0x43b   : > { %10561 = vst [vmem:[#allocation49_spill] sm:$0xff] %v8522_v35  ;;  %v3027_v0 = vpack.c.bf16 %v8522_v35, %v8522_v35  ;;  %v8540_v59 = vsub.f32 %v2477_v39, %v2921_v53 }
 0x43c   : > { %v3091_v31 = vunpack.c.l.b16 %v3011_v58  ;;  %v2824_v10 = vpop.f32.mrf.mxu2 }
 0x43d   : > { %v3188_v9 = vunpack.c.l.b16 %v3027_v0  ;;  %v8538_v5 = vsub.f32 %v2461_v43, %v2824_v10  ;;  %10567 = vst [vmem:[#allocation12_spill] sm:$0xff] %v8540_v59  ;;  %v3057_v26 = vpack.c.bf16 %v8540_v59, %v8540_v59  ;;  %v3282_v43 = vunpack.c.l.b16 %v3040_v49 }
 0x43e   : > { %v8542_v35 = vpack.c.b16 %v3091_v31, %v3090_v17  ;;  %v3379_v0 = vunpack.c.l.b16 %v3056_v8  ;;  %v10568_v17 = vld [vmem:[#allocation71_spill] sm:$0xff]  ;;  %v2433_v49 = vmul.f32 2.0, %v8136_v50  ;;  %v2449_v8 = vmul.f32 2.0, %v8138_v51 }
 0x43f   : > { %10566 = vst [vmem:[#allocation45_spill] sm:$0xff] %v8538_v5  ;;  %v8544_v6 = vpack.c.b16 %v3188_v9, %v3187_v32  ;;  %v3041_v14 = vpack.c.bf16 %v8538_v5, %v8538_v5  ;;  %v2638_v22 = vpop.f32.mrf.mxu0  ;;  %v3380_v10 = vunpack.c.l.b16 %v3057_v26  ;;  %v2432_v31 = vmul.f32 2.0, %v10568_v17  ;;  %v10569_v32 = vld [vmem:[#allocation70_spill] sm:$0xff] }
 0x440   : > { %v2735_v58 = vpop.f32.mrf.mxu1  ;;  %3148 = vmatmul.bf16.gmra.mxu0 %v8542_v35  ;;  %v2448_v9 = vmul.f32 2.0, %v10569_v32 }
 0x441   : > { %3245 = vmatmul.bf16.gmra.mxu1 %v8544_v6  ;;  %v3283_v39 = vunpack.c.l.b16 %v3041_v14  ;;  %v8556_v5 = vpack.c.b16 %v3380_v10, %v3379_v0  ;;  %v8558_v57 = vsub.f32 %v2432_v31, %v2638_v22  ;;  %v10572_v14 = vld [vmem:[#allocation17_spill] sm:$0xff] }
 0x442   : > { %v8560_v59 = vsub.f32 %v2448_v9, %v2735_v58  ;;  %v2924_v47 = vpop.f32.mrf.mxu3  ;;  %v2462_v26 = vmul.f32 2.0, %v10572_v14  ;;  %v10576_v14 = vld [vmem:[#allocation21_spill] sm:$0xff] }
 0x443   : > { %v8554_v53 = vpack.c.b16 %v3283_v39, %v3282_v43  ;;  %10570 = vst [vmem:[#allocation50_spill] sm:$0xff] %v8558_v57  ;;  %3434 = vmatmul.bf16.gmra.mxu3 %v8556_v5  ;;  %v10573_v43 = vld [vmem:[#allocation18_spill] sm:$0xff]  ;;  %v3012_v22 = vpack.c.bf16 %v8558_v57, %v8558_v57 }
 0x444   : > { %10571 = vst [vmem:[#allocation58_spill] sm:$0xff] %v8560_v59  ;;  %v2827_v2 = vpop.f32.mrf.mxu2  ;;  %v2478_v39 = vmul.f32 2.0, %v10573_v43  ;;  %v3028_v58 = vpack.c.bf16 %v8560_v59, %v8560_v59  ;;  %v2463_v43 = vmul.f32 2.0, %v10576_v14  ;;  %v10577_v57 = vld [vmem:[#allocation22_spill] sm:$0xff] }
 0x445   : > { %3337 = vmatmul.bf16.gmra.mxu2 %v8554_v53  ;;  %v8576_v32 = vsub.f32 %v2462_v26, %v2827_v2  ;;  %v2479_v48 = vmul.f32 2.0, %v10577_v57  ;;  %v3092_v28 = vunpack.c.l.b16 %v3012_v22 }
 0x446   : > { %v8578_v50 = vsub.f32 %v2478_v39, %v2924_v47  ;;  %v3189_v59 = vunpack.c.l.b16 %v3028_v58 }
 0x447   : > { %v2640_v0 = vpop.f32.mrf.mxu0  ;;  %10575 = vst [vmem:[#allocation55_spill] sm:$0xff] %v8576_v32  ;;  %v3042_v2 = vpack.c.bf16 %v8576_v32, %v8576_v32 }
 0x448   : > { %v2737_v10 = vpop.f32.mrf.mxu1  ;;  %v8572_v17 = vsub.f32 %v2433_v49, %v2640_v0  ;;  %v3058_v47 = vpack.c.bf16 %v8578_v50, %v8578_v50 }
 0x449   : > { %v8574_v31 = vsub.f32 %v2449_v8, %v2737_v10  ;;  %v3284_v58 = vunpack.c.l.b16 %v3042_v2 }
 0x44a   : > { %v3013_v51 = vpack.c.bf16 %v8572_v17, %v8572_v17  ;;  %v2926_v10 = vpop.f32.mrf.mxu3 }
 0x44b   : > { %10574 = vst [vmem:[#allocation56_spill] sm:$0xff] %v8574_v31  ;;  %v3029_v9 = vpack.c.bf16 %v8574_v31, %v8574_v31  ;;  %v8592_v39 = vsub.f32 %v2479_v48, %v2926_v10 }
 0x44c   : > { %v3093_v49 = vunpack.c.l.b16 %v3013_v51  ;;  %v2829_v8 = vpop.f32.mrf.mxu2  ;;  %v3381_v51 = vunpack.c.l.b16 %v3058_v47 }
 0x44d   : > { %v3190_v0 = vunpack.c.l.b16 %v3029_v9  ;;  %v8590_v26 = vsub.f32 %v2463_v43, %v2829_v8  ;;  %v3059_v22 = vpack.c.bf16 %v8592_v39, %v8592_v39 }
 0x44e   : > { %v3101_v31 = vpack.c.b16 %v3093_v49, %v3092_v28  ;;  %v2464_v28 = vmul.f32 2.0, %v8146_v19 }
 0x44f   : > { %v3198_v14 = vpack.c.b16 %v3190_v0, %v3189_v59  ;;  %v3043_v57 = vpack.c.bf16 %v8590_v26, %v8590_v26  ;;  %v3382_v32 = vunpack.c.l.b16 %v3059_v22  ;;  %v2480_v59 = vmul.f32 2.0, %v8148_v52 }
 0x450   : > { %3153 = vmatmul.bf16.gmra.mxu0 %v3101_v31 }
 0x451   : > { %3250 = vmatmul.bf16.gmra.mxu1 %v3198_v14  ;;  %v3285_v9 = vunpack.c.l.b16 %v3043_v57  ;;  %3626 = vmatpush.bf16.msrb.mxu0 %v3101_v31  ;;  %v3391_v8 = vpack.c.b16 %v3382_v32, %v3381_v51  ;;  %v2465_v31 = vmul.f32 2.0, %v8156_v7 }
 0x452   : > { %3723 = vmatpush.bf16.msrb.mxu1 %v3198_v14  ;;  %v2929_v10 = vpop.f32.mrf.mxu3 }
 0x453   : > { %v3294_v43 = vpack.c.b16 %v3285_v9, %v3284_v58  ;;  %3439 = vmatmul.bf16.gmra.mxu3 %v3391_v8  ;;  %v8604_v0 = vsub.f32 %v2480_v59, %v2929_v10 }
 0x454   : > { %v2832_v48 = vpop.f32.mrf.mxu2 }
 0x455   : > { %3627 = vmatpush.bf16.msrb.mxu0 %v8542_v35  ;;  %3342 = vmatmul.bf16.gmra.mxu2 %v3294_v43  ;;  %v8602_v49 = vsub.f32 %v2464_v28, %v2832_v48  ;;  %v2481_v35 = vmul.f32 2.0, %v8158_v24  ;;  %v3060_v52 = vpack.c.bf16 %v8604_v0, %v8604_v0 }
 0x456   : > { %3724 = vmatpush.bf16.msrb.mxu1 %v8544_v6 }
 0x457   : > { %v3044_v6 = vpack.c.bf16 %v8602_v49, %v8602_v49  ;;  %v3383_v57 = vunpack.c.l.b16 %v3060_v52 }
 0x459   : > { %3628 = vmatpush.bf16.msrb.mxu0 %v8490_v41  ;;  %v3286_v14 = vunpack.c.l.b16 %v3044_v6 }
 0x45a   : > { %3725 = vmatpush.bf16.msrb.mxu1 %v8492_v18  ;;  %v2931_v32 = vpop.f32.mrf.mxu3 }
 0x45b   : > { %v8616_v47 = vsub.f32 %v2481_v35, %v2931_v32 }
 0x45c   : > { %v2834_v19 = vpop.f32.mrf.mxu2 }
 0x45d   : > { %v8614_v2 = vsub.f32 %v2465_v31, %v2834_v19  ;;  %3629 = vmatpush.bf16.msrb.mxu0 %v8438_v20  ;;  %v3119_v41 = vpop.f32.mrf.mxu0  ;;  %v3061_v18 = vpack.c.bf16 %v8616_v47, %v8616_v47 }
 0x45e   : > { %3726 = vmatpush.bf16.msrb.mxu1 %v8440_v11  ;;  %v3216_v7 = vpop.f32.mrf.mxu1  ;;  %v3514_v28 = vpack.c.bf16 %v3119_v41, %v3119_v41 }
 0x45f   : > { %v3045_v24 = vpack.c.bf16 %v8614_v2, %v8614_v2  ;;  %v3384_v58 = vunpack.c.l.b16 %v3061_v18  ;;  %v3530_v59 = vpack.c.bf16 %v3216_v7, %v3216_v7 }
 0x461   : > { %v3287_v22 = vunpack.c.l.b16 %v3045_v24  ;;  %3630 = vmatpush.bf16.msrb.mxu0 %v8386_v44  ;;  %v3392_v20 = vpack.c.b16 %v3384_v58, %v3383_v57  ;;  %v10581_v57 = vld [vmem:[#allocation113_spill] sm:$0xff]  ;;  %v10582_v58 = vld [vmem:[#allocation159_spill] sm:$0xff] }
 0x462   : > { %3727 = vmatpush.bf16.msrb.mxu1 %v8388_v4 }
 0x463   : > { %v3295_v51 = vpack.c.b16 %v3287_v22, %v3286_v14  ;;  %3444 = vmatmul.bf16.gmra.mxu3 %v3392_v20  ;;  %v10580_v14 = vld [vmem:[#allocation112_spill] sm:$0xff] }
 0x464   : > { %3917 = vmatpush.bf16.msrb.mxu3 %v3392_v20 }
 0x465   : > { %3631 = vmatpush.bf16.msrb.mxu0 %v8338_v23  ;;  %v3121_v11 = vpop.f32.mrf.mxu0  ;;  %3347 = vmatmul.bf16.gmra.mxu2 %v3295_v51  ;;  %v3594_v23 = vunpack.c.l.b16 %v3514_v28  ;;  %v10586_v28 = vld [vmem:[#allocation161_spill] sm:$0xff] }
 0x466   : > { %3728 = vmatpush.bf16.msrb.mxu1 %v8340_v38  ;;  %v3218_v9 = vpop.f32.mrf.mxu1  ;;  %v3515_v48 = vpack.c.bf16 %v3121_v11, %v3121_v11  ;;  %3820 = vmatpush.bf16.msrb.mxu2 %v3295_v51  ;;  %v3691_v38 = vunpack.c.l.b16 %v3530_v59  ;;  %v10584_v11 = vld [vmem:[#allocation102_spill] sm:$0xff] }
 0x467   : > { %v3531_v10 = vpack.c.bf16 %v3218_v9, %v3218_v9  ;;  %v10585_v9 = vld [vmem:[#allocation103_spill] sm:$0xff]  ;;  %v10587_v59 = vld [vmem:[#allocation162_spill] sm:$0xff] }
 0x468   : > { %v3595_v44 = vunpack.c.l.b16 %v3515_v48  ;;  %3918 = vmatpush.bf16.msrb.mxu3 %v3391_v8 }
 0x469   : > { %3632 = vmatpush.bf16.msrb.mxu0 %v8286_v29  ;;  %v3692_v4 = vunpack.c.l.b16 %v3531_v10 }
 0x46a   : > { %3729 = vmatpush.bf16.msrb.mxu1 %v8288_v27  ;;  %3821 = vmatpush.bf16.msrb.mxu2 %v3294_v43  ;;  %v3610_v6 = vpack.c.b16 %v3595_v44, %v3594_v23 }
 0x46b   : > { %v3707_v19 = vpack.c.b16 %v3692_v4, %v3691_v38 }
 0x46c   : > { %3919 = vmatpush.bf16.msrb.mxu3 %v8556_v5 }
 0x46d   : > { %3633 = vmatpush.bf16.msrb.mxu0 %v8240_v36  ;;  %v3124_v31 = vpop.f32.mrf.mxu0 }
 0x46e   : > { %3730 = vmatpush.bf16.msrb.mxu1 %v8242_v16  ;;  %v3221_v35 = vpop.f32.mrf.mxu1  ;;  %3822 = vmatpush.bf16.msrb.mxu2 %v8554_v53  ;;  %v3516_v27 = vpack.c.bf16 %v3124_v31, %v3124_v31 }
 0x470   : > { %3634 = vmatmul.bf16.vlgmr.msrb.gmra.mxu0 %v3610_v6  ;;  %3920 = vmatpush.bf16.msrb.mxu3 %v8504_v61 }
 0x471   : > { %4142 = vmatpush.bf16.msra.mxu0 %v7426_v13  ;;  %3731 = vmatmul.bf16.vlgmr.msrb.gmra.mxu1 %v3707_v19 }
 0x472   : > { %4239 = vmatpush.bf16.msra.mxu1 %v7428_v34  ;;  %3823 = vmatpush.bf16.msrb.mxu2 %v8502_v33 }
 0x474   : > { %3921 = vmatpush.bf16.msrb.mxu3 %v8452_v40 }
 0x475   : > { %4143 = vmatpush.bf16.msra.mxu0 %v7442_v56  ;;  %v3126_v36 = vpop.f32.mrf.mxu0 }
 0x476   : > { %4240 = vmatpush.bf16.msra.mxu1 %v7444_v15  ;;  %v3223_v16 = vpop.f32.mrf.mxu1  ;;  %v3517_v29 = vpack.c.bf16 %v3126_v36, %v3126_v36  ;;  %3824 = vmatpush.bf16.msrb.mxu2 %v8450_v55  ;;  %v3410_v56 = vpop.f32.mrf.mxu3  ;;  %v3532_v15 = vpack.c.bf16 %v3221_v35, %v3221_v35 }
 0x477   : > { %v3533_v13 = vpack.c.bf16 %v3223_v16, %v3223_v16  ;;  %v3562_v40 = vpack.c.bf16 %v3410_v56, %v3410_v56 }
 0x478   : > { %v3313_v34 = vpop.f32.mrf.mxu2  ;;  %v3597_v5 = vunpack.c.l.b16 %v3517_v29  ;;  %3922 = vmatpush.bf16.msrb.mxu3 %v8400_v12  ;;  %v10588_v29 = vld [vmem:[#allocation138_spill] sm:$0xff] }
 0x479   : > { %4144 = vmatpush.bf16.msra.mxu0 %v7481_v3  ;;  %v3694_v33 = vunpack.c.l.b16 %v3533_v13  ;;  %v3596_v3 = vunpack.c.l.b16 %v3516_v27  ;;  %v3546_v61 = vpack.c.bf16 %v3313_v34, %v3313_v34  ;;  %v3885_v52 = vunpack.c.l.b16 %v3562_v40  ;;  %v10589_v13 = vld [vmem:[#allocation163_spill] sm:$0xff] }
 0x47a   : > { %4241 = vmatpush.bf16.msra.mxu1 %v7483_v21  ;;  %3825 = vmatpush.bf16.msrb.mxu2 %v8398_v37  ;;  %v3693_v21 = vunpack.c.l.b16 %v3532_v15 }
 0x47b   : > { %v3611_v43 = vpack.c.b16 %v3597_v5, %v3596_v3  ;;  %v3788_v32 = vunpack.c.l.b16 %v3546_v61  ;;  %v10590_v3 = vld [vmem:[#allocation128_spill] sm:$0xff] }
 0x47c   : > { %v3708_v8 = vpack.c.b16 %v3694_v33, %v3693_v21  ;;  %3923 = vmatpush.bf16.msrb.mxu3 %v8348_v42  ;;  %v10579_v42 = vld [vmem:[#allocation158_spill] sm:$0xff]  ;;  %v10591_v21 = vld [vmem:[#allocation129_spill] sm:$0xff] }
 0x47d   : > { %4145 = vmatpush.bf16.msra.mxu0 %v7487_v63  ;;  %v3129_v55 = vpop.f32.mrf.mxu0 }
 0x47e   : > { %4242 = vmatpush.bf16.msra.mxu1 %v7491_v45  ;;  %v3226_v53 = vpop.f32.mrf.mxu1  ;;  %3826 = vmatpush.bf16.msrb.mxu2 %v8346_v54  ;;  %v3412_v45 = vpop.f32.mrf.mxu3  ;;  %v10578_v54 = vld [vmem:[#allocation157_spill] sm:$0xff]  ;;  %v3518_v51 = vpack.c.bf16 %v3129_v55, %v3129_v55 }
 0x47f   : > { %v3563_v37 = vpack.c.bf16 %v3412_v45, %v3412_v45  ;;  %v3534_v20 = vpack.c.bf16 %v3226_v53, %v3226_v53  ;;  %v10593_v45 = vld [vmem:[#allocation117_spill] sm:$0xff] }
 0x480   : > { %v3315_v63 = vpop.f32.mrf.mxu2  ;;  %3639 = vmatmul.bf16.gmra.mxu0 %v3611_v43  ;;  %3924 = vmatpush.bf16.msrb.mxu3 %v8296_v46  ;;  %v10583_v46 = vld [vmem:[#allocation160_spill] sm:$0xff]  ;;  %v3598_v44 = vunpack.c.l.b16 %v3518_v51 }
 0x481   : > { %4146 = vmatpush.bf16.msra.mxu0 %v10303_v30  ;;  %3736 = vmatmul.bf16.gmra.mxu1 %v3708_v8  ;;  %v3547_v12 = vpack.c.bf16 %v3315_v63, %v3315_v63  ;;  %v3886_v7 = vunpack.c.l.b16 %v3563_v37  ;;  %v3695_v4 = vunpack.c.l.b16 %v3534_v20  ;;  %v10592_v63 = vld [vmem:[#allocation116_spill] sm:$0xff] }
 0x482   : > { %4243 = vmatpush.bf16.msra.mxu1 %v10304_v60  ;;  %3827 = vmatpush.bf16.msrb.mxu2 %v8294_v25 }
 0x483   : > { %v3789_v41 = vunpack.c.l.b16 %v3547_v12  ;;  %v3901_v60 = vpack.c.b16 %v3886_v7, %v3885_v52 }
 0x484   : > { %4433 = vmatpush.bf16.msra.mxu3 %v10579_v42 }
 0x485   : > { %4147 = vmatpush.bf16.msra.mxu0 %v10446_v1  ;;  %v3804_v30 = vpack.c.b16 %v3789_v41, %v3788_v32  ;;  %v3131_v24 = vpop.f32.mrf.mxu0  ;;  %3925 = vmatmul.bf16.vlgmr.msrb.gmra.mxu3 %v3901_v60  ;;  %v10595_v60 = vld [vmem:[#allocation105_spill] sm:$0xff] }
 0x486   : > { %4244 = vmatpush.bf16.msra.mxu1 %v10447_v62  ;;  %4336 = vmatpush.bf16.msra.mxu2 %v10578_v54  ;;  %v3228_v18 = vpop.f32.mrf.mxu1  ;;  %v3519_v22 = vpack.c.bf16 %v3131_v24, %v3131_v24  ;;  %v3415_v25 = vpop.f32.mrf.mxu3 }
 0x487   : > { %v3535_v1 = vpack.c.bf16 %v3228_v18, %v3228_v18  ;;  %3828 = vmatmul.bf16.vlgmr.msrb.gmra.mxu2 %v3804_v30  ;;  %v3564_v35 = vpack.c.bf16 %v3415_v25, %v3415_v25  ;;  %v10594_v30 = vld [vmem:[#allocation104_spill] sm:$0xff]  ;;  %v10597_v25 = vld [vmem:[#allocation97_spill] sm:$0xff] }
 0x488   : > { %v3318_v62 = vpop.f32.mrf.mxu2  ;;  %4434 = vmatpush.bf16.msra.mxu3 %v10583_v46  ;;  %v3599_v48 = vunpack.c.l.b16 %v3519_v22 }
 0x489   : > { %4148 = vmatpush.bf16.msra.mxu0 %v10580_v14  ;;  %v3696_v10 = vunpack.c.l.b16 %v3535_v1  ;;  %v3548_v31 = vpack.c.bf16 %v3318_v62, %v3318_v62  ;;  %v3887_v15 = vunpack.c.l.b16 %v3564_v35  ;;  %v10596_v62 = vld [vmem:[#allocation96_spill] sm:$0xff] }
 0x48a   : > { %4245 = vmatpush.bf16.msra.mxu1 %v10581_v57  ;;  %4337 = vmatpush.bf16.msra.mxu2 %v10582_v58  ;;  %v3612_v6 = vpack.c.b16 %v3599_v48, %v3598_v44 }
 0x48b   : > { %v3709_v19 = vpack.c.b16 %v3696_v10, %v3695_v4  ;;  %v3790_v27 = vunpack.c.l.b16 %v3548_v31 }
 0x48c   : > { %4435 = vmatpush.bf16.msra.mxu3 %v10587_v59 }
 0x48d   : > { %4149 = vmatpush.bf16.msra.mxu0 %v10584_v11  ;;  %v3134_v23 = vpop.f32.mrf.mxu0 }
 0x48e   : > { %4246 = vmatpush.bf16.msra.mxu1 %v10585_v9  ;;  %4338 = vmatpush.bf16.msra.mxu2 %v10586_v28  ;;  %v3231_v38 = vpop.f32.mrf.mxu1  ;;  %v3417_v16 = vpop.f32.mrf.mxu3  ;;  %v3520_v32 = vpack.c.bf16 %v3134_v23, %v3134_v23 }
 0x48f   : > { %v3565_v56 = vpack.c.bf16 %v3417_v16, %v3417_v16  ;;  %v3536_v52 = vpack.c.bf16 %v3231_v38, %v3231_v38 }
 0x490   : > { %v3320_v36 = vpop.f32.mrf.mxu2  ;;  %4436 = vmatpush.bf16.msra.mxu3 %v10589_v13  ;;  %3644 = vmatmul.bf16.gmra.mxu0 %v3612_v6  ;;  %v3600_v54 = vunpack.c.l.b16 %v3520_v32 }
 0x491   : > { %v3549_v34 = vpack.c.bf16 %v3320_v36, %v3320_v36  ;;  %3741 = vmatmul.bf16.gmra.mxu1 %v3709_v19  ;;  %v3888_v33 = vunpack.c.l.b16 %v3565_v56  ;;  %v3697_v42 = vunpack.c.l.b16 %v3536_v52 }
 0x492   : > { %4339 = vmatpush.bf16.msra.mxu2 %v10588_v29 }
 0x493   : > { %v3791_v5 = vunpack.c.l.b16 %v3549_v34  ;;  %v3902_v55 = vpack.c.b16 %v3888_v33, %v3887_v15 }
 0x494   : > { %4437 = vmatpush.bf16.msra.mxu3 %v10591_v21 }
 0x495   : > { %v3805_v61 = vpack.c.b16 %v3791_v5, %v3790_v27  ;;  %v3136_v53 = vpop.f32.mrf.mxu0  ;;  %3930 = vmatmul.bf16.gmra.mxu3 %v3902_v55 }
 0x496   : > { %4340 = vmatpush.bf16.msra.mxu2 %v10590_v3  ;;  %v3233_v40 = vpop.f32.mrf.mxu1  ;;  %v3521_v43 = vpack.c.bf16 %v3136_v53, %v3136_v53  ;;  %v3420_v37 = vpop.f32.mrf.mxu3 }
 0x497   : > { %v3537_v8 = vpack.c.bf16 %v3233_v40, %v3233_v40  ;;  %3833 = vmatmul.bf16.gmra.mxu2 %v3805_v61  ;;  %v3566_v57 = vpack.c.bf16 %v3420_v37, %v3420_v37 }
 0x498   : > { %4438 = vmatpush.bf16.msra.mxu3 %v10593_v45  ;;  %v3323_v12 = vpop.f32.mrf.mxu2  ;;  %v3601_v41 = vunpack.c.l.b16 %v3521_v43 }
 0x499   : > { %v3698_v7 = vunpack.c.l.b16 %v3537_v8  ;;  %v3550_v14 = vpack.c.bf16 %v3323_v12, %v3323_v12  ;;  %v3889_v9 = vunpack.c.l.b16 %v3566_v57 }
 0x49a   : > { %4341 = vmatpush.bf16.msra.mxu2 %v10592_v63  ;;  %v3613_v22 = vpack.c.b16 %v3601_v41, %v3600_v54 }
 0x49b   : > { %v3710_v1 = vpack.c.b16 %v3698_v7, %v3697_v42  ;;  %v3792_v11 = vunpack.c.l.b16 %v3550_v14 }
 0x49c   : > { %4439 = vmatpush.bf16.msra.mxu3 %v10595_v60 }
 0x49d   : > { %v3139_v24 = vpop.f32.mrf.mxu0 }
 0x49e   : > { %4342 = vmatpush.bf16.msra.mxu2 %v10594_v30  ;;  %v3236_v18 = vpop.f32.mrf.mxu1  ;;  %v3422_v46 = vpop.f32.mrf.mxu3  ;;  %v3522_v6 = vpack.c.bf16 %v3139_v24, %v3139_v24 }
 0x49f   : > { %v3567_v20 = vpack.c.bf16 %v3422_v46, %v3422_v46  ;;  %v3538_v19 = vpack.c.bf16 %v3236_v18, %v3236_v18 }
 0x4a0   : > { %4440 = vmatpush.bf16.msra.mxu3 %v10597_v25  ;;  %v3325_v58 = vpop.f32.mrf.mxu2  ;;  %3649 = vmatmul.bf16.gmra.mxu0 %v3613_v22  ;;  %v3602_v29 = vunpack.c.l.b16 %v3522_v6 }
 0x4a1   : > { %3746 = vmatmul.bf16.gmra.mxu1 %v3710_v1  ;;  %v3551_v51 = vpack.c.bf16 %v3325_v58, %v3325_v58  ;;  %v3890_v10 = vunpack.c.l.b16 %v3567_v20  ;;  %v3699_v13 = vunpack.c.l.b16 %v3538_v19 }
 0x4a2   : > { %4343 = vmatpush.bf16.msra.mxu2 %v10596_v62 }
 0x4a3   : > { %v3793_v48 = vunpack.c.l.b16 %v3551_v51  ;;  %v3903_v4 = vpack.c.b16 %v3890_v10, %v3889_v9 }
 0x4a5   : > { %v3141_v28 = vpop.f32.mrf.mxu0  ;;  %v3806_v44 = vpack.c.b16 %v3793_v48, %v3792_v11  ;;  %3935 = vmatmul.bf16.gmra.mxu3 %v3903_v4 }
 0x4a6   : > { %v3238_v59 = vpop.f32.mrf.mxu1  ;;  %v3523_v23 = vpack.c.bf16 %v3141_v28, %v3141_v28  ;;  %v3425_v35 = vpop.f32.mrf.mxu3 }
 0x4a7   : > { %v3539_v38 = vpack.c.bf16 %v3238_v59, %v3238_v59  ;;  %3838 = vmatmul.bf16.gmra.mxu2 %v3806_v44  ;;  %v3568_v15 = vpack.c.bf16 %v3425_v35, %v3425_v35 }
 0x4a8   : > { %v3328_v31 = vpop.f32.mrf.mxu2  ;;  %v3603_v36 = vunpack.c.l.b16 %v3523_v23 }
 0x4a9   : > { %v3700_v16 = vunpack.c.l.b16 %v3539_v38  ;;  %v3552_v27 = vpack.c.bf16 %v3328_v31, %v3328_v31  ;;  %v3891_v40 = vunpack.c.l.b16 %v3568_v15 }
 0x4aa   : > { %v3614_v5 = vpack.c.b16 %v3603_v36, %v3602_v29 }
 0x4ab   : > { %v3711_v33 = vpack.c.b16 %v3700_v16, %v3699_v13  ;;  %v3794_v53 = vunpack.c.l.b16 %v3552_v27 }
 0x4ad   : > { %v3144_v34 = vpop.f32.mrf.mxu0 }
 0x4ae   : > { %v3241_v56 = vpop.f32.mrf.mxu1  ;;  %v3427_v21 = vpop.f32.mrf.mxu3  ;;  %v3524_v30 = vpack.c.bf16 %v3144_v34, %v3144_v34 }
 0x4af   : > { %v3569_v55 = vpack.c.bf16 %v3427_v21, %v3427_v21  ;;  %v3540_v60 = vpack.c.bf16 %v3241_v56, %v3241_v56 }
 0x4b0   : > { %v3330_v3 = vpop.f32.mrf.mxu2  ;;  %3654 = vmatmul.bf16.gmra.mxu0 %v3614_v5  ;;  %v3604_v24 = vunpack.c.l.b16 %v3524_v30 }
 0x4b1   : > { %3751 = vmatmul.bf16.gmra.mxu1 %v3711_v33  ;;  %v3553_v61 = vpack.c.bf16 %v3330_v3, %v3330_v3  ;;  %v3892_v8 = vunpack.c.l.b16 %v3569_v55  ;;  %v3701_v18 = vunpack.c.l.b16 %v3540_v60 }
 0x4b3   : > { %v3795_v43 = vunpack.c.l.b16 %v3553_v61  ;;  %v3904_v37 = vpack.c.b16 %v3892_v8, %v3891_v40 }
 0x4b5   : > { %v3146_v63 = vpop.f32.mrf.mxu0  ;;  %v3807_v12 = vpack.c.b16 %v3795_v43, %v3794_v53  ;;  %3940 = vmatmul.bf16.gmra.mxu3 %v3904_v37 }
 0x4b6   : > { %v3243_v45 = vpop.f32.mrf.mxu1  ;;  %v3525_v32 = vpack.c.bf16 %v3146_v63, %v3146_v63  ;;  %v3430_v7 = vpop.f32.mrf.mxu3 }
 0x4b7   : > { %v3541_v52 = vpack.c.bf16 %v3243_v45, %v3243_v45  ;;  %3843 = vmatmul.bf16.gmra.mxu2 %v3807_v12  ;;  %v3570_v1 = vpack.c.bf16 %v3430_v7, %v3430_v7 }
 0x4b8   : > { %v3333_v41 = vpop.f32.mrf.mxu2  ;;  %v3605_v54 = vunpack.c.l.b16 %v3525_v32 }
 0x4b9   : > { %v3702_v42 = vunpack.c.l.b16 %v3541_v52  ;;  %v3554_v22 = vpack.c.bf16 %v3333_v41, %v3333_v41  ;;  %v3893_v9 = vunpack.c.l.b16 %v3570_v1 }
 0x4ba   : > { %v3615_v62 = vpack.c.b16 %v3605_v54, %v3604_v24 }
 0x4bb   : > { %v3712_v25 = vpack.c.b16 %v3702_v42, %v3701_v18  ;;  %v3796_v11 = vunpack.c.l.b16 %v3554_v22 }
 0x4bd   : > { %v3149_v14 = vpop.f32.mrf.mxu0 }
 0x4be   : > { %v3246_v57 = vpop.f32.mrf.mxu1  ;;  %v3432_v46 = vpop.f32.mrf.mxu3  ;;  %v3526_v6 = vpack.c.bf16 %v3149_v14, %v3149_v14 }
 0x4bf   : > { %v3571_v20 = vpack.c.bf16 %v3432_v46, %v3432_v46  ;;  %v3542_v19 = vpack.c.bf16 %v3246_v57, %v3246_v57 }
 0x4c0   : > { %v3335_v58 = vpop.f32.mrf.mxu2  ;;  %3659 = vmatmul.bf16.gmra.mxu0 %v3615_v62  ;;  %v3606_v29 = vunpack.c.l.b16 %v3526_v6 }
 0x4c1   : > { %3756 = vmatmul.bf16.gmra.mxu1 %v3712_v25  ;;  %v3555_v51 = vpack.c.bf16 %v3335_v58, %v3335_v58  ;;  %v3894_v10 = vunpack.c.l.b16 %v3571_v20  ;;  %v3703_v13 = vunpack.c.l.b16 %v3542_v19 }
 0x4c3   : > { %v3797_v48 = vunpack.c.l.b16 %v3555_v51  ;;  %v3905_v4 = vpack.c.b16 %v3894_v10, %v3893_v9 }
 0x4c5   : > { %v3151_v28 = vpop.f32.mrf.mxu0  ;;  %v3808_v44 = vpack.c.b16 %v3797_v48, %v3796_v11  ;;  %3945 = vmatmul.bf16.gmra.mxu3 %v3905_v4 }
 0x4c6   : > { %v3248_v59 = vpop.f32.mrf.mxu1  ;;  %v3527_v23 = vpack.c.bf16 %v3151_v28, %v3151_v28  ;;  %v3435_v35 = vpop.f32.mrf.mxu3 }
 0x4c7   : > { %v3543_v38 = vpack.c.bf16 %v3248_v59, %v3248_v59  ;;  %3848 = vmatmul.bf16.gmra.mxu2 %v3808_v44  ;;  %v3572_v15 = vpack.c.bf16 %v3435_v35, %v3435_v35 }
 0x4c8   : > { %v3338_v31 = vpop.f32.mrf.mxu2  ;;  %v3607_v36 = vunpack.c.l.b16 %v3527_v23  ;;  %v10598_v23 = vld [vmem:[#allocation15_spill] sm:$0xff] }
 0x4c9   : > { %v3704_v16 = vunpack.c.l.b16 %v3543_v38  ;;  %v3556_v27 = vpack.c.bf16 %v3338_v31, %v3338_v31  ;;  %v3895_v40 = vunpack.c.l.b16 %v3572_v15  ;;  %v3450_v38 = vmul.f32 2.0, %v10598_v23  ;;  %v10599_v31 = vld [vmem:[#allocation16_spill] sm:$0xff] }
 0x4ca   : > { %v3616_v5 = vpack.c.b16 %v3607_v36, %v3606_v29  ;;  %v3466_v35 = vmul.f32 2.0, %v10599_v31 }
 0x4cb   : > { %v3713_v33 = vpack.c.b16 %v3704_v16, %v3703_v13  ;;  %v3798_v53 = vunpack.c.l.b16 %v3556_v27  ;;  %v10600_v27 = vld [vmem:[#allocation24_spill] sm:$0xff] }
 0x4cc   : > { %v3451_v15 = vmul.f32 2.0, %v10600_v27 }
 0x4cd   : > { %v3154_v34 = vpop.f32.mrf.mxu0 }
 0x4ce   : > { %v3251_v56 = vpop.f32.mrf.mxu1  ;;  %v3437_v21 = vpop.f32.mrf.mxu3  ;;  %v3528_v41 = vpack.c.bf16 %v3154_v34, %v3154_v34 }
 0x4cf   : > { %v3573_v55 = vpack.c.bf16 %v3437_v21, %v3437_v21  ;;  %v3544_v7 = vpack.c.bf16 %v3251_v56, %v3251_v56 }
 0x4d0   : > { %v3340_v3 = vpop.f32.mrf.mxu2  ;;  %3664 = vmatmul.bf16.gmra.mxu0 %v3616_v5  ;;  %v3608_v24 = vunpack.c.l.b16 %v3528_v41  ;;  %v10601_v5 = vld [vmem:[#allocation25_spill] sm:$0xff] }
 0x4d1   : > { %3761 = vmatmul.bf16.gmra.mxu1 %v3713_v33  ;;  %v3557_v61 = vpack.c.bf16 %v3340_v3, %v3340_v3  ;;  %v3896_v8 = vunpack.c.l.b16 %v3573_v55  ;;  %v3705_v18 = vunpack.c.l.b16 %v3544_v7  ;;  %v3467_v33 = vmul.f32 2.0, %v10601_v5 }
 0x4d3   : > { %v3799_v43 = vunpack.c.l.b16 %v3557_v61  ;;  %v3906_v37 = vpack.c.b16 %v3896_v8, %v3895_v40 }
 0x4d5   : > { %v3156_v63 = vpop.f32.mrf.mxu0  ;;  %v3809_v12 = vpack.c.b16 %v3799_v43, %v3798_v53  ;;  %3950 = vmatmul.bf16.gmra.mxu3 %v3906_v37 }
 0x4d6   : > { %v3253_v45 = vpop.f32.mrf.mxu1  ;;  %v3529_v32 = vpack.c.bf16 %v3156_v63, %v3156_v63  ;;  %v3440_v60 = vpop.f32.mrf.mxu3 }
 0x4d7   : > { %v3545_v52 = vpack.c.bf16 %v3253_v45, %v3253_v45  ;;  %3853 = vmatmul.bf16.gmra.mxu2 %v3809_v12  ;;  %v3574_v1 = vpack.c.bf16 %v3440_v60, %v3440_v60 }
 0x4d8   : > { %v3343_v30 = vpop.f32.mrf.mxu2  ;;  %v3609_v54 = vunpack.c.l.b16 %v3529_v32 }
 0x4d9   : > { %v3706_v42 = vunpack.c.l.b16 %v3545_v52  ;;  %v3558_v22 = vpack.c.bf16 %v3343_v30, %v3343_v30  ;;  %v3897_v20 = vunpack.c.l.b16 %v3574_v1 }
 0x4da   : > { %v3617_v14 = vpack.c.b16 %v3609_v54, %v3608_v24 }
 0x4db   : > { %v3714_v57 = vpack.c.b16 %v3706_v42, %v3705_v18  ;;  %v3800_v51 = vunpack.c.l.b16 %v3558_v22  ;;  %v10603_v22 = vld [vmem:[#allocation20_spill] sm:$0xff] }
 0x4dc   : > { %v3468_v1 = vmul.f32 2.0, %v10603_v22  ;;  %v10615_v22 = vld [vmem:[#allocation125_spill] sm:$0xff] }
 0x4de   : > { %v3442_v25 = vpop.f32.mrf.mxu3 }
 0x4df   : > { %v3575_v46 = vpack.c.bf16 %v3442_v25, %v3442_v25 }
 0x4e0   : > { %3669 = vmatmul.bf16.gmra.mxu0 %v3617_v14  ;;  %v3345_v62 = vpop.f32.mrf.mxu2  ;;  %v10602_v14 = vld [vmem:[#allocation19_spill] sm:$0xff] }
 0x4e1   : > { %3766 = vmatmul.bf16.gmra.mxu1 %v3714_v57  ;;  %v3559_v58 = vpack.c.bf16 %v3345_v62, %v3345_v62  ;;  %v3898_v9 = vunpack.c.l.b16 %v3575_v46  ;;  %v3452_v57 = vmul.f32 2.0, %v10602_v14 }
 0x4e3   : > { %v3801_v11 = vunpack.c.l.b16 %v3559_v58  ;;  %v3907_v10 = vpack.c.b16 %v3898_v9, %v3897_v20  ;;  %v10604_v58 = vld [vmem:[#allocation23_spill] sm:$0xff] }
 0x4e4   : > { %v3453_v46 = vmul.f32 2.0, %v10604_v58  ;;  %v10616_v58 = vld [vmem:[#allocation126_spill] sm:$0xff] }
 0x4e5   : > { %v3810_v48 = vpack.c.b16 %v3801_v11, %v3800_v51  ;;  %3955 = vmatmul.bf16.gmra.mxu3 %v3907_v10  ;;  %v10605_v51 = vld [vmem:[#allocation74_spill] sm:$0xff] }
 0x4e6   : > { %v3445_v59 = vpop.f32.mrf.mxu3  ;;  %v3469_v20 = vmul.f32 2.0, %v10605_v51 }
 0x4e7   : > { %3858 = vmatmul.bf16.gmra.mxu2 %v3810_v48  ;;  %v3576_v19 = vpack.c.bf16 %v3445_v59, %v3445_v59 }
 0x4e8   : > { %v3348_v28 = vpop.f32.mrf.mxu2 }
 0x4e9   : > { %v3560_v6 = vpack.c.bf16 %v3348_v28, %v3348_v28  ;;  %v3899_v21 = vunpack.c.l.b16 %v3576_v19 }
 0x4eb   : > { %v3802_v3 = vunpack.c.l.b16 %v3560_v6 }
 0x4ed   : > { %v3635_v44 = vpop.f32.mrf.mxu0 }
 0x4ee   : > { %v3732_v4 = vpop.f32.mrf.mxu1  ;;  %v8678_v36 = vsub.f32 %v3450_v38, %v3635_v44  ;;  %v3447_v13 = vpop.f32.mrf.mxu3 }
 0x4ef   : > { %v8680_v16 = vsub.f32 %v3466_v35, %v3732_v4  ;;  %v3577_v56 = vpack.c.bf16 %v3447_v13, %v3447_v13 }
 0x4f0   : > { %v3350_v29 = vpop.f32.mrf.mxu2  ;;  %v4030_v53 = vpack.c.bf16 %v8678_v36, %v8678_v36 }
 0x4f1   : > { %v3561_v34 = vpack.c.bf16 %v3350_v29, %v3350_v29  ;;  %v3900_v55 = vunpack.c.l.b16 %v3577_v56  ;;  %v4046_v40 = vpack.c.bf16 %v8680_v16, %v8680_v16  ;;  %v10606_v29 = vld [vmem:[#allocation82_spill] sm:$0xff] }
 0x4f2   : > { %v4110_v41 = vunpack.c.l.b16 %v4030_v53  ;;  %v3482_v13 = vmul.f32 2.0, %v10606_v29  ;;  %v10610_v53 = vld [vmem:[#allocation87_spill] sm:$0xff] }
 0x4f3   : > { %v3803_v61 = vunpack.c.l.b16 %v3561_v34  ;;  %v3908_v37 = vpack.c.b16 %v3900_v55, %v3899_v21  ;;  %v4207_v7 = vunpack.c.l.b16 %v4046_v40  ;;  %v10607_v34 = vld [vmem:[#allocation80_spill] sm:$0xff]  ;;  %v3499_v40 = vmul.f32 2.0, %v10610_v53  ;;  %v10620_v53 = vld [vmem:[#allocation83_spill] sm:$0xff] }
 0x4f4   : > { %v3498_v56 = vmul.f32 2.0, %v10607_v34 }
 0x4f5   : > { %v3637_v43 = vpop.f32.mrf.mxu0  ;;  %v3811_v12 = vpack.c.b16 %v3803_v61, %v3802_v3  ;;  %3960 = vmatmul.bf16.gmra.mxu3 %v3908_v37  ;;  %v10609_v61 = vld [vmem:[#allocation90_spill] sm:$0xff] }
 0x4f6   : > { %v3734_v8 = vpop.f32.mrf.mxu1  ;;  %v8688_v63 = vsub.f32 %v3451_v15, %v3637_v43  ;;  %v3483_v55 = vmul.f32 2.0, %v10609_v61  ;;  %v10619_v61 = vld [vmem:[#allocation86_spill] sm:$0xff] }
 0x4f7   : > { %v8690_v45 = vsub.f32 %v3467_v33, %v3734_v8  ;;  %3863 = vmatmul.bf16.gmra.mxu2 %v3811_v12  ;;  %v10611_v12 = vld [vmem:[#allocation79_spill] sm:$0xff] }
 0x4f8   : > { %v4031_v32 = vpack.c.bf16 %v8688_v63, %v8688_v63  ;;  %v3454_v37 = vmul.f32 2.0, %v10611_v12 }
 0x4f9   : > { %v4047_v52 = vpack.c.bf16 %v8690_v45, %v8690_v45 }
 0x4fa   : > { %v4111_v30 = vunpack.c.l.b16 %v4031_v32  ;;  %v10612_v32 = vld [vmem:[#allocation78_spill] sm:$0xff] }
 0x4fb   : > { %v4208_v60 = vunpack.c.l.b16 %v4047_v52  ;;  %v3470_v52 = vmul.f32 2.0, %v10612_v32 }
 0x4fc   : > { %v8696_v54 = vpack.c.b16 %v4111_v30, %v4110_v41 }
 0x4fd   : > { %v8698_v42 = vpack.c.b16 %v4208_v60, %v4207_v7  ;;  %v3640_v24 = vpop.f32.mrf.mxu0 }
 0x4fe   : > { %v3737_v18 = vpop.f32.mrf.mxu1  ;;  %4150 = vmatmul.bf16.vlgmr.msra.gmra.mxu0 %v8696_v54  ;;  %v8704_v62 = vsub.f32 %v3452_v57, %v3640_v24 }
 0x4ff   : > { %4247 = vmatmul.bf16.vlgmr.msra.gmra.mxu1 %v8698_v42  ;;  %v8706_v25 = vsub.f32 %v3468_v1, %v3737_v18  ;;  %v3455_v1 = vmul.f32 2.0, %v10615_v22 }
 0x500   : > { %v4032_v48 = vpack.c.bf16 %v8704_v62, %v8704_v62 }
 0x501   : > { %v4048_v10 = vpack.c.bf16 %v8706_v25, %v8706_v25 }
 0x502   : > { %v4112_v23 = vunpack.c.l.b16 %v4032_v48 }
 0x503   : > { %v4209_v38 = vunpack.c.l.b16 %v4048_v10 }
 0x505   : > { %v3642_v11 = vpop.f32.mrf.mxu0 }
 0x506   : > { %v3739_v9 = vpop.f32.mrf.mxu1  ;;  %v8714_v28 = vsub.f32 %v3453_v46, %v3642_v11  ;;  %v3471_v46 = vmul.f32 2.0, %v10616_v58  ;;  %v10625_v58 = vld [vmem:[#allocation135_spill] sm:$0xff] }
 0x507   : > { %v8716_v59 = vsub.f32 %v3469_v20, %v3739_v9 }
 0x508   : > { %v4033_v44 = vpack.c.bf16 %v8714_v28, %v8714_v28  ;;  %v3926_v19 = vpop.f32.mrf.mxu3 }
 0x509   : > { %v4049_v4 = vpack.c.bf16 %v8716_v59, %v8716_v59  ;;  %v8730_v33 = vsub.f32 %v3498_v56, %v3926_v19 }
 0x50a   : > { %v4113_v31 = vunpack.c.l.b16 %v4033_v44  ;;  %v3829_v6 = vpop.f32.mrf.mxu2 }
 0x50b   : > { %v4210_v35 = vunpack.c.l.b16 %v4049_v4  ;;  %v8728_v5 = vsub.f32 %v3482_v13, %v3829_v6  ;;  %10608 = vst [vmem:[#allocation60_spill] sm:$0xff] %v8730_v33  ;;  %v4078_v8 = vpack.c.bf16 %v8730_v33, %v8730_v33  ;;  %v10690_v33 = vld [vmem:[#allocation12_spill] sm:$0xff] }
 0x50c   : > { %v8724_v27 = vpack.c.b16 %v4113_v31, %v4112_v23 }
 0x50d   : > { %v8726_v15 = vpack.c.b16 %v4210_v35, %v4209_v38  ;;  %v3645_v3 = vpop.f32.mrf.mxu0  ;;  %v4062_v43 = vpack.c.bf16 %v8728_v5, %v8728_v5  ;;  %v4401_v20 = vunpack.c.l.b16 %v4078_v8 }
 0x50e   : > { %v3742_v21 = vpop.f32.mrf.mxu1  ;;  %4155 = vmatmul.bf16.gmra.mxu0 %v8724_v27  ;;  %v8746_v24 = vsub.f32 %v3454_v37, %v3645_v3 }
 0x50f   : > { %4252 = vmatmul.bf16.gmra.mxu1 %v8726_v15  ;;  %v8748_v18 = vsub.f32 %v3470_v52, %v3742_v21  ;;  %v4304_v51 = vunpack.c.l.b16 %v4062_v43 }
 0x510   : > { %v3928_v7 = vpop.f32.mrf.mxu3  ;;  %v4034_v23 = vpack.c.bf16 %v8746_v24, %v8746_v24 }
 0x511   : > { %v8744_v60 = vsub.f32 %v3499_v40, %v3928_v7  ;;  %v4050_v38 = vpack.c.bf16 %v8748_v18, %v8748_v18  ;;  %v3500_v40 = vmul.f32 2.0, %v10620_v53 }
 0x512   : > { %v3831_v41 = vpop.f32.mrf.mxu2  ;;  %v4114_v3 = vunpack.c.l.b16 %v4034_v23 }
 0x513   : > { %v8742_v30 = vsub.f32 %v3483_v55, %v3831_v41  ;;  %10614 = vst [vmem:[#allocation62_spill] sm:$0xff] %v8744_v60  ;;  %v4079_v57 = vpack.c.bf16 %v8744_v60, %v8744_v60  ;;  %v4211_v21 = vunpack.c.l.b16 %v4050_v38  ;;  %v3484_v55 = vmul.f32 2.0, %v10619_v61  ;;  %v10623_v41 = vld [vmem:[#allocation53_spill] sm:$0xff] }
 0x514   : > { %v3485_v7 = vmul.f32 2.0, %v10623_v41 }
 0x515   : > { %10613 = vst [vmem:[#allocation59_spill] sm:$0xff] %v8742_v30  ;;  %v4063_v14 = vpack.c.bf16 %v8742_v30, %v8742_v30  ;;  %v3647_v11 = vpop.f32.mrf.mxu0  ;;  %v4402_v10 = vunpack.c.l.b16 %v4079_v57 }
 0x516   : > { %v3744_v9 = vpop.f32.mrf.mxu1  ;;  %v8756_v44 = vsub.f32 %v3455_v1, %v3647_v11 }
 0x517   : > { %v4305_v48 = vunpack.c.l.b16 %v4063_v14  ;;  %v8758_v4 = vsub.f32 %v3471_v46, %v3744_v9  ;;  %v8766_v35 = vpack.c.b16 %v4402_v10, %v4401_v20  ;;  %v10624_v14 = vld [vmem:[#allocation134_spill] sm:$0xff]  ;;  %v3456_v46 = vmul.f32 2.0, %v10625_v58 }
 0x518   : > { %10617 = vst [vmem:[#allocation61_spill] sm:$0xff] %v8756_v44  ;;  %v4035_v6 = vpack.c.bf16 %v8756_v44, %v8756_v44  ;;  %v3931_v13 = vpop.f32.mrf.mxu3  ;;  %v3501_v57 = vmul.f32 2.0, %v10624_v14 }
 0x519   : > { %10618 = vst [vmem:[#allocation66_spill] sm:$0xff] %v8758_v4  ;;  %v8764_v31 = vpack.c.b16 %v4305_v48, %v4304_v51  ;;  %v4051_v19 = vpack.c.bf16 %v8758_v4, %v8758_v4  ;;  %4441 = vmatmul.bf16.vlgmr.msra.gmra.mxu3 %v8766_v35  ;;  %v8778_v8 = vsub.f32 %v3500_v40, %v3931_v13  ;;  %v10626_v51 = vld [vmem:[#allocation168_spill] sm:$0xff]  ;;  %v10688_v4 = vld [vmem:[#allocation58_spill] sm:$0xff] }
 0x51a   : > { %v3834_v29 = vpop.f32.mrf.mxu2  ;;  %v4115_v34 = vunpack.c.l.b16 %v4035_v6  ;;  %v3472_v20 = vmul.f32 2.0, %v10626_v51  ;;  %v3480_v44 = vmul.f32 2.0, %v10688_v4 }
 0x51b   : > { %v4212_v56 = vunpack.c.l.b16 %v4051_v19  ;;  %4344 = vmatmul.bf16.vlgmr.msra.gmra.mxu2 %v8764_v31  ;;  %v8776_v43 = vsub.f32 %v3484_v55, %v3834_v29  ;;  %10622 = vst [vmem:[#allocation64_spill] sm:$0xff] %v8778_v8  ;;  %v4080_v1 = vpack.c.bf16 %v8778_v8, %v8778_v8  ;;  %v10631_v29 = vld [vmem:[#allocation171_spill] sm:$0xff] }
 0x51c   : > { %v8780_v32 = vpack.c.b16 %v4115_v34, %v4114_v3  ;;  %v3457_v13 = vmul.f32 2.0, %v10631_v29  ;;  %v10632_v34 = vld [vmem:[#allocation164_spill] sm:$0xff]  ;;  %v10636_v29 = vld [vmem:[#allocation170_spill] sm:$0xff] }
 0x51d   : > { %10621 = vst [vmem:[#allocation65_spill] sm:$0xff] %v8776_v43  ;;  %v3650_v12 = vpop.f32.mrf.mxu0  ;;  %v8782_v52 = vpack.c.b16 %v4212_v56, %v4211_v21  ;;  %v4064_v22 = vpack.c.bf16 %v8776_v43, %v8776_v43  ;;  %v3473_v56 = vmul.f32 2.0, %v10632_v34  ;;  %v4403_v21 = vunpack.c.l.b16 %v4080_v1 }
 0x51e   : > { %v3747_v37 = vpop.f32.mrf.mxu1  ;;  %4160 = vmatmul.bf16.gmra.mxu0 %v8780_v32  ;;  %v8798_v23 = vsub.f32 %v3456_v46, %v3650_v12 }
 0x51f   : > { %4257 = vmatmul.bf16.gmra.mxu1 %v8782_v52  ;;  %v8800_v38 = vsub.f32 %v3472_v20, %v3747_v37  ;;  %v4306_v3 = vunpack.c.l.b16 %v4064_v22 }
 0x520   : > { %v3933_v9 = vpop.f32.mrf.mxu3  ;;  %10629 = vst [vmem:[#allocation67_spill] sm:$0xff] %v8798_v23  ;;  %v4036_v41 = vpack.c.bf16 %v8798_v23, %v8798_v23  ;;  %v10680_v23 = vld [vmem:[#allocation49_spill] sm:$0xff] }
 0x521   : > { %v8796_v10 = vsub.f32 %v3501_v57, %v3933_v9  ;;  %10630 = vst [vmem:[#allocation69_spill] sm:$0xff] %v8800_v38 }
 0x522   : > { %v3836_v11 = vpop.f32.mrf.mxu2 }
 0x523   : > { %v8794_v48 = vsub.f32 %v3485_v7, %v3836_v11  ;;  %10628 = vst [vmem:[#allocation68_spill] sm:$0xff] %v8796_v10  ;;  %v4081_v19 = vpack.c.bf16 %v8796_v10, %v8796_v10  ;;  %v4052_v7 = vpack.c.bf16 %v8800_v38, %v8800_v38  ;;  %v4116_v11 = vunpack.c.l.b16 %v4036_v41  ;;  %v10640_v41 = vld [vmem:[#allocation36_spill] sm:$0xff] }
 0x525   : > { %10627 = vst [vmem:[#allocation63_spill] sm:$0xff] %v8794_v48  ;;  %v4065_v6 = vpack.c.bf16 %v8794_v48, %v8794_v48  ;;  %v3652_v61 = vpop.f32.mrf.mxu0  ;;  %v4404_v40 = vunpack.c.l.b16 %v4081_v19  ;;  %v4213_v9 = vunpack.c.l.b16 %v4052_v7  ;;  %v3503_v7 = vmul.f32 2.0, %v10640_v41 }
 0x526   : > { %v3749_v55 = vpop.f32.mrf.mxu1  ;;  %v8808_v12 = vsub.f32 %v3457_v13, %v3652_v61  ;;  %v3502_v13 = vmul.f32 2.0, %v10636_v29 }
 0x527   : > { %v4307_v53 = vunpack.c.l.b16 %v4065_v6  ;;  %v8810_v37 = vsub.f32 %v3473_v56, %v3749_v55  ;;  %v8822_v1 = vpack.c.b16 %v4404_v40, %v4403_v21  ;;  %v10635_v6 = vld [vmem:[#allocation169_spill] sm:$0xff] }
 0x528   : > { %10633 = vst [vmem:[#allocation14_spill] sm:$0xff] %v8808_v12  ;;  %v4037_v14 = vpack.c.bf16 %v8808_v12, %v8808_v12  ;;  %v3936_v46 = vpop.f32.mrf.mxu3  ;;  %v3486_v19 = vmul.f32 2.0, %v10635_v6  ;;  %v10664_v12 = vld [vmem:[#allocation42_spill] sm:$0xff] }
 0x529   : > { %10634 = vst [vmem:[#allocation73_spill] sm:$0xff] %v8810_v37  ;;  %v4053_v57 = vpack.c.bf16 %v8810_v37, %v8810_v37  ;;  %v8820_v22 = vpack.c.b16 %v4307_v53, %v4306_v3  ;;  %4446 = vmatmul.bf16.gmra.mxu3 %v8822_v1  ;;  %v8830_v56 = vsub.f32 %v3502_v13, %v3936_v46  ;;  %v10639_v53 = vld [vmem:[#allocation167_spill] sm:$0xff] }
 0x52a   : > { %v3839_v58 = vpop.f32.mrf.mxu2  ;;  %v4117_v51 = vunpack.c.l.b16 %v4037_v14  ;;  %v3487_v40 = vmul.f32 2.0, %v10639_v53 }
 0x52b   : > { %v4214_v20 = vunpack.c.l.b16 %v4053_v57  ;;  %4349 = vmatmul.bf16.gmra.mxu2 %v8820_v22  ;;  %v8828_v34 = vsub.f32 %v3486_v19, %v3839_v58  ;;  %10638 = vst [vmem:[#allocation71_spill] sm:$0xff] %v8830_v56  ;;  %v4082_v57 = vpack.c.bf16 %v8830_v56, %v8830_v56  ;;  %v10641_v58 = vld [vmem:[#allocation165_spill] sm:$0xff]  ;;  %v10647_v56 = vld [vmem:[#allocation39_spill] sm:$0xff] }
 0x52c   : > { %v8832_v61 = vpack.c.b16 %v4117_v51, %v4116_v11  ;;  %v3458_v46 = vmul.f32 2.0, %v10641_v58  ;;  %v10642_v51 = vld [vmem:[#allocation166_spill] sm:$0xff]  ;;  %v3459_v58 = vmul.f32 2.0, %v10647_v56 }
 0x52d   : > { %10637 = vst [vmem:[#allocation72_spill] sm:$0xff] %v8828_v34  ;;  %v3655_v3 = vpop.f32.mrf.mxu0  ;;  %v8834_v55 = vpack.c.b16 %v4214_v20, %v4213_v9  ;;  %v4066_v14 = vpack.c.bf16 %v8828_v34, %v8828_v34  ;;  %v3474_v11 = vmul.f32 2.0, %v10642_v51  ;;  %v10648_v34 = vld [vmem:[#allocation34_spill] sm:$0xff]  ;;  %v4405_v48 = vunpack.c.l.b16 %v4082_v57 }
 0x52e   : > { %v3752_v21 = vpop.f32.mrf.mxu1  ;;  %4165 = vmatmul.bf16.gmra.mxu0 %v8832_v61  ;;  %v8850_v29 = vsub.f32 %v3458_v46, %v3655_v3  ;;  %v3475_v51 = vmul.f32 2.0, %v10648_v34 }
 0x52f   : > { %4262 = vmatmul.bf16.gmra.mxu1 %v8834_v55  ;;  %v8852_v13 = vsub.f32 %v3474_v11, %v3752_v21  ;;  %v4308_v10 = vunpack.c.l.b16 %v4066_v14 }
 0x530   : > { %v3938_v9 = vpop.f32.mrf.mxu3  ;;  %10645 = vst [vmem:[#allocation18_spill] sm:$0xff] %v8850_v29  ;;  %v4038_v46 = vpack.c.bf16 %v8850_v29, %v8850_v29 }
 0x531   : > { %v8848_v19 = vsub.f32 %v3503_v7, %v3938_v9  ;;  %10646 = vst [vmem:[#allocation21_spill] sm:$0xff] %v8852_v13  ;;  %v4054_v11 = vpack.c.bf16 %v8852_v13, %v8852_v13 }
 0x532   : > { %v3841_v20 = vpop.f32.mrf.mxu2 }
 0x533   : > { %v8846_v6 = vsub.f32 %v3487_v40, %v3841_v20  ;;  %10644 = vst [vmem:[#allocation17_spill] sm:$0xff] %v8848_v19  ;;  %v4083_v41 = vpack.c.bf16 %v8848_v19, %v8848_v19  ;;  %v10651_v19 = vld [vmem:[#allocation35_spill] sm:$0xff] }
 0x535   : > { %10643 = vst [vmem:[#allocation70_spill] sm:$0xff] %v8846_v6  ;;  %v4067_v53 = vpack.c.bf16 %v8846_v6, %v8846_v6  ;;  %v3657_v40 = vpop.f32.mrf.mxu0  ;;  %v4406_v9 = vunpack.c.l.b16 %v4083_v41  ;;  %v3488_v6 = vmul.f32 2.0, %v10651_v19 }
 0x536   : > { %v3754_v20 = vpop.f32.mrf.mxu1  ;;  %v8860_v3 = vsub.f32 %v3459_v58, %v3657_v40  ;;  %v4118_v40 = vunpack.c.l.b16 %v4038_v46  ;;  %v10655_v46 = vld [vmem:[#allocation43_spill] sm:$0xff] }
 0x537   : > { %v4309_v7 = vunpack.c.l.b16 %v4067_v53  ;;  %v8862_v21 = vsub.f32 %v3475_v51, %v3754_v20  ;;  %v8874_v57 = vpack.c.b16 %v4406_v9, %v4405_v48  ;;  %v4215_v20 = vunpack.c.l.b16 %v4054_v11 }
 0x538   : > { %10649 = vst [vmem:[#allocation22_spill] sm:$0xff] %v8860_v3  ;;  %v4039_v56 = vpack.c.bf16 %v8860_v3, %v8860_v3  ;;  %v3941_v41 = vpop.f32.mrf.mxu3  ;;  %v10652_v3 = vld [vmem:[#allocation40_spill] sm:$0xff]  ;;  %v3489_v11 = vmul.f32 2.0, %v10655_v46 }
 0x539   : > { %10650 = vst [vmem:[#allocation157_spill] sm:$0xff] %v8862_v21  ;;  %v4055_v34 = vpack.c.bf16 %v8862_v21, %v8862_v21  ;;  %v8872_v14 = vpack.c.b16 %v4309_v7, %v4308_v10  ;;  %4451 = vmatmul.bf16.gmra.mxu3 %v8874_v57  ;;  %v3504_v13 = vmul.f32 2.0, %v10652_v3  ;;  %v10657_v3 = vld [vmem:[#allocation33_spill] sm:$0xff] }
 0x53a   : > { %v3844_v53 = vpop.f32.mrf.mxu2  ;;  %v4119_v58 = vunpack.c.l.b16 %v4039_v56 }
 0x53b   : > { %v4216_v51 = vunpack.c.l.b16 %v4055_v34  ;;  %4354 = vmatmul.bf16.gmra.mxu2 %v8872_v14  ;;  %v8880_v29 = vsub.f32 %v3488_v6, %v3844_v53  ;;  %v8882_v10 = vsub.f32 %v3504_v13, %v3941_v41  ;;  %v10656_v34 = vld [vmem:[#allocation37_spill] sm:$0xff]  ;;  %v3460_v53 = vmul.f32 2.0, %v10657_v3  ;;  %v10658_v41 = vld [vmem:[#allocation44_spill] sm:$0xff] }
 0x53c   : > { %v8884_v9 = vpack.c.b16 %v4119_v58, %v4118_v40  ;;  %v3505_v19 = vmul.f32 2.0, %v10656_v34  ;;  %v3476_v58 = vmul.f32 2.0, %v10658_v41  ;;  %v3477_v41 = vmul.f32 2.0, %v10664_v12 }
 0x53d   : > { %10653 = vst [vmem:[#allocation158_spill] sm:$0xff] %v8880_v29  ;;  %v3660_v48 = vpop.f32.mrf.mxu0  ;;  %v8886_v56 = vpack.c.b16 %v4216_v51, %v4215_v20  ;;  %v4068_v6 = vpack.c.bf16 %v8880_v29, %v8880_v29  ;;  %v4084_v13 = vpack.c.bf16 %v8882_v10, %v8882_v10  ;;  %v10663_v29 = vld [vmem:[#allocation47_spill] sm:$0xff] }
 0x53e   : > { %10654 = vst [vmem:[#allocation112_spill] sm:$0xff] %v8882_v10  ;;  %v3757_v7 = vpop.f32.mrf.mxu1  ;;  %4170 = vmatmul.bf16.gmra.mxu0 %v8884_v9  ;;  %v8902_v37 = vsub.f32 %v3460_v53, %v3660_v48  ;;  %v3461_v3 = vmul.f32 2.0, %v10663_v29 }
 0x53f   : > { %4267 = vmatmul.bf16.gmra.mxu1 %v8886_v56  ;;  %v8904_v46 = vsub.f32 %v3476_v58, %v3757_v7  ;;  %v4310_v8 = vunpack.c.l.b16 %v4068_v6  ;;  %v4407_v43 = vunpack.c.l.b16 %v4084_v13 }
 0x540   : > { %v3943_v40 = vpop.f32.mrf.mxu3  ;;  %10661 = vst [vmem:[#allocation160_spill] sm:$0xff] %v8902_v37  ;;  %v4040_v53 = vpack.c.bf16 %v8902_v37, %v8902_v37 }
 0x541   : > { %v8900_v21 = vsub.f32 %v3505_v19, %v3943_v40  ;;  %10662 = vst [vmem:[#allocation102_spill] sm:$0xff] %v8904_v46  ;;  %v4056_v58 = vpack.c.bf16 %v8904_v46, %v8904_v46 }
 0x542   : > { %v3846_v51 = vpop.f32.mrf.mxu2 }
 0x543   : > { %v8898_v20 = vsub.f32 %v3489_v11, %v3846_v51  ;;  %10660 = vst [vmem:[#allocation159_spill] sm:$0xff] %v8900_v21  ;;  %v4085_v10 = vpack.c.bf16 %v8900_v21, %v8900_v21  ;;  %v10667_v21 = vld [vmem:[#allocation51_spill] sm:$0xff] }
 0x545   : > { %10659 = vst [vmem:[#allocation113_spill] sm:$0xff] %v8898_v20  ;;  %v4069_v34 = vpack.c.bf16 %v8898_v20, %v8898_v20  ;;  %v3662_v11 = vpop.f32.mrf.mxu0  ;;  %v4408_v40 = vunpack.c.l.b16 %v4085_v10  ;;  %v3490_v20 = vmul.f32 2.0, %v10667_v21 }
 0x546   : > { %v3759_v51 = vpop.f32.mrf.mxu1  ;;  %v8912_v48 = vsub.f32 %v3461_v3, %v3662_v11  ;;  %v4120_v11 = vunpack.c.l.b16 %v4040_v53  ;;  %v10671_v53 = vld [vmem:[#allocation38_spill] sm:$0xff] }
 0x547   : > { %v4311_v19 = vunpack.c.l.b16 %v4069_v34  ;;  %v8914_v7 = vsub.f32 %v3477_v41, %v3759_v51  ;;  %v8926_v13 = vpack.c.b16 %v4408_v40, %v4407_v43  ;;  %v4217_v51 = vunpack.c.l.b16 %v4056_v58 }
 0x548   : > { %10665 = vst [vmem:[#allocation103_spill] sm:$0xff] %v8912_v48  ;;  %v4041_v29 = vpack.c.bf16 %v8912_v48, %v8912_v48  ;;  %v3946_v34 = vpop.f32.mrf.mxu3  ;;  %v10668_v48 = vld [vmem:[#allocation46_spill] sm:$0xff]  ;;  %v3491_v58 = vmul.f32 2.0, %v10671_v53 }
 0x549   : > { %10666 = vst [vmem:[#allocation161_spill] sm:$0xff] %v8914_v7  ;;  %v4057_v12 = vpack.c.bf16 %v8914_v7, %v8914_v7  ;;  %v8924_v6 = vpack.c.b16 %v4311_v19, %v4310_v8  ;;  %4456 = vmatmul.bf16.gmra.mxu3 %v8926_v13  ;;  %v3506_v46 = vmul.f32 2.0, %v10668_v48  ;;  %v10673_v48 = vld [vmem:[#allocation41_spill] sm:$0xff] }
 0x54a   : > { %v3849_v10 = vpop.f32.mrf.mxu2  ;;  %v4121_v3 = vunpack.c.l.b16 %v4041_v29 }
 0x54b   : > { %v4218_v41 = vunpack.c.l.b16 %v4057_v12  ;;  %4359 = vmatmul.bf16.gmra.mxu2 %v8924_v6  ;;  %v8932_v37 = vsub.f32 %v3490_v20, %v3849_v10  ;;  %v8934_v8 = vsub.f32 %v3506_v46, %v3946_v34  ;;  %v10672_v12 = vld [vmem:[#allocation48_spill] sm:$0xff]  ;;  %v3462_v10 = vmul.f32 2.0, %v10673_v48 }
 0x54c   : > { %v8936_v40 = vpack.c.b16 %v4121_v3, %v4120_v11  ;;  %v3507_v21 = vmul.f32 2.0, %v10672_v12  ;;  %v10674_v34 = vld [vmem:[#allocation52_spill] sm:$0xff] }
 0x54d   : > { %10669 = vst [vmem:[#allocation162_spill] sm:$0xff] %v8932_v37  ;;  %v3665_v43 = vpop.f32.mrf.mxu0  ;;  %v8938_v29 = vpack.c.b16 %v4218_v41, %v4217_v51  ;;  %v4070_v20 = vpack.c.bf16 %v8932_v37, %v8932_v37  ;;  %v4086_v46 = vpack.c.bf16 %v8934_v8, %v8934_v8  ;;  %v3478_v3 = vmul.f32 2.0, %v10674_v34  ;;  %v10679_v37 = vld [vmem:[#allocation13_spill] sm:$0xff] }
 0x54e   : > { %10670 = vst [vmem:[#allocation138_spill] sm:$0xff] %v8934_v8  ;;  %v3762_v19 = vpop.f32.mrf.mxu1  ;;  %4175 = vmatmul.bf16.gmra.mxu0 %v8936_v40  ;;  %v8954_v38 = vsub.f32 %v3462_v10, %v3665_v43  ;;  %v3463_v48 = vmul.f32 2.0, %v10679_v37  ;;  %v3479_v34 = vmul.f32 2.0, %v10680_v23 }
 0x54f   : > { %4272 = vmatmul.bf16.gmra.mxu1 %v8938_v29  ;;  %v8956_v53 = vsub.f32 %v3478_v3, %v3762_v19  ;;  %v4312_v60 = vunpack.c.l.b16 %v4070_v20  ;;  %v4409_v30 = vunpack.c.l.b16 %v4086_v46 }
 0x550   : > { %v3948_v11 = vpop.f32.mrf.mxu3  ;;  %10677 = vst [vmem:[#allocation129_spill] sm:$0xff] %v8954_v38  ;;  %v4042_v10 = vpack.c.bf16 %v8954_v38, %v8954_v38 }
 0x551   : > { %v8952_v7 = vsub.f32 %v3507_v21, %v3948_v11  ;;  %10678 = vst [vmem:[#allocation116_spill] sm:$0xff] %v8956_v53  ;;  %v4058_v3 = vpack.c.bf16 %v8956_v53, %v8956_v53 }
 0x552   : > { %v3851_v41 = vpop.f32.mrf.mxu2 }
 0x553   : > { %v8950_v51 = vsub.f32 %v3491_v58, %v3851_v41  ;;  %10676 = vst [vmem:[#allocation128_spill] sm:$0xff] %v8952_v7  ;;  %v4087_v8 = vpack.c.bf16 %v8952_v7, %v8952_v7  ;;  %v10683_v7 = vld [vmem:[#allocation57_spill] sm:$0xff] }
 0x555   : > { %10675 = vst [vmem:[#allocation163_spill] sm:$0xff] %v8950_v51  ;;  %v4071_v12 = vpack.c.bf16 %v8950_v51, %v8950_v51  ;;  %v3667_v58 = vpop.f32.mrf.mxu0  ;;  %v4410_v11 = vunpack.c.l.b16 %v4087_v8  ;;  %v3492_v51 = vmul.f32 2.0, %v10683_v7  ;;  %v3509_v7 = vmul.f32 2.0, %v10690_v33 }
 0x556   : > { %v3764_v41 = vpop.f32.mrf.mxu1  ;;  %v8964_v43 = vsub.f32 %v3463_v48, %v3667_v58  ;;  %v4122_v58 = vunpack.c.l.b16 %v4042_v10  ;;  %v10689_v10 = vld [vmem:[#allocation45_spill] sm:$0xff] }
 0x557   : > { %v4313_v21 = vunpack.c.l.b16 %v4071_v12  ;;  %v8966_v19 = vsub.f32 %v3479_v34, %v3764_v41  ;;  %v8978_v46 = vpack.c.b16 %v4410_v11, %v4409_v30  ;;  %v4219_v41 = vunpack.c.l.b16 %v4058_v3 }
 0x558   : > { %10681 = vst [vmem:[#allocation117_spill] sm:$0xff] %v8964_v43  ;;  %v4043_v37 = vpack.c.bf16 %v8964_v43, %v8964_v43  ;;  %v3951_v12 = vpop.f32.mrf.mxu3  ;;  %v10684_v43 = vld [vmem:[#allocation54_spill] sm:$0xff]  ;;  %v3493_v3 = vmul.f32 2.0, %v10689_v10 }
 0x559   : > { %10682 = vst [vmem:[#allocation104_spill] sm:$0xff] %v8966_v19  ;;  %v4059_v23 = vpack.c.bf16 %v8966_v19, %v8966_v19  ;;  %v8976_v20 = vpack.c.b16 %v4313_v21, %v4312_v60  ;;  %4461 = vmatmul.bf16.gmra.mxu3 %v8978_v46  ;;  %v3508_v53 = vmul.f32 2.0, %v10684_v43 }
 0x55a   : > { %v3854_v8 = vpop.f32.mrf.mxu2  ;;  %v4123_v48 = vunpack.c.l.b16 %v4043_v37  ;;  %v10687_v37 = vld [vmem:[#allocation50_spill] sm:$0xff] }
 0x55b   : > { %v4220_v34 = vunpack.c.l.b16 %v4059_v23  ;;  %4364 = vmatmul.bf16.gmra.mxu2 %v8976_v20  ;;  %v8984_v38 = vsub.f32 %v3492_v51, %v3854_v8  ;;  %v8986_v60 = vsub.f32 %v3508_v53, %v3951_v12  ;;  %v3464_v23 = vmul.f32 2.0, %v10687_v37  ;;  %v10695_v37 = vld [vmem:[#allocation56_spill] sm:$0xff] }
 0x55c   : > { %v4132_v11 = vpack.c.b16 %v4123_v48, %v4122_v58  ;;  %v3481_v10 = vmul.f32 2.0, %v10695_v37 }
 0x55d   : > { %10685 = vst [vmem:[#allocation105_spill] sm:$0xff] %v8984_v38  ;;  %v3670_v30 = vpop.f32.mrf.mxu0  ;;  %v4229_v19 = vpack.c.b16 %v4220_v34, %v4219_v41  ;;  %v4072_v51 = vpack.c.bf16 %v8984_v38, %v8984_v38  ;;  %v4088_v53 = vpack.c.bf16 %v8986_v60, %v8986_v60  ;;  %v3465_v41 = vmul.f32 2.0, %v8572_v17 }
 0x55e   : > { %10686 = vst [vmem:[#allocation96_spill] sm:$0xff] %v8986_v60  ;;  %v3767_v21 = vpop.f32.mrf.mxu1  ;;  %4180 = vmatmul.bf16.gmra.mxu0 %v4132_v11  ;;  %v8996_v43 = vsub.f32 %v3464_v23, %v3670_v30 }
 0x55f   : > { %4277 = vmatmul.bf16.gmra.mxu1 %v4229_v19  ;;  %v8998_v8 = vsub.f32 %v3480_v44, %v3767_v21  ;;  %v4314_v30 = vunpack.c.l.b16 %v4072_v51  ;;  %v4411_v23 = vunpack.c.l.b16 %v4088_v53 }
 0x560   : > { %10691 = vst [vmem:[#allocation97_spill] sm:$0xff] %v8996_v43  ;;  %v3953_v48 = vpop.f32.mrf.mxu3  ;;  %v4044_v44 = vpack.c.bf16 %v8996_v43, %v8996_v43 }
 0x561   : > { %10692 = vst [vmem:[#allocation15_spill] sm:$0xff] %v8998_v8  ;;  %v9002_v4 = vsub.f32 %v3509_v7, %v3953_v48  ;;  %v4060_v21 = vpack.c.bf16 %v8998_v8, %v8998_v8 }
 0x562   : > { %v3856_v12 = vpop.f32.mrf.mxu2 }
 0x563   : > { %v9000_v34 = vsub.f32 %v3493_v3, %v3856_v12  ;;  %10694 = vst [vmem:[#allocation24_spill] sm:$0xff] %v9002_v4  ;;  %v4089_v33 = vpack.c.bf16 %v9002_v4, %v9002_v4  ;;  %v4124_v4 = vunpack.c.l.b16 %v4044_v44  ;;  %v4221_v38 = vunpack.c.l.b16 %v4060_v21 }
 0x564   : > { %v3495_v44 = vmul.f32 2.0, %v8590_v26  ;;  %v3511_v21 = vmul.f32 2.0, %v8592_v39 }
 0x565   : > { %10693 = vst [vmem:[#allocation16_spill] sm:$0xff] %v9000_v34  ;;  %v4073_v58 = vpack.c.bf16 %v9000_v34, %v9000_v34  ;;  %v3672_v3 = vpop.f32.mrf.mxu0  ;;  %v4412_v48 = vunpack.c.l.b16 %v4089_v33 }
 0x566   : > { %v3769_v7 = vpop.f32.mrf.mxu1  ;;  %v9014_v34 = vsub.f32 %v3465_v41, %v3672_v3  ;;  %v10697_v3 = vld [vmem:[#allocation55_spill] sm:$0xff] }
 0x567   : > { %v4315_v12 = vunpack.c.l.b16 %v4073_v58  ;;  %v9016_v60 = vsub.f32 %v3481_v10, %v3769_v7  ;;  %v9024_v37 = vpack.c.b16 %v4412_v48, %v4411_v23  ;;  %v3494_v7 = vmul.f32 2.0, %v10697_v3 }
 0x568   : > { %v4045_v17 = vpack.c.bf16 %v9014_v34, %v9014_v34  ;;  %v3956_v33 = vpop.f32.mrf.mxu3 }
 0x569   : > { %10696 = vst [vmem:[#allocation25_spill] sm:$0xff] %v9016_v60  ;;  %v4061_v51 = vpack.c.bf16 %v9016_v60, %v9016_v60  ;;  %v9022_v53 = vpack.c.b16 %v4315_v12, %v4314_v30  ;;  %4466 = vmatmul.bf16.gmra.mxu3 %v9024_v37  ;;  %v3510_v60 = vmul.f32 2.0, %v8578_v50 }
 0x56a   : > { %v4125_v8 = vunpack.c.l.b16 %v4045_v17  ;;  %v3859_v58 = vpop.f32.mrf.mxu2 }
 0x56b   : > { %v4222_v43 = vunpack.c.l.b16 %v4061_v51  ;;  %4369 = vmatmul.bf16.gmra.mxu2 %v9022_v53  ;;  %v9030_v30 = vsub.f32 %v3494_v7, %v3859_v58  ;;  %v9032_v23 = vsub.f32 %v3510_v60, %v3956_v33  ;;  %v3513_v7 = vmul.f32 2.0, %v8616_v47 }
 0x56c   : > { %v4133_v41 = vpack.c.b16 %v4125_v8, %v4124_v4 }
 0x56d   : > { %v4230_v10 = vpack.c.b16 %v4222_v43, %v4221_v38  ;;  %v4074_v43 = vpack.c.bf16 %v9030_v30, %v9030_v30  ;;  %v4090_v50 = vpack.c.bf16 %v9032_v23, %v9032_v23 }
 0x56e   : > { %4658 = vmatpush.bf16.msrb.mxu0 %v4133_v41 }
 0x56f   : > { %4755 = vmatpush.bf16.msrb.mxu1 %v4230_v10  ;;  %4185 = vmatmul.bf16.gmra.mxu0 %v4133_v41  ;;  %v4316_v39 = vunpack.c.l.b16 %v4074_v43 }
 0x570   : > { %4282 = vmatmul.bf16.gmra.mxu1 %v4230_v10  ;;  %v3958_v38 = vpop.f32.mrf.mxu3 }
 0x571   : > { %v9042_v60 = vsub.f32 %v3511_v21, %v3958_v38 }
 0x572   : > { %4659 = vmatpush.bf16.msrb.mxu0 %v4132_v11  ;;  %v3861_v8 = vpop.f32.mrf.mxu2 }
 0x573   : > { %4756 = vmatpush.bf16.msrb.mxu1 %v4229_v19  ;;  %v9040_v4 = vsub.f32 %v3495_v44, %v3861_v8  ;;  %v4091_v26 = vpack.c.bf16 %v9042_v60, %v9042_v60  ;;  %v4413_v19 = vunpack.c.l.b16 %v4090_v50 }
 0x575   : > { %v4075_v12 = vpack.c.bf16 %v9040_v4, %v9040_v4  ;;  %v4414_v48 = vunpack.c.l.b16 %v4091_v26 }
 0x576   : > { %4660 = vmatpush.bf16.msrb.mxu0 %v8936_v40  ;;  %v3496_v40 = vmul.f32 2.0, %v8602_v49 }
 0x577   : > { %4757 = vmatpush.bf16.msrb.mxu1 %v8938_v29  ;;  %v4317_v11 = vunpack.c.l.b16 %v4075_v12  ;;  %v9052_v51 = vpack.c.b16 %v4414_v48, %v4413_v19  ;;  %v3512_v29 = vmul.f32 2.0, %v8604_v0 }
 0x578   : > { %v3961_v33 = vpop.f32.mrf.mxu3 }
 0x579   : > { %v9050_v17 = vpack.c.b16 %v4317_v11, %v4316_v39  ;;  %4471 = vmatmul.bf16.gmra.mxu3 %v9052_v51 }
 0x57a   : > { %4661 = vmatpush.bf16.msrb.mxu0 %v8884_v9  ;;  %v3864_v58 = vpop.f32.mrf.mxu2  ;;  %v9064_v9 = vsub.f32 %v3512_v29, %v3961_v33 }
 0x57b   : > { %4758 = vmatpush.bf16.msrb.mxu1 %v8886_v56  ;;  %v4151_v41 = vpop.f32.mrf.mxu0  ;;  %4374 = vmatmul.bf16.gmra.mxu2 %v9050_v17  ;;  %v9062_v3 = vsub.f32 %v3496_v40, %v3864_v58  ;;  %v3497_v56 = vmul.f32 2.0, %v8614_v2 }
 0x57c   : > { %v4248_v10 = vpop.f32.mrf.mxu1  ;;  %v4546_v43 = vpack.c.bf16 %v4151_v41, %v4151_v41 }
 0x57d   : > { %v4076_v0 = vpack.c.bf16 %v9062_v3, %v9062_v3  ;;  %v4562_v50 = vpack.c.bf16 %v4248_v10, %v4248_v10 }
 0x57e   : > { %4662 = vmatpush.bf16.msrb.mxu0 %v8832_v61  ;;  %v4092_v61 = vpack.c.bf16 %v9064_v9, %v9064_v9  ;;  %v4626_v40 = vunpack.c.l.b16 %v4546_v43 }
 0x57f   : > { %4759 = vmatpush.bf16.msrb.mxu1 %v8834_v55  ;;  %v4318_v12 = vunpack.c.l.b16 %v4076_v0  ;;  %v4723_v29 = vunpack.c.l.b16 %v4562_v50  ;;  %v10704_v0 = vld [vmem:[#allocation137_spill] sm:$0xff] }
 0x580   : > { %v3963_v49 = vpop.f32.mrf.mxu3  ;;  %v4415_v26 = vunpack.c.l.b16 %v4092_v61  ;;  %v10705_v61 = vld [vmem:[#allocation136_spill] sm:$0xff]  ;;  %v10708_v50 = vld [vmem:[#allocation133_spill] sm:$0xff] }
 0x581   : > { %v9076_v21 = vsub.f32 %v3513_v7, %v3963_v49  ;;  %v10701_v49 = vld [vmem:[#allocation149_spill] sm:$0xff] }
 0x582   : > { %4663 = vmatpush.bf16.msrb.mxu0 %v8780_v32  ;;  %v3866_v44 = vpop.f32.mrf.mxu2 }
 0x583   : > { %4760 = vmatpush.bf16.msrb.mxu1 %v8782_v52  ;;  %v9074_v55 = vsub.f32 %v3497_v56, %v3866_v44  ;;  %v4153_v8 = vpop.f32.mrf.mxu0  ;;  %v4093_v52 = vpack.c.bf16 %v9076_v21, %v9076_v21  ;;  %v10698_v56 = vld [vmem:[#allocation156_spill] sm:$0xff]  ;;  %v10700_v44 = vld [vmem:[#allocation150_spill] sm:$0xff] }
 0x584   : > { %v4250_v2 = vpop.f32.mrf.mxu1  ;;  %v4547_v38 = vpack.c.bf16 %v4153_v8, %v4153_v8 }
 0x585   : > { %v4563_v47 = vpack.c.bf16 %v4250_v2, %v4250_v2  ;;  %v4077_v32 = vpack.c.bf16 %v9074_v55, %v9074_v55  ;;  %v4416_v19 = vunpack.c.l.b16 %v4093_v52  ;;  %v10707_v52 = vld [vmem:[#allocation141_spill] sm:$0xff] }
 0x586   : > { %4664 = vmatpush.bf16.msrb.mxu0 %v8724_v27  ;;  %v4627_v11 = vunpack.c.l.b16 %v4547_v38  ;;  %v10699_v27 = vld [vmem:[#allocation155_spill] sm:$0xff] }
 0x587   : > { %4761 = vmatpush.bf16.msrb.mxu1 %v8726_v15  ;;  %v4319_v39 = vunpack.c.l.b16 %v4077_v32  ;;  %v4724_v48 = vunpack.c.l.b16 %v4563_v47  ;;  %v4424_v33 = vpack.c.b16 %v4416_v19, %v4415_v26  ;;  %v10706_v32 = vld [vmem:[#allocation142_spill] sm:$0xff]  ;;  %v10711_v19 = vld [vmem:[#allocation124_spill] sm:$0xff] }
 0x588   : > { %v4642_v15 = vpack.c.b16 %v4627_v11, %v4626_v40  ;;  %v10714_v40 = vld [vmem:[#allocation115_spill] sm:$0xff] }
 0x589   : > { %v4327_v58 = vpack.c.b16 %v4319_v39, %v4318_v12  ;;  %v4739_v7 = vpack.c.b16 %v4724_v48, %v4723_v29  ;;  %4476 = vmatmul.bf16.gmra.mxu3 %v4424_v33  ;;  %v10710_v39 = vld [vmem:[#allocation127_spill] sm:$0xff]  ;;  %v10712_v48 = vld [vmem:[#allocation122_spill] sm:$0xff] }
 0x58a   : > { %4665 = vmatpush.bf16.msrb.mxu0 %v8696_v54  ;;  %4949 = vmatpush.bf16.msrb.mxu3 %v4424_v33  ;;  %v10702_v54 = vld [vmem:[#allocation146_spill] sm:$0xff] }
 0x58b   : > { %4762 = vmatpush.bf16.msrb.mxu1 %v8698_v42  ;;  %v4156_v41 = vpop.f32.mrf.mxu0  ;;  %4379 = vmatmul.bf16.gmra.mxu2 %v4327_v58  ;;  %v10703_v42 = vld [vmem:[#allocation145_spill] sm:$0xff]  ;;  %v10715_v29 = vld [vmem:[#allocation114_spill] sm:$0xff] }
 0x58c   : > { %v4253_v10 = vpop.f32.mrf.mxu1  ;;  %4852 = vmatpush.bf16.msrb.mxu2 %v4327_v58  ;;  %v4548_v43 = vpack.c.bf16 %v4156_v41, %v4156_v41 }
 0x58d   : > { %4666 = vmatmul.bf16.vlgmr.msrb.gmra.mxu0 %v4642_v15  ;;  %v10718_v15 = vld [vmem:[#allocation106_spill] sm:$0xff] }
 0x58e   : > { %5062 = vmatpush.msra.mxu0 %v10698_v56  ;;  %4763 = vmatmul.bf16.vlgmr.msrb.gmra.mxu1 %v4739_v7  ;;  %v4628_v11 = vunpack.c.l.b16 %v4548_v43  ;;  %v10719_v7 = vld [vmem:[#allocation31_spill] sm:$0xff] }
 0x58f   : > { %5127 = vmatpush.msra.mxu1 %v10699_v27  ;;  %4950 = vmatpush.bf16.msrb.mxu3 %v9052_v51  ;;  %v10709_v51 = vld [vmem:[#allocation132_spill] sm:$0xff] }
 0x590   : > { %5063 = vmatpush.msra.mxu0 %v10700_v44  ;;  %4853 = vmatpush.bf16.msrb.mxu2 %v9050_v17  ;;  %v4564_v17 = vpack.c.bf16 %v4253_v10, %v4253_v10 }
 0x591   : > { %5128 = vmatpush.msra.mxu1 %v10701_v49 }
 0x592   : > { %5064 = vmatpush.msra.mxu0 %v10702_v54  ;;  %v10720_v54 = vld [vmem:[#allocation101_spill] sm:$0xff] }
 0x593   : > { %5129 = vmatpush.msra.mxu1 %v10703_v42  ;;  %v4158_v8 = vpop.f32.mrf.mxu0  ;;  %4951 = vmatpush.bf16.msrb.mxu3 %v9024_v37  ;;  %v10713_v37 = vld [vmem:[#allocation121_spill] sm:$0xff] }
 0x594   : > { %5065 = vmatpush.msra.mxu0 %v10704_v0  ;;  %v4255_v2 = vpop.f32.mrf.mxu1  ;;  %v4549_v38 = vpack.c.bf16 %v4158_v8, %v4158_v8  ;;  %4854 = vmatpush.bf16.msrb.mxu2 %v9022_v53  ;;  %v4725_v53 = vunpack.c.l.b16 %v4564_v17 }
 0x595   : > { %5130 = vmatpush.msra.mxu1 %v10705_v61  ;;  %v4565_v47 = vpack.c.bf16 %v4255_v2, %v4255_v2 }
 0x596   : > { %5066 = vmatpush.msra.mxu0 %v10706_v32  ;;  %v4629_v12 = vunpack.c.l.b16 %v4549_v38  ;;  %v10722_v38 = vld [vmem:[#allocation95_spill] sm:$0xff] }
 0x597   : > { %5131 = vmatpush.msra.mxu1 %v10707_v52  ;;  %v4726_v26 = vunpack.c.l.b16 %v4565_v47  ;;  %4952 = vmatpush.bf16.msrb.mxu3 %v8978_v46  ;;  %v10717_v46 = vld [vmem:[#allocation32_spill] sm:$0xff] }
 0x598   : > { %5067 = vmatpush.msra.mxu0 %v10708_v50  ;;  %4855 = vmatpush.bf16.msrb.mxu2 %v8976_v20  ;;  %v4643_v41 = vpack.c.b16 %v4629_v12, %v4628_v11  ;;  %v10716_v20 = vld [vmem:[#allocation111_spill] sm:$0xff]  ;;  %v10723_v47 = vld [vmem:[#allocation28_spill] sm:$0xff]  ;;  %v10724_v50 = vld [vmem:[#allocation94_spill] sm:$0xff] }
 0x599   : > { %5132 = vmatpush.msra.mxu1 %v10709_v51  ;;  %v4740_v10 = vpack.c.b16 %v4726_v26, %v4725_v53  ;;  %v10725_v51 = vld [vmem:[#allocation27_spill] sm:$0xff] }
 0x59a   : > { %5068 = vmatpush.msra.mxu0 %v10710_v39 }
 0x59b   : > { %5133 = vmatpush.msra.mxu1 %v10711_v19  ;;  %v4161_v58 = vpop.f32.mrf.mxu0  ;;  %4953 = vmatpush.bf16.msrb.mxu3 %v8926_v13 }
 0x59c   : > { %5069 = vmatpush.msra.mxu0 %v10712_v48  ;;  %v4258_v33 = vpop.f32.mrf.mxu1  ;;  %v4442_v27 = vpop.f32.mrf.mxu3  ;;  %4856 = vmatpush.bf16.msrb.mxu2 %v8924_v6  ;;  %v10721_v6 = vld [vmem:[#allocation99_spill] sm:$0xff]  ;;  %v4550_v52 = vpack.c.bf16 %v4161_v58, %v4161_v58  ;;  %v10726_v48 = vld [vmem:[#allocation89_spill] sm:$0xff] }
 0x59d   : > { %5134 = vmatpush.msra.mxu1 %v10713_v37  ;;  %4671 = vmatmul.bf16.gmra.mxu0 %v4643_v41  ;;  %v4594_v49 = vpack.c.bf16 %v4442_v27, %v4442_v27  ;;  %v10727_v37 = vld [vmem:[#allocation88_spill] sm:$0xff]  ;;  %v10728_v58 = vld [vmem:[#allocation85_spill] sm:$0xff]  ;;  %v10730_v41 = vld [vmem:[#allocation154_spill] sm:$0xff] }
 0x59e   : > { %5070 = vmatpush.msra.mxu0 %v10714_v40  ;;  %v4345_v56 = vpop.f32.mrf.mxu2  ;;  %4768 = vmatmul.bf16.gmra.mxu1 %v4740_v10  ;;  %v10731_v10 = vld [vmem:[#allocation153_spill] sm:$0xff] }
 0x59f   : > { %5135 = vmatpush.msra.mxu1 %v10715_v29  ;;  %4954 = vmatpush.bf16.msrb.mxu3 %v8874_v57  ;;  %v4578_v44 = vpack.c.bf16 %v4345_v56, %v4345_v56  ;;  %v4566_v57 = vpack.c.bf16 %v4258_v33, %v4258_v33  ;;  %v4917_v17 = vunpack.c.l.b16 %v4594_v49  ;;  %v10729_v33 = vld [vmem:[#allocation84_spill] sm:$0xff]  ;;  %v10737_v49 = vld [vmem:[#allocation143_spill] sm:$0xff] }
 0x5a0   : > { %5071 = vmatpush.msra.mxu0 %v10716_v20  ;;  %4857 = vmatpush.bf16.msrb.mxu2 %v8872_v14 }
 0x5a1   : > { %5136 = vmatpush.msra.mxu1 %v10717_v46  ;;  %v4820_v43 = vunpack.c.l.b16 %v4578_v44  ;;  %v10736_v44 = vld [vmem:[#allocation144_spill] sm:$0xff] }
 0x5a2   : > { %5072 = vmatpush.msra.mxu0 %v10718_v15  ;;  %v10734_v15 = vld [vmem:[#allocation152_spill] sm:$0xff] }
 0x5a3   : > { %5137 = vmatpush.msra.mxu1 %v10719_v7  ;;  %v4163_v13 = vpop.f32.mrf.mxu0  ;;  %4955 = vmatpush.bf16.msrb.mxu3 %v8822_v1  ;;  %v4727_v1 = vunpack.c.l.b16 %v4566_v57  ;;  %v10735_v7 = vld [vmem:[#allocation151_spill] sm:$0xff] }
 0x5a4   : > { %5073 = vmatpush.msra.mxu0 %v10720_v54  ;;  %v4260_v42 = vpop.f32.mrf.mxu1  ;;  %v4551_v0 = vpack.c.bf16 %v4163_v13, %v4163_v13  ;;  %v4444_v8 = vpop.f32.mrf.mxu3  ;;  %4858 = vmatpush.bf16.msrb.mxu2 %v8820_v22  ;;  %v4630_v22 = vunpack.c.l.b16 %v4550_v52 }
 0x5a5   : > { %5138 = vmatpush.msra.mxu1 %v10721_v6  ;;  %v4567_v2 = vpack.c.bf16 %v4260_v42, %v4260_v42  ;;  %v4595_v14 = vpack.c.bf16 %v4444_v8, %v4444_v8 }
 0x5a6   : > { %v4347_v61 = vpop.f32.mrf.mxu2  ;;  %5074 = vmatpush.msra.mxu0 %v10722_v38  ;;  %v4631_v39 = vunpack.c.l.b16 %v4551_v0  ;;  %v10738_v0 = vld [vmem:[#allocation140_spill] sm:$0xff] }
 0x5a7   : > { %5139 = vmatpush.msra.mxu1 %v10723_v47  ;;  %v4579_v32 = vpack.c.bf16 %v4347_v61, %v4347_v61  ;;  %v4918_v26 = vunpack.c.l.b16 %v4595_v14  ;;  %v4728_v19 = vunpack.c.l.b16 %v4567_v2  ;;  %4956 = vmatpush.bf16.msrb.mxu3 %v8766_v35  ;;  %v10733_v35 = vld [vmem:[#allocation147_spill] sm:$0xff] }
 0x5a8   : > { %5075 = vmatpush.msra.mxu0 %v10724_v50  ;;  %4859 = vmatpush.bf16.msrb.mxu2 %v8764_v31  ;;  %v4644_v20 = vpack.c.b16 %v4631_v39, %v4630_v22  ;;  %v10732_v31 = vld [vmem:[#allocation148_spill] sm:$0xff]  ;;  %v10739_v61 = vld [vmem:[#allocation139_spill] sm:$0xff]  ;;  %v10742_v39 = vld [vmem:[#allocation118_spill] sm:$0xff] }
 0x5a9   : > { %5140 = vmatpush.msra.mxu1 %v10725_v51  ;;  %v4821_v12 = vunpack.c.l.b16 %v4579_v32  ;;  %v4933_v53 = vpack.c.b16 %v4918_v26, %v4917_v17  ;;  %v4741_v46 = vpack.c.b16 %v4728_v19, %v4727_v1  ;;  %v10741_v17 = vld [vmem:[#allocation130_spill] sm:$0xff]  ;;  %v10743_v19 = vld [vmem:[#allocation123_spill] sm:$0xff]  ;;  %v10744_v22 = vld [vmem:[#allocation120_spill] sm:$0xff] }
 0x5aa   : > { %5076 = vmatpush.msra.mxu0 %v10726_v48  ;;  %v10745_v1 = vld [vmem:[#allocation119_spill] sm:$0xff] }
 0x5ab   : > { %v4836_v11 = vpack.c.b16 %v4821_v12, %v4820_v43  ;;  %5141 = vmatpush.msra.mxu1 %v10727_v37  ;;  %v4166_v40 = vpop.f32.mrf.mxu0  ;;  %5257 = vmatpush.msra.mxu3 %v10731_v10  ;;  %v10740_v43 = vld [vmem:[#allocation131_spill] sm:$0xff]  ;;  %v10747_v10 = vld [vmem:[#allocation109_spill] sm:$0xff] }
 0x5ac   : > { %5077 = vmatpush.msra.mxu0 %v10728_v58  ;;  %v4263_v29 = vpop.f32.mrf.mxu1  ;;  %5192 = vmatpush.msra.mxu2 %v10730_v41  ;;  %v4447_v27 = vpop.f32.mrf.mxu3  ;;  %v4552_v52 = vpack.c.bf16 %v4166_v40, %v4166_v40  ;;  %v10746_v41 = vld [vmem:[#allocation110_spill] sm:$0xff] }
 0x5ad   : > { %5142 = vmatpush.msra.mxu1 %v10729_v33  ;;  %4860 = vmatmul.bf16.vlgmr.msrb.gmra.mxu2 %v4836_v11  ;;  %v4596_v6 = vpack.c.bf16 %v4447_v27, %v4447_v27  ;;  %v4568_v57 = vpack.c.bf16 %v4263_v29, %v4263_v29 }
 0x5ae   : > { %v4350_v56 = vpop.f32.mrf.mxu2  ;;  %4957 = vmatmul.bf16.vlgmr.msrb.gmra.mxu3 %v4933_v53  ;;  %5193 = vmatpush.msra.mxu2 %v10732_v31  ;;  %v4632_v58 = vunpack.c.l.b16 %v4552_v52  ;;  %v10748_v31 = vld [vmem:[#allocation108_spill] sm:$0xff] }
 0x5af   : > { %5258 = vmatpush.msra.mxu3 %v10733_v35  ;;  %4676 = vmatmul.bf16.gmra.mxu0 %v4644_v20  ;;  %v4580_v54 = vpack.c.bf16 %v4350_v56, %v4350_v56  ;;  %v4919_v51 = vunpack.c.l.b16 %v4596_v6  ;;  %v4729_v33 = vunpack.c.l.b16 %v4568_v57  ;;  %v10749_v35 = vld [vmem:[#allocation107_spill] sm:$0xff] }
 0x5b0   : > { %4773 = vmatmul.bf16.gmra.mxu1 %v4741_v46  ;;  %5194 = vmatpush.msra.mxu2 %v10734_v15  ;;  %v10750_v15 = vld [vmem:[#allocation100_spill] sm:$0xff] }
 0x5b1   : > { %5259 = vmatpush.msra.mxu3 %v10735_v7  ;;  %v4822_v50 = vunpack.c.l.b16 %v4580_v54  ;;  %v10751_v7 = vld [vmem:[#allocation30_spill] sm:$0xff] }
 0x5b2   : > { %5195 = vmatpush.msra.mxu2 %v10736_v44  ;;  %v10752_v44 = vld [vmem:[#allocation98_spill] sm:$0xff] }
 0x5b3   : > { %5260 = vmatpush.msra.mxu3 %v10737_v49  ;;  %v4168_v13 = vpop.f32.mrf.mxu0  ;;  %v10753_v49 = vld [vmem:[#allocation29_spill] sm:$0xff] }
 0x5b4   : > { %v4265_v42 = vpop.f32.mrf.mxu1  ;;  %5196 = vmatpush.msra.mxu2 %v10738_v0  ;;  %v4449_v2 = vpop.f32.mrf.mxu3  ;;  %v4553_v38 = vpack.c.bf16 %v4168_v13, %v4168_v13  ;;  %v10754_v0 = vld [vmem:[#allocation92_spill] sm:$0xff] }
 0x5b5   : > { %5261 = vmatpush.msra.mxu3 %v10739_v61  ;;  %v4569_v47 = vpack.c.bf16 %v4265_v42, %v4265_v42  ;;  %v4597_v14 = vpack.c.bf16 %v4449_v2, %v4449_v2  ;;  %v10755_v61 = vld [vmem:[#allocation91_spill] sm:$0xff] }
 0x5b6   : > { %v4352_v8 = vpop.f32.mrf.mxu2  ;;  %5197 = vmatpush.msra.mxu2 %v10740_v43  ;;  %v4633_v11 = vunpack.c.l.b16 %v4553_v38  ;;  %v10756_v43 = vld [vmem:[#allocation93_spill] sm:$0xff] }
 0x5b7   : > { %v4581_v32 = vpack.c.bf16 %v4352_v8, %v4352_v8  ;;  %5262 = vmatpush.msra.mxu3 %v10741_v17  ;;  %v4920_v26 = vunpack.c.l.b16 %v4597_v14  ;;  %v4730_v53 = vunpack.c.l.b16 %v4569_v47  ;;  %v10757_v17 = vld [vmem:[#allocation26_spill] sm:$0xff] }
 0x5b8   : > { %5198 = vmatpush.msra.mxu2 %v10742_v39  ;;  %v4645_v20 = vpack.c.b16 %v4633_v11, %v4632_v58  ;;  %v10758_v39 = vld [vmem:[#allocation77_spill] sm:$0xff] }
 0x5b9   : > { %v4823_v12 = vunpack.c.l.b16 %v4581_v32  ;;  %5263 = vmatpush.msra.mxu3 %v10743_v19  ;;  %v4934_v37 = vpack.c.b16 %v4920_v26, %v4919_v51  ;;  %v4742_v46 = vpack.c.b16 %v4730_v53, %v4729_v33  ;;  %v10759_v19 = vld [vmem:[#allocation76_spill] sm:$0xff] }
 0x5ba   : > { %5199 = vmatpush.msra.mxu2 %v10744_v22  ;;  %v10760_v22 = vld [vmem:[#allocation81_spill] sm:$0xff] }
 0x5bb   : > { %v4837_v48 = vpack.c.b16 %v4823_v12, %v4822_v50  ;;  %5264 = vmatpush.msra.mxu3 %v10745_v1  ;;  %v4171_v40 = vpop.f32.mrf.mxu0  ;;  %v10761_v1 = vld [vmem:[#allocation75_spill] sm:$0xff] }
 0x5bc   : > { %v4268_v29 = vpop.f32.mrf.mxu1  ;;  %5200 = vmatpush.msra.mxu2 %v10746_v41  ;;  %v4452_v27 = vpop.f32.mrf.mxu3  ;;  %v4554_v52 = vpack.c.bf16 %v4171_v40, %v4171_v40 }
 0x5bd   : > { %5265 = vmatpush.msra.mxu3 %v10747_v10  ;;  %4865 = vmatmul.bf16.gmra.mxu2 %v4837_v48  ;;  %v4598_v6 = vpack.c.bf16 %v4452_v27, %v4452_v27  ;;  %v4570_v57 = vpack.c.bf16 %v4268_v29, %v4268_v29 }
 0x5be   : > { %v4355_v56 = vpop.f32.mrf.mxu2  ;;  %4962 = vmatmul.bf16.gmra.mxu3 %v4934_v37  ;;  %5201 = vmatpush.msra.mxu2 %v10748_v31  ;;  %v4634_v58 = vunpack.c.l.b16 %v4554_v52 }
 0x5bf   : > { %5266 = vmatpush.msra.mxu3 %v10749_v35  ;;  %4681 = vmatmul.bf16.gmra.mxu0 %v4645_v20  ;;  %v4582_v54 = vpack.c.bf16 %v4355_v56, %v4355_v56  ;;  %v4921_v51 = vunpack.c.l.b16 %v4598_v6  ;;  %v4731_v33 = vunpack.c.l.b16 %v4570_v57 }
 0x5c0   : > { %4778 = vmatmul.bf16.gmra.mxu1 %v4742_v46  ;;  %5202 = vmatpush.msra.mxu2 %v10750_v15 }
 0x5c1   : > { %5267 = vmatpush.msra.mxu3 %v10751_v7  ;;  %v4824_v50 = vunpack.c.l.b16 %v4582_v54 }
 0x5c2   : > { %5203 = vmatpush.msra.mxu2 %v10752_v44 }
 0x5c3   : > { %5268 = vmatpush.msra.mxu3 %v10753_v49  ;;  %v4173_v13 = vpop.f32.mrf.mxu0 }
 0x5c4   : > { %v4270_v42 = vpop.f32.mrf.mxu1  ;;  %5204 = vmatpush.msra.mxu2 %v10754_v0  ;;  %v4454_v2 = vpop.f32.mrf.mxu3  ;;  %v4555_v38 = vpack.c.bf16 %v4173_v13, %v4173_v13 }
 0x5c5   : > { %5269 = vmatpush.msra.mxu3 %v10755_v61  ;;  %v4571_v47 = vpack.c.bf16 %v4270_v42, %v4270_v42  ;;  %v4599_v14 = vpack.c.bf16 %v4454_v2, %v4454_v2 }
 0x5c6   : > { %v4357_v8 = vpop.f32.mrf.mxu2  ;;  %5205 = vmatpush.msra.mxu2 %v10756_v43  ;;  %v4635_v11 = vunpack.c.l.b16 %v4555_v38 }
 0x5c7   : > { %v4583_v32 = vpack.c.bf16 %v4357_v8, %v4357_v8  ;;  %5270 = vmatpush.msra.mxu3 %v10757_v17  ;;  %v4922_v26 = vunpack.c.l.b16 %v4599_v14  ;;  %v4732_v53 = vunpack.c.l.b16 %v4571_v47 }
 0x5c8   : > { %5206 = vmatpush.msra.mxu2 %v10758_v39  ;;  %v4646_v56 = vpack.c.b16 %v4635_v11, %v4634_v58 }
 0x5c9   : > { %v4825_v12 = vunpack.c.l.b16 %v4583_v32  ;;  %5271 = vmatpush.msra.mxu3 %v10759_v19  ;;  %v4935_v37 = vpack.c.b16 %v4922_v26, %v4921_v51  ;;  %v4743_v27 = vpack.c.b16 %v4732_v53, %v4731_v33 }
 0x5ca   : > { %5207 = vmatpush.msra.mxu2 %v10760_v22 }
 0x5cb   : > { %v4838_v48 = vpack.c.b16 %v4825_v12, %v4824_v50  ;;  %5272 = vmatpush.msra.mxu3 %v10761_v1  ;;  %v4176_v40 = vpop.f32.mrf.mxu0 }
 0x5cc   : > { %v4273_v29 = vpop.f32.mrf.mxu1  ;;  %v4457_v10 = vpop.f32.mrf.mxu3  ;;  %v4556_v13 = vpack.c.bf16 %v4176_v40, %v4176_v40 }
 0x5cd   : > { %4870 = vmatmul.bf16.gmra.mxu2 %v4838_v48  ;;  %v4600_v46 = vpack.c.bf16 %v4457_v10, %v4457_v10  ;;  %v4572_v42 = vpack.c.bf16 %v4273_v29, %v4273_v29 }
 0x5ce   : > { %v4360_v41 = vpop.f32.mrf.mxu2  ;;  %4967 = vmatmul.bf16.gmra.mxu3 %v4935_v37  ;;  %v4636_v52 = vunpack.c.l.b16 %v4556_v13 }
 0x5cf   : > { %4686 = vmatmul.bf16.gmra.mxu0 %v4646_v56  ;;  %v4584_v20 = vpack.c.bf16 %v4360_v41, %v4360_v41  ;;  %v4923_v61 = vunpack.c.l.b16 %v4600_v46  ;;  %v4733_v57 = vunpack.c.l.b16 %v4572_v42 }
 0x5d0   : > { %4783 = vmatmul.bf16.gmra.mxu1 %v4743_v27 }
 0x5d1   : > { %v4826_v0 = vunpack.c.l.b16 %v4584_v20 }
 0x5d3   : > { %v4178_v31 = vpop.f32.mrf.mxu0 }
 0x5d4   : > { %v4275_v35 = vpop.f32.mrf.mxu1  ;;  %v4459_v7 = vpop.f32.mrf.mxu3  ;;  %v4557_v44 = vpack.c.bf16 %v4178_v31, %v4178_v31 }
 0x5d5   : > { %v4573_v49 = vpack.c.bf16 %v4275_v35, %v4275_v35  ;;  %v4601_v6 = vpack.c.bf16 %v4459_v7, %v4459_v7 }
 0x5d6   : > { %v4362_v15 = vpop.f32.mrf.mxu2  ;;  %v4637_v38 = vunpack.c.l.b16 %v4557_v44 }
 0x5d7   : > { %v4585_v54 = vpack.c.bf16 %v4362_v15, %v4362_v15  ;;  %v4924_v2 = vunpack.c.l.b16 %v4601_v6  ;;  %v4734_v47 = vunpack.c.l.b16 %v4573_v49 }
 0x5d8   : > { %v4647_v12 = vpack.c.b16 %v4637_v38, %v4636_v52 }
 0x5d9   : > { %v4827_v8 = vunpack.c.l.b16 %v4585_v54  ;;  %v4936_v14 = vpack.c.b16 %v4924_v2, %v4923_v61  ;;  %v4744_v26 = vpack.c.b16 %v4734_v47, %v4733_v57 }
 0x5db   : > { %v4839_v32 = vpack.c.b16 %v4827_v8, %v4826_v0  ;;  %v4181_v43 = vpop.f32.mrf.mxu0 }
 0x5dc   : > { %v4278_v17 = vpop.f32.mrf.mxu1  ;;  %v4462_v51 = vpop.f32.mrf.mxu3  ;;  %v4558_v40 = vpack.c.bf16 %v4181_v43, %v4181_v43 }
 0x5dd   : > { %4875 = vmatmul.bf16.gmra.mxu2 %v4839_v32  ;;  %v4602_v19 = vpack.c.bf16 %v4462_v51, %v4462_v51  ;;  %v4574_v29 = vpack.c.bf16 %v4278_v17, %v4278_v17 }
 0x5de   : > { %v4365_v50 = vpop.f32.mrf.mxu2  ;;  %4972 = vmatmul.bf16.gmra.mxu3 %v4936_v14  ;;  %v4638_v15 = vunpack.c.l.b16 %v4558_v40 }
 0x5df   : > { %4691 = vmatmul.bf16.gmra.mxu0 %v4647_v12  ;;  %v4586_v39 = vpack.c.bf16 %v4365_v50, %v4365_v50  ;;  %v4925_v10 = vunpack.c.l.b16 %v4602_v19  ;;  %v4735_v7 = vunpack.c.l.b16 %v4574_v29 }
 0x5e0   : > { %4788 = vmatmul.bf16.gmra.mxu1 %v4744_v26 }
 0x5e1   : > { %v4828_v41 = vunpack.c.l.b16 %v4586_v39 }
 0x5e3   : > { %v4183_v11 = vpop.f32.mrf.mxu0 }
 0x5e4   : > { %v4280_v53 = vpop.f32.mrf.mxu1  ;;  %v4464_v37 = vpop.f32.mrf.mxu3  ;;  %v4559_v22 = vpack.c.bf16 %v4183_v11, %v4183_v11 }
 0x5e5   : > { %v4575_v1 = vpack.c.bf16 %v4280_v53, %v4280_v53  ;;  %v4603_v33 = vpack.c.bf16 %v4464_v37, %v4464_v37 }
 0x5e6   : > { %v4367_v48 = vpop.f32.mrf.mxu2  ;;  %v4639_v20 = vunpack.c.l.b16 %v4559_v22 }
 0x5e7   : > { %v4587_v58 = vpack.c.bf16 %v4367_v48, %v4367_v48  ;;  %v4926_v27 = vunpack.c.l.b16 %v4603_v33  ;;  %v4736_v46 = vunpack.c.l.b16 %v4575_v1 }
 0x5e8   : > { %v4648_v13 = vpack.c.b16 %v4639_v20, %v4638_v15  ;;  %v4482_v15 = vmul.f32 2.0, %v8678_v36  ;;  %v4483_v36 = vmul.f32 2.0, %v8688_v63 }
 0x5e9   : > { %v4829_v56 = vunpack.c.l.b16 %v4587_v58  ;;  %v4937_v35 = vpack.c.b16 %v4926_v27, %v4925_v10  ;;  %v4745_v42 = vpack.c.b16 %v4736_v46, %v4735_v7  ;;  %v4498_v7 = vmul.f32 2.0, %v8680_v16 }
 0x5ea   : > { %v4499_v16 = vmul.f32 2.0, %v8690_v45 }
 0x5eb   : > { %v4840_v31 = vpack.c.b16 %v4829_v56, %v4828_v41 }
 0x5ec   : > { %v4186_v44 = vpop.f32.mrf.mxu0  ;;  %v4467_v6 = vpop.f32.mrf.mxu3 }
 0x5ed   : > { %v4283_v49 = vpop.f32.mrf.mxu1  ;;  %4880 = vmatmul.bf16.gmra.mxu2 %v4840_v31  ;;  %v4604_v61 = vpack.c.bf16 %v4467_v6, %v4467_v6  ;;  %v4560_v43 = vpack.c.bf16 %v4186_v44, %v4186_v44 }
 0x5ee   : > { %v4370_v54 = vpop.f32.mrf.mxu2  ;;  %4977 = vmatmul.bf16.gmra.mxu3 %v4937_v35  ;;  %v4576_v17 = vpack.c.bf16 %v4283_v49, %v4283_v49 }
 0x5ef   : > { %4696 = vmatmul.bf16.gmra.mxu0 %v4648_v13  ;;  %v4588_v0 = vpack.c.bf16 %v4370_v54, %v4370_v54  ;;  %v4927_v51 = vunpack.c.l.b16 %v4604_v61  ;;  %v4640_v48 = vunpack.c.l.b16 %v4560_v43 }
 0x5f0   : > { %4793 = vmatmul.bf16.gmra.mxu1 %v4745_v42  ;;  %v4737_v37 = vunpack.c.l.b16 %v4576_v17 }
 0x5f1   : > { %v4830_v50 = vunpack.c.l.b16 %v4588_v0 }
 0x5f4   : > { %v4188_v8 = vpop.f32.mrf.mxu0  ;;  %v4469_v47 = vpop.f32.mrf.mxu3 }
 0x5f5   : > { %v4285_v2 = vpop.f32.mrf.mxu1  ;;  %v4561_v32 = vpack.c.bf16 %v4188_v8, %v4188_v8  ;;  %v4605_v57 = vpack.c.bf16 %v4469_v47, %v4469_v47 }
 0x5f6   : > { %v4372_v38 = vpop.f32.mrf.mxu2  ;;  %v4577_v14 = vpack.c.bf16 %v4285_v2, %v4285_v2 }
 0x5f7   : > { %v4589_v52 = vpack.c.bf16 %v4372_v38, %v4372_v38  ;;  %v4928_v26 = vunpack.c.l.b16 %v4605_v57  ;;  %v4641_v39 = vunpack.c.l.b16 %v4561_v32 }
 0x5f8   : > { %v4738_v19 = vunpack.c.l.b16 %v4577_v14 }
 0x5f9   : > { %v4831_v12 = vunpack.c.l.b16 %v4589_v52  ;;  %v4938_v53 = vpack.c.b16 %v4928_v26, %v4927_v51  ;;  %v4649_v22 = vpack.c.b16 %v4641_v39, %v4640_v48  ;;  %v4500_v26 = vmul.f32 2.0, %v8706_v25 }
 0x5fa   : > { %v4746_v1 = vpack.c.b16 %v4738_v19, %v4737_v37 }
 0x5fb   : > { %v4841_v11 = vpack.c.b16 %v4831_v12, %v4830_v50  ;;  %v4484_v12 = vmul.f32 2.0, %v8704_v62  ;;  %v4501_v62 = vmul.f32 2.0, %v8716_v59  ;;  %v4514_v59 = vmul.f32 2.0, %v8728_v5 }
 0x5fc   : > { %v4472_v33 = vpop.f32.mrf.mxu3 }
 0x5fd   : > { %4885 = vmatmul.bf16.gmra.mxu2 %v4841_v11  ;;  %v4606_v29 = vpack.c.bf16 %v4472_v33, %v4472_v33 }
 0x5fe   : > { %4982 = vmatmul.bf16.gmra.mxu3 %v4938_v53  ;;  %v4375_v58 = vpop.f32.mrf.mxu2 }
 0x5ff   : > { %4701 = vmatmul.bf16.gmra.mxu0 %v4649_v22  ;;  %v4590_v40 = vpack.c.bf16 %v4375_v58, %v4375_v58  ;;  %v4929_v46 = vunpack.c.l.b16 %v4606_v29  ;;  %v4485_v22 = vmul.f32 2.0, %v8714_v28  ;;  %v4502_v29 = vmul.f32 2.0, %v8748_v18  ;;  %v10765_v18 = vld [vmem:[#allocation61_spill] sm:$0xff] }
 0x600   : > { %4798 = vmatmul.bf16.gmra.mxu1 %v4746_v1 }
 0x601   : > { %v4832_v20 = vunpack.c.l.b16 %v4590_v40  ;;  %v4486_v40 = vmul.f32 2.0, %v8746_v24 }
 0x604   : > { %v4474_v10 = vpop.f32.mrf.mxu3 }
 0x605   : > { %v4607_v27 = vpack.c.bf16 %v4474_v10, %v4474_v10 }
 0x606   : > { %v4377_v41 = vpop.f32.mrf.mxu2 }
 0x607   : > { %v4591_v56 = vpack.c.bf16 %v4377_v41, %v4377_v41  ;;  %v4930_v35 = vunpack.c.l.b16 %v4607_v27  ;;  %v10762_v27 = vld [vmem:[#allocation60_spill] sm:$0xff] }
 0x609   : > { %v4833_v31 = vunpack.c.l.b16 %v4591_v56  ;;  %v4939_v6 = vpack.c.b16 %v4930_v35, %v4929_v46 }
 0x60a   : > { %v4667_v44 = vpop.f32.mrf.mxu0 }
 0x60b   : > { %v4764_v49 = vpop.f32.mrf.mxu1  ;;  %v4842_v54 = vpack.c.b16 %v4833_v31, %v4832_v20  ;;  %v9166_v13 = vsub.f32 %v4482_v15, %v4667_v44  ;;  %v4530_v20 = vmul.f32 2.0, %v10762_v27  ;;  %v4487_v15 = vmul.f32 2.0, %v10765_v18 }
 0x60c   : > { %v9168_v42 = vsub.f32 %v4498_v7, %v4764_v49  ;;  %v4477_v61 = vpop.f32.mrf.mxu3  ;;  %v10766_v7 = vld [vmem:[#allocation66_spill] sm:$0xff] }
 0x60d   : > { %4890 = vmatmul.bf16.gmra.mxu2 %v4842_v54  ;;  %v4608_v14 = vpack.c.bf16 %v4477_v61, %v4477_v61  ;;  %v4503_v44 = vmul.f32 2.0, %v10766_v7 }
 0x60e   : > { %4987 = vmatmul.bf16.gmra.mxu3 %v4939_v6  ;;  %v4380_v0 = vpop.f32.mrf.mxu2 }
 0x60f   : > { %5078 = vmatmul.f32.vlgmr.msra.gmra.mxu0 %v9166_v13  ;;  %v4592_v32 = vpack.c.bf16 %v4380_v0, %v4380_v0  ;;  %v4931_v63 = vunpack.c.l.b16 %v4608_v14  ;;  %v10767_v0 = vld [vmem:[#allocation59_spill] sm:$0xff] }
 0x610   : > { %5143 = vmatmul.f32.vlgmr.msra.gmra.mxu1 %v9168_v42  ;;  %v4515_v61 = vmul.f32 2.0, %v10767_v0 }
 0x611   : > { %v4834_v50 = vunpack.c.l.b16 %v4592_v32 }
 0x612   : > { %v4669_v8 = vpop.f32.mrf.mxu0 }
 0x613   : > { %v4766_v2 = vpop.f32.mrf.mxu1  ;;  %v9174_v38 = vsub.f32 %v4483_v36, %v4669_v8  ;;  %v10768_v36 = vld [vmem:[#allocation62_spill] sm:$0xff] }
 0x614   : > { %v9176_v47 = vsub.f32 %v4499_v16, %v4766_v2  ;;  %v4479_v57 = vpop.f32.mrf.mxu3  ;;  %v4531_v16 = vmul.f32 2.0, %v10768_v36 }
 0x615   : > { %v4609_v17 = vpack.c.bf16 %v4479_v57, %v4479_v57 }
 0x616   : > { %v4382_v52 = vpop.f32.mrf.mxu2 }
 0x617   : > { %5081 = vmatmul.f32.gmra.mxu0 %v9174_v38  ;;  %v4593_v43 = vpack.c.bf16 %v4382_v52, %v4382_v52  ;;  %v4932_v45 = vunpack.c.l.b16 %v4609_v17  ;;  %v10771_v52 = vld [vmem:[#allocation67_spill] sm:$0xff] }
 0x618   : > { %5146 = vmatmul.f32.gmra.mxu1 %v9176_v47  ;;  %v4488_v57 = vmul.f32 2.0, %v10771_v52 }
 0x619   : > { %v4835_v51 = vunpack.c.l.b16 %v4593_v43  ;;  %v4940_v53 = vpack.c.b16 %v4932_v45, %v4931_v63  ;;  %v10772_v43 = vld [vmem:[#allocation69_spill] sm:$0xff] }
 0x61a   : > { %v4672_v39 = vpop.f32.mrf.mxu0  ;;  %v4504_v17 = vmul.f32 2.0, %v10772_v43 }
 0x61b   : > { %v4769_v19 = vpop.f32.mrf.mxu1  ;;  %v4843_v11 = vpack.c.b16 %v4835_v51, %v4834_v50  ;;  %v9182_v48 = vsub.f32 %v4484_v12, %v4672_v39  ;;  %v10773_v12 = vld [vmem:[#allocation65_spill] sm:$0xff]  ;;  %v10774_v39 = vld [vmem:[#allocation64_spill] sm:$0xff] }
 0x61c   : > { %v9184_v37 = vsub.f32 %v4500_v26, %v4769_v19  ;;  %v4516_v26 = vmul.f32 2.0, %v10773_v12  ;;  %v4532_v19 = vmul.f32 2.0, %v10774_v39 }
 0x61d   : > { %4895 = vmatmul.bf16.gmra.mxu2 %v4843_v11 }
 0x61e   : > { %4992 = vmatmul.bf16.gmra.mxu3 %v4940_v53 }
 0x61f   : > { %5084 = vmatmul.f32.gmra.mxu0 %v9182_v48 }
 0x620   : > { %5149 = vmatmul.f32.gmra.mxu1 %v9184_v37 }
 0x622   : > { %v4674_v1 = vpop.f32.mrf.mxu0 }
 0x623   : > { %v4771_v25 = vpop.f32.mrf.mxu1  ;;  %v9190_v58 = vsub.f32 %v4485_v22, %v4674_v1  ;;  %v10777_v1 = vld [vmem:[#allocation14_spill] sm:$0xff] }
 0x624   : > { %v9192_v33 = vsub.f32 %v4501_v62, %v4771_v25  ;;  %v4489_v25 = vmul.f32 2.0, %v10777_v1 }
 0x627   : > { %5087 = vmatmul.f32.gmra.mxu0 %v9190_v58 }
 0x628   : > { %5152 = vmatmul.f32.gmra.mxu1 %v9192_v33 }
 0x62c   : > { %v4677_v41 = vpop.f32.mrf.mxu0 }
 0x62d   : > { %v4774_v10 = vpop.f32.mrf.mxu1  ;;  %v9198_v56 = vsub.f32 %v4486_v40, %v4677_v41  ;;  %v10778_v40 = vld [vmem:[#allocation73_spill] sm:$0xff] }
 0x62e   : > { %v9200_v28 = vsub.f32 %v4502_v29, %v4774_v10  ;;  %v4505_v29 = vmul.f32 2.0, %v10778_v40 }
 0x62f   : > { %5090 = vmatmul.f32.gmra.mxu0 %v9198_v56 }
 0x630   : > { %5155 = vmatmul.f32.gmra.mxu1 %v9200_v28  ;;  %v4861_v46 = vpop.f32.mrf.mxu2 }
 0x631   : > { %v4958_v31 = vpop.f32.mrf.mxu3  ;;  %v9206_v35 = vsub.f32 %v4514_v59, %v4861_v46 }
 0x632   : > { %v9208_v24 = vsub.f32 %v4530_v20, %v4958_v31  ;;  %v10779_v20 = vld [vmem:[#allocation63_spill] sm:$0xff]  ;;  %v10780_v31 = vld [vmem:[#allocation68_spill] sm:$0xff] }
 0x633   : > { %10763 = vst [vmem:[#allocation19_spill] sm:$0xff] %v9206_v35  ;;  %5208 = vmatmul.f32.vlgmr.msra.gmra.mxu2 %v9206_v35  ;;  %v4517_v46 = vmul.f32 2.0, %v10779_v20  ;;  %v4533_v18 = vmul.f32 2.0, %v10780_v31 }
 0x634   : > { %10764 = vst [vmem:[#allocation20_spill] sm:$0xff] %v9208_v24  ;;  %5273 = vmatmul.f32.vlgmr.msra.gmra.mxu3 %v9208_v24  ;;  %v4679_v5 = vpop.f32.mrf.mxu0 }
 0x635   : > { %v4776_v49 = vpop.f32.mrf.mxu1  ;;  %v9214_v54 = vsub.f32 %v4487_v15, %v4679_v5 }
 0x636   : > { %v9216_v6 = vsub.f32 %v4503_v44, %v4776_v49  ;;  %v10783_v49 = vld [vmem:[#allocation18_spill] sm:$0xff] }
 0x637   : > { %5093 = vmatmul.f32.gmra.mxu0 %v9214_v54  ;;  %v4490_v0 = vmul.f32 2.0, %v10783_v49 }
 0x638   : > { %5158 = vmatmul.f32.gmra.mxu1 %v9216_v6  ;;  %v4863_v8 = vpop.f32.mrf.mxu2 }
 0x639   : > { %v4960_v2 = vpop.f32.mrf.mxu3  ;;  %v9222_v32 = vsub.f32 %v4515_v61, %v4863_v8  ;;  %v10784_v61 = vld [vmem:[#allocation21_spill] sm:$0xff] }
 0x63a   : > { %v9224_v14 = vsub.f32 %v4531_v16, %v4960_v2  ;;  %v4506_v36 = vmul.f32 2.0, %v10784_v61 }
 0x63b   : > { %10769 = vst [vmem:[#allocation23_spill] sm:$0xff] %v9222_v32  ;;  %5211 = vmatmul.f32.gmra.mxu2 %v9222_v32  ;;  %v10812_v32 = vld [vmem:[#allocation97_spill] sm:$0xff] }
 0x63c   : > { %10770 = vst [vmem:[#allocation74_spill] sm:$0xff] %v9224_v14  ;;  %5276 = vmatmul.f32.gmra.mxu3 %v9224_v14  ;;  %v4682_v50 = vpop.f32.mrf.mxu0 }
 0x63d   : > { %v4779_v63 = vpop.f32.mrf.mxu1  ;;  %v9230_v51 = vsub.f32 %v4488_v57, %v4682_v50  ;;  %v10785_v57 = vld [vmem:[#allocation72_spill] sm:$0xff] }
 0x63e   : > { %v9232_v45 = vsub.f32 %v4504_v17, %v4779_v63  ;;  %v4518_v43 = vmul.f32 2.0, %v10785_v57  ;;  %v10786_v17 = vld [vmem:[#allocation71_spill] sm:$0xff] }
 0x63f   : > { %5096 = vmatmul.f32.gmra.mxu0 %v9230_v51  ;;  %v4534_v50 = vmul.f32 2.0, %v10786_v17 }
 0x640   : > { %5161 = vmatmul.f32.gmra.mxu1 %v9232_v45  ;;  %v4866_v11 = vpop.f32.mrf.mxu2 }
 0x641   : > { %v4963_v53 = vpop.f32.mrf.mxu3  ;;  %v9238_v22 = vsub.f32 %v4516_v26, %v4866_v11 }
 0x642   : > { %v9240_v62 = vsub.f32 %v4532_v19, %v4963_v53  ;;  %v10788_v19 = vld [vmem:[#allocation22_spill] sm:$0xff]  ;;  %v10789_v53 = vld [vmem:[#allocation157_spill] sm:$0xff] }
 0x643   : > { %10775 = vst [vmem:[#allocation82_spill] sm:$0xff] %v9238_v22  ;;  %5214 = vmatmul.f32.gmra.mxu2 %v9238_v22  ;;  %v4491_v11 = vmul.f32 2.0, %v10788_v19  ;;  %v4507_v1 = vmul.f32 2.0, %v10789_v53 }
 0x644   : > { %10776 = vst [vmem:[#allocation80_spill] sm:$0xff] %v9240_v62  ;;  %5279 = vmatmul.f32.gmra.mxu3 %v9240_v62  ;;  %v4684_v41 = vpop.f32.mrf.mxu0  ;;  %v4496_v62 = vmul.f32 2.0, %v10812_v32 }
 0x645   : > { %v4781_v10 = vpop.f32.mrf.mxu1  ;;  %v9246_v59 = vsub.f32 %v4489_v25, %v4684_v41 }
 0x646   : > { %v9248_v27 = vsub.f32 %v4505_v29, %v4781_v10  ;;  %v10790_v10 = vld [vmem:[#allocation70_spill] sm:$0xff] }
 0x647   : > { %5099 = vmatmul.f32.gmra.mxu0 %v9246_v59  ;;  %v4519_v20 = vmul.f32 2.0, %v10790_v10 }
 0x648   : > { %5164 = vmatmul.f32.gmra.mxu1 %v9248_v27  ;;  %v4868_v15 = vpop.f32.mrf.mxu2 }
 0x649   : > { %v4965_v7 = vpop.f32.mrf.mxu3  ;;  %v9254_v44 = vsub.f32 %v4517_v46, %v4868_v15  ;;  %v10791_v46 = vld [vmem:[#allocation17_spill] sm:$0xff] }
 0x64a   : > { %v9256_v5 = vsub.f32 %v4533_v18, %v4965_v7  ;;  %v4535_v31 = vmul.f32 2.0, %v10791_v46 }
 0x64b   : > { %10781 = vst [vmem:[#allocation90_spill] sm:$0xff] %v9254_v44  ;;  %5217 = vmatmul.f32.gmra.mxu2 %v9254_v44  ;;  %v4497_v44 = vmul.f32 2.0, %v9014_v34 }
 0x64c   : > { %10782 = vst [vmem:[#allocation87_spill] sm:$0xff] %v9256_v5  ;;  %5282 = vmatmul.f32.gmra.mxu3 %v9256_v5  ;;  %v4687_v16 = vpop.f32.mrf.mxu0 }
 0x64d   : > { %v4784_v8 = vpop.f32.mrf.mxu1  ;;  %v9262_v2 = vsub.f32 %v4490_v0, %v4687_v16  ;;  %v10792_v0 = vld [vmem:[#allocation160_spill] sm:$0xff] }
 0x64e   : > { %v9264_v52 = vsub.f32 %v4506_v36, %v4784_v8  ;;  %v4492_v61 = vmul.f32 2.0, %v10792_v0  ;;  %v10793_v36 = vld [vmem:[#allocation102_spill] sm:$0xff] }
 0x64f   : > { %5102 = vmatmul.f32.gmra.mxu0 %v9262_v2  ;;  %v4508_v16 = vmul.f32 2.0, %v10793_v36 }
 0x650   : > { %5167 = vmatmul.f32.gmra.mxu1 %v9264_v52  ;;  %v4871_v63 = vpop.f32.mrf.mxu2 }
 0x651   : > { %v4968_v12 = vpop.f32.mrf.mxu3  ;;  %v9270_v26 = vsub.f32 %v4518_v43, %v4871_v63 }
 0x652   : > { %v9272_v39 = vsub.f32 %v4534_v50, %v4968_v12  ;;  %v10794_v50 = vld [vmem:[#allocation158_spill] sm:$0xff]  ;;  %v10795_v12 = vld [vmem:[#allocation112_spill] sm:$0xff] }
 0x653   : > { %5220 = vmatmul.f32.gmra.mxu2 %v9270_v26  ;;  %v4520_v63 = vmul.f32 2.0, %v10794_v50  ;;  %v4536_v19 = vmul.f32 2.0, %v10795_v12 }
 0x654   : > { %10787 = vst [vmem:[#allocation79_spill] sm:$0xff] %v9272_v39  ;;  %5285 = vmatmul.f32.gmra.mxu3 %v9272_v39  ;;  %v4689_v25 = vpop.f32.mrf.mxu0 }
 0x655   : > { %v4786_v40 = vpop.f32.mrf.mxu1  ;;  %v9278_v29 = vsub.f32 %v4491_v11, %v4689_v25 }
 0x656   : > { %v9280_v41 = vsub.f32 %v4507_v1, %v4786_v40  ;;  %v10796_v40 = vld [vmem:[#allocation103_spill] sm:$0xff] }
 0x657   : > { %5105 = vmatmul.f32.gmra.mxu0 %v9278_v29  ;;  %v4493_v10 = vmul.f32 2.0, %v10796_v40 }
 0x658   : > { %5170 = vmatmul.f32.gmra.mxu1 %v9280_v41  ;;  %v4873_v18 = vpop.f32.mrf.mxu2 }
 0x659   : > { %v4970_v15 = vpop.f32.mrf.mxu3  ;;  %v9286_v7 = vsub.f32 %v4519_v20, %v4873_v18  ;;  %v10797_v20 = vld [vmem:[#allocation161_spill] sm:$0xff] }
 0x65a   : > { %v9288_v49 = vsub.f32 %v4535_v31, %v4970_v15  ;;  %v4509_v46 = vmul.f32 2.0, %v10797_v20 }
 0x65b   : > { %5223 = vmatmul.f32.gmra.mxu2 %v9286_v7 }
 0x65c   : > { %5288 = vmatmul.f32.gmra.mxu3 %v9288_v49  ;;  %v4692_v8 = vpop.f32.mrf.mxu0 }
 0x65d   : > { %v4789_v57 = vpop.f32.mrf.mxu1  ;;  %v9294_v43 = vsub.f32 %v4492_v61, %v4692_v8  ;;  %v10798_v61 = vld [vmem:[#allocation113_spill] sm:$0xff] }
 0x65e   : > { %v9296_v17 = vsub.f32 %v4508_v16, %v4789_v57  ;;  %v4521_v36 = vmul.f32 2.0, %v10798_v61  ;;  %v10799_v16 = vld [vmem:[#allocation159_spill] sm:$0xff] }
 0x65f   : > { %5108 = vmatmul.f32.gmra.mxu0 %v9294_v43  ;;  %v4537_v8 = vmul.f32 2.0, %v10799_v16 }
 0x660   : > { %5173 = vmatmul.f32.gmra.mxu1 %v9296_v17  ;;  %v4876_v11 = vpop.f32.mrf.mxu2 }
 0x661   : > { %v4973_v53 = vpop.f32.mrf.mxu3  ;;  %v9302_v1 = vsub.f32 %v4520_v63, %v4876_v11 }
 0x662   : > { %v9304_v25 = vsub.f32 %v4536_v19, %v4973_v53  ;;  %v10800_v19 = vld [vmem:[#allocation129_spill] sm:$0xff]  ;;  %v10801_v53 = vld [vmem:[#allocation116_spill] sm:$0xff] }
 0x663   : > { %5226 = vmatmul.f32.gmra.mxu2 %v9302_v1  ;;  %v4494_v11 = vmul.f32 2.0, %v10800_v19  ;;  %v4510_v40 = vmul.f32 2.0, %v10801_v53  ;;  %v10805_v53 = vld [vmem:[#allocation117_spill] sm:$0xff] }
 0x664   : > { %5291 = vmatmul.f32.gmra.mxu3 %v9304_v25  ;;  %v4694_v31 = vpop.f32.mrf.mxu0  ;;  %v4495_v24 = vmul.f32 2.0, %v10805_v53 }
 0x665   : > { %v4791_v18 = vpop.f32.mrf.mxu1  ;;  %v9310_v15 = vsub.f32 %v4493_v10, %v4694_v31 }
 0x666   : > { %v9312_v0 = vsub.f32 %v4509_v46, %v4791_v18  ;;  %v10802_v18 = vld [vmem:[#allocation162_spill] sm:$0xff] }
 0x667   : > { %5111 = vmatmul.f32.gmra.mxu0 %v9310_v15  ;;  %v4522_v61 = vmul.f32 2.0, %v10802_v18 }
 0x668   : > { %5176 = vmatmul.f32.gmra.mxu1 %v9312_v0  ;;  %v4878_v57 = vpop.f32.mrf.mxu2 }
 0x669   : > { %v4975_v50 = vpop.f32.mrf.mxu3  ;;  %v9318_v63 = vsub.f32 %v4521_v36, %v4878_v57  ;;  %v10803_v36 = vld [vmem:[#allocation138_spill] sm:$0xff] }
 0x66a   : > { %v9320_v12 = vsub.f32 %v4537_v8, %v4975_v50  ;;  %v4538_v16 = vmul.f32 2.0, %v10803_v36 }
 0x66b   : > { %5229 = vmatmul.f32.gmra.mxu2 %v9318_v63 }
 0x66c   : > { %5294 = vmatmul.f32.gmra.mxu3 %v9320_v12  ;;  %v4697_v10 = vpop.f32.mrf.mxu0 }
 0x66d   : > { %v4794_v20 = vpop.f32.mrf.mxu1  ;;  %v9326_v46 = vsub.f32 %v4494_v11, %v4697_v10  ;;  %v10806_v11 = vld [vmem:[#allocation104_spill] sm:$0xff] }
 0x66e   : > { %v9328_v31 = vsub.f32 %v4510_v40, %v4794_v20  ;;  %v4511_v10 = vmul.f32 2.0, %v10806_v11 }
 0x66f   : > { %5114 = vmatmul.f32.gmra.mxu0 %v9326_v46 }
 0x670   : > { %5179 = vmatmul.f32.gmra.mxu1 %v9328_v31  ;;  %v4881_v8 = vpop.f32.mrf.mxu2 }
 0x671   : > { %v4978_v57 = vpop.f32.mrf.mxu3  ;;  %v9334_v50 = vsub.f32 %v4522_v61, %v4881_v8  ;;  %v10808_v61 = vld [vmem:[#allocation163_spill] sm:$0xff]  ;;  %v10809_v8 = vld [vmem:[#allocation128_spill] sm:$0xff] }
 0x672   : > { %v9336_v19 = vsub.f32 %v4538_v16, %v4978_v57  ;;  %v4523_v16 = vmul.f32 2.0, %v10808_v61  ;;  %v4539_v57 = vmul.f32 2.0, %v10809_v8  ;;  %v10816_v8 = vld [vmem:[#allocation105_spill] sm:$0xff] }
 0x673   : > { %5232 = vmatmul.f32.gmra.mxu2 %v9334_v50  ;;  %v4524_v5 = vmul.f32 2.0, %v10816_v8 }
 0x674   : > { %10804 = vst [vmem:[#allocation78_spill] sm:$0xff] %v9336_v19  ;;  %5297 = vmatmul.f32.gmra.mxu3 %v9336_v19  ;;  %v4699_v40 = vpop.f32.mrf.mxu0 }
 0x675   : > { %v4796_v20 = vpop.f32.mrf.mxu1  ;;  %v9342_v18 = vsub.f32 %v4495_v24, %v4699_v40  ;;  %v10813_v24 = vld [vmem:[#allocation15_spill] sm:$0xff] }
 0x676   : > { %v9344_v36 = vsub.f32 %v4511_v10, %v4796_v20  ;;  %v4512_v40 = vmul.f32 2.0, %v10813_v24 }
 0x677   : > { %5117 = vmatmul.f32.gmra.mxu0 %v9342_v18 }
 0x678   : > { %10807 = vst [vmem:[#allocation125_spill] sm:$0xff] %v9344_v36  ;;  %5182 = vmatmul.f32.gmra.mxu1 %v9344_v36  ;;  %v4883_v53 = vpop.f32.mrf.mxu2 }
 0x679   : > { %v4980_v11 = vpop.f32.mrf.mxu3  ;;  %v9350_v35 = vsub.f32 %v4523_v16, %v4883_v53  ;;  %v10817_v16 = vld [vmem:[#allocation96_spill] sm:$0xff] }
 0x67a   : > { %v9352_v14 = vsub.f32 %v4539_v57, %v4980_v11  ;;  %v4540_v53 = vmul.f32 2.0, %v10817_v16 }
 0x67b   : > { %10810 = vst [vmem:[#allocation126_spill] sm:$0xff] %v9350_v35  ;;  %5235 = vmatmul.f32.gmra.mxu2 %v9350_v35 }
 0x67c   : > { %10811 = vst [vmem:[#allocation86_spill] sm:$0xff] %v9352_v14  ;;  %5300 = vmatmul.f32.gmra.mxu3 %v9352_v14  ;;  %v4702_v10 = vpop.f32.mrf.mxu0 }
 0x67d   : > { %v4799_v20 = vpop.f32.mrf.mxu1  ;;  %v9358_v22 = vsub.f32 %v4496_v62, %v4702_v10  ;;  %v10820_v62 = vld [vmem:[#allocation25_spill] sm:$0xff] }
 0x67e   : > { %v9360_v61 = vsub.f32 %v4512_v40, %v4799_v20  ;;  %v4513_v10 = vmul.f32 2.0, %v10820_v62 }
 0x67f   : > { %10814 = vst [vmem:[#allocation83_spill] sm:$0xff] %v9358_v22  ;;  %5120 = vmatmul.f32.gmra.mxu0 %v9358_v22 }
 0x680   : > { %10815 = vst [vmem:[#allocation53_spill] sm:$0xff] %v9360_v61  ;;  %5185 = vmatmul.f32.gmra.mxu1 %v9360_v61  ;;  %v4886_v32 = vpop.f32.mrf.mxu2 }
 0x681   : > { %v4983_v57 = vpop.f32.mrf.mxu3  ;;  %v9366_v11 = vsub.f32 %v4524_v5, %v4886_v32  ;;  %v10823_v5 = vld [vmem:[#allocation16_spill] sm:$0xff] }
 0x682   : > { %v9368_v24 = vsub.f32 %v4540_v53, %v4983_v57  ;;  %v4525_v53 = vmul.f32 2.0, %v10823_v5  ;;  %v10824_v32 = vld [vmem:[#allocation24_spill] sm:$0xff]  ;;  %v4542_v5 = vmul.f32 2.0, %v9032_v23 }
 0x683   : > { %10818 = vst [vmem:[#allocation134_spill] sm:$0xff] %v9366_v11  ;;  %5238 = vmatmul.f32.gmra.mxu2 %v9366_v11  ;;  %v4541_v34 = vmul.f32 2.0, %v10824_v32 }
 0x684   : > { %10819 = vst [vmem:[#allocation135_spill] sm:$0xff] %v9368_v24  ;;  %5303 = vmatmul.f32.gmra.mxu3 %v9368_v24  ;;  %v4704_v40 = vpop.f32.mrf.mxu0 }
 0x685   : > { %v4801_v20 = vpop.f32.mrf.mxu1  ;;  %v9374_v8 = vsub.f32 %v4497_v44, %v4704_v40 }
 0x686   : > { %v9376_v16 = vsub.f32 %v4513_v10, %v4801_v20  ;;  %v4526_v20 = vmul.f32 2.0, %v9030_v30 }
 0x687   : > { %10821 = vst [vmem:[#allocation168_spill] sm:$0xff] %v9374_v8  ;;  %5123 = vmatmul.f32.gmra.mxu0 %v9374_v8 }
 0x688   : > { %10822 = vst [vmem:[#allocation171_spill] sm:$0xff] %v9376_v16  ;;  %5188 = vmatmul.f32.gmra.mxu1 %v9376_v16  ;;  %5386 = vmatpush.msrb.mxu0 %v9374_v8  ;;  %v4888_v57 = vpop.f32.mrf.mxu2 }
 0x689   : > { %5451 = vmatpush.msrb.mxu1 %v9376_v16  ;;  %v4985_v62 = vpop.f32.mrf.mxu3  ;;  %v9384_v39 = vsub.f32 %v4525_v53, %v4888_v57 }
 0x68a   : > { %v9386_v44 = vsub.f32 %v4541_v34, %v4985_v62  ;;  %5387 = vmatpush.msrb.mxu0 %v9358_v22  ;;  %v4527_v62 = vmul.f32 2.0, %v9040_v4 }
 0x68b   : > { %10825 = vst [vmem:[#allocation164_spill] sm:$0xff] %v9384_v39  ;;  %5452 = vmatpush.msrb.mxu1 %v9360_v61  ;;  %5241 = vmatmul.f32.gmra.mxu2 %v9384_v39 }
 0x68c   : > { %10826 = vst [vmem:[#allocation169_spill] sm:$0xff] %v9386_v44  ;;  %5306 = vmatmul.f32.gmra.mxu3 %v9386_v44  ;;  %5388 = vmatpush.msrb.mxu0 %v9342_v18  ;;  %v5079_v10 = vpop.f32.mrf.mxu0 }
 0x68d   : > { %5453 = vmatpush.msrb.mxu1 %v9344_v36  ;;  %v5144_v40 = vpop.f32.mrf.mxu1 }
 0x68e   : > { %5389 = vmatpush.msrb.mxu0 %v9326_v46 }
 0x68f   : > { %5454 = vmatpush.msrb.mxu1 %v9328_v31 }
 0x690   : > { %5390 = vmatpush.msrb.mxu0 %v9310_v15  ;;  %v4891_v53 = vpop.f32.mrf.mxu2 }
 0x691   : > { %5455 = vmatpush.msrb.mxu1 %v9312_v0  ;;  %v4988_v32 = vpop.f32.mrf.mxu3  ;;  %v9400_v34 = vsub.f32 %v4526_v20, %v4891_v53  ;;  %v4543_v20 = vmul.f32 2.0, %v9042_v60 }
 0x692   : > { %v9402_v57 = vsub.f32 %v4542_v5, %v4988_v32  ;;  %5391 = vmatpush.msrb.mxu0 %v9294_v43 }
 0x693   : > { %10827 = vst [vmem:[#allocation170_spill] sm:$0xff] %v9400_v34  ;;  %5456 = vmatpush.msrb.mxu1 %v9296_v17  ;;  %5244 = vmatmul.f32.gmra.mxu2 %v9400_v34 }
 0x694   : > { %10828 = vst [vmem:[#allocation167_spill] sm:$0xff] %v9402_v57  ;;  %5309 = vmatmul.f32.gmra.mxu3 %v9402_v57  ;;  %5392 = vmatpush.msrb.mxu0 %v9278_v29  ;;  %v5082_v30 = vpop.f32.mrf.mxu0 }
 0x695   : > { %5457 = vmatpush.msrb.mxu1 %v9280_v41  ;;  %v5147_v23 = vpop.f32.mrf.mxu1 }
 0x696   : > { %5393 = vmatpush.msrb.mxu0 %v9262_v2 }
 0x697   : > { %5458 = vmatpush.msrb.mxu1 %v9264_v52 }
 0x698   : > { %5394 = vmatpush.msrb.mxu0 %v9246_v59  ;;  %v4893_v5 = vpop.f32.mrf.mxu2 }
 0x699   : > { %5459 = vmatpush.msrb.mxu1 %v9248_v27  ;;  %v4990_v53 = vpop.f32.mrf.mxu3  ;;  %v9416_v32 = vsub.f32 %v4527_v62, %v4893_v5  ;;  %v4528_v62 = vmul.f32 2.0, %v9062_v3 }
 0x69a   : > { %v9418_v16 = vsub.f32 %v4543_v20, %v4990_v53  ;;  %5395 = vmatpush.msrb.mxu0 %v9230_v51  ;;  %v4544_v20 = vmul.f32 2.0, %v9064_v9 }
 0x69b   : > { %10829 = vst [vmem:[#allocation36_spill] sm:$0xff] %v9416_v32  ;;  %5460 = vmatpush.msrb.mxu1 %v9232_v45  ;;  %5247 = vmatmul.f32.gmra.mxu2 %v9416_v32 }
 0x69c   : > { %10830 = vst [vmem:[#allocation165_spill] sm:$0xff] %v9418_v16  ;;  %5312 = vmatmul.f32.gmra.mxu3 %v9418_v16  ;;  %5396 = vmatpush.msrb.mxu0 %v9214_v54  ;;  %v5085_v4 = vpop.f32.mrf.mxu0 }
 0x69d   : > { %5461 = vmatpush.msrb.mxu1 %v9216_v6  ;;  %v5150_v60 = vpop.f32.mrf.mxu1 }
 0x69e   : > { %5397 = vmatpush.msrb.mxu0 %v9198_v56 }
 0x69f   : > { %5462 = vmatpush.msrb.mxu1 %v9200_v28 }
 0x6a0   : > { %5398 = vmatpush.msrb.mxu0 %v9190_v58  ;;  %v4896_v5 = vpop.f32.mrf.mxu2 }
 0x6a1   : > { %5463 = vmatpush.msrb.mxu1 %v9192_v33  ;;  %v4993_v53 = vpop.f32.mrf.mxu3  ;;  %v9432_v8 = vsub.f32 %v4528_v62, %v4896_v5  ;;  %v4529_v62 = vmul.f32 2.0, %v9074_v55 }
 0x6a2   : > { %v9434_v61 = vsub.f32 %v4544_v20, %v4993_v53  ;;  %5399 = vmatpush.msrb.mxu0 %v9182_v48  ;;  %v4545_v20 = vmul.f32 2.0, %v9076_v21 }
 0x6a3   : > { %10831 = vst [vmem:[#allocation166_spill] sm:$0xff] %v9432_v8  ;;  %5464 = vmatpush.msrb.mxu1 %v9184_v37  ;;  %5250 = vmatmul.f32.gmra.mxu2 %v9432_v8 }
 0x6a4   : > { %10832 = vst [vmem:[#allocation39_spill] sm:$0xff] %v9434_v61  ;;  %5315 = vmatmul.f32.gmra.mxu3 %v9434_v61  ;;  %5400 = vmatpush.msrb.mxu0 %v9174_v38  ;;  %v5088_v3 = vpop.f32.mrf.mxu0 }
 0x6a5   : > { %5465 = vmatpush.msrb.mxu1 %v9176_v47  ;;  %v5153_v9 = vpop.f32.mrf.mxu1 }
 0x6a6   : > { %5401 = vmatpush.msrb.mxu0 %v9166_v13 }
 0x6a7   : > { %5466 = vmatpush.msrb.mxu1 %v9168_v42  ;;  %5402 = vmatmul.f32.vlgmr.msrb.gmra.mxu0 %v5079_v10 }
 0x6a8   : > { %5467 = vmatmul.f32.vlgmr.msrb.gmra.mxu1 %v5144_v40  ;;  %v4898_v5 = vpop.f32.mrf.mxu2 }
 0x6a9   : > { %v4995_v53 = vpop.f32.mrf.mxu3  ;;  %v9446_v22 = vsub.f32 %v4529_v62, %v4898_v5  ;;  %v10835_v5 = vld [vmem:[#allocation79_spill] sm:$0xff] }
 0x6aa   : > { %v9448_v36 = vsub.f32 %v4545_v20, %v4995_v53  ;;  %v10836_v53 = vld [vmem:[#allocation90_spill] sm:$0xff] }
 0x6ab   : > { %10833 = vst [vmem:[#allocation34_spill] sm:$0xff] %v9446_v22  ;;  %5253 = vmatmul.f32.gmra.mxu2 %v9446_v22 }
 0x6ac   : > { %10834 = vst [vmem:[#allocation35_spill] sm:$0xff] %v9448_v36  ;;  %5318 = vmatmul.f32.gmra.mxu3 %v9448_v36  ;;  %5516 = vmatpush.msrb.mxu2 %v9446_v22  ;;  %v5091_v10 = vpop.f32.mrf.mxu0  ;;  %v10838_v22 = vld [vmem:[#allocation82_spill] sm:$0xff] }
 0x6ad   : > { %5581 = vmatpush.msrb.mxu3 %v9448_v36  ;;  %v5156_v40 = vpop.f32.mrf.mxu1  ;;  %v10837_v36 = vld [vmem:[#allocation87_spill] sm:$0xff] }
 0x6ae   : > { %5517 = vmatpush.msrb.mxu2 %v9432_v8  ;;  %v10840_v8 = vld [vmem:[#allocation23_spill] sm:$0xff] }
 0x6af   : > { %5582 = vmatpush.msrb.mxu3 %v9434_v61  ;;  %5405 = vmatmul.f32.gmra.mxu0 %v5082_v30  ;;  %v10839_v61 = vld [vmem:[#allocation80_spill] sm:$0xff] }
 0x6b0   : > { %5470 = vmatmul.f32.gmra.mxu1 %v5147_v23  ;;  %5518 = vmatpush.msrb.mxu2 %v9416_v32  ;;  %v10842_v32 = vld [vmem:[#allocation19_spill] sm:$0xff] }
 0x6b1   : > { %5583 = vmatpush.msrb.mxu3 %v9418_v16  ;;  %v10841_v16 = vld [vmem:[#allocation74_spill] sm:$0xff] }
 0x6b2   : > { %5519 = vmatpush.msrb.mxu2 %v9400_v34 }
 0x6b3   : > { %5584 = vmatpush.msrb.mxu3 %v9402_v57  ;;  %v10843_v57 = vld [vmem:[#allocation20_spill] sm:$0xff] }
 0x6b4   : > { %5520 = vmatpush.msrb.mxu2 %v9384_v39  ;;  %v5094_v30 = vpop.f32.mrf.mxu0 }
 0x6b5   : > { %5585 = vmatpush.msrb.mxu3 %v9386_v44  ;;  %v5159_v23 = vpop.f32.mrf.mxu1 }
 0x6b6   : > { %5521 = vmatpush.msrb.mxu2 %v9366_v11  ;;  %v5209_v55 = vpop.f32.mrf.mxu2 }
 0x6b7   : > { %5586 = vmatpush.msrb.mxu3 %v9368_v24  ;;  %v5274_v21 = vpop.f32.mrf.mxu3  ;;  %5408 = vmatmul.f32.gmra.mxu0 %v5085_v4 }
 0x6b8   : > { %5473 = vmatmul.f32.gmra.mxu1 %v5150_v60  ;;  %5522 = vmatpush.msrb.mxu2 %v9350_v35 }
 0x6b9   : > { %5587 = vmatpush.msrb.mxu3 %v9352_v14 }
 0x6ba   : > { %5523 = vmatpush.msrb.mxu2 %v9334_v50 }
 0x6bb   : > { %5588 = vmatpush.msrb.mxu3 %v9336_v19 }
 0x6bc   : > { %5524 = vmatpush.msrb.mxu2 %v9318_v63  ;;  %v5097_v4 = vpop.f32.mrf.mxu0 }
 0x6bd   : > { %5589 = vmatpush.msrb.mxu3 %v9320_v12  ;;  %v5162_v60 = vpop.f32.mrf.mxu1 }
 0x6be   : > { %5525 = vmatpush.msrb.mxu2 %v9302_v1  ;;  %v5212_v62 = vpop.f32.mrf.mxu2 }
 0x6bf   : > { %5590 = vmatpush.msrb.mxu3 %v9304_v25  ;;  %v5277_v20 = vpop.f32.mrf.mxu3  ;;  %5411 = vmatmul.f32.gmra.mxu0 %v5088_v3 }
 0x6c0   : > { %5476 = vmatmul.f32.gmra.mxu1 %v5153_v9  ;;  %5526 = vmatpush.msrb.mxu2 %v9286_v7 }
 0x6c1   : > { %5591 = vmatpush.msrb.mxu3 %v9288_v49 }
 0x6c2   : > { %5527 = vmatpush.msrb.mxu2 %v9270_v26 }
 0x6c3   : > { %5592 = vmatpush.msrb.mxu3 %v10835_v5 }
 0x6c4   : > { %5528 = vmatpush.msrb.mxu2 %v10836_v53  ;;  %v5100_v34 = vpop.f32.mrf.mxu0 }
 0x6c5   : > { %5593 = vmatpush.msrb.mxu3 %v10837_v36  ;;  %v5165_v44 = vpop.f32.mrf.mxu1 }
 0x6c6   : > { %5529 = vmatpush.msrb.mxu2 %v10838_v22  ;;  %v5215_v3 = vpop.f32.mrf.mxu2 }
 0x6c7   : > { %5594 = vmatpush.msrb.mxu3 %v10839_v61  ;;  %v5280_v9 = vpop.f32.mrf.mxu3  ;;  %5414 = vmatmul.f32.gmra.mxu0 %v5091_v10 }
 0x6c8   : > { %5479 = vmatmul.f32.gmra.mxu1 %v5156_v40  ;;  %5530 = vmatpush.msrb.mxu2 %v10840_v8 }
 0x6c9   : > { %5595 = vmatpush.msrb.mxu3 %v10841_v16 }
 0x6ca   : > { %5531 = vmatpush.msrb.mxu2 %v10842_v32 }
 0x6cb   : > { %5596 = vmatpush.msrb.mxu3 %v10843_v57  ;;  %5532 = vmatmul.f32.vlgmr.msrb.gmra.mxu2 %v5209_v55 }
 0x6cc   : > { %5597 = vmatmul.f32.vlgmr.msrb.gmra.mxu3 %v5274_v21  ;;  %v5103_v10 = vpop.f32.mrf.mxu0 }
 0x6cd   : > { %v5168_v40 = vpop.f32.mrf.mxu1 }
 0x6ce   : > { %v5218_v39 = vpop.f32.mrf.mxu2 }
 0x6cf   : > { %v5283_v24 = vpop.f32.mrf.mxu3  ;;  %5417 = vmatmul.f32.gmra.mxu0 %v5094_v30 }
 0x6d0   : > { %5482 = vmatmul.f32.gmra.mxu1 %v5159_v23 }
 0x6d3   : > { %5535 = vmatmul.f32.gmra.mxu2 %v5212_v62 }
 0x6d4   : > { %5600 = vmatmul.f32.gmra.mxu3 %v5277_v20  ;;  %v5106_v55 = vpop.f32.mrf.mxu0 }
 0x6d5   : > { %v5171_v21 = vpop.f32.mrf.mxu1 }
 0x6d6   : > { %v5221_v11 = vpop.f32.mrf.mxu2 }
 0x6d7   : > { %v5286_v14 = vpop.f32.mrf.mxu3  ;;  %5420 = vmatmul.f32.gmra.mxu0 %v5097_v4 }
 0x6d8   : > { %5485 = vmatmul.f32.gmra.mxu1 %v5162_v60 }
 0x6db   : > { %5538 = vmatmul.f32.gmra.mxu2 %v5215_v3 }
 0x6dc   : > { %5603 = vmatmul.f32.gmra.mxu3 %v5280_v9  ;;  %v5109_v62 = vpop.f32.mrf.mxu0 }
 0x6dd   : > { %v5174_v20 = vpop.f32.mrf.mxu1 }
 0x6de   : > { %v5224_v35 = vpop.f32.mrf.mxu2 }
 0x6df   : > { %v5289_v19 = vpop.f32.mrf.mxu3  ;;  %5423 = vmatmul.f32.gmra.mxu0 %v5100_v34 }
 0x6e0   : > { %5488 = vmatmul.f32.gmra.mxu1 %v5165_v44 }
 0x6e3   : > { %5541 = vmatmul.f32.gmra.mxu2 %v5218_v39 }
 0x6e4   : > { %5606 = vmatmul.f32.gmra.mxu3 %v5283_v24  ;;  %v5112_v34 = vpop.f32.mrf.mxu0 }
 0x6e5   : > { %v5177_v44 = vpop.f32.mrf.mxu1 }
 0x6e6   : > { %v5227_v30 = vpop.f32.mrf.mxu2 }
 0x6e7   : > { %5426 = vmatmul.f32.gmra.mxu0 %v5103_v10  ;;  %v5292_v23 = vpop.f32.mrf.mxu3 }
 0x6e8   : > { %5491 = vmatmul.f32.gmra.mxu1 %v5168_v40 }
 0x6eb   : > { %5544 = vmatmul.f32.gmra.mxu2 %v5221_v11 }
 0x6ec   : > { %5609 = vmatmul.f32.gmra.mxu3 %v5286_v14  ;;  %v5115_v3 = vpop.f32.mrf.mxu0 }
 0x6ed   : > { %v5180_v9 = vpop.f32.mrf.mxu1 }
 0x6ee   : > { %v5230_v4 = vpop.f32.mrf.mxu2 }
 0x6ef   : > { %5429 = vmatmul.f32.gmra.mxu0 %v5106_v55  ;;  %v5295_v60 = vpop.f32.mrf.mxu3 }
 0x6f0   : > { %5494 = vmatmul.f32.gmra.mxu1 %v5171_v21 }
 0x6f3   : > { %5547 = vmatmul.f32.gmra.mxu2 %v5224_v35 }
 0x6f4   : > { %5612 = vmatmul.f32.gmra.mxu3 %v5289_v19  ;;  %v5118_v35 = vpop.f32.mrf.mxu0 }
 0x6f5   : > { %v5183_v19 = vpop.f32.mrf.mxu1 }
 0x6f6   : > { %v5233_v39 = vpop.f32.mrf.mxu2 }
 0x6f7   : > { %5432 = vmatmul.f32.gmra.mxu0 %v5109_v62  ;;  %v5298_v24 = vpop.f32.mrf.mxu3 }
 0x6f8   : > { %5497 = vmatmul.f32.gmra.mxu1 %v5174_v20 }
 0x6fb   : > { %5550 = vmatmul.f32.gmra.mxu2 %v5227_v30 }
 0x6fc   : > { %5615 = vmatmul.f32.gmra.mxu3 %v5292_v23  ;;  %v5121_v55 = vpop.f32.mrf.mxu0 }
 0x6fd   : > { %v5186_v21 = vpop.f32.mrf.mxu1 }
 0x6fe   : > { %v5236_v14 = vpop.f32.mrf.mxu2 }
 0x6ff   : > { %5435 = vmatmul.f32.gmra.mxu0 %v5112_v34  ;;  %v5301_v11 = vpop.f32.mrf.mxu3  ;;  %v5322_v34 = vmul.f32 2.0, %v9166_v13  ;;  %v5339_v13 = vmul.f32 2.0, %v9176_v47 }
 0x700   : > { %5500 = vmatmul.f32.gmra.mxu1 %v5177_v44  ;;  %v5338_v44 = vmul.f32 2.0, %v9168_v42 }
 0x703   : > { %5553 = vmatmul.f32.gmra.mxu2 %v5230_v4 }
 0x704   : > { %5618 = vmatmul.f32.gmra.mxu3 %v5295_v60  ;;  %v5124_v62 = vpop.f32.mrf.mxu0 }
 0x705   : > { %v5189_v20 = vpop.f32.mrf.mxu1 }
 0x706   : > { %v5239_v10 = vpop.f32.mrf.mxu2 }
 0x707   : > { %5438 = vmatmul.f32.gmra.mxu0 %v5115_v3  ;;  %v5304_v40 = vpop.f32.mrf.mxu3 }
 0x708   : > { %5503 = vmatmul.f32.gmra.mxu1 %v5180_v9 }
 0x70b   : > { %5556 = vmatmul.f32.gmra.mxu2 %v5233_v39 }
 0x70c   : > { %5621 = vmatmul.f32.gmra.mxu3 %v5298_v24 }
 0x70e   : > { %v5242_v30 = vpop.f32.mrf.mxu2 }
 0x70f   : > { %5441 = vmatmul.f32.gmra.mxu0 %v5118_v35  ;;  %v5307_v23 = vpop.f32.mrf.mxu3 }
 0x710   : > { %5506 = vmatmul.f32.gmra.mxu1 %v5183_v19 }
 0x713   : > { %5559 = vmatmul.f32.gmra.mxu2 %v5236_v14  ;;  %v5323_v14 = vmul.f32 2.0, %v9174_v38 }
 0x714   : > { %5624 = vmatmul.f32.gmra.mxu3 %v5301_v11 }
 0x716   : > { %v5245_v4 = vpop.f32.mrf.mxu2 }
 0x717   : > { %5444 = vmatmul.f32.gmra.mxu0 %v5121_v55  ;;  %v5310_v60 = vpop.f32.mrf.mxu3  ;;  %v5324_v55 = vmul.f32 2.0, %v9182_v48 }
 0x718   : > { %5509 = vmatmul.f32.gmra.mxu1 %v5186_v21  ;;  %v5340_v21 = vmul.f32 2.0, %v9184_v37 }
 0x71b   : > { %5562 = vmatmul.f32.gmra.mxu2 %v5239_v10 }
 0x71c   : > { %5627 = vmatmul.f32.gmra.mxu3 %v5304_v40 }
 0x71e   : > { %v5248_v10 = vpop.f32.mrf.mxu2 }
 0x71f   : > { %5447 = vmatmul.f32.gmra.mxu0 %v5124_v62  ;;  %v5313_v40 = vpop.f32.mrf.mxu3 }
 0x720   : > { %5512 = vmatmul.f32.gmra.mxu1 %v5189_v20 }
 0x723   : > { %5565 = vmatmul.f32.gmra.mxu2 %v5242_v30 }
 0x724   : > { %5630 = vmatmul.f32.gmra.mxu3 %v5307_v23  ;;  %v5403_v39 = vpop.f32.mrf.mxu0 }
 0x725   : > { %v5468_v24 = vpop.f32.mrf.mxu1  ;;  %v5646_v3 = vsub.f32 %v5322_v34, %v5403_v39 }
 0x726   : > { %v5662_v9 = vsub.f32 %v5338_v44, %v5468_v24  ;;  %v5251_v62 = vpop.f32.mrf.mxu2 }
 0x727   : > { %5710 = vst [vmem:[%s9488_s19] sm:$0xff] %v5646_v3  ;;  %v5316_v20 = vpop.f32.mrf.mxu3  ;;  %v5326_v3 = vmul.f32 2.0, %v9198_v56 }
 0x728   : > { %5726 = vst [vmem:[%s9488_s19 + $0x80] sm:$0xff] %v5662_v9  ;;  %v5342_v9 = vmul.f32 2.0, %v9200_v28 }
 0x72b   : > { %5568 = vmatmul.f32.gmra.mxu2 %v5245_v4  ;;  %v5325_v4 = vmul.f32 2.0, %v9190_v58 }
 0x72c   : > { %5633 = vmatmul.f32.gmra.mxu3 %v5310_v60  ;;  %v5406_v42 = vpop.f32.mrf.mxu0  ;;  %v5341_v60 = vmul.f32 2.0, %v9192_v33 }
 0x72d   : > { %v5471_v11 = vpop.f32.mrf.mxu1  ;;  %v5647_v35 = vsub.f32 %v5323_v14, %v5406_v42  ;;  %v5327_v42 = vmul.f32 2.0, %v9214_v54  ;;  %v5328_v54 = vmul.f32 2.0, %v9230_v51  ;;  %v5329_v51 = vmul.f32 2.0, %v9246_v59 }
 0x72e   : > { %v5663_v19 = vsub.f32 %v5339_v13, %v5471_v11  ;;  %v5254_v39 = vpop.f32.mrf.mxu2  ;;  %v5343_v11 = vmul.f32 2.0, %v9216_v6  ;;  %v5344_v6 = vmul.f32 2.0, %v9232_v45  ;;  %v5345_v45 = vmul.f32 2.0, %v9248_v27 }
 0x72f   : > { %5711 = vst [vmem:[%s9488_s19 + $0x8] sm:$0xff] %v5647_v35  ;;  %v5319_v24 = vpop.f32.mrf.mxu3  ;;  %v5330_v59 = vmul.f32 2.0, %v9262_v2  ;;  %v5346_v27 = vmul.f32 2.0, %v9264_v52  ;;  %v5331_v2 = vmul.f32 2.0, %v9278_v29  ;;  %v5347_v52 = vmul.f32 2.0, %v9280_v41 }
 0x730   : > { %5727 = vst [vmem:[%s9488_s19 + $0x88] sm:$0xff] %v5663_v19  ;;  %v5332_v29 = vmul.f32 2.0, %v9294_v43  ;;  %v5348_v41 = vmul.f32 2.0, %v9296_v17  ;;  %v5333_v43 = vmul.f32 2.0, %v9310_v15  ;;  %v5349_v17 = vmul.f32 2.0, %v9312_v0 }
 0x731   : > { %v5334_v15 = vmul.f32 2.0, %v9326_v46  ;;  %v5350_v0 = vmul.f32 2.0, %v9328_v31  ;;  %v5335_v46 = vmul.f32 2.0, %v9342_v18  ;;  %v10844_v31 = vld [vmem:[#allocation125_spill] sm:$0xff]  ;;  %v10846_v18 = vld [vmem:[#allocation83_spill] sm:$0xff] }
 0x733   : > { %5571 = vmatmul.f32.gmra.mxu2 %v5248_v10  ;;  %v5354_v10 = vmul.f32 2.0, %v10842_v32 }
 0x734   : > { %5636 = vmatmul.f32.gmra.mxu3 %v5313_v40  ;;  %v5409_v38 = vpop.f32.mrf.mxu0  ;;  %v5370_v40 = vmul.f32 2.0, %v10843_v57 }
 0x735   : > { %v5474_v47 = vpop.f32.mrf.mxu1  ;;  %v5648_v30 = vsub.f32 %v5324_v55, %v5409_v38 }
 0x736   : > { %v5664_v23 = vsub.f32 %v5340_v21, %v5474_v47 }
 0x737   : > { %5712 = vst [vmem:[%s9488_s19 + $0x10] sm:$0xff] %v5648_v30 }
 0x738   : > { %5728 = vst [vmem:[%s9488_s19 + $0x90] sm:$0xff] %v5664_v23 }
 0x73b   : > { %5574 = vmatmul.f32.gmra.mxu2 %v5251_v62  ;;  %v5355_v62 = vmul.f32 2.0, %v10840_v8 }
 0x73c   : > { %5639 = vmatmul.f32.gmra.mxu3 %v5316_v20  ;;  %v5412_v48 = vpop.f32.mrf.mxu0  ;;  %v5371_v20 = vmul.f32 2.0, %v10841_v16 }
 0x73d   : > { %v5477_v37 = vpop.f32.mrf.mxu1  ;;  %v5649_v34 = vsub.f32 %v5325_v4, %v5412_v48 }
 0x73e   : > { %v5665_v44 = vsub.f32 %v5341_v60, %v5477_v37 }
 0x73f   : > { %5713 = vst [vmem:[%s9488_s19 + $0x18] sm:$0xff] %v5649_v34 }
 0x740   : > { %5729 = vst [vmem:[%s9488_s19 + $0x98] sm:$0xff] %v5665_v44 }
 0x743   : > { %5577 = vmatmul.f32.gmra.mxu2 %v5254_v39  ;;  %v5356_v39 = vmul.f32 2.0, %v10838_v22 }
 0x744   : > { %5642 = vmatmul.f32.gmra.mxu3 %v5319_v24  ;;  %v5415_v58 = vpop.f32.mrf.mxu0  ;;  %v5372_v24 = vmul.f32 2.0, %v10839_v61 }
 0x745   : > { %v5480_v33 = vpop.f32.mrf.mxu1  ;;  %v5650_v14 = vsub.f32 %v5326_v3, %v5415_v58 }
 0x746   : > { %v5666_v13 = vsub.f32 %v5342_v9, %v5480_v33 }
 0x747   : > { %5714 = vst [vmem:[%s9488_s19 + $0x20] sm:$0xff] %v5650_v14 }
 0x748   : > { %5730 = vst [vmem:[%s9488_s19 + $0xa0] sm:$0xff] %v5666_v13 }
 0x74c   : > { %v5418_v35 = vpop.f32.mrf.mxu0 }
 0x74d   : > { %v5483_v56 = vpop.f32.mrf.mxu1  ;;  %v5651_v19 = vsub.f32 %v5327_v42, %v5418_v35  ;;  %v5357_v42 = vmul.f32 2.0, %v10836_v53 }
 0x74e   : > { %v5667_v28 = vsub.f32 %v5343_v11, %v5483_v56  ;;  %v5533_v55 = vpop.f32.mrf.mxu2  ;;  %v5373_v11 = vmul.f32 2.0, %v10837_v36 }
 0x74f   : > { %v5598_v21 = vpop.f32.mrf.mxu3  ;;  %5715 = vst [vmem:[%s9488_s19 + $0x28] sm:$0xff] %v5651_v19  ;;  %v5678_v38 = vsub.f32 %v5354_v10, %v5533_v55  ;;  %v5358_v55 = vmul.f32 2.0, %v9270_v26 }
 0x750   : > { %v5694_v47 = vsub.f32 %v5370_v40, %v5598_v21  ;;  %5731 = vst [vmem:[%s9488_s19 + $0xa8] sm:$0xff] %v5667_v28  ;;  %v5374_v21 = vmul.f32 2.0, %v10835_v5 }
 0x751   : > { %5742 = vst [vmem:[%s9488_s19 + $0x100] sm:$0xff] %v5678_v38 }
 0x752   : > { %5758 = vst [vmem:[%s9488_s19 + $0x180] sm:$0xff] %v5694_v47 }
 0x754   : > { %v5421_v30 = vpop.f32.mrf.mxu0 }
 0x755   : > { %v5486_v32 = vpop.f32.mrf.mxu1  ;;  %v5652_v23 = vsub.f32 %v5328_v54, %v5421_v30 }
 0x756   : > { %v5668_v57 = vsub.f32 %v5344_v6, %v5486_v32  ;;  %v5536_v4 = vpop.f32.mrf.mxu2 }
 0x757   : > { %v5601_v60 = vpop.f32.mrf.mxu3  ;;  %5716 = vst [vmem:[%s9488_s19 + $0x30] sm:$0xff] %v5652_v23  ;;  %v5679_v48 = vsub.f32 %v5355_v62, %v5536_v4  ;;  %v5359_v23 = vmul.f32 2.0, %v9286_v7 }
 0x758   : > { %v5695_v37 = vsub.f32 %v5371_v20, %v5601_v60  ;;  %5732 = vst [vmem:[%s9488_s19 + $0xb0] sm:$0xff] %v5668_v57  ;;  %v5375_v57 = vmul.f32 2.0, %v9288_v49 }
 0x759   : > { %5743 = vst [vmem:[%s9488_s19 + $0x108] sm:$0xff] %v5679_v48 }
 0x75a   : > { %5759 = vst [vmem:[%s9488_s19 + $0x188] sm:$0xff] %v5695_v37 }
 0x75c   : > { %v5424_v34 = vpop.f32.mrf.mxu0 }
 0x75d   : > { %v5489_v8 = vpop.f32.mrf.mxu1  ;;  %v5653_v44 = vsub.f32 %v5329_v51, %v5424_v34  ;;  %v5360_v51 = vmul.f32 2.0, %v9302_v1 }
 0x75e   : > { %v5669_v16 = vsub.f32 %v5345_v45, %v5489_v8  ;;  %v5539_v3 = vpop.f32.mrf.mxu2  ;;  %v5376_v45 = vmul.f32 2.0, %v9304_v25 }
 0x75f   : > { %v5604_v9 = vpop.f32.mrf.mxu3  ;;  %5717 = vst [vmem:[%s9488_s19 + $0x38] sm:$0xff] %v5653_v44  ;;  %v5680_v58 = vsub.f32 %v5356_v39, %v5539_v3  ;;  %v5361_v3 = vmul.f32 2.0, %v9318_v63 }
 0x760   : > { %v5696_v33 = vsub.f32 %v5372_v24, %v5604_v9  ;;  %5733 = vst [vmem:[%s9488_s19 + $0xb8] sm:$0xff] %v5669_v16  ;;  %v5377_v9 = vmul.f32 2.0, %v9320_v12 }
 0x761   : > { %5744 = vst [vmem:[%s9488_s19 + $0x110] sm:$0xff] %v5680_v58 }
 0x762   : > { %5760 = vst [vmem:[%s9488_s19 + $0x190] sm:$0xff] %v5696_v33 }
 0x764   : > { %v5427_v14 = vpop.f32.mrf.mxu0 }
 0x765   : > { %v5492_v22 = vpop.f32.mrf.mxu1  ;;  %v5654_v13 = vsub.f32 %v5330_v59, %v5427_v14  ;;  %v5351_v14 = vmul.f32 2.0, %v10844_v31 }
 0x766   : > { %v5670_v61 = vsub.f32 %v5346_v27, %v5492_v22  ;;  %v5542_v35 = vpop.f32.mrf.mxu2 }
 0x767   : > { %v5607_v56 = vpop.f32.mrf.mxu3  ;;  %5718 = vst [vmem:[%s9488_s19 + $0x40] sm:$0xff] %v5654_v13  ;;  %v5681_v19 = vsub.f32 %v5357_v42, %v5542_v35  ;;  %v10845_v42 = vld [vmem:[#allocation78_spill] sm:$0xff] }
 0x768   : > { %v5697_v28 = vsub.f32 %v5373_v11, %v5607_v56  ;;  %5734 = vst [vmem:[%s9488_s19 + $0xc0] sm:$0xff] %v5670_v61  ;;  %v5362_v61 = vmul.f32 2.0, %v9334_v50  ;;  %v5378_v11 = vmul.f32 2.0, %v10845_v42  ;;  %v10861_v42 = vld [vmem:[#allocation39_spill] sm:$0xff] }
 0x769   : > { %5745 = vst [vmem:[%s9488_s19 + $0x118] sm:$0xff] %v5681_v19 }
 0x76a   : > { %5761 = vst [vmem:[%s9488_s19 + $0x198] sm:$0xff] %v5697_v28 }
 0x76c   : > { %v5430_v10 = vpop.f32.mrf.mxu0 }
 0x76d   : > { %v5495_v53 = vpop.f32.mrf.mxu1  ;;  %v5655_v40 = vsub.f32 %v5331_v2, %v5430_v10  ;;  %v5336_v2 = vmul.f32 2.0, %v10846_v18  ;;  %v10862_v18 = vld [vmem:[#allocation34_spill] sm:$0xff] }
 0x76e   : > { %v5671_v36 = vsub.f32 %v5347_v52, %v5495_v53  ;;  %v5545_v38 = vpop.f32.mrf.mxu2  ;;  %v10847_v52 = vld [vmem:[#allocation53_spill] sm:$0xff] }
 0x76f   : > { %v5610_v47 = vpop.f32.mrf.mxu3  ;;  %5719 = vst [vmem:[%s9488_s19 + $0x48] sm:$0xff] %v5655_v40  ;;  %v5682_v54 = vsub.f32 %v5358_v55, %v5545_v38  ;;  %v5352_v10 = vmul.f32 2.0, %v10847_v52  ;;  %v10848_v55 = vld [vmem:[#allocation126_spill] sm:$0xff]  ;;  %v10863_v52 = vld [vmem:[#allocation35_spill] sm:$0xff] }
 0x770   : > { %v5698_v6 = vsub.f32 %v5374_v21, %v5610_v47  ;;  %5735 = vst [vmem:[%s9488_s19 + $0xc8] sm:$0xff] %v5671_v36  ;;  %v5363_v21 = vmul.f32 2.0, %v10848_v55  ;;  %v10849_v38 = vld [vmem:[#allocation86_spill] sm:$0xff] }
 0x771   : > { %5746 = vst [vmem:[%s9488_s19 + $0x120] sm:$0xff] %v5682_v54  ;;  %v5379_v47 = vmul.f32 2.0, %v10849_v38 }
 0x772   : > { %5762 = vst [vmem:[%s9488_s19 + $0x1a0] sm:$0xff] %v5698_v6 }
 0x774   : > { %v5433_v30 = vpop.f32.mrf.mxu0 }
 0x775   : > { %v5498_v26 = vpop.f32.mrf.mxu1  ;;  %v5656_v32 = vsub.f32 %v5332_v29, %v5433_v30  ;;  %v10850_v30 = vld [vmem:[#allocation168_spill] sm:$0xff] }
 0x776   : > { %v5672_v5 = vsub.f32 %v5348_v41, %v5498_v26  ;;  %v5548_v62 = vpop.f32.mrf.mxu2  ;;  %v5337_v26 = vmul.f32 2.0, %v10850_v30 }
 0x777   : > { %v5613_v20 = vpop.f32.mrf.mxu3  ;;  %5720 = vst [vmem:[%s9488_s19 + $0x50] sm:$0xff] %v5656_v32  ;;  %v5683_v4 = vsub.f32 %v5359_v23, %v5548_v62  ;;  %v10851_v32 = vld [vmem:[#allocation171_spill] sm:$0xff] }
 0x778   : > { %v5699_v60 = vsub.f32 %v5375_v57, %v5613_v20  ;;  %5736 = vst [vmem:[%s9488_s19 + $0xd0] sm:$0xff] %v5672_v5  ;;  %v5353_v5 = vmul.f32 2.0, %v10851_v32 }
 0x779   : > { %5747 = vst [vmem:[%s9488_s19 + $0x128] sm:$0xff] %v5683_v4  ;;  %v10852_v4 = vld [vmem:[#allocation134_spill] sm:$0xff] }
 0x77a   : > { %5763 = vst [vmem:[%s9488_s19 + $0x1a8] sm:$0xff] %v5699_v60  ;;  %v5364_v60 = vmul.f32 2.0, %v10852_v4 }
 0x77c   : > { %v5436_v48 = vpop.f32.mrf.mxu0 }
 0x77d   : > { %v5501_v7 = vpop.f32.mrf.mxu1  ;;  %v5657_v37 = vsub.f32 %v5333_v43, %v5436_v48  ;;  %v10853_v43 = vld [vmem:[#allocation135_spill] sm:$0xff] }
 0x77e   : > { %v5673_v49 = vsub.f32 %v5349_v17, %v5501_v7  ;;  %v5551_v34 = vpop.f32.mrf.mxu2  ;;  %v5380_v17 = vmul.f32 2.0, %v10853_v43 }
 0x77f   : > { %v5616_v8 = vpop.f32.mrf.mxu3  ;;  %5721 = vst [vmem:[%s9488_s19 + $0x58] sm:$0xff] %v5657_v37  ;;  %v5684_v44 = vsub.f32 %v5360_v51, %v5551_v34  ;;  %v10854_v51 = vld [vmem:[#allocation164_spill] sm:$0xff]  ;;  %v10855_v34 = vld [vmem:[#allocation169_spill] sm:$0xff] }
 0x780   : > { %v5700_v16 = vsub.f32 %v5376_v45, %v5616_v8  ;;  %5737 = vst [vmem:[%s9488_s19 + $0xd8] sm:$0xff] %v5673_v49  ;;  %v5365_v45 = vmul.f32 2.0, %v10854_v51  ;;  %v5381_v8 = vmul.f32 2.0, %v10855_v34 }
 0x781   : > { %5748 = vst [vmem:[%s9488_s19 + $0x130] sm:$0xff] %v5684_v44 }
 0x782   : > { %5764 = vst [vmem:[%s9488_s19 + $0x1b0] sm:$0xff] %v5700_v16 }
 0x784   : > { %v5439_v39 = vpop.f32.mrf.mxu0 }
 0x785   : > { %v5504_v1 = vpop.f32.mrf.mxu1  ;;  %v5658_v24 = vsub.f32 %v5334_v15, %v5439_v39  ;;  %v10856_v39 = vld [vmem:[#allocation170_spill] sm:$0xff] }
 0x786   : > { %v5674_v25 = vsub.f32 %v5350_v0, %v5504_v1  ;;  %v5554_v58 = vpop.f32.mrf.mxu2  ;;  %v5366_v1 = vmul.f32 2.0, %v10856_v39 }
 0x787   : > { %v5619_v33 = vpop.f32.mrf.mxu3  ;;  %5722 = vst [vmem:[%s9488_s19 + $0x60] sm:$0xff] %v5658_v24  ;;  %v5685_v59 = vsub.f32 %v5361_v3, %v5554_v58  ;;  %v10857_v24 = vld [vmem:[#allocation167_spill] sm:$0xff] }
 0x788   : > { %v5701_v27 = vsub.f32 %v5377_v9, %v5619_v33  ;;  %5738 = vst [vmem:[%s9488_s19 + $0xe0] sm:$0xff] %v5674_v25  ;;  %v5382_v25 = vmul.f32 2.0, %v10857_v24 }
 0x789   : > { %5749 = vst [vmem:[%s9488_s19 + $0x138] sm:$0xff] %v5685_v59  ;;  %v10858_v59 = vld [vmem:[#allocation36_spill] sm:$0xff] }
 0x78a   : > { %5765 = vst [vmem:[%s9488_s19 + $0x1b8] sm:$0xff] %v5701_v27  ;;  %v5367_v27 = vmul.f32 2.0, %v10858_v59 }
 0x78c   : > { %v5442_v22 = vpop.f32.mrf.mxu0 }
 0x78d   : > { %v5507_v63 = vpop.f32.mrf.mxu1  ;;  %v5659_v13 = vsub.f32 %v5335_v46, %v5442_v22  ;;  %v10859_v46 = vld [vmem:[#allocation165_spill] sm:$0xff] }
 0x78e   : > { %v5675_v12 = vsub.f32 %v5351_v14, %v5507_v63  ;;  %v5557_v35 = vpop.f32.mrf.mxu2  ;;  %v5383_v31 = vmul.f32 2.0, %v10859_v46 }
 0x78f   : > { %v5622_v56 = vpop.f32.mrf.mxu3  ;;  %5723 = vst [vmem:[%s9488_s19 + $0x68] sm:$0xff] %v5659_v13  ;;  %v5686_v19 = vsub.f32 %v5362_v61, %v5557_v35 }
 0x790   : > { %v5702_v28 = vsub.f32 %v5378_v11, %v5622_v56  ;;  %5739 = vst [vmem:[%s9488_s19 + $0xe8] sm:$0xff] %v5675_v12  ;;  %v10860_v12 = vld [vmem:[#allocation166_spill] sm:$0xff]  ;;  %v5384_v11 = vmul.f32 2.0, %v10861_v42 }
 0x791   : > { %5750 = vst [vmem:[%s9488_s19 + $0x140] sm:$0xff] %v5686_v19  ;;  %v5368_v61 = vmul.f32 2.0, %v10860_v12 }
 0x792   : > { %5766 = vst [vmem:[%s9488_s19 + $0x1c0] sm:$0xff] %v5702_v28 }
 0x794   : > { %v5445_v53 = vpop.f32.mrf.mxu0 }
 0x795   : > { %v5510_v50 = vpop.f32.mrf.mxu1  ;;  %v5660_v40 = vsub.f32 %v5336_v2, %v5445_v53  ;;  %v5369_v2 = vmul.f32 2.0, %v10862_v18 }
 0x796   : > { %v5676_v36 = vsub.f32 %v5352_v10, %v5510_v50  ;;  %v5560_v54 = vpop.f32.mrf.mxu2  ;;  %v5385_v10 = vmul.f32 2.0, %v10863_v52 }
 0x797   : > { %v5625_v6 = vpop.f32.mrf.mxu3  ;;  %5724 = vst [vmem:[%s9488_s19 + $0x70] sm:$0xff] %v5660_v40  ;;  %v5687_v29 = vsub.f32 %v5363_v21, %v5560_v54 }
 0x798   : > { %v5703_v41 = vsub.f32 %v5379_v47, %v5625_v6  ;;  %5740 = vst [vmem:[%s9488_s19 + $0xf0] sm:$0xff] %v5676_v36 }
 0x799   : > { %5751 = vst [vmem:[%s9488_s19 + $0x148] sm:$0xff] %v5687_v29 }
 0x79a   : > { %5767 = vst [vmem:[%s9488_s19 + $0x1c8] sm:$0xff] %v5703_v41 }
 0x79c   : > { %v5448_v23 = vpop.f32.mrf.mxu0 }
 0x79d   : > { %v5513_v57 = vpop.f32.mrf.mxu1  ;;  %v5661_v62 = vsub.f32 %v5337_v26, %v5448_v23 }
 0x79e   : > { %v5677_v20 = vsub.f32 %v5353_v5, %v5513_v57  ;;  %v5563_v48 = vpop.f32.mrf.mxu2 }
 0x79f   : > { %v5628_v7 = vpop.f32.mrf.mxu3  ;;  %5725 = vst [vmem:[%s9488_s19 + $0x78] sm:$0xff] %v5661_v62  ;;  %v5688_v37 = vsub.f32 %v5364_v60, %v5563_v48 }
 0x7a0   : > { %v5704_v49 = vsub.f32 %v5380_v17, %v5628_v7  ;;  %5741 = vst [vmem:[%s9488_s19 + $0xf8] sm:$0xff] %v5677_v20 }
 0x7a1   : > { %5752 = vst [vmem:[%s9488_s19 + $0x150] sm:$0xff] %v5688_v37 }
 0x7a2   : > { %5768 = vst [vmem:[%s9488_s19 + $0x1d0] sm:$0xff] %v5704_v49 }
 0x7a6   : > { %v5566_v44 = vpop.f32.mrf.mxu2 }
 0x7a7   : > { %v5631_v16 = vpop.f32.mrf.mxu3  ;;  %v5689_v15 = vsub.f32 %v5365_v45, %v5566_v44 }
 0x7a8   : > { %v5705_v0 = vsub.f32 %v5381_v8, %v5631_v16 }
 0x7a9   : > { %5753 = vst [vmem:[%s9488_s19 + $0x158] sm:$0xff] %v5689_v15 }
 0x7aa   : > { %5769 = vst [vmem:[%s9488_s19 + $0x1d8] sm:$0xff] %v5705_v0 }
 0x7ae   : > { %v5569_v3 = vpop.f32.mrf.mxu2 }
 0x7af   : > { %v5634_v9 = vpop.f32.mrf.mxu3  ;;  %v5690_v58 = vsub.f32 %v5366_v1, %v5569_v3 }
 0x7b0   : > { %v5706_v33 = vsub.f32 %v5382_v25, %v5634_v9 }
 0x7b1   : > { %5754 = vst [vmem:[%s9488_s19 + $0x160] sm:$0xff] %v5690_v58 }
 0x7b2   : > { %5770 = vst [vmem:[%s9488_s19 + $0x1e0] sm:$0xff] %v5706_v33 }
 0x7b6   : > { %v5572_v14 = vpop.f32.mrf.mxu2 }
 0x7b7   : > { %v5637_v22 = vpop.f32.mrf.mxu3  ;;  %v5691_v63 = vsub.f32 %v5367_v27, %v5572_v14 }
 0x7b8   : > { %v5707_v13 = vsub.f32 %v5383_v31, %v5637_v22 }
 0x7b9   : > { %5755 = vst [vmem:[%s9488_s19 + $0x168] sm:$0xff] %v5691_v63 }
 0x7ba   : > { %5771 = vst [vmem:[%s9488_s19 + $0x1e8] sm:$0xff] %v5707_v13 }
 0x7be   : > { %v5575_v35 = vpop.f32.mrf.mxu2 }
 0x7bf   : > { %v5640_v56 = vpop.f32.mrf.mxu3  ;;  %v5692_v19 = vsub.f32 %v5368_v61, %v5575_v35 }
 0x7c0   : > { %v5708_v28 = vsub.f32 %v5384_v11, %v5640_v56 }
 0x7c1   : > { %5756 = vst [vmem:[%s9488_s19 + $0x170] sm:$0xff] %v5692_v19 }
 0x7c2   : > { %5772 = vst [vmem:[%s9488_s19 + $0x1f0] sm:$0xff] %v5708_v28 }
 0x7c6   : > { %v5578_v53 = vpop.f32.mrf.mxu2 }
 0x7c7   : > { %v5643_v50 = vpop.f32.mrf.mxu3  ;;  %v5693_v40 = vsub.f32 %v5369_v2, %v5578_v53 }
 0x7c8   : > { %v5709_v36 = vsub.f32 %v5385_v10, %v5643_v50 }
 0x7c9   : > { %5757 = vst [vmem:[%s9488_s19 + $0x178] sm:$0xff] %v5693_v40 }
 0x7ca   : > { %5773 = vst [vmem:[%s9488_s19 + $0x1f8] sm:$0xff] %v5709_v36 }
 0x7cb   : > { %6332 = shalt.err (!%p6329_p10)
}
 0x7cc   : > { %s6380_s7 = smov 128   ;;  %s6381_s11 = smov 8  }
 0x7cd   : > { %5966 = dma.vmem_to_hbm [thread:$0]  (%p6474_p3), %s5789_s22, 8192, %s5791_s23, %s5775_s0, %s6380_s7, %s6380_s7, %s6381_s11  }
 0x7ce PF: > { %s5805_s12 = sand.u32 1, %s6363_s14   ;;  %p10864_p12 = scmp.ge.s32.totalorder %s6375_s17, 2 }
 0x7cf   : > { %s5806_s18 = scalar_lea.sflag [#allocation5], %s5805_s12 }
 0x7d0   : > { %p5977_p13 = pnand %p10864_p12, %p6440_p6 }
 0x7d2   : > { %p5978_p0 = pneg %p5977_p13 }
 0x7d4   : > { %6358 = dma.done.wait (%p5978_p0), %s5806_s18, 8192  }
 0x7d5   : > { %6360 = vsyncadd (%p5978_p0), %s5806_s18, 4294959104  ;;  %p18_p5 = scmp.ge.s32.totalorder %s6458_s27, 4   ;;  %s10865_s14 = smov %s6367_s15 }
 0x7d6   : > { %s10866_s15 = smov %s6371_s16  ;;  %s10867_s16 = smov %s6470_s5 }
 0x7d7   : > { %s10868_s17 = smov %s6458_s27  ;;  %20 = sbr.rel (!%p18_p5) target bundleno = 8 (0x8), region = 81 }
 0x7dc   :  { %5812 = vsyncpa [#allocation4], 1 }
 0x7dd   :  { %5814 = vsyncpa [#allocation4 + $0x1], 1 }
 0x7de   :  { %5815 = vsyncpa [#allocation7], 1 }
 0x7df   :  { %5816 = vsyncpa [#allocation5], 1 }
 0x7e0   :  { %5818 = vsyncpa [#allocation5 + $0x1], 1 }

</bundles_post_ra>
